<compile_context>
chip_gen: v6e
topology: v6e:2x2x1
jax: 0.10.0
libtpu: 0.0.40
codegen_flags: <defaults>
</compile_context>

<pallas_src>
import functools

import numpy as np
import jax
import jax.numpy as jnp
from jax.experimental import pallas as pl
from jax.experimental.pallas import tpu as pltpu

POOL_SIDES = (1, 2, 6)


# ----------------------------------------------------------------------------
# Fused kernel: stem matmul -> ReLU -> hierarchical SPP max-pools -> FC accum
# Processes BB batch elements per grid step; writes their logits as one row.
# ----------------------------------------------------------------------------
def _fused_kernel(x_ref, wst_ref, bst_ref, w1_ref, w2_ref, w6_ref, fcb_ref,
                  o_ref, *, H, W, BB):
    # x_ref:   (BB, Cin, H*W) bf16   batch block, channels on sublanes,
    #                                spatial lane-dense (plain NCHW reshape)
    # wst_ref: (Cin, C) bf16         stem weight;  bst_ref: (1, C) f32 bias
    # w1_ref:  (1, C)   f32          fc weights for the 1x1 pool cell
    # w2_ref:  (4, C)   f32          fc weights per 2x2 pool cell (row = i*2+j)
    # w6_ref:  (36, C)  f32          fc weights per 6x6 pool cell (row = i*6+j)
    # fcb_ref: (1,) in SMEM          fc bias scalar
    # o_ref:   (1, 1, BB)            logits for this batch block (lane-dense)
    C = wst_ref.shape[1]
    kh, kw = H // 6, W // 6

    # Hoist grid-resident weight loads out of the per-element loop.
    wst = wst_ref[...]
    bst = bst_ref[...]
    w1 = w1_ref[...]
    w2 = w2_ref[...]
    w6 = w6_ref[...]
    bias = fcb_ref[0]

    lane = jax.lax.broadcasted_iota(jnp.int32, (1, 1, BB), 2)
    out_row = jnp.zeros((1, 1, BB), jnp.float32)

    # Static unroll over the small batch block.
    # TODO(synk): for large BB switch to lax.fori_loop to bound live ranges.
    for b in range(BB):
        xb = x_ref[b]                                      # (Cin, H*W) bf16

        # ---- stand-in encoder stem: 1x1 conv + ReLU ------------------------
        # Transposed-LHS contraction over Cin (K=3), f32 accumulation.
        feat = jax.lax.dot_general(
            xb, wst,
            dimension_numbers=(((0,), (0,)), ((), ())),
            preferred_element_type=jnp.float32)            # (H*W, C) f32
        feat = jnp.maximum(feat + bst, 0.0)

        # ---- hierarchical adaptive max pooling (C lane-dense) --------------
        # 6x6 pool: max over each (kh, kw) spatial window.
        colmax = feat.reshape(H * 6, kw, C).max(axis=1)    # (H*6, C)
        p6 = colmax.reshape(6, kh, 6, C).max(axis=1)       # (6, 6, C)
        p6f = p6.reshape(36, C)
        # 2x2 pool = max over 3x3 groups of the 6x6 pool (exact: 6|H, 6|W).
        r2 = p6f.reshape(12, 3, C).max(axis=1)             # (12, C)
        p2f = r2.reshape(2, 3, 2, C).max(axis=1).reshape(4, C)
        # 1x1 pool = global max.
        p1 = p2f.max(axis=0, keepdims=True)                # (1, C)

        # ---- spp_fc: sublane reduces per pool, ONE cross-lane reduce -------
        row = (p1 * w1
               + (p2f * w2).sum(axis=0, keepdims=True)
               + (p6f * w6).sum(axis=0, keepdims=True))    # (1, C)
        y = jnp.sum(row) + bias                            # scalar
        out_row = jnp.where(lane == b, y, out_row)

    o_ref[...] = out_row


# ----------------------------------------------------------------------------
# Wrapper: layout plumbing + one fused, batch-blocked pallas_call
# ----------------------------------------------------------------------------
def deepfake_spp_classifier(x, stem_w, stem_b, fc_w, fc_b, *, block_b=4):
    """x: (B, Cin, H, W) NCHW image. Returns (B, 1) logits."""
    B, Cin, H, W = x.shape
    C = stem_w.shape[1]
    assert H % 6 == 0 and W % 6 == 0, "hierarchical SPP needs 6 | H and 6 | W"
    # TODO(synk): spatial sizes not divisible by 6 need the general per-window
    # AdaptiveMaxPool2d bounds instead of the exact hierarchical pooling.

    BB = block_b
    n_blocks = -(-B // BB)
    B_pad = n_blocks * BB

    # Layout plumbing (tiny, one-time): dense (B, Cin, H*W) bf16 input (plain
    # NCHW reshape, no transpose), bf16 stem weight, fc weight re-split.
    x_flat = x.reshape(B, Cin, H * W).astype(jnp.bfloat16)
    if B_pad != B:
        x_flat = jnp.pad(x_flat, ((0, B_pad - B), (0, 0), (0, 0)))
    wst = stem_w.astype(jnp.bfloat16)                      # (Cin, C)
    bst = stem_b.reshape(1, C).astype(jnp.float32)
    # fc_w is (1, F) in PyTorch flatten order (pool sides 1, 2, 6; each pooled
    # (B, C, n, n).view(B, -1) is channel-major, cells row-major).
    fc_flat = fc_w.reshape(-1).astype(jnp.float32)
    w1 = fc_flat[:C].reshape(1, C)                         # (1, C)
    w2 = fc_flat[C:5 * C].reshape(C, 4).T                  # (4, C), row = cell
    w6 = fc_flat[5 * C:41 * C].reshape(C, 36).T            # (36, C), row = cell
    fcb = fc_b.reshape(1).astype(jnp.float32)

    out = pl.pallas_call(
        functools.partial(_fused_kernel, H=H, W=W, BB=BB),
        out_shape=jax.ShapeDtypeStruct((n_blocks, 1, BB), jnp.float32),
        grid=(n_blocks,),
        in_specs=[
            pl.BlockSpec((BB, Cin, H * W), lambda i: (i, 0, 0)),  # image block
            pl.BlockSpec((Cin, C), lambda i: (0, 0)),             # stem weight
            pl.BlockSpec((1, C), lambda i: (0, 0)),               # stem bias
            pl.BlockSpec((1, C), lambda i: (0, 0)),               # fc w (1x1)
            pl.BlockSpec((4, C), lambda i: (0, 0)),               # fc w (2x2)
            pl.BlockSpec((36, C), lambda i: (0, 0)),              # fc w (6x6)
            pl.BlockSpec(memory_space=pltpu.MemorySpace.SMEM),    # fc bias
        ],
        out_specs=pl.BlockSpec((1, 1, BB), lambda i: (i, 0, 0)),
        compiler_params=pltpu.CompilerParams(
            dimension_semantics=("parallel",),      # batch-block axis -> 2 TCs on v7x
            vmem_limit_bytes=48 * 1024 * 1024,      # re-derive per gen (v7x<=48M)
        ),
    )(x_flat, wst, bst, w1, w2, w6, fcb)

    return out.reshape(B_pad)[:B].reshape(B, 1)


# ----------------------------------------------------------------------------
# Pure-NumPy reference (PyTorch semantics) for verification
# ----------------------------------------------------------------------------
def _adaptive_windows(size, n):
    # PyTorch AdaptiveMaxPool2d window bounds.
    return [((i * size) // n, -((-(i + 1) * size) // n)) for i in range(n)]


def reference(x, stem_w, stem_b, fc_w, fc_b):
    x = np.asarray(x, np.float32)
    B, Cin, H, W = x.shape
    xm = np.transpose(x, (0, 2, 3, 1)).reshape(-1, Cin)
    feat = np.maximum(xm @ np.asarray(stem_w, np.float32)
                      + np.asarray(stem_b, np.float32), 0.0)
    Cout = feat.shape[-1]
    feat = np.transpose(feat.reshape(B, H, W, Cout), (0, 3, 1, 2))
    blocks = []
    for n in POOL_SIDES:
        h_wins = _adaptive_windows(H, n)
        w_wins = _adaptive_windows(W, n)
        pooled = np.zeros((B, Cout, n, n), np.float32)
        for i, (hs, he) in enumerate(h_wins):
            for j, (ws, we) in enumerate(w_wins):
                pooled[:, :, i, j] = feat[:, :, hs:he, ws:we].max(axis=(2, 3))
        blocks.append(pooled.reshape(B, -1))
    spp = np.concatenate(blocks, axis=1)
    return spp @ np.asarray(fc_w, np.float32).T + np.asarray(fc_b, np.float32)


if __name__ == "__main__":
    key = jax.random.PRNGKey(0)
    k1, k2, k3, k4, k5 = jax.random.split(key, 5)

    # Small shapes: batch=8 (block_b=4 -> grid of 2, even & >=2 for v7x),
    # image channels=3, spatial 24x24 (divisible by 6), stand-in encoder
    # feature width 128 (lane-dense; real b2 gives 1408).
    B, Cin, H, W = 8, 3, 24, 24
    C_feat = 128
    F = C_feat * sum(n * n for n in POOL_SIDES)   # 128 * 41 = 5248

    x = jax.random.normal(k1, (B, Cin, H, W), jnp.float32)
    stem_w = jax.random.normal(k2, (Cin, C_feat), jnp.float32) * 0.1
    stem_b = jax.random.normal(k3, (C_feat,), jnp.float32) * 0.1
    fc_w = jax.random.normal(k4, (1, F), jnp.float32) * 0.02
    fc_b = jax.random.normal(k5, (1,), jnp.float32) * 0.02

    fwd = jax.jit(deepfake_spp_classifier)
    out = jax.block_until_ready(fwd(x, stem_w, stem_b, fc_w, fc_b))

    # The kernel feeds the stem matmul bf16 operands (f32 accumulation), as
    # required for v5e's bf16-only MXU; the reference uses the same rounded
    # stem operands so that SPP + spp_fc (the actual module head) is compared
    # at full f32 precision.
    x_q = np.asarray(jnp.asarray(x).astype(jnp.bfloat16).astype(jnp.float32))
    w_q = np.asarray(jnp.asarray(stem_w).astype(jnp.bfloat16).astype(jnp.float32))
    ref = reference(x_q, w_q, stem_b, fc_w, fc_b)

    assert out.shape == (B, 1), out.shape
    np.testing.assert_allclose(np.asarray(out), ref, rtol=2e-3, atol=2e-3)
    print("KERNEL_OK")
</pallas_src>

<mosaic_0001>
module attributes {stable_mosaic.version = 11 : i64} {
  func.func @_fused_kernel(%arg0: i32, %arg1: memref<4x3x576xbf16, #tpu.memory_space<vmem>>, %arg2: memref<3x128xbf16, #tpu.memory_space<vmem>>, %arg3: memref<1x128xf32, #tpu.memory_space<vmem>>, %arg4: memref<1x128xf32, #tpu.memory_space<vmem>>, %arg5: memref<4x128xf32, #tpu.memory_space<vmem>>, %arg6: memref<36x128xf32, #tpu.memory_space<vmem>>, %arg7: memref<1xf32, #tpu.memory_space<smem>>, %arg8: memref<1x1x4xf32, #tpu.memory_space<vmem>>) attributes {dimension_semantics = [#tpu.dimension_semantics<parallel>], iteration_bounds = array<i64: 2>, scalar_prefetch = 0 : i64, scratch_operands = 0 : i64, tpu.core_type = #tpu.core_type<tc>, window_params = [{transform_indices = @transform_0, window_bounds = array<i64: 4, 3, 576>}, {pipeline_mode = #tpu.pipeline_mode<synchronous>, transform_indices = @transform_1, window_bounds = array<i64: 3, 128>}, {pipeline_mode = #tpu.pipeline_mode<synchronous>, transform_indices = @transform_2, window_bounds = array<i64: 1, 128>}, {pipeline_mode = #tpu.pipeline_mode<synchronous>, transform_indices = @transform_3, window_bounds = array<i64: 1, 128>}, {pipeline_mode = #tpu.pipeline_mode<synchronous>, transform_indices = @transform_4, window_bounds = array<i64: 4, 128>}, {pipeline_mode = #tpu.pipeline_mode<synchronous>, transform_indices = @transform_5, window_bounds = array<i64: 36, 128>}, {transform_indices = @transform_6, window_bounds = array<i64: 1>}, {transform_indices = @transform_7, window_bounds = array<i64: 1, 1, 4>}]} {
    %c0 = arith.constant 0 : index
    %c0_0 = arith.constant 0 : index
    %0 = vector.load %arg2[%c0, %c0_0] : memref<3x128xbf16, #tpu.memory_space<vmem>>, vector<3x128xbf16>
    %c0_1 = arith.constant 0 : index
    %c0_2 = arith.constant 0 : index
    %1 = vector.load %arg3[%c0_1, %c0_2] : memref<1x128xf32, #tpu.memory_space<vmem>>, vector<1x128xf32>
    %c0_3 = arith.constant 0 : index
    %c0_4 = arith.constant 0 : index
    %2 = vector.load %arg4[%c0_3, %c0_4] : memref<1x128xf32, #tpu.memory_space<vmem>>, vector<1x128xf32>
    %c0_5 = arith.constant 0 : index
    %c0_6 = arith.constant 0 : index
    %3 = vector.load %arg5[%c0_5, %c0_6] : memref<4x128xf32, #tpu.memory_space<vmem>>, vector<4x128xf32>
    %c0_7 = arith.constant 0 : index
    %c0_8 = arith.constant 0 : index
    %4 = vector.load %arg6[%c0_7, %c0_8] : memref<36x128xf32, #tpu.memory_space<vmem>>, vector<36x128xf32>
    %c0_9 = arith.constant 0 : index
    %5 = memref.load %arg7[%c0_9] : memref<1xf32, #tpu.memory_space<smem>>
    %6 = tpu.iota {dimensions = array<i32: 2>} : vector<1x1x4xi32>
    %cst = arith.constant 0.000000e+00 : f32
    %7 = vector.broadcast %cst : f32 to vector<1x1x4xf32>
    %c0_10 = arith.constant 0 : index
    %c0_11 = arith.constant 0 : index
    %c0_12 = arith.constant 0 : index
    %8 = vector.load %arg1[%c0_10, %c0_11, %c0_12] : memref<4x3x576xbf16, #tpu.memory_space<vmem>>, vector<1x3x576xbf16>
    %9 = vector.shape_cast %8 : vector<1x3x576xbf16> to vector<3x576xbf16>
    %cst_13 = arith.constant dense<0.000000e+00> : vector<576x128xf32>
    %10 = tpu.matmul %9, %0, %cst_13 {dimension_numbers = #tpu.dot_dimension_numbers<[0], [0], [1], [1], [0, 1, 1, 1], [], []>} : vector<3x576xbf16>, vector<3x128xbf16>, vector<576x128xf32> -> vector<576x128xf32>
    %11 = vector.broadcast %1 : vector<1x128xf32> to vector<576x128xf32>
    %12 = arith.addf %10, %11 : vector<576x128xf32>
    %cst_14 = arith.constant 0.000000e+00 : f32
    %13 = vector.broadcast %cst_14 : f32 to vector<576x128xf32>
    %14 = arith.maximumf %12, %13 : vector<576x128xf32>
    %15 = vector.shape_cast %14 : vector<576x128xf32> to vector<144x4x128xf32>
    %cst_15 = arith.constant dense<0xFF800000> : vector<144x128xf32>
    %16 = vector.multi_reduction <maximumf>, %15, %cst_15 [1] : vector<144x4x128xf32> to vector<144x128xf32>
    %17 = vector.shape_cast %16 : vector<144x128xf32> to vector<6x4x6x128xf32>
    %cst_16 = arith.constant dense<0xFF800000> : vector<6x6x128xf32>
    %18 = vector.multi_reduction <maximumf>, %17, %cst_16 [1] : vector<6x4x6x128xf32> to vector<6x6x128xf32>
    %19 = vector.shape_cast %18 : vector<6x6x128xf32> to vector<36x128xf32>
    %20 = vector.shape_cast %19 : vector<36x128xf32> to vector<12x3x128xf32>
    %cst_17 = arith.constant dense<0xFF800000> : vector<12x128xf32>
    %21 = vector.multi_reduction <maximumf>, %20, %cst_17 [1] : vector<12x3x128xf32> to vector<12x128xf32>
    %22 = vector.shape_cast %21 : vector<12x128xf32> to vector<2x3x2x128xf32>
    %cst_18 = arith.constant dense<0xFF800000> : vector<2x2x128xf32>
    %23 = vector.multi_reduction <maximumf>, %22, %cst_18 [1] : vector<2x3x2x128xf32> to vector<2x2x128xf32>
    %24 = vector.shape_cast %23 : vector<2x2x128xf32> to vector<4x128xf32>
    %cst_19 = arith.constant dense<0xFF800000> : vector<128xf32>
    %25 = vector.multi_reduction <maximumf>, %24, %cst_19 [0] : vector<4x128xf32> to vector<128xf32>
    %26 = vector.shape_cast %25 : vector<128xf32> to vector<1x128xf32>
    %27 = arith.mulf %26, %2 : vector<1x128xf32>
    %28 = arith.mulf %24, %3 : vector<4x128xf32>
    %cst_20 = arith.constant dense<0.000000e+00> : vector<128xf32>
    %29 = vector.multi_reduction <add>, %28, %cst_20 [0] : vector<4x128xf32> to vector<128xf32>
    %30 = vector.shape_cast %29 : vector<128xf32> to vector<1x128xf32>
    %31 = arith.addf %27, %30 : vector<1x128xf32>
    %32 = arith.mulf %19, %4 : vector<36x128xf32>
    %cst_21 = arith.constant dense<0.000000e+00> : vector<128xf32>
    %33 = vector.multi_reduction <add>, %32, %cst_21 [0] : vector<36x128xf32> to vector<128xf32>
    %34 = vector.shape_cast %33 : vector<128xf32> to vector<1x128xf32>
    %35 = arith.addf %31, %34 : vector<1x128xf32>
    %36 = vector.shape_cast %35 : vector<1x128xf32> to vector<1x1x128xf32>
    %cst_22 = arith.constant dense<0.000000e+00> : vector<1xf32>
    %37 = vector.multi_reduction <add>, %36, %cst_22 [1, 2] : vector<1x1x128xf32> to vector<1xf32>
    %38 = vector.shape_cast %37 : vector<1xf32> to vector<1x1x1xf32>
    %39 = vector.extract %38[0, 0, 0] : f32 from vector<1x1x1xf32>
    %40 = arith.addf %39, %5 : f32
    %c0_i32 = arith.constant 0 : i32
    %41 = vector.broadcast %c0_i32 : i32 to vector<1x1x4xi32>
    %42 = arith.cmpi eq, %6, %41 : vector<1x1x4xi32>
    %43 = vector.broadcast %40 : f32 to vector<1x1x4xf32>
    %44 = arith.select %42, %43, %7 : vector<1x1x4xi1>, vector<1x1x4xf32>
    %c1 = arith.constant 1 : index
    %c0_23 = arith.constant 0 : index
    %c0_24 = arith.constant 0 : index
    %45 = vector.load %arg1[%c1, %c0_23, %c0_24] : memref<4x3x576xbf16, #tpu.memory_space<vmem>>, vector<1x3x576xbf16>
    %46 = vector.shape_cast %45 : vector<1x3x576xbf16> to vector<3x576xbf16>
    %cst_25 = arith.constant dense<0.000000e+00> : vector<576x128xf32>
    %47 = tpu.matmul %46, %0, %cst_25 {dimension_numbers = #tpu.dot_dimension_numbers<[0], [0], [1], [1], [0, 1, 1, 1], [], []>} : vector<3x576xbf16>, vector<3x128xbf16>, vector<576x128xf32> -> vector<576x128xf32>
    %48 = vector.broadcast %1 : vector<1x128xf32> to vector<576x128xf32>
    %49 = arith.addf %47, %48 : vector<576x128xf32>
    %cst_26 = arith.constant 0.000000e+00 : f32
    %50 = vector.broadcast %cst_26 : f32 to vector<576x128xf32>
    %51 = arith.maximumf %49, %50 : vector<576x128xf32>
    %52 = vector.shape_cast %51 : vector<576x128xf32> to vector<144x4x128xf32>
    %cst_27 = arith.constant dense<0xFF800000> : vector<144x128xf32>
    %53 = vector.multi_reduction <maximumf>, %52, %cst_27 [1] : vector<144x4x128xf32> to vector<144x128xf32>
    %54 = vector.shape_cast %53 : vector<144x128xf32> to vector<6x4x6x128xf32>
    %cst_28 = arith.constant dense<0xFF800000> : vector<6x6x128xf32>
    %55 = vector.multi_reduction <maximumf>, %54, %cst_28 [1] : vector<6x4x6x128xf32> to vector<6x6x128xf32>
    %56 = vector.shape_cast %55 : vector<6x6x128xf32> to vector<36x128xf32>
    %57 = vector.shape_cast %56 : vector<36x128xf32> to vector<12x3x128xf32>
    %cst_29 = arith.constant dense<0xFF800000> : vector<12x128xf32>
    %58 = vector.multi_reduction <maximumf>, %57, %cst_29 [1] : vector<12x3x128xf32> to vector<12x128xf32>
    %59 = vector.shape_cast %58 : vector<12x128xf32> to vector<2x3x2x128xf32>
    %cst_30 = arith.constant dense<0xFF800000> : vector<2x2x128xf32>
    %60 = vector.multi_reduction <maximumf>, %59, %cst_30 [1] : vector<2x3x2x128xf32> to vector<2x2x128xf32>
    %61 = vector.shape_cast %60 : vector<2x2x128xf32> to vector<4x128xf32>
    %cst_31 = arith.constant dense<0xFF800000> : vector<128xf32>
    %62 = vector.multi_reduction <maximumf>, %61, %cst_31 [0] : vector<4x128xf32> to vector<128xf32>
    %63 = vector.shape_cast %62 : vector<128xf32> to vector<1x128xf32>
    %64 = arith.mulf %63, %2 : vector<1x128xf32>
    %65 = arith.mulf %61, %3 : vector<4x128xf32>
    %cst_32 = arith.constant dense<0.000000e+00> : vector<128xf32>
    %66 = vector.multi_reduction <add>, %65, %cst_32 [0] : vector<4x128xf32> to vector<128xf32>
    %67 = vector.shape_cast %66 : vector<128xf32> to vector<1x128xf32>
    %68 = arith.addf %64, %67 : vector<1x128xf32>
    %69 = arith.mulf %56, %4 : vector<36x128xf32>
    %cst_33 = arith.constant dense<0.000000e+00> : vector<128xf32>
    %70 = vector.multi_reduction <add>, %69, %cst_33 [0] : vector<36x128xf32> to vector<128xf32>
    %71 = vector.shape_cast %70 : vector<128xf32> to vector<1x128xf32>
    %72 = arith.addf %68, %71 : vector<1x128xf32>
    %73 = vector.shape_cast %72 : vector<1x128xf32> to vector<1x1x128xf32>
    %cst_34 = arith.constant dense<0.000000e+00> : vector<1xf32>
    %74 = vector.multi_reduction <add>, %73, %cst_34 [1, 2] : vector<1x1x128xf32> to vector<1xf32>
    %75 = vector.shape_cast %74 : vector<1xf32> to vector<1x1x1xf32>
    %76 = vector.extract %75[0, 0, 0] : f32 from vector<1x1x1xf32>
    %77 = arith.addf %76, %5 : f32
    %c1_i32 = arith.constant 1 : i32
    %78 = vector.broadcast %c1_i32 : i32 to vector<1x1x4xi32>
    %79 = arith.cmpi eq, %6, %78 : vector<1x1x4xi32>
    %80 = vector.broadcast %77 : f32 to vector<1x1x4xf32>
    %81 = arith.select %79, %80, %44 : vector<1x1x4xi1>, vector<1x1x4xf32>
    %c2 = arith.constant 2 : index
    %c0_35 = arith.constant 0 : index
    %c0_36 = arith.constant 0 : index
    %82 = vector.load %arg1[%c2, %c0_35, %c0_36] : memref<4x3x576xbf16, #tpu.memory_space<vmem>>, vector<1x3x576xbf16>
    %83 = vector.shape_cast %82 : vector<1x3x576xbf16> to vector<3x576xbf16>
    %cst_37 = arith.constant dense<0.000000e+00> : vector<576x128xf32>
    %84 = tpu.matmul %83, %0, %cst_37 {dimension_numbers = #tpu.dot_dimension_numbers<[0], [0], [1], [1], [0, 1, 1, 1], [], []>} : vector<3x576xbf16>, vector<3x128xbf16>, vector<576x128xf32> -> vector<576x128xf32>
    %85 = vector.broadcast %1 : vector<1x128xf32> to vector<576x128xf32>
    %86 = arith.addf %84, %85 : vector<576x128xf32>
    %cst_38 = arith.constant 0.000000e+00 : f32
    %87 = vector.broadcast %cst_38 : f32 to vector<576x128xf32>
    %88 = arith.maximumf %86, %87 : vector<576x128xf32>
    %89 = vector.shape_cast %88 : vector<576x128xf32> to vector<144x4x128xf32>
    %cst_39 = arith.constant dense<0xFF800000> : vector<144x128xf32>
    %90 = vector.multi_reduction <maximumf>, %89, %cst_39 [1] : vector<144x4x128xf32> to vector<144x128xf32>
    %91 = vector.shape_cast %90 : vector<144x128xf32> to vector<6x4x6x128xf32>
    %cst_40 = arith.constant dense<0xFF800000> : vector<6x6x128xf32>
    %92 = vector.multi_reduction <maximumf>, %91, %cst_40 [1] : vector<6x4x6x128xf32> to vector<6x6x128xf32>
    %93 = vector.shape_cast %92 : vector<6x6x128xf32> to vector<36x128xf32>
    %94 = vector.shape_cast %93 : vector<36x128xf32> to vector<12x3x128xf32>
    %cst_41 = arith.constant dense<0xFF800000> : vector<12x128xf32>
    %95 = vector.multi_reduction <maximumf>, %94, %cst_41 [1] : vector<12x3x128xf32> to vector<12x128xf32>
    %96 = vector.shape_cast %95 : vector<12x128xf32> to vector<2x3x2x128xf32>
    %cst_42 = arith.constant dense<0xFF800000> : vector<2x2x128xf32>
    %97 = vector.multi_reduction <maximumf>, %96, %cst_42 [1] : vector<2x3x2x128xf32> to vector<2x2x128xf32>
    %98 = vector.shape_cast %97 : vector<2x2x128xf32> to vector<4x128xf32>
    %cst_43 = arith.constant dense<0xFF800000> : vector<128xf32>
    %99 = vector.multi_reduction <maximumf>, %98, %cst_43 [0] : vector<4x128xf32> to vector<128xf32>
    %100 = vector.shape_cast %99 : vector<128xf32> to vector<1x128xf32>
    %101 = arith.mulf %100, %2 : vector<1x128xf32>
    %102 = arith.mulf %98, %3 : vector<4x128xf32>
    %cst_44 = arith.constant dense<0.000000e+00> : vector<128xf32>
    %103 = vector.multi_reduction <add>, %102, %cst_44 [0] : vector<4x128xf32> to vector<128xf32>
    %104 = vector.shape_cast %103 : vector<128xf32> to vector<1x128xf32>
    %105 = arith.addf %101, %104 : vector<1x128xf32>
    %106 = arith.mulf %93, %4 : vector<36x128xf32>
    %cst_45 = arith.constant dense<0.000000e+00> : vector<128xf32>
    %107 = vector.multi_reduction <add>, %106, %cst_45 [0] : vector<36x128xf32> to vector<128xf32>
    %108 = vector.shape_cast %107 : vector<128xf32> to vector<1x128xf32>
    %109 = arith.addf %105, %108 : vector<1x128xf32>
    %110 = vector.shape_cast %109 : vector<1x128xf32> to vector<1x1x128xf32>
    %cst_46 = arith.constant dense<0.000000e+00> : vector<1xf32>
    %111 = vector.multi_reduction <add>, %110, %cst_46 [1, 2] : vector<1x1x128xf32> to vector<1xf32>
    %112 = vector.shape_cast %111 : vector<1xf32> to vector<1x1x1xf32>
    %113 = vector.extract %112[0, 0, 0] : f32 from vector<1x1x1xf32>
    %114 = arith.addf %113, %5 : f32
    %c2_i32 = arith.constant 2 : i32
    %115 = vector.broadcast %c2_i32 : i32 to vector<1x1x4xi32>
    %116 = arith.cmpi eq, %6, %115 : vector<1x1x4xi32>
    %117 = vector.broadcast %114 : f32 to vector<1x1x4xf32>
    %118 = arith.select %116, %117, %81 : vector<1x1x4xi1>, vector<1x1x4xf32>
    %c3 = arith.constant 3 : index
    %c0_47 = arith.constant 0 : index
    %c0_48 = arith.constant 0 : index
    %119 = vector.load %arg1[%c3, %c0_47, %c0_48] : memref<4x3x576xbf16, #tpu.memory_space<vmem>>, vector<1x3x576xbf16>
    %120 = vector.shape_cast %119 : vector<1x3x576xbf16> to vector<3x576xbf16>
    %cst_49 = arith.constant dense<0.000000e+00> : vector<576x128xf32>
    %121 = tpu.matmul %120, %0, %cst_49 {dimension_numbers = #tpu.dot_dimension_numbers<[0], [0], [1], [1], [0, 1, 1, 1], [], []>} : vector<3x576xbf16>, vector<3x128xbf16>, vector<576x128xf32> -> vector<576x128xf32>
    %122 = vector.broadcast %1 : vector<1x128xf32> to vector<576x128xf32>
    %123 = arith.addf %121, %122 : vector<576x128xf32>
    %cst_50 = arith.constant 0.000000e+00 : f32
    %124 = vector.broadcast %cst_50 : f32 to vector<576x128xf32>
    %125 = arith.maximumf %123, %124 : vector<576x128xf32>
    %126 = vector.shape_cast %125 : vector<576x128xf32> to vector<144x4x128xf32>
    %cst_51 = arith.constant dense<0xFF800000> : vector<144x128xf32>
    %127 = vector.multi_reduction <maximumf>, %126, %cst_51 [1] : vector<144x4x128xf32> to vector<144x128xf32>
    %128 = vector.shape_cast %127 : vector<144x128xf32> to vector<6x4x6x128xf32>
    %cst_52 = arith.constant dense<0xFF800000> : vector<6x6x128xf32>
    %129 = vector.multi_reduction <maximumf>, %128, %cst_52 [1] : vector<6x4x6x128xf32> to vector<6x6x128xf32>
    %130 = vector.shape_cast %129 : vector<6x6x128xf32> to vector<36x128xf32>
    %131 = vector.shape_cast %130 : vector<36x128xf32> to vector<12x3x128xf32>
    %cst_53 = arith.constant dense<0xFF800000> : vector<12x128xf32>
    %132 = vector.multi_reduction <maximumf>, %131, %cst_53 [1] : vector<12x3x128xf32> to vector<12x128xf32>
    %133 = vector.shape_cast %132 : vector<12x128xf32> to vector<2x3x2x128xf32>
    %cst_54 = arith.constant dense<0xFF800000> : vector<2x2x128xf32>
    %134 = vector.multi_reduction <maximumf>, %133, %cst_54 [1] : vector<2x3x2x128xf32> to vector<2x2x128xf32>
    %135 = vector.shape_cast %134 : vector<2x2x128xf32> to vector<4x128xf32>
    %cst_55 = arith.constant dense<0xFF800000> : vector<128xf32>
    %136 = vector.multi_reduction <maximumf>, %135, %cst_55 [0] : vector<4x128xf32> to vector<128xf32>
    %137 = vector.shape_cast %136 : vector<128xf32> to vector<1x128xf32>
    %138 = arith.mulf %137, %2 : vector<1x128xf32>
    %139 = arith.mulf %135, %3 : vector<4x128xf32>
    %cst_56 = arith.constant dense<0.000000e+00> : vector<128xf32>
    %140 = vector.multi_reduction <add>, %139, %cst_56 [0] : vector<4x128xf32> to vector<128xf32>
    %141 = vector.shape_cast %140 : vector<128xf32> to vector<1x128xf32>
    %142 = arith.addf %138, %141 : vector<1x128xf32>
    %143 = arith.mulf %130, %4 : vector<36x128xf32>
    %cst_57 = arith.constant dense<0.000000e+00> : vector<128xf32>
    %144 = vector.multi_reduction <add>, %143, %cst_57 [0] : vector<36x128xf32> to vector<128xf32>
    %145 = vector.shape_cast %144 : vector<128xf32> to vector<1x128xf32>
    %146 = arith.addf %142, %145 : vector<1x128xf32>
    %147 = vector.shape_cast %146 : vector<1x128xf32> to vector<1x1x128xf32>
    %cst_58 = arith.constant dense<0.000000e+00> : vector<1xf32>
    %148 = vector.multi_reduction <add>, %147, %cst_58 [1, 2] : vector<1x1x128xf32> to vector<1xf32>
    %149 = vector.shape_cast %148 : vector<1xf32> to vector<1x1x1xf32>
    %150 = vector.extract %149[0, 0, 0] : f32 from vector<1x1x1xf32>
    %151 = arith.addf %150, %5 : f32
    %c3_i32 = arith.constant 3 : i32
    %152 = vector.broadcast %c3_i32 : i32 to vector<1x1x4xi32>
    %153 = arith.cmpi eq, %6, %152 : vector<1x1x4xi32>
    %154 = vector.broadcast %151 : f32 to vector<1x1x4xf32>
    %155 = arith.select %153, %154, %118 : vector<1x1x4xi1>, vector<1x1x4xf32>
    %c0_59 = arith.constant 0 : index
    %c0_60 = arith.constant 0 : index
    %c0_61 = arith.constant 0 : index
    %156 = vector.load %arg8[%c0_59, %c0_60, %c0_61] : memref<1x1x4xf32, #tpu.memory_space<vmem>>, vector<1x1x4xf32>
    tpu.vector_store %arg8[%c0_59, %c0_60, %c0_61], %155 {strides = array<i32>} : memref<1x1x4xf32, #tpu.memory_space<vmem>>, vector<1x1x4xf32>,
    return
  }
  func.func @transform_0(%arg0: i32) -> (i32, i32, i32) {
    %c0_i32 = arith.constant 0 : i32
    %c0_i32_0 = arith.constant 0 : i32
    %c0_i32_1 = arith.constant 0 : i32
    return %arg0, %c0_i32, %c0_i32_0 : i32, i32, i32
  }
  func.func @transform_1(%arg0: i32) -> (i32, i32) {
    %c0_i32 = arith.constant 0 : i32
    %c0_i32_0 = arith.constant 0 : i32
    %c0_i32_1 = arith.constant 0 : i32
    return %c0_i32, %c0_i32_0 : i32, i32
  }
  func.func @transform_2(%arg0: i32) -> (i32, i32) {
    %c0_i32 = arith.constant 0 : i32
    %c0_i32_0 = arith.constant 0 : i32
    %c0_i32_1 = arith.constant 0 : i32
    return %c0_i32, %c0_i32_0 : i32, i32
  }
  func.func @transform_3(%arg0: i32) -> (i32, i32) {
    %c0_i32 = arith.constant 0 : i32
    %c0_i32_0 = arith.constant 0 : i32
    %c0_i32_1 = arith.constant 0 : i32
    return %c0_i32, %c0_i32_0 : i32, i32
  }
  func.func @transform_4(%arg0: i32) -> (i32, i32) {
    %c0_i32 = arith.constant 0 : i32
    %c0_i32_0 = arith.constant 0 : i32
    %c0_i32_1 = arith.constant 0 : i32
    return %c0_i32, %c0_i32_0 : i32, i32
  }
  func.func @transform_5(%arg0: i32) -> (i32, i32) {
    %c0_i32 = arith.constant 0 : i32
    %c0_i32_0 = arith.constant 0 : i32
    %c0_i32_1 = arith.constant 0 : i32
    return %c0_i32, %c0_i32_0 : i32, i32
  }
  func.func @transform_6(%arg0: i32) -> i32 {
    %c0_i32 = arith.constant 0 : i32
    %c0_i32_0 = arith.constant 0 : i32
    return %c0_i32 : i32
  }
  func.func @transform_7(%arg0: i32) -> (i32, i32, i32) {
    %c0_i32 = arith.constant 0 : i32
    %c0_i32_0 = arith.constant 0 : i32
    %c0_i32_1 = arith.constant 0 : i32
    return %arg0, %c0_i32, %c0_i32_0 : i32, i32, i32
  }
}

</mosaic_0001>

<bundles_post_ra>
// kernel: deepfake_spp_classifier.1
= control target key start
LH: loop header
LB: loop body
LE: loop exit
PB: predicated region body
PF: predicated region fallthrough
CT: control target
= control target key end

     0   :  { %s9842_s26 = smov 0   ;;  %s13694_s0 = inlined_call_operand.vmem [shape: bf16[8,3,576], index: 0, kind: input, shape index: {}]   ;;  %s13695_s1 = inlined_call_operand.vmem [shape: bf16[3,128], index: 1, kind: input, shape index: {}]   ;;  %s13696_s2 = inlined_call_operand.vmem [shape: f32[1,128], index: 2, kind: input, shape index: {}]   ;;  %s13697_s3 = inlined_call_operand.vmem [shape: f32[1,128], index: 3, kind: input, shape index: {}]   ;;  %s13698_s4 = inlined_call_operand.vmem [shape: f32[4,128], index: 4, kind: input, shape index: {}]   ;;  %s13699_s5 = inlined_call_operand.vmem [shape: f32[36,128], index: 5, kind: input, shape index: {}]   ;;  %s13700_s6 = inlined_call_operand.<no memory space> [shape: f32[1], index: 6, kind: input, shape index: {}]   ;;  %s13701_s7 = inlined_call_operand.vmem [shape: f32[2,1,4], index: 7, kind: output, shape index: {}]  }
   0x1   :  { %12 = sst [smem:[#allocation2]] %s13700_s6 }
   0x2 LB: > { %s9848_s27 = sadd.s32 4294967295, %s9795_s26   ;;  %p9132_p0 = scmp.ge.s32.totalorder %s9795_s26, 1  ;;  %s9795_s26 = sphi %s9842_s26, %s18_s26  }
   0x3   : > { %p240_p1 = scmp.lt.s32.totalorder %s9795_s26, 3 }
   0x5   : > { %p241_p2 = pnand %p9132_p0, %p240_p1 }
   0x7   : > { %244 = sbr.rel (%p241_p2) target bundleno = 2051 (0x803), region = 48 }
   0xc   : > { %s9133_s28 = sshll.u32 %s9848_s27, 2  ;;  %v13702_v0 = vlaneseq  ;;  %v9797_v1 = vmov 1983009808   ;;  %v282_v3 = vld [vmem:[%s13695_s1] sm:$0x3]  ;;  %vm522_vm0 = vcmask 1040384  }
   0xd   : > { %p272_p3 = scmp.lt.s32.totalorder %s9133_s28, 7  ;;  %v306_v2 = vunpack.c.l.s4 %v9797_v1  ;;  %vm523_vm1 = vcmask 1041408   ;;  %v9798_v5 = vmov 65535   ;;  %vm413_vm2 = vcmask 23552   ;;  %s291_s19 = sld [smem:[#allocation2]] }
   0xe   : > { %v309_v4 = vshrl.u32 %v13702_v0, 7  ;;  %v524_v6 = vsel %vm522_vm0, 4294967295, %v9798_v5  ;;  %vm1138_vm3 = vcmask 1043456   ;;  %vm2308_vm4 = vcmask 1041409   ;;  %p278_p4 = scmp.lt.s32.totalorder %s9848_s27, 1 }
   0xf   : > { %s14171_s28 = smov (!%p272_p3, %s9133_s28), 7  ;;  %v307_v7 = vunpack.c.0.s8 %v306_v2  ;;  %v525_v8 = vsel %vm523_vm1, %v524_v6, 0  ;;  %vm2311_vm5 = vcmask 1042434   ;;  %vm2314_vm6 = vcmask 1043459  }
  0x10   : > { %v9858_v9 = vand.u32 %v525_v8, %v282_v3  ;;  %s9736_s30 = smul.u32 10, %s14171_s28  ;;  %vm2476_vm7 = vcmask 1044484   ;;  %vm2479_vm8 = vcmask 1045509   ;;  %vm2482_vm9 = vcmask 1046534   ;;  %s14173_s27 = smov (!%p278_p4, %s9848_s27), 1 }
  0x11   : > { %v9860_v10 = vsub.s32 %v307_v7, %v309_v4  ;;  %vm2485_vm10 = vcmask 1047559   ;;  %s280_s8 = scalar_lea.vmem %s13701_s7, %s14173_s27  ;;  %vm9079_vm15 = vcmask 24576  }
  0x12   : > { %9440 = vmatprep.subr.bf16.mxu0 %v9858_v9  ;;  %9514 = vmatprep.subr.bf16.mxu1 %v9858_v9  ;;  %s9867_s10 = scalar_lea.vmem %s13694_s0, %s9736_s30 }
  0x13   : > { %9441 = vmatpush3.bf16.msra.mxu0 %v9858_v9  ;;  %9515 = vmatpush3.bf16.msra.mxu1 %v9858_v9  ;;  %v294_v11 = vld [vmem:[%s9867_s10] sm:$0xff]  ;;  %v9173_v14 = vld [vmem:[%s9867_s10 + $0xa] sm:$0xff]  ;;  %v9136_v31 = vld.sshfl [vmem:[%s9867_s10 + $0x8] sm:$0x3 pattern:$0x76325410] }
  0x14   : > { %9588 = vmatprep.subr.bf16.mxu0 %v9858_v9  ;;  %9662 = vmatprep.subr.bf16.mxu1 %v9858_v9  ;;  %v311_v12 = vrot.slane %v294_v11, %v9860_v10  ;;  %v2578_v15 = vrot.slane %v9173_v14, %v9860_v10  ;;  %v304_v17 = vcombine.high %v294_v11, %v294_v11  ;;  %v9175_v33 = vld.sshfl [vmem:[%s9867_s10 + $0x12] sm:$0x3 pattern:$0x76325410]  ;;  %v9889_v38 = vld [vmem:[%s9867_s10 + $0x14] sm:$0xff]  ;;  %v9893_v40 = vld [vmem:[%s9867_s10 + $0x1e] sm:$0xff] }
  0x15   : > { %v2571_v18 = vcombine.high %v9173_v14, %v9173_v14  ;;  %v4749_v41 = vrot.slane %v9889_v38, %v9860_v10  ;;  %v6920_v43 = vrot.slane %v9893_v40, %v9860_v10 }
  0x16   : > { %333 = vxpose.xlu0.c.b16.start.end [1/1] (short) %v311_v12, 128  ;;  %v319_v13 = vcombine.high %v311_v12, %v311_v12  ;;  %v2586_v16 = vcombine.high %v2578_v15, %v2578_v15  ;;  %v318_v19 = vrot.slane %v304_v17, %v9860_v10  ;;  %v6913_v12 = vcombine.high %v9893_v40, %v9893_v40 }
  0x17   : > { %v2585_v20 = vrot.slane %v2571_v18, %v9860_v10  ;;  %v4757_v57 = vcombine.high %v4749_v41, %v4749_v41  ;;  %v6928_v59 = vcombine.high %v6920_v43, %v6920_v43 }
  0x18   : > { %349 = vxpose.xlu1.c.b16.start.end [1/1] (short) %v319_v13, 128  ;;  %v320_v21 = vcombine.high %v318_v19, %v318_v19 }
  0x19   : > { %v2587_v22 = vcombine.high %v2585_v20, %v2585_v20 }
  0x33   : > { %2600 = vxpose.xlu0.c.b16.start.end [1/1] (short) %v2578_v15, 128 }
  0x35   : > { %2616 = vxpose.xlu1.c.b16.start.end [1/1] (short) %v2586_v16, 128  ;;  %v6927_v16 = vrot.slane %v6913_v12, %v9860_v10 }
  0x50   : > { %365 = vxpose.xlu0.c.b16.start.end [1/1] (short) %v318_v19, 128 }
  0x52   : > { %2632 = vxpose.xlu1.c.b16.start.end [1/1] (short) %v2585_v20, 128 }
  0x6d   : > { %381 = vxpose.xlu0.c.b16.start.end [1/1] (short) %v320_v21, 128 }
  0x6f   : > { %2648 = vxpose.xlu1.c.b16.start.end [1/1] (short) %v2587_v22, 128 }
  0x78   : > { %v341_v23 = vpop.trf.xlu0 }
  0x79   : > { %9442 = vmatprep.mubr.msk.bf16.mxu0 %vm413_vm2, %v341_v23 }
  0x7a   : > { %v357_v24 = vpop.trf.xlu1 }
  0x7c   : > { %v342_v25 = vpop.trf.xlu0 }
  0x7d   : > { %9443 = vmatmul.mubr.msk.bf16.vlgmr.msra.gmra.mxu0 %vm413_vm2, %v342_v25 }
  0x7e   : > { %9589 = vmatpush3.bf16.msra.mxu0 %v9858_v9  ;;  %v358_v26 = vpop.trf.xlu1 }
  0x80   : > { %v343_v27 = vpop.trf.xlu0 }
  0x81   : > { %9446 = vmatprep.mubr.msk.bf16.mxu0 %vm413_vm2, %v343_v27 }
  0x82   : > { %v359_v28 = vpop.trf.xlu1 }
  0x84   : > { %v344_v29 = vpop.trf.xlu0 }
  0x85   : > { %9447 = vmatmul.mubr.msk.bf16.gmra.mxu0 %vm413_vm2, %v344_v29 }
  0x86   : > { %v360_v30 = vpop.trf.xlu1 }
  0x88   : > { %v345_v32 = vpop.trf.xlu0 }
  0x89   : > { %9450 = vmatprep.mubr.msk.bf16.mxu0 %vm413_vm2, %v345_v32  ;;  %v6929_v32 = vcombine.high %v6927_v16, %v6927_v16 }
  0x8a   : > { %397 = vxpose.xlu0.c.b16.start.end [1/1] (short) (narrow) %v9136_v31, 64  ;;  %v361_v34 = vpop.trf.xlu1 }
  0x8c   : > { %v346_v35 = vpop.trf.xlu0  ;;  %2664 = vxpose.xlu1.c.b16.start.end [1/1] (short) (narrow) %v9175_v33, 64 }
  0x8d   : > { %9451 = vmatmul.mubr.msk.bf16.gmra.mxu0 %vm413_vm2, %v346_v35 }
  0x8e   : > { %v362_v36 = vpop.trf.xlu1 }
  0x90   : > { %v347_v37 = vpop.trf.xlu0 }
  0x91   : > { %9454 = vmatprep.mubr.msk.bf16.mxu0 %vm413_vm2, %v347_v37 }
  0x92   : > { %v363_v39 = vpop.trf.xlu1 }
  0x94   : > { %v348_v42 = vpop.trf.xlu0 }
  0x95   : > { %9455 = vmatmul.mubr.msk.bf16.gmra.mxu0 %vm413_vm2, %v348_v42 }
  0x96   : > { %9458 = vmatprep.mubr.msk.bf16.mxu0 %vm413_vm2, %v357_v24  ;;  %v364_v44 = vpop.trf.xlu1 }
  0x97   : > { %4771 = vxpose.xlu0.c.b16.start.end [1/1] (short) %v4749_v41, 128 }
  0x98   : > { %v2608_v45 = vpop.trf.xlu0 }
  0x99   : > { %9516 = vmatprep.mubr.msk.bf16.mxu1 %vm413_vm2, %v2608_v45  ;;  %6942 = vxpose.xlu1.c.b16.start.end [1/1] (short) %v6920_v43, 128 }
  0x9a   : > { %v2624_v46 = vpop.trf.xlu1 }
  0x9c   : > { %v2609_v47 = vpop.trf.xlu0 }
  0x9d   : > { %9459 = vmatmul.mubr.msk.bf16.gmra.mxu0 %vm413_vm2, %v358_v26  ;;  %9517 = vmatmul.mubr.msk.bf16.vlgmr.msra.gmra.mxu1 %vm413_vm2, %v2609_v47  ;;  %v9214_v47 = vld.sshfl [vmem:[%s9867_s10 + $0x1c] sm:$0x3 pattern:$0x76325410] }
  0x9e   : > { %9663 = vmatpush3.bf16.msra.mxu1 %v9858_v9  ;;  %9462 = vmatprep.mubr.msk.bf16.mxu0 %vm413_vm2, %v359_v28  ;;  %v2625_v48 = vpop.trf.xlu1  ;;  %v4742_v9 = vcombine.high %v9889_v38, %v9889_v38 }
  0xa0   : > { %v2610_v49 = vpop.trf.xlu0  ;;  %v4756_v14 = vrot.slane %v4742_v9, %v9860_v10 }
  0xa1   : > { %9520 = vmatprep.mubr.msk.bf16.mxu1 %vm413_vm2, %v2610_v49  ;;  %v9253_v49 = vld.sshfl [vmem:[%s9867_s10 + $0x26] sm:$0x3 pattern:$0x76325410] }
  0xa2   : > { %v2626_v50 = vpop.trf.xlu1  ;;  %v4758_v29 = vcombine.high %v4756_v14, %v4756_v14 }
  0xa4   : > { %v2611_v51 = vpop.trf.xlu0 }
  0xa5   : > { %9463 = vmatmul.mubr.msk.bf16.gmra.mxu0 %vm413_vm2, %v360_v30  ;;  %9521 = vmatmul.mubr.msk.bf16.gmra.mxu1 %vm413_vm2, %v2611_v51 }
  0xa6   : > { %9466 = vmatprep.mubr.msk.bf16.mxu0 %vm413_vm2, %v361_v34  ;;  %v2627_v52 = vpop.trf.xlu1 }
  0xa8   : > { %v2612_v53 = vpop.trf.xlu0 }
  0xa9   : > { %9524 = vmatprep.mubr.msk.bf16.mxu1 %vm413_vm2, %v2612_v53 }
  0xaa   : > { %v2628_v54 = vpop.trf.xlu1 }
  0xac   : > { %v2613_v55 = vpop.trf.xlu0 }
  0xad   : > { %9467 = vmatmul.mubr.msk.bf16.gmra.mxu0 %vm413_vm2, %v362_v36  ;;  %9525 = vmatmul.mubr.msk.bf16.gmra.mxu1 %vm413_vm2, %v2613_v55 }
  0xae   : > { %9470 = vmatprep.mubr.msk.bf16.mxu0 %vm413_vm2, %v363_v39  ;;  %v2629_v56 = vpop.trf.xlu1 }
  0xb0   : > { %v2614_v58 = vpop.trf.xlu0 }
  0xb1   : > { %9528 = vmatprep.mubr.msk.bf16.mxu1 %vm413_vm2, %v2614_v58 }
  0xb2   : > { %v2630_v60 = vpop.trf.xlu1 }
  0xb4   : > { %v2615_v61 = vpop.trf.xlu0  ;;  %4787 = vxpose.xlu0.c.b16.start.end [1/1] (short) %v4757_v57, 128 }
  0xb5   : > { %9471 = vmatmul.mubr.msk.bf16.gmra.mxu0 %vm413_vm2, %v364_v44  ;;  %9529 = vmatmul.mubr.msk.bf16.gmra.mxu1 %vm413_vm2, %v2615_v61 }
  0xb6   : > { %9532 = vmatprep.mubr.msk.bf16.mxu1 %vm413_vm2, %v2624_v46  ;;  %v2631_v62 = vpop.trf.xlu1  ;;  %6958 = vxpose.xlu1.c.b16.start.end [1/1] (short) %v6928_v59, 128 }
  0xb8   : > { %v373_v63 = vpop.trf.xlu0 }
  0xb9   : > { %9474 = vmatprep.mubr.msk.bf16.mxu0 %vm413_vm2, %v373_v63 }
  0xba   : > { %v2640_v1 = vpop.trf.xlu1 }
  0xbc   : > { %v374_v2 = vpop.trf.xlu0 }
  0xbd   : > { %9475 = vmatmul.mubr.msk.bf16.gmra.mxu0 %vm413_vm2, %v374_v2  ;;  %9533 = vmatmul.mubr.msk.bf16.gmra.mxu1 %vm413_vm2, %v2625_v48 }
  0xbe   : > { %9536 = vmatprep.mubr.msk.bf16.mxu1 %vm413_vm2, %v2626_v50  ;;  %v2641_v3 = vpop.trf.xlu1 }
  0xc0   : > { %v375_v4 = vpop.trf.xlu0 }
  0xc1   : > { %9478 = vmatprep.mubr.msk.bf16.mxu0 %vm413_vm2, %v375_v4 }
  0xc2   : > { %v2642_v5 = vpop.trf.xlu1 }
  0xc4   : > { %v376_v6 = vpop.trf.xlu0 }
  0xc5   : > { %9479 = vmatmul.mubr.msk.bf16.gmra.mxu0 %vm413_vm2, %v376_v6  ;;  %9537 = vmatmul.mubr.msk.bf16.gmra.mxu1 %vm413_vm2, %v2627_v52 }
  0xc6   : > { %9540 = vmatprep.mubr.msk.bf16.mxu1 %vm413_vm2, %v2628_v54  ;;  %v2643_v7 = vpop.trf.xlu1 }
  0xc8   : > { %v377_v8 = vpop.trf.xlu0 }
  0xc9   : > { %9482 = vmatprep.mubr.msk.bf16.mxu0 %vm413_vm2, %v377_v8  ;;  %v9996_v8 = vld [vmem:[%s13696_s2] ss:$0 sm:$0xff] }
  0xca   : > { %v2644_v11 = vpop.trf.xlu1 }
  0xcc   : > { %v378_v13 = vpop.trf.xlu0 }
  0xcd   : > { %9483 = vmatmul.mubr.msk.bf16.gmra.mxu0 %vm413_vm2, %v378_v13  ;;  %9541 = vmatmul.mubr.msk.bf16.gmra.mxu1 %vm413_vm2, %v2629_v56 }
  0xce   : > { %9544 = vmatprep.mubr.msk.bf16.mxu1 %vm413_vm2, %v2630_v60  ;;  %v2645_v15 = vpop.trf.xlu1 }
  0xd0   : > { %v379_v17 = vpop.trf.xlu0 }
  0xd1   : > { %9486 = vmatprep.mubr.msk.bf16.mxu0 %vm413_vm2, %v379_v17  ;;  %4803 = vxpose.xlu0.c.b16.start.end [1/1] (short) %v4756_v14, 128 }
  0xd2   : > { %v2646_v18 = vpop.trf.xlu1 }
  0xd3   : > { %6974 = vxpose.xlu1.c.b16.start.end [1/1] (short) %v6927_v16, 128 }
  0xd4   : > { %v380_v19 = vpop.trf.xlu0 }
  0xd5   : > { %9487 = vmatmul.mubr.msk.bf16.gmra.mxu0 %vm413_vm2, %v380_v19  ;;  %9545 = vmatmul.mubr.msk.bf16.gmra.mxu1 %vm413_vm2, %v2631_v62 }
  0xd6   : > { %9548 = vmatprep.mubr.msk.bf16.mxu1 %vm413_vm2, %v2640_v1  ;;  %v2647_v20 = vpop.trf.xlu1 }
  0xd8   : > { %v389_v21 = vpop.trf.xlu0 }
  0xd9   : > { %9490 = vmatprep.mubr.msk.bf16.mxu0 %vm413_vm2, %v389_v21 }
  0xda   : > { %v2656_v22 = vpop.trf.xlu1 }
  0xdc   : > { %v390_v23 = vpop.trf.xlu0 }
  0xdd   : > { %9491 = vmatmul.mubr.msk.bf16.gmra.mxu0 %vm413_vm2, %v390_v23  ;;  %9549 = vmatmul.mubr.msk.bf16.gmra.mxu1 %vm413_vm2, %v2641_v3 }
  0xde   : > { %9552 = vmatprep.mubr.msk.bf16.mxu1 %vm413_vm2, %v2642_v5  ;;  %v2657_v10 = vpop.trf.xlu1 }
  0xe0   : > { %v391_v24 = vpop.trf.xlu0 }
  0xe1   : > { %9494 = vmatprep.mubr.msk.bf16.mxu0 %vm413_vm2, %v391_v24 }
  0xe2   : > { %v2658_v25 = vpop.trf.xlu1 }
  0xe4   : > { %v392_v26 = vpop.trf.xlu0 }
  0xe5   : > { %9495 = vmatmul.mubr.msk.bf16.gmra.mxu0 %vm413_vm2, %v392_v26  ;;  %9553 = vmatmul.mubr.msk.bf16.gmra.mxu1 %vm413_vm2, %v2643_v7 }
  0xe6   : > { %9556 = vmatprep.mubr.msk.bf16.mxu1 %vm413_vm2, %v2644_v11  ;;  %v2659_v27 = vpop.trf.xlu1 }
  0xe8   : > { %v393_v28 = vpop.trf.xlu0 }
  0xe9   : > { %9498 = vmatprep.mubr.msk.bf16.mxu0 %vm413_vm2, %v393_v28 }
  0xea   : > { %v2660_v30 = vpop.trf.xlu1 }
  0xec   : > { %v394_v31 = vpop.trf.xlu0 }
  0xed   : > { %9499 = vmatmul.mubr.msk.bf16.gmra.mxu0 %vm413_vm2, %v394_v31  ;;  %9557 = vmatmul.mubr.msk.bf16.gmra.mxu1 %vm413_vm2, %v2645_v15 }
  0xee   : > { %9560 = vmatprep.mubr.msk.bf16.mxu1 %vm413_vm2, %v2646_v18  ;;  %4819 = vxpose.xlu0.c.b16.start.end [1/1] (short) %v4758_v29, 128  ;;  %v2661_v33 = vpop.trf.xlu1 }
  0xf0   : > { %v395_v34 = vpop.trf.xlu0  ;;  %6990 = vxpose.xlu1.c.b16.start.end [1/1] (short) %v6929_v32, 128 }
  0xf1   : > { %9502 = vmatprep.mubr.msk.bf16.mxu0 %vm413_vm2, %v395_v34 }
  0xf2   : > { %v2662_v35 = vpop.trf.xlu1 }
  0xf4   : > { %v396_v36 = vpop.trf.xlu0 }
  0xf5   : > { %9503 = vmatmul.mubr.msk.bf16.gmra.mxu0 %vm413_vm2, %v396_v36  ;;  %9561 = vmatmul.mubr.msk.bf16.gmra.mxu1 %vm413_vm2, %v2647_v20 }
  0xf6   : > { %9564 = vmatprep.mubr.msk.bf16.mxu1 %vm413_vm2, %v2656_v22  ;;  %v2663_v37 = vpop.trf.xlu1 }
  0xf8   : > { %v405_v38 = vpop.trf.xlu0 }
  0xf9   : > { %9506 = vmatprep.mubr.msk.bf16.mxu0 %vm413_vm2, %v405_v38 }
  0xfa   : > { %v2672_v39 = vpop.trf.xlu1 }
  0xfc   : > { %v406_v40 = vpop.trf.xlu0 }
  0xfd   : > { %9507 = vmatmul.mubr.msk.bf16.gmra.mxu0 %vm413_vm2, %v406_v40  ;;  %9565 = vmatmul.mubr.msk.bf16.gmra.mxu1 %vm413_vm2, %v2657_v10 }
  0xfe   : > { %9568 = vmatprep.mubr.msk.bf16.mxu1 %vm413_vm2, %v2658_v25  ;;  %v2673_v41 = vpop.trf.xlu1 }
 0x100   : > { %v407_v42 = vpop.trf.xlu0 }
 0x101   : > { %9510 = vmatprep.mubr.msk.bf16.mxu0 %vm413_vm2, %v407_v42 }
 0x102   : > { %v2674_v43 = vpop.trf.xlu1 }
 0x104   : > { %v408_v44 = vpop.trf.xlu0 }
 0x105   : > { %9511 = vmatmul.mubr.msk.bf16.gmra.mxu0 %vm413_vm2, %v408_v44  ;;  %9569 = vmatmul.mubr.msk.bf16.gmra.mxu1 %vm413_vm2, %v2659_v27 }
 0x106   : > { %9572 = vmatprep.mubr.msk.bf16.mxu1 %vm413_vm2, %v2660_v30  ;;  %v2675_v45 = vpop.trf.xlu1 }
 0x108   : > { %v4779_v46 = vpop.trf.xlu0 }
 0x109   : > { %9590 = vmatprep.mubr.msk.bf16.mxu0 %vm413_vm2, %v4779_v46 }
 0x10a   : > { %v6950_v48 = vpop.trf.xlu1 }
 0x10b   : > { %4835 = vxpose.xlu0.c.b16.start.end [1/1] (short) (narrow) %v9214_v47, 64 }
 0x10c   : > { %v4780_v50 = vpop.trf.xlu0 }
 0x10d   : > { %9573 = vmatmul.mubr.msk.bf16.gmra.mxu1 %vm413_vm2, %v2661_v33  ;;  %9591 = vmatmul.mubr.msk.bf16.vlgmr.msra.gmra.mxu0 %vm413_vm2, %v4780_v50 }
 0x10e   : > { %9576 = vmatprep.mubr.msk.bf16.mxu1 %vm413_vm2, %v2662_v35  ;;  %v6951_v51 = vpop.trf.xlu1  ;;  %7006 = vxpose.xlu1.c.b16.start.end [1/1] (short) (narrow) %v9253_v49, 64 }
 0x110   : > { %v4781_v52 = vpop.trf.xlu0 }
 0x111   : > { %9594 = vmatprep.mubr.msk.bf16.mxu0 %vm413_vm2, %v4781_v52 }
 0x112   : > { %v6952_v53 = vpop.trf.xlu1 }
 0x114   : > { %v4782_v54 = vpop.trf.xlu0 }
 0x115   : > { %9577 = vmatmul.mubr.msk.bf16.gmra.mxu1 %vm413_vm2, %v2663_v37  ;;  %9595 = vmatmul.mubr.msk.bf16.gmra.mxu0 %vm413_vm2, %v4782_v54 }
 0x116   : > { %9580 = vmatprep.mubr.msk.bf16.mxu1 %vm413_vm2, %v2672_v39  ;;  %v6953_v55 = vpop.trf.xlu1 }
 0x118   : > { %v4783_v56 = vpop.trf.xlu0 }
 0x119   : > { %9598 = vmatprep.mubr.msk.bf16.mxu0 %vm413_vm2, %v4783_v56 }
 0x11a   : > { %v6954_v57 = vpop.trf.xlu1 }
 0x11c   : > { %v4784_v58 = vpop.trf.xlu0 }
 0x11d   : > { %9581 = vmatmul.mubr.msk.bf16.gmra.mxu1 %vm413_vm2, %v2673_v41  ;;  %9599 = vmatmul.mubr.msk.bf16.gmra.mxu0 %vm413_vm2, %v4784_v58 }
 0x11e   : > { %9584 = vmatprep.mubr.msk.bf16.mxu1 %vm413_vm2, %v2674_v43  ;;  %v6955_v59 = vpop.trf.xlu1 }
 0x120   : > { %v4785_v60 = vpop.trf.xlu0 }
 0x121   : > { %9602 = vmatprep.mubr.msk.bf16.mxu0 %vm413_vm2, %v4785_v60 }
 0x122   : > { %v6956_v61 = vpop.trf.xlu1 }
 0x124   : > { %v4786_v62 = vpop.trf.xlu0 }
 0x125   : > { %9585 = vmatmul.mubr.msk.bf16.gmra.mxu1 %vm413_vm2, %v2675_v45  ;;  %9603 = vmatmul.mubr.msk.bf16.gmra.mxu0 %vm413_vm2, %v4786_v62 }
 0x126   : > { %9664 = vmatprep.mubr.msk.bf16.mxu1 %vm413_vm2, %v6950_v48  ;;  %v6957_v1 = vpop.trf.xlu1 }
 0x128   : > { %v4795_v63 = vpop.trf.xlu0 }
 0x129   : > { %9606 = vmatprep.mubr.msk.bf16.mxu0 %vm413_vm2, %v4795_v63 }
 0x12a   : > { %v6966_v3 = vpop.trf.xlu1 }
 0x12c   : > { %v4796_v2 = vpop.trf.xlu0 }
 0x12d   : > { %9607 = vmatmul.mubr.msk.bf16.gmra.mxu0 %vm413_vm2, %v4796_v2  ;;  %9665 = vmatmul.mubr.msk.bf16.vlgmr.msra.gmra.mxu1 %vm413_vm2, %v6951_v51 }
 0x12e   : > { %9668 = vmatprep.mubr.msk.bf16.mxu1 %vm413_vm2, %v6952_v53  ;;  %v9989_v6 = vpop.trf.xlu1 }
 0x130   : > { %v4797_v4 = vpop.trf.xlu0 }
 0x131   : > { %9610 = vmatprep.mubr.msk.bf16.mxu0 %vm413_vm2, %v4797_v4 }
 0x132   : > { %v9998_v9 = vpop.trf.xlu1 }
 0x134   : > { %v4798_v5 = vpop.trf.xlu0 }
 0x135   : > { %9611 = vmatmul.mubr.msk.bf16.gmra.mxu0 %vm413_vm2, %v4798_v5  ;;  %9669 = vmatmul.mubr.msk.bf16.gmra.mxu1 %vm413_vm2, %v6953_v55 }
 0x136   : > { %9672 = vmatprep.mubr.msk.bf16.mxu1 %vm413_vm2, %v6954_v57  ;;  %v10006_v19 = vpop.trf.xlu1 }
 0x138   : > { %v4799_v7 = vpop.trf.xlu0 }
 0x139   : > { %9614 = vmatprep.mubr.msk.bf16.mxu0 %vm413_vm2, %v4799_v7 }
 0x13a   : > { %v10019_v43 = vpop.trf.xlu1 }
 0x13c   : > { %v4800_v11 = vpop.trf.xlu0 }
 0x13d   : > { %v9444_v12 = vpop.f32.mrf.mxu0  ;;  %9615 = vmatmul.mubr.msk.bf16.gmra.mxu0 %vm413_vm2, %v4800_v11  ;;  %9673 = vmatmul.mubr.msk.bf16.gmra.mxu1 %vm413_vm2, %v6955_v59 }
 0x13e   : > { %v572_v13 = vadd.f32 %v9444_v12, %v9996_v8  ;;  %9676 = vmatprep.mubr.msk.bf16.mxu1 %vm413_vm2, %v6956_v61  ;;  %v10030_v12 = vpop.trf.xlu1 }
 0x13f   : > { %v563_v14 = vpop.f32.mrf.mxu0 }
 0x140   : > { %v852_v15 = vmax.f32 %v572_v13, 0.0  ;;  %v564_v16 = vadd.f32 %v9996_v8, %v563_v14  ;;  %v4801_v17 = vpop.trf.xlu0 }
 0x141   : > { %v9445_v18 = vpop.f32.mrf.mxu0  ;;  %9618 = vmatprep.mubr.msk.bf16.mxu0 %vm413_vm2, %v4801_v17 }
 0x142   : > { %v996_v20 = vcombine.high %v852_v15, %v852_v15  ;;  %v1167_v21 = vsel %vm1138_vm3, %v852_v15, -inf  ;;  %v850_v22 = vmax.f32 %v564_v16, 0.0  ;;  %v575_v23 = vadd.f32 %v9445_v18, %v9996_v8 }
 0x143   : > { %v1168_v10 = vrot.slane %v1167_v21, 4  ;;  %v566_v24 = vpop.f32.mrf.mxu0 }
 0x144   : > { %v1174_v25 = vsel %vm1138_vm3, %v996_v20, -inf  ;;  %v994_v26 = vcombine.high %v850_v22, %v850_v22  ;;  %v1139_v27 = vsel %vm1138_vm3, %v850_v22, -inf  ;;  %v853_v28 = vmax.f32 %v575_v23, 0.0  ;;  %v4802_v29 = vpop.trf.xlu0 }
 0x145   : > { %v1169_v30 = vmax.f32 %v1167_v21, %v1168_v10  ;;  %v1175_v31 = vrot.slane %v1174_v25, 4  ;;  %v1140_v32 = vrot.slane %v1139_v27, 4  ;;  %v567_v33 = vadd.f32 %v9996_v8, %v566_v24  ;;  %v9448_v34 = vpop.f32.mrf.mxu0  ;;  %9619 = vmatmul.mubr.msk.bf16.gmra.mxu0 %vm413_vm2, %v4802_v29  ;;  %9677 = vmatmul.mubr.msk.bf16.gmra.mxu1 %vm413_vm2, %v6957_v1 }
 0x146   : > { %v1146_v35 = vsel %vm1138_vm3, %v994_v26, -inf  ;;  %v997_v36 = vcombine.high %v853_v28, %v853_v28  ;;  %v1181_v37 = vsel %vm1138_vm3, %v853_v28, -inf  ;;  %v588_v38 = vadd.f32 %v9448_v34, %v9996_v8  ;;  %9680 = vmatprep.mubr.msk.bf16.mxu1 %vm413_vm2, %v6966_v3 }
 0x147   : > { %v1170_v39 = vrot.slane %v1169_v30, 2  ;;  %v1176_v40 = vmax.f32 %v1174_v25, %v1175_v31  ;;  %v1141_v41 = vmax.f32 %v1139_v27, %v1140_v32  ;;  %v1147_v42 = vrot.slane %v1146_v35, 4  ;;  %v579_v2 = vpop.f32.mrf.mxu0 }
 0x148   : > { %v1182_v44 = vrot.slane %v1181_v37, 4  ;;  %v1188_v45 = vsel %vm1138_vm3, %v997_v36, -inf  ;;  %v851_v46 = vmax.f32 %v567_v33, 0.0  ;;  %v856_v47 = vmax.f32 %v588_v38, 0.0  ;;  %v4811_v48 = vpop.trf.xlu0 }
 0x149   : > { %v1171_v49 = vmax.f32 %v1169_v30, %v1170_v39  ;;  %v1177_v50 = vrot.slane %v1176_v40, 2  ;;  %v1142_v51 = vrot.slane %v1141_v41, 2  ;;  %v1148_v52 = vmax.f32 %v1146_v35, %v1147_v42  ;;  %9622 = vmatprep.mubr.msk.bf16.mxu0 %vm413_vm2, %v4811_v48 }
 0x14a   : > { %v1183_v53 = vmax.f32 %v1181_v37, %v1182_v44  ;;  %v1189_v54 = vrot.slane %v1188_v45, 4  ;;  %v995_v55 = vcombine.high %v851_v46, %v851_v46  ;;  %v1153_v56 = vsel %vm1138_vm3, %v851_v46, -inf  ;;  %v6972_v37 = vpop.trf.xlu1 }
 0x14b   : > { %v1172_v57 = vrot.slane %v1171_v49, 1  ;;  %v1178_v58 = vmax.f32 %v1176_v40, %v1177_v50  ;;  %v1143_v59 = vmax.f32 %v1141_v41, %v1142_v51  ;;  %v1149_v60 = vrot.slane %v1148_v52, 2 }
 0x14c   : > { %v1184_v61 = vrot.slane %v1183_v53, 2  ;;  %v1190_v62 = vmax.f32 %v1188_v45, %v1189_v54  ;;  %v1154_v63 = vrot.slane %v1153_v56, 4  ;;  %v1160_v1 = vsel %vm1138_vm3, %v995_v55, -inf  ;;  %v4812_v3 = vpop.trf.xlu0 }
 0x14d   : > { %v10025_v4 = vmax.f32 %v1171_v49, %v1172_v57  ;;  %v1179_v5 = vrot.slane %v1178_v58, 1  ;;  %v1144_v7 = vrot.slane %v1143_v59, 1  ;;  %v1150_v11 = vmax.f32 %v1148_v52, %v1149_v60  ;;  %9623 = vmatmul.mubr.msk.bf16.gmra.mxu0 %vm413_vm2, %v4812_v3  ;;  %9681 = vmatmul.mubr.msk.bf16.gmra.mxu1 %vm413_vm2, %v9989_v6  ;;  %v9449_v6 = vpop.f32.mrf.mxu0 }
 0x14e   : > { %v1185_v13 = vmax.f32 %v1183_v53, %v1184_v61  ;;  %v1191_v14 = vrot.slane %v1190_v62, 2  ;;  %v1155_v15 = vmax.f32 %v1153_v56, %v1154_v63  ;;  %v1161_v16 = vrot.slane %v1160_v1, 4  ;;  %9684 = vmatprep.mubr.msk.bf16.mxu1 %vm413_vm2, %v9998_v9 }
 0x14f   : > { %v10034_v17 = vmax.f32 %v1178_v58, %v1179_v5  ;;  %v10036_v18 = vmax.f32 %v1143_v59, %v1144_v7  ;;  %v1151_v20 = vrot.slane %v1150_v11, 1  ;;  %v1000_v21 = vcombine.high %v856_v47, %v856_v47  ;;  %v582_v42 = vpop.f32.mrf.mxu0 }
 0x150   : > { %v1186_v22 = vrot.slane %v1185_v13, 1  ;;  %v1192_v23 = vmax.f32 %v1190_v62, %v1191_v14  ;;  %v1156_v10 = vrot.slane %v1155_v15, 2  ;;  %v1162_v24 = vmax.f32 %v1160_v1, %v1161_v16  ;;  %v4813_v25 = vpop.trf.xlu0 }
 0x151   : > { %v10038_v26 = vmax.f32 %v1150_v11, %v1151_v20  ;;  %v1223_v27 = vsel %vm1138_vm3, %v856_v47, -inf  ;;  %v1230_v28 = vsel %vm1138_vm3, %v1000_v21, -inf  ;;  %v580_v9 = vadd.f32 %v9996_v8, %v579_v2  ;;  %9626 = vmatprep.mubr.msk.bf16.mxu0 %vm413_vm2, %v4813_v25  ;;  %v9452_v60 = vpop.f32.mrf.mxu0 }
 0x152   : > { %v10044_v29 = vmax.f32 %v1185_v13, %v1186_v22  ;;  %v1193_v30 = vrot.slane %v1192_v23, 1  ;;  %v1157_v31 = vmax.f32 %v1155_v15, %v1156_v10  ;;  %v1163_v32 = vrot.slane %v1162_v24, 2 }
 0x153   : > { %v1224_v33 = vrot.slane %v1223_v27, 4  ;;  %v1231_v34 = vrot.slane %v1230_v28, 4  ;;  %v854_v35 = vmax.f32 %v580_v9, 0.0  ;;  %v591_v36 = vadd.f32 %v9449_v6, %v9996_v8 }
 0x154   : > { %v1194_v38 = vmax.f32 %v1192_v23, %v1193_v30  ;;  %v2147_v39 = vmax.f32 %v10036_v18, %v10044_v29  ;;  %v1158_v40 = vrot.slane %v1157_v31, 1  ;;  %v1164_v41 = vmax.f32 %v1162_v24, %v1163_v32  ;;  %v4814_v44 = vpop.trf.xlu0  ;;  %v595_v29 = vpop.f32.mrf.mxu0 }
 0x155   : > { %v1225_v45 = vmax.f32 %v1223_v27, %v1224_v33  ;;  %v1232_v46 = vmax.f32 %v1230_v28, %v1231_v34  ;;  %v998_v47 = vcombine.high %v854_v35, %v854_v35  ;;  %v1195_v48 = vsel %vm1138_vm3, %v854_v35, -inf  ;;  %9627 = vmatmul.mubr.msk.bf16.gmra.mxu0 %vm413_vm2, %v4814_v44  ;;  %9685 = vmatmul.mubr.msk.bf16.gmra.mxu1 %vm413_vm2, %v10006_v19 }
 0x156   : > { %v2150_v49 = vmax.f32 %v10038_v26, %v1194_v38  ;;  %v10054_v50 = vmax.f32 %v1157_v31, %v1158_v40  ;;  %v1165_v51 = vrot.slane %v1164_v41, 1  ;;  %v1196_v52 = vrot.slane %v1195_v48, 4  ;;  %9688 = vmatprep.mubr.msk.bf16.mxu1 %vm413_vm2, %v10019_v43  ;;  %v6973_v43 = vpop.trf.xlu1 }
 0x157   : > { %v1226_v53 = vrot.slane %v1225_v45, 2  ;;  %v1233_v54 = vrot.slane %v1232_v46, 2  ;;  %v1202_v55 = vsel %vm1138_vm3, %v998_v47, -inf  ;;  %v857_v56 = vmax.f32 %v591_v36, 0.0 }
 0x158   : > { %v10059_v57 = vmax.f32 %v1164_v41, %v1165_v51  ;;  %v1197_v58 = vmax.f32 %v1195_v48, %v1196_v52  ;;  %v1203_v59 = vrot.slane %v1202_v55, 4  ;;  %v583_v19 = vadd.f32 %v9996_v8, %v582_v42  ;;  %v4815_v61 = vpop.trf.xlu0 }
 0x159   : > { %v1227_v62 = vmax.f32 %v1225_v45, %v1226_v53  ;;  %v1234_v63 = vmax.f32 %v1232_v46, %v1233_v54  ;;  %v1001_v1 = vcombine.high %v857_v56, %v857_v56  ;;  %v1237_v2 = vsel %vm1138_vm3, %v857_v56, -inf  ;;  %9630 = vmatprep.mubr.msk.bf16.mxu0 %vm413_vm2, %v4815_v61 }
 0x15a   : > { %v1198_v3 = vrot.slane %v1197_v58, 2  ;;  %v1204_v5 = vmax.f32 %v1202_v55, %v1203_v59  ;;  %v1238_v7 = vrot.slane %v1237_v2, 4  ;;  %v855_v11 = vmax.f32 %v583_v19, 0.0  ;;  %v6982_v34 = vpop.trf.xlu1 }
 0x15b   : > { %v1228_v13 = vrot.slane %v1227_v62, 1  ;;  %v1235_v14 = vrot.slane %v1234_v63, 1  ;;  %v1244_v15 = vsel %vm1138_vm3, %v1001_v1, -inf  ;;  %v604_v16 = vadd.f32 %v9452_v60, %v9996_v8 }
 0x15c   : > { %v1199_v18 = vmax.f32 %v1197_v58, %v1198_v3  ;;  %v1205_v20 = vrot.slane %v1204_v5, 2  ;;  %v1239_v21 = vmax.f32 %v1237_v2, %v1238_v7  ;;  %v1245_v22 = vrot.slane %v1244_v15, 4  ;;  %v4816_v23 = vpop.trf.xlu0  ;;  %v9453_v58 = vpop.f32.mrf.mxu0 }
 0x15d   : > { %v1229_v10 = vmax.f32 %v1227_v62, %v1228_v13  ;;  %v1236_v24 = vmax.f32 %v1234_v63, %v1235_v14  ;;  %v999_v6 = vcombine.high %v855_v11, %v855_v11  ;;  %v1209_v25 = vsel %vm1138_vm3, %v855_v11, -inf  ;;  %9631 = vmatmul.mubr.msk.bf16.gmra.mxu0 %vm413_vm2, %v4816_v23  ;;  %9689 = vmatmul.mubr.msk.bf16.gmra.mxu1 %vm413_vm2, %v10030_v12 }
 0x15e   : > { %v1200_v26 = vrot.slane %v1199_v18, 1  ;;  %v1206_v27 = vmax.f32 %v1204_v5, %v1205_v20  ;;  %v1240_v28 = vrot.slane %v1239_v21, 2  ;;  %v1246_v9 = vmax.f32 %v1244_v15, %v1245_v22  ;;  %9692 = vmatprep.mubr.msk.bf16.mxu1 %vm413_vm2, %v6972_v37 }
 0x15f   : > { %v10071_v30 = vmax.f32 %v2147_v39, %v1229_v10  ;;  %v10073_v31 = vmax.f32 %v2150_v49, %v1236_v24  ;;  %v1210_v32 = vrot.slane %v1209_v25, 4  ;;  %v1216_v33 = vsel %vm1138_vm3, %v999_v6, -inf }
 0x160   : > { %v1201_v35 = vmax.f32 %v1199_v18, %v1200_v26  ;;  %v1207_v36 = vrot.slane %v1206_v27, 1  ;;  %v1241_v38 = vmax.f32 %v1239_v21, %v1240_v28  ;;  %v1247_v40 = vrot.slane %v1246_v9, 2  ;;  %v4817_v12 = vpop.trf.xlu0  ;;  %v598_v18 = vpop.f32.mrf.mxu0 }
 0x161   : > { %v1211_v41 = vmax.f32 %v1209_v25, %v1210_v32  ;;  %v1217_v42 = vrot.slane %v1216_v33, 4  ;;  %v860_v44 = vmax.f32 %v604_v16, 0.0  ;;  %v596_v45 = vadd.f32 %v9996_v8, %v595_v29  ;;  %9634 = vmatprep.mubr.msk.bf16.mxu0 %vm413_vm2, %v4817_v12 }
 0x162   : > { %v1208_v37 = vmax.f32 %v1206_v27, %v1207_v36  ;;  %v2153_v39 = vmax.f32 %v10054_v50, %v1201_v35  ;;  %v1242_v46 = vrot.slane %v1241_v38, 1  ;;  %v1248_v47 = vmax.f32 %v1246_v9, %v1247_v40  ;;  %v6983_v50 = vpop.trf.xlu1 }
 0x163   : > { %v1212_v48 = vrot.slane %v1211_v41, 2  ;;  %v1218_v49 = vmax.f32 %v1216_v33, %v1217_v42  ;;  %v1004_v51 = vcombine.high %v860_v44, %v860_v44  ;;  %v1279_v52 = vsel %vm1138_vm3, %v860_v44, -inf }
 0x164   : > { %v2156_v53 = vmax.f32 %v10059_v57, %v1208_v37  ;;  %v1243_v54 = vmax.f32 %v1241_v38, %v1242_v46  ;;  %v1249_v55 = vrot.slane %v1248_v47, 1  ;;  %v1280_v56 = vrot.slane %v1279_v52, 4  ;;  %v4818_v59 = vpop.trf.xlu0  ;;  %v10099_v37 = vld [vmem:[%s13699_s5] sm:$0xff] }
 0x165   : > { %v1213_v19 = vmax.f32 %v1211_v41, %v1212_v48  ;;  %v1219_v60 = vrot.slane %v1218_v49, 2  ;;  %v1286_v61 = vsel %vm1138_vm3, %v1004_v51, -inf  ;;  %v858_v62 = vmax.f32 %v596_v45, 0.0  ;;  %9635 = vmatmul.mubr.msk.bf16.gmra.mxu0 %vm413_vm2, %v4818_v59  ;;  %9693 = vmatmul.mubr.msk.bf16.gmra.mxu1 %vm413_vm2, %v6973_v43  ;;  %v9456_v48 = vpop.f32.mrf.mxu0 }
 0x166   : > { %v1250_v63 = vmax.f32 %v1248_v47, %v1249_v55  ;;  %v2154_v1 = vmax.f32 %v2153_v39, %v1243_v54  ;;  %v1281_v2 = vmax.f32 %v1279_v52, %v1280_v56  ;;  %v1287_v3 = vrot.slane %v1286_v61, 4  ;;  %9696 = vmatprep.mubr.msk.bf16.mxu1 %vm413_vm2, %v6982_v34  ;;  %v6984_v29 = vpop.trf.xlu1 }
 0x167   : > { %v1214_v57 = vrot.slane %v1213_v19, 1  ;;  %v1220_v5 = vmax.f32 %v1218_v49, %v1219_v60  ;;  %v1002_v7 = vcombine.high %v858_v62, %v858_v62  ;;  %v1251_v11 = vsel %vm1138_vm3, %v858_v62, -inf }
 0x168   : > { %v2157_v13 = vmax.f32 %v2156_v53, %v1250_v63  ;;  %v1282_v14 = vrot.slane %v1281_v2, 2  ;;  %v1288_v15 = vmax.f32 %v1286_v61, %v1287_v3  ;;  %v1252_v16 = vrot.slane %v1251_v11, 4  ;;  %v4827_v20 = vpop.trf.xlu0  ;;  %v611_v3 = vpop.f32.mrf.mxu0 }
 0x169   : > { %v1215_v21 = vmax.f32 %v1213_v19, %v1214_v57  ;;  %v1221_v43 = vrot.slane %v1220_v5, 1  ;;  %v1258_v22 = vsel %vm1138_vm3, %v1002_v7, -inf  ;;  %v607_v23 = vadd.f32 %v9453_v58, %v9996_v8  ;;  %9638 = vmatprep.mubr.msk.bf16.mxu0 %vm413_vm2, %v4827_v20 }
 0x16a   : > { %v1283_v10 = vmax.f32 %v1281_v2, %v1282_v14  ;;  %v1289_v24 = vrot.slane %v1288_v15, 2  ;;  %v1253_v6 = vmax.f32 %v1251_v11, %v1252_v16  ;;  %v1259_v25 = vrot.slane %v1258_v22, 4 }
 0x16b   : > { %v1222_v26 = vmax.f32 %v1220_v5, %v1221_v43  ;;  %v2159_v27 = vmax.f32 %v10025_v4, %v1215_v21  ;;  %v861_v28 = vmax.f32 %v607_v23, 0.0  ;;  %v599_v9 = vadd.f32 %v9996_v8, %v598_v18 }
 0x16c   : > { %v1284_v32 = vrot.slane %v1283_v10, 1  ;;  %v1290_v33 = vmax.f32 %v1288_v15, %v1289_v24  ;;  %v1254_v34 = vrot.slane %v1253_v6, 2  ;;  %v1260_v35 = vmax.f32 %v1258_v22, %v1259_v25  ;;  %v4828_v36 = vpop.trf.xlu0 }
 0x16d   : > { %v2162_v38 = vmax.f32 %v10034_v17, %v1222_v26  ;;  %v1005_v40 = vcombine.high %v861_v28, %v861_v28  ;;  %v1293_v12 = vsel %vm1138_vm3, %v861_v28, -inf  ;;  %v859_v41 = vmax.f32 %v599_v9, 0.0  ;;  %9639 = vmatmul.mubr.msk.bf16.gmra.mxu0 %vm413_vm2, %v4828_v36  ;;  %9697 = vmatmul.mubr.msk.bf16.gmra.mxu1 %vm413_vm2, %v6983_v50 }
 0x16e   : > { %v1285_v4 = vmax.f32 %v1283_v10, %v1284_v32  ;;  %v1291_v42 = vrot.slane %v1290_v33, 1  ;;  %v1255_v44 = vmax.f32 %v1253_v6, %v1254_v34  ;;  %v1261_v45 = vrot.slane %v1260_v35, 2  ;;  %9700 = vmatprep.mubr.msk.bf16.mxu1 %vm413_vm2, %v6984_v29  ;;  %v9457_v6 = vpop.f32.mrf.mxu0 }
 0x16f   : > { %v1294_v17 = vrot.slane %v1293_v12, 4  ;;  %v1300_v39 = vsel %vm1138_vm3, %v1005_v40, -inf  ;;  %v1003_v46 = vcombine.high %v859_v41, %v859_v41  ;;  %v1265_v47 = vsel %vm1138_vm3, %v859_v41, -inf  ;;  %v6985_v40 = vpop.trf.xlu1 }
 0x170   : > { %v1292_v49 = vmax.f32 %v1290_v33, %v1291_v42  ;;  %v10103_v51 = vmax.f32 %v2154_v1, %v1285_v4  ;;  %v1256_v52 = vrot.slane %v1255_v44, 1  ;;  %v1262_v53 = vmax.f32 %v1260_v35, %v1261_v45  ;;  %v4829_v54 = vpop.trf.xlu0  ;;  %v614_v45 = vpop.f32.mrf.mxu0 }
 0x171   : > { %v1295_v55 = vmax.f32 %v1293_v12, %v1294_v17  ;;  %v1301_v56 = vrot.slane %v1300_v39, 4  ;;  %v1266_v58 = vrot.slane %v1265_v47, 4  ;;  %v1272_v59 = vsel %vm1138_vm3, %v1003_v46, -inf  ;;  %9642 = vmatprep.mubr.msk.bf16.mxu0 %vm413_vm2, %v4829_v54 }
 0x172   : > { %v10107_v19 = vmax.f32 %v2157_v13, %v1292_v49  ;;  %v10110_v60 = vrot.slane %v10099_v37, 2  ;;  %v1257_v61 = vmax.f32 %v1255_v44, %v1256_v52  ;;  %v1263_v62 = vrot.slane %v1262_v53, 1 }
 0x173   : > { %v1296_v50 = vrot.slane %v1295_v55, 2  ;;  %v1302_v63 = vmax.f32 %v1300_v39, %v1301_v56  ;;  %v1267_v1 = vmax.f32 %v1265_v47, %v1266_v58  ;;  %v1273_v2 = vrot.slane %v1272_v59, 4 }
 0x174   : > { %13807 = vst [vmem:[#allocation3_spill] sm:$0xff] %v10110_v60  ;;  %v10113_v57 = vrot.slane %v10099_v37, 3  ;;  %v1264_v5 = vmax.f32 %v1262_v53, %v1263_v62  ;;  %v2160_v7 = vmax.f32 %v2159_v27, %v1257_v61  ;;  %v10116_v11 = vrot.slane %v10099_v37, 4  ;;  %v4830_v12 = vpop.trf.xlu0 }
 0x175   : > { %v1297_v13 = vmax.f32 %v1295_v55, %v1296_v50  ;;  %v1303_v14 = vrot.slane %v1302_v63, 2  ;;  %v1268_v15 = vrot.slane %v1267_v1, 2  ;;  %v1274_v16 = vmax.f32 %v1272_v59, %v1273_v2  ;;  %9643 = vmatmul.mubr.msk.bf16.gmra.mxu0 %vm413_vm2, %v4830_v12  ;;  %9701 = vmatmul.mubr.msk.bf16.gmra.mxu1 %vm413_vm2, %v6985_v40  ;;  %v9518_v12 = vpop.f32.mrf.mxu1 }
 0x176   : > { %13808 = vst [vmem:[#allocation4_spill] sm:$0xff] %v10113_v57  ;;  %v2163_v18 = vmax.f32 %v2162_v38, %v1264_v5  ;;  %v10119_v20 = vrot.slane %v10099_v37, 5  ;;  %v620_v21 = vadd.f32 %v9456_v48, %v9996_v8  ;;  %v612_v43 = vadd.f32 %v9996_v8, %v611_v3  ;;  %v10139_v48 = vld [vmem:[%s13699_s5 + $0x8] sm:$0xff] }
 0x177   : > { %v1298_v22 = vrot.slane %v1297_v13, 1  ;;  %v1304_v23 = vmax.f32 %v1302_v63, %v1303_v14  ;;  %v1269_v10 = vmax.f32 %v1267_v1, %v1268_v15  ;;  %v1275_v24 = vrot.slane %v1274_v16, 2 }
 0x178   : > { %13809 = vst [vmem:[#allocation5_spill] sm:$0xff] %v10119_v20  ;;  %v10125_v25 = vmul.f32 %v10110_v60, %v10103_v51  ;;  %v10128_v26 = vrot.slane %v10099_v37, 1  ;;  %v864_v27 = vmax.f32 %v620_v21, 0.0  ;;  %v862_v28 = vmax.f32 %v612_v43, 0.0 }
 0x179   : > { %v1299_v9 = vmax.f32 %v1297_v13, %v1298_v22  ;;  %v1305_v29 = vrot.slane %v1304_v23, 1  ;;  %v1270_v32 = vrot.slane %v1269_v10, 1  ;;  %v1276_v33 = vmax.f32 %v1274_v16, %v1275_v24 }
 0x17a   : > { %v1008_v34 = vcombine.high %v864_v27, %v864_v27  ;;  %v1335_v35 = vsel %vm1138_vm3, %v864_v27, -inf  ;;  %v1006_v36 = vcombine.high %v862_v28, %v862_v28  ;;  %v1307_v38 = vsel %vm1138_vm3, %v862_v28, -inf }
 0x17b   : > { %v1306_v41 = vmax.f32 %v1304_v23, %v1305_v29  ;;  %v2161_v4 = vmax.f32 %v2160_v7, %v1299_v9  ;;  %v1271_v42 = vmax.f32 %v1269_v10, %v1270_v32  ;;  %v1277_v44 = vrot.slane %v1276_v33, 1 }
 0x17c   : > { %v1336_v17 = vrot.slane %v1335_v35, 4  ;;  %v1342_v39 = vsel %vm1138_vm3, %v1008_v34, -inf  ;;  %v1308_v46 = vrot.slane %v1307_v38, 4  ;;  %v623_v47 = vadd.f32 %v9457_v6, %v9996_v8 }
 0x17d   : > { %v2164_v49 = vmax.f32 %v2163_v18, %v1306_v41  ;;  %v2257_v52 = vmax.f32 %v10107_v19, %v2161_v4  ;;  %v1278_v53 = vmax.f32 %v1276_v33, %v1277_v44  ;;  %v1314_v54 = vsel %vm1138_vm3, %v1006_v36, -inf }
 0x17e   : > { %v2149_v55 = vmax.f32 %v10071_v30, %v1271_v42  ;;  %v1337_v56 = vmax.f32 %v1335_v35, %v1336_v17  ;;  %v1343_v58 = vrot.slane %v1342_v39, 4  ;;  %v1309_v59 = vmax.f32 %v1307_v38, %v1308_v46 }
 0x17f   : > { %v10144_v61 = vmax.f32 %v2257_v52, %v2164_v49  ;;  %v2152_v62 = vmax.f32 %v10073_v31, %v1278_v53  ;;  %v615_v50 = vadd.f32 %v9996_v8, %v614_v45  ;;  %v10149_v63 = vrot.slane %v10139_v48, 1 }
 0x180   : > { %v2400_v1 = vmul.f32 %v10113_v57, %v10107_v19  ;;  %v1338_v2 = vrot.slane %v1337_v56, 2  ;;  %v1344_v3 = vmax.f32 %v1342_v39, %v1343_v58  ;;  %v1310_v5 = vrot.slane %v1309_v59, 2 }
 0x181   : > { %13810 = vst [vmem:[#allocation6_spill] sm:$0xff] %v10144_v61  ;;  %13811 = vst [vmem:[#allocation7_spill] sm:$0xff] %v10149_v63  ;;  %v2471_v30 = vrot.slane %v10125_v25, 6  ;;  %v2255_v7 = vmax.f32 %v2149_v55, %v2152_v62  ;;  %v2398_v13 = vmul.f32 %v10128_v26, %v2152_v62  ;;  %v1315_v14 = vrot.slane %v1314_v54, 4  ;;  %v9460_v25 = vpop.f32.mrf.mxu0 }
 0x182   : > { %v10156_v15 = vmul.f32 %v10116_v11, %v2161_v4  ;;  %v2397_v31 = vmul.f32 %v2149_v55, %v10099_v37  ;;  %v10159_v16 = vmax.f32 %v1337_v56, %v1338_v2  ;;  %v865_v18 = vmax.f32 %v623_v47, 0.0 }
 0x183   : > { %v10162_v21 = vmax.f32 %v2255_v7, %v10103_v51  ;;  %v2469_v19 = vrot.slane %v2398_v13, 7  ;;  %v1316_v43 = vmax.f32 %v1314_v54, %v1315_v14  ;;  %v863_v22 = vmax.f32 %v615_v50, 0.0  ;;  %v627_v45 = vpop.f32.mrf.mxu0  ;;  %v2822_v13 = vpop.f32.mrf.mxu1 }
 0x184   : > { %v2473_v23 = vrot.slane %v2400_v1, 5  ;;  %v1345_v10 = vrot.slane %v1344_v3, 2  ;;  %v1311_v24 = vmax.f32 %v1309_v59, %v1310_v5  ;;  %v1009_v6 = vcombine.high %v865_v18, %v865_v18 }
 0x185   : > { %13812 = vst [vmem:[#allocation8_spill] sm:$0xff] %v10162_v21  ;;  %v2470_v27 = vsel %vm2308_vm4, %v2469_v19, %v2397_v31  ;;  %v1317_v28 = vrot.slane %v1316_v43, 2  ;;  %v1349_v9 = vsel %vm1138_vm3, %v865_v18, -inf  ;;  %v1007_v29 = vcombine.high %v863_v22, %v863_v22 }
 0x186   : > { %v10167_v32 = vmul.f32 %v10119_v20, %v2164_v49  ;;  %v2472_v33 = vsel %vm2311_vm5, %v2471_v30, %v2470_v27  ;;  %v1340_v34 = vrot.slane %v10159_v16, 1  ;;  %v1350_v38 = vrot.slane %v1349_v9, 4 }
 0x187   : > { %v10173_v35 = vsel %vm2314_vm6, %v2473_v23, %v2472_v33  ;;  %v1318_v36 = vmax.f32 %v1316_v43, %v1317_v28  ;;  %v1356_v40 = vsel %vm1138_vm3, %v1009_v6, -inf  ;;  %v1346_v41 = vmax.f32 %v1344_v3, %v1345_v10 }
 0x188   : > { %v1357_v4 = vrot.slane %v1356_v40, 4  ;;  %v1321_v42 = vsel %vm1138_vm3, %v863_v22, -inf  ;;  %v1328_v44 = vsel %vm1138_vm3, %v1007_v29, -inf  ;;  %v1312_v17 = vrot.slane %v1311_v24, 1 }
 0x189   : > { %v1351_v39 = vmax.f32 %v1349_v9, %v1350_v38  ;;  %v1322_v46 = vrot.slane %v1321_v42, 4  ;;  %v1329_v47 = vrot.slane %v1328_v44, 4  ;;  %v1319_v49 = vrot.slane %v1318_v36, 1  ;;  %v6986_v38 = vpop.trf.xlu1 }
 0x18a   : > { %v1358_v52 = vmax.f32 %v1356_v40, %v1357_v4  ;;  %v636_v53 = vadd.f32 %v9460_v25, %v9996_v8  ;;  %v2831_v54 = vadd.f32 %v9518_v12, %v9996_v8  ;;  %v628_v59 = vadd.f32 %v9996_v8, %v627_v45  ;;  %v4831_v40 = vpop.trf.xlu0  ;;  %9704 = vmatprep.mubr.msk.bf16.mxu1 %vm413_vm2, %v6986_v38 }
 0x18b   : > { %v1352_v55 = vrot.slane %v1351_v39, 2  ;;  %v1323_v56 = vmax.f32 %v1321_v42, %v1322_v46  ;;  %v1330_v58 = vmax.f32 %v1328_v44, %v1329_v47  ;;  %v1347_v62 = vrot.slane %v1346_v41, 1  ;;  %9646 = vmatprep.mubr.msk.bf16.mxu0 %vm413_vm2, %v4831_v40 }
 0x18c   : > { %v1359_v50 = vrot.slane %v1358_v52, 2  ;;  %v868_v1 = vmax.f32 %v636_v53, 0.0  ;;  %v3111_v2 = vmax.f32 %v2831_v54, 0.0  ;;  %v10181_v3 = vmax.f32 %v1311_v24, %v1312_v17 }
 0x18d   : > { %v1353_v5 = vmax.f32 %v1351_v39, %v1352_v55  ;;  %v1324_v30 = vrot.slane %v1323_v56, 2  ;;  %v1331_v7 = vrot.slane %v1330_v58, 2  ;;  %v10184_v43 = vmax.f32 %v1318_v36, %v1319_v49 }
 0x18e   : > { %v1360_v14 = vmax.f32 %v1358_v52, %v1359_v50  ;;  %v1012_v31 = vcombine.high %v868_v1, %v868_v1  ;;  %v1391_v18 = vsel %vm1138_vm3, %v868_v1, -inf  ;;  %v3255_v19 = vcombine.high %v3111_v2, %v3111_v2 }
 0x18f   : > { %v1354_v22 = vrot.slane %v1353_v5, 1  ;;  %v1392_v23 = vrot.slane %v1391_v18, 4  ;;  %v866_v10 = vmax.f32 %v628_v59, 0.0  ;;  %v3425_v24 = vsel %vm1138_vm3, %v3111_v2, -inf  ;;  %v9461_v2 = vpop.f32.mrf.mxu0 }
 0x190   : > { %v1361_v6 = vrot.slane %v1360_v14, 1  ;;  %v1398_v25 = vsel %vm1138_vm3, %v1012_v31, -inf  ;;  %v2823_v27 = vadd.f32 %v9996_v8, %v2822_v13  ;;  %v1325_v9 = vmax.f32 %v1323_v56, %v1324_v30 }
 0x191   : > { %v1355_v28 = vmax.f32 %v1353_v5, %v1354_v22  ;;  %v1393_v29 = vmax.f32 %v1391_v18, %v1392_v23  ;;  %v3432_v33 = vsel %vm1138_vm3, %v3255_v19, -inf  ;;  %v1332_v36 = vmax.f32 %v1330_v58, %v1331_v7 }
 0x192   : > { %v1362_v12 = vmax.f32 %v1360_v14, %v1361_v6  ;;  %v1399_v4 = vrot.slane %v1398_v25, 4  ;;  %v3426_v42 = vrot.slane %v3425_v24, 4  ;;  %v10193_v44 = vmax.f32 %v10159_v16, %v1340_v34 }
 0x193   : > { %v10195_v45 = vmax.f32 %v1346_v41, %v1347_v62  ;;  %v2165_v17 = vmax.f32 %v10181_v3, %v1355_v28  ;;  %v1394_v39 = vrot.slane %v1393_v29, 2  ;;  %v3433_v52 = vrot.slane %v3432_v33, 4  ;;  %v630_v28 = vpop.f32.mrf.mxu0 }
 0x194   : > { %v2168_v46 = vmax.f32 %v10184_v43, %v1362_v12  ;;  %v1400_v47 = vmax.f32 %v1398_v25, %v1399_v4  ;;  %v3427_v49 = vmax.f32 %v3425_v24, %v3426_v42  ;;  %v1010_v54 = vcombine.high %v866_v10, %v866_v10 }
 0x195   : > { %v1395_v53 = vmax.f32 %v1393_v29, %v1394_v39  ;;  %v1363_v55 = vsel %vm1138_vm3, %v866_v10, -inf  ;;  %v3109_v56 = vmax.f32 %v2823_v27, 0.0  ;;  %v1326_v58 = vrot.slane %v1325_v9, 1  ;;  %v9519_v27 = vpop.f32.mrf.mxu1 }
 0x196   : > { %v1333_v59 = vrot.slane %v1332_v36, 1  ;;  %v1401_v50 = vrot.slane %v1400_v47, 2  ;;  %v1364_v16 = vrot.slane %v1363_v55, 4  ;;  %v1370_v41 = vsel %vm1138_vm3, %v1010_v54, -inf }
 0x197   : > { %v1396_v34 = vrot.slane %v1395_v53, 1  ;;  %v3253_v62 = vcombine.high %v3109_v56, %v3109_v56  ;;  %v3397_v1 = vsel %vm1138_vm3, %v3109_v56, -inf  ;;  %v3428_v5 = vrot.slane %v3427_v49, 2 }
 0x198   : > { %v1402_v3 = vmax.f32 %v1400_v47, %v1401_v50  ;;  %v3434_v30 = vmax.f32 %v3432_v33, %v3433_v52  ;;  %v1365_v7 = vmax.f32 %v1363_v55, %v1364_v16  ;;  %v1371_v14 = vrot.slane %v1370_v41, 4  ;;  %v2825_v50 = vpop.f32.mrf.mxu1 }
 0x199   : > { %v1397_v13 = vmax.f32 %v1395_v53, %v1396_v34  ;;  %v3398_v31 = vrot.slane %v3397_v1, 4  ;;  %v3404_v18 = vsel %vm1138_vm3, %v3253_v62, -inf  ;;  %v10203_v19 = vmax.f32 %v1325_v9, %v1326_v58 }
 0x19a   : > { %v10205_v43 = vmax.f32 %v1332_v36, %v1333_v59  ;;  %v1403_v22 = vrot.slane %v1402_v3, 1  ;;  %v1366_v23 = vrot.slane %v1365_v7, 2  ;;  %v1372_v6 = vmax.f32 %v1370_v41, %v1371_v14 }
 0x19b   : > { %v10207_v10 = vmax.f32 %v2165_v17, %v1397_v13  ;;  %v3399_v25 = vmax.f32 %v3397_v1, %v3398_v31  ;;  %v3405_v24 = vrot.slane %v3404_v18, 4  ;;  %v10209_v33 = vmax.f32 %v3427_v49, %v3428_v5  ;;  %v6987_v5 = vpop.trf.xlu1 }
 0x19c   : > { %v1404_v29 = vmax.f32 %v1402_v3, %v1403_v22  ;;  %v3435_v38 = vrot.slane %v3434_v30, 2  ;;  %v1367_v40 = vmax.f32 %v1365_v7, %v1366_v23  ;;  %v1373_v12 = vrot.slane %v1372_v6, 2  ;;  %9705 = vmatmul.mubr.msk.bf16.gmra.mxu1 %vm413_vm2, %v6987_v5 }
 0x19d   : > { %v3400_v4 = vrot.slane %v3399_v25, 2  ;;  %v3406_v9 = vmax.f32 %v3404_v18, %v3405_v24  ;;  %v639_v36 = vadd.f32 %v9461_v2, %v9996_v8  ;;  %v2834_v17 = vadd.f32 %v9519_v27, %v9996_v8 }
 0x19e   : > { %v10212_v42 = vmax.f32 %v2168_v46, %v1404_v29  ;;  %v1368_v39 = vrot.slane %v1367_v40, 1  ;;  %v631_v47 = vadd.f32 %v9996_v8, %v630_v28  ;;  %v1374_v52 = vmax.f32 %v1372_v6, %v1373_v12  ;;  %v9464_v28 = vpop.f32.mrf.mxu0 }
 0x19f   : > { %v3401_v53 = vmax.f32 %v3399_v25, %v3400_v4  ;;  %v3407_v54 = vrot.slane %v3406_v9, 2  ;;  %v869_v55 = vmax.f32 %v639_v36, 0.0  ;;  %v10216_v49 = vmax.f32 %v3434_v30, %v3435_v38  ;;  %v4832_v30 = vpop.trf.xlu0 }
 0x1a0   : > { %v10218_v56 = vmax.f32 %v1367_v40, %v1368_v39  ;;  %v3112_v58 = vmax.f32 %v2834_v17, 0.0  ;;  %v867_v59 = vmax.f32 %v631_v47, 0.0  ;;  %v1375_v16 = vrot.slane %v1374_v52, 1  ;;  %9647 = vmatmul.mubr.msk.bf16.gmra.mxu0 %vm413_vm2, %v4832_v30 }
 0x1a1   : > { %v3402_v34 = vrot.slane %v3401_v53, 1  ;;  %v10220_v46 = vmax.f32 %v3406_v9, %v3407_v54  ;;  %v1013_v41 = vcombine.high %v869_v55, %v869_v55  ;;  %v1405_v1 = vsel %vm1138_vm3, %v869_v55, -inf }
 0x1a2   : > { %v2171_v62 = vmax.f32 %v10203_v19, %v10218_v56  ;;  %v3256_v2 = vcombine.high %v3112_v58, %v3112_v58  ;;  %v3439_v3 = vsel %vm1138_vm3, %v3112_v58, -inf  ;;  %v1376_v7 = vmax.f32 %v1374_v52, %v1375_v16 }
 0x1a3   : > { %v10226_v13 = vmax.f32 %v3401_v53, %v3402_v34  ;;  %v1406_v14 = vrot.slane %v1405_v1, 4  ;;  %v2826_v31 = vadd.f32 %v9996_v8, %v2825_v50  ;;  %v1412_v18 = vsel %vm1138_vm3, %v1013_v41, -inf }
 0x1a4   : > { %v3440_v19 = vrot.slane %v3439_v3, 4  ;;  %v3446_v22 = vsel %vm1138_vm3, %v3256_v2, -inf  ;;  %v1011_v23 = vcombine.high %v867_v59, %v867_v59  ;;  %v2174_v6 = vmax.f32 %v10205_v43, %v1376_v7 }
 0x1a5   : > { %v3409_v25 = vrot.slane %v10220_v46, 1  ;;  %v1407_v24 = vmax.f32 %v1405_v1, %v1406_v14  ;;  %v1413_v27 = vrot.slane %v1412_v18, 4  ;;  %v3447_v38 = vrot.slane %v3446_v22, 4 }
 0x1a6   : > { %v3441_v29 = vmax.f32 %v3439_v3, %v3440_v19  ;;  %v1377_v40 = vsel %vm1138_vm3, %v867_v59, -inf  ;;  %v1384_v12 = vsel %vm1138_vm3, %v1011_v23, -inf  ;;  %v3110_v52 = vmax.f32 %v2826_v31, 0.0 }
 0x1a7   : > { %v1408_v4 = vrot.slane %v1407_v24, 2  ;;  %v1414_v9 = vmax.f32 %v1412_v18, %v1413_v27  ;;  %v1378_v36 = vrot.slane %v1377_v40, 4  ;;  %v1385_v39 = vrot.slane %v1384_v12, 4  ;;  %v9522_v27 = vpop.f32.mrf.mxu1 }
 0x1a8   : > { %v3442_v17 = vrot.slane %v3441_v29, 2  ;;  %v3448_v47 = vmax.f32 %v3446_v22, %v3447_v38  ;;  %v652_v43 = vadd.f32 %v9464_v28, %v9996_v8  ;;  %v3254_v16 = vcombine.high %v3110_v52, %v3110_v52 }
 0x1a9   : > { %v1409_v53 = vmax.f32 %v1407_v24, %v1408_v4  ;;  %v1415_v54 = vrot.slane %v1414_v9, 2  ;;  %v1379_v55 = vmax.f32 %v1377_v40, %v1378_v36  ;;  %v1386_v56 = vmax.f32 %v1384_v12, %v1385_v39 }
 0x1aa   : > { %v3443_v58 = vmax.f32 %v3441_v29, %v3442_v17  ;;  %v3449_v50 = vrot.slane %v3448_v47, 2  ;;  %v3411_v59 = vsel %vm1138_vm3, %v3110_v52, -inf  ;;  %v3418_v7 = vsel %vm1138_vm3, %v3254_v16, -inf }
 0x1ab   : > { %v1410_v34 = vrot.slane %v1409_v53, 1  ;;  %v1416_v41 = vmax.f32 %v1414_v9, %v1415_v54  ;;  %v1380_v1 = vrot.slane %v1379_v55, 2  ;;  %v1387_v2 = vrot.slane %v1386_v56, 2 }
 0x1ac   : > { %v3444_v3 = vrot.slane %v3443_v58, 1  ;;  %v3450_v5 = vmax.f32 %v3448_v47, %v3449_v50  ;;  %v3412_v30 = vrot.slane %v3411_v59, 4  ;;  %v3419_v24 = vrot.slane %v3418_v7, 4 }
 0x1ad   : > { %v1411_v14 = vmax.f32 %v1409_v53, %v1410_v34  ;;  %v1417_v8 = vrot.slane %v1416_v41, 1  ;;  %v1381_v31 = vmax.f32 %v1379_v55, %v1380_v1  ;;  %v1388_v18 = vmax.f32 %v1386_v56, %v1387_v2  ;;  %v6988_v1 = vpop.trf.xlu1  ;;  %v4833_v2 = vpop.trf.xlu0 }
 0x1ae   : > { %v10240_v19 = vmax.f32 %v3443_v58, %v3444_v3  ;;  %v3451_v22 = vrot.slane %v3450_v5, 1  ;;  %v3413_v23 = vmax.f32 %v3411_v59, %v3412_v30  ;;  %v10245_v12 = vmax.f32 %v10220_v46, %v3409_v25  ;;  %v10262_v25 = vld [vmem:[%s13696_s2] ss:$0 sm:$0xff]  ;;  %9708 = vmatprep.mubr.msk.bf16.mxu1 %vm413_vm2, %v6988_v1  ;;  %9650 = vmatprep.mubr.msk.bf16.mxu0 %vm413_vm2, %v4833_v2 }
 0x1af   : > { %v1418_v28 = vmax.f32 %v1416_v41, %v1417_v8  ;;  %v10242_v29 = vmax.f32 %v2171_v62, %v1411_v14  ;;  %v1382_v38 = vrot.slane %v1381_v31, 1  ;;  %v1389_v40 = vrot.slane %v1388_v18, 1  ;;  %v643_v62 = vpop.f32.mrf.mxu0 }
 0x1b0   : > { %v10247_v4 = vmax.f32 %v3450_v5, %v3451_v22  ;;  %v4405_v9 = vmax.f32 %v10226_v13, %v10240_v19  ;;  %v3420_v36 = vmax.f32 %v3418_v7, %v3419_v24  ;;  %v872_v52 = vmax.f32 %v652_v43, 0.0 }
 0x1b1   : > { %v10251_v39 = vmax.f32 %v2174_v6, %v1418_v28  ;;  %v10253_v17 = vmax.f32 %v1381_v31, %v1382_v38  ;;  %v10255_v47 = vmax.f32 %v1388_v18, %v1389_v40  ;;  %v3414_v54 = vrot.slane %v3413_v23, 2  ;;  %v2838_v6 = vpop.f32.mrf.mxu1  ;;  %v9465_v14 = vpop.f32.mrf.mxu0 }
 0x1b2   : > { %v3421_v46 = vrot.slane %v3420_v36, 2  ;;  %v2847_v55 = vadd.f32 %v10262_v25, %v9522_v27  ;;  %v1016_v58 = vcombine.high %v872_v52, %v872_v52  ;;  %v1447_v50 = vsel %vm1138_vm3, %v872_v52, -inf }
 0x1b3   : > { %v3430_v59 = vrot.slane %v10209_v33, 1  ;;  %v1448_v34 = vrot.slane %v1447_v50, 4  ;;  %v3437_v3 = vrot.slane %v10216_v49, 1  ;;  %v644_v30 = vadd.f32 %v10262_v25, %v643_v62 }
 0x1b4   : > { %v3115_v41 = vmax.f32 %v2847_v55, 0.0  ;;  %v1454_v5 = vsel %vm1138_vm3, %v1016_v58, -inf  ;;  %v2839_v7 = vadd.f32 %v10262_v25, %v2838_v6  ;;  %v10278_v8 = vmax.f32 %v3413_v23, %v3414_v54 }
 0x1b5   : > { %v10280_v31 = vmax.f32 %v3420_v36, %v3421_v46  ;;  %v1449_v18 = vmax.f32 %v1447_v50, %v1448_v34  ;;  %v1455_v22 = vrot.slane %v1454_v5, 4  ;;  %v870_v28 = vmax.f32 %v644_v30, 0.0 }
 0x1b6   : > { %v3259_v24 = vcombine.high %v3115_v41, %v3115_v41  ;;  %v3481_v27 = vsel %vm1138_vm3, %v3115_v41, -inf  ;;  %v3113_v38 = vmax.f32 %v2839_v7, 0.0  ;;  %v655_v55 = vadd.f32 %v10262_v25, %v9465_v14 }
 0x1b7   : > { %v1450_v40 = vrot.slane %v1449_v18, 2  ;;  %v1456_v52 = vmax.f32 %v1454_v5, %v1455_v22  ;;  %v3482_v62 = vrot.slane %v3481_v27, 4  ;;  %v1014_v58 = vcombine.high %v870_v28, %v870_v28 }
 0x1b8   : > { %v3488_v6 = vsel %vm1138_vm3, %v3259_v24, -inf  ;;  %v1419_v23 = vsel %vm1138_vm3, %v870_v28, -inf  ;;  %v3257_v54 = vcombine.high %v3113_v38, %v3113_v38  ;;  %v3453_v2 = vsel %vm1138_vm3, %v3113_v38, -inf }
 0x1b9   : > { %v1451_v36 = vmax.f32 %v1449_v18, %v1450_v40  ;;  %v1457_v46 = vrot.slane %v1456_v52, 2  ;;  %v3483_v50 = vmax.f32 %v3481_v27, %v3482_v62  ;;  %v3489_v34 = vrot.slane %v3488_v6, 4 }
 0x1ba   : > { %v1420_v1 = vrot.slane %v1419_v23, 4  ;;  %v1426_v41 = vsel %vm1138_vm3, %v1014_v58, -inf  ;;  %v3460_v5 = vsel %vm1138_vm3, %v3257_v54, -inf  ;;  %v3454_v16 = vrot.slane %v3453_v2, 4 }
 0x1bb   : > { %v1452_v30 = vrot.slane %v1451_v36, 1  ;;  %v1458_v7 = vmax.f32 %v1456_v52, %v1457_v46  ;;  %v3484_v14 = vrot.slane %v3483_v50, 2  ;;  %v3490_v22 = vmax.f32 %v3488_v6, %v3489_v34 }
 0x1bc   : > { %v1421_v24 = vmax.f32 %v1419_v23, %v1420_v1  ;;  %v1427_v0 = vrot.slane %v1426_v41, 4  ;;  %v3461_v28 = vrot.slane %v3460_v5, 4  ;;  %v3455_v56 = vmax.f32 %v3453_v2, %v3454_v16 }
 0x1bd   : > { %v1453_v43 = vmax.f32 %v1451_v36, %v1452_v30  ;;  %v1459_v18 = vrot.slane %v1458_v7, 1  ;;  %v3485_v40 = vmax.f32 %v3483_v50, %v3484_v14  ;;  %v3491_v27 = vrot.slane %v3490_v22, 2 }
 0x1be   : > { %v1422_v62 = vrot.slane %v1421_v24, 2  ;;  %v1428_v51 = vmax.f32 %v1426_v41, %v1427_v0  ;;  %v3462_v58 = vmax.f32 %v3460_v5, %v3461_v28  ;;  %v3456_v23 = vrot.slane %v3455_v56, 2 }
 0x1bf   : > { %v1460_v53 = vmax.f32 %v1458_v7, %v1459_v18  ;;  %v10290_v38 = vmax.f32 %v10242_v29, %v1453_v43  ;;  %v3486_v54 = vrot.slane %v3485_v40, 1  ;;  %v3492_v52 = vmax.f32 %v3490_v22, %v3491_v27  ;;  %v9523_v18 = vpop.f32.mrf.mxu1  ;;  %v646_v27 = vpop.f32.mrf.mxu0 }
 0x1c0   : > { %v1423_v46 = vmax.f32 %v1421_v24, %v1422_v62  ;;  %v1429_v6 = vrot.slane %v1428_v51, 2  ;;  %v3463_v34 = vrot.slane %v3462_v58, 2  ;;  %v3416_v1 = vrot.slane %v10278_v8, 1 }
 0x1c1   : > { %v3423_v36 = vrot.slane %v10280_v31, 1  ;;  %v10295_v50 = vmax.f32 %v10251_v39, %v1460_v53  ;;  %v3493_v0 = vrot.slane %v3492_v52, 1  ;;  %v3457_v2 = vmax.f32 %v3455_v56, %v3456_v23 }
 0x1c2   : > { %v1424_v16 = vrot.slane %v1423_v46, 1  ;;  %v1430_v41 = vmax.f32 %v1428_v51, %v1429_v6  ;;  %v3464_v5 = vmax.f32 %v3462_v58, %v3463_v34  ;;  %v10300_v29 = vmax.f32 %v10209_v33, %v3430_v59 }
 0x1c3   : > { %v2406_v43 = vmul.f32 %v10149_v63, %v10295_v50  ;;  %v3487_v30 = vmax.f32 %v3485_v40, %v3486_v54  ;;  %v873_v7 = vmax.f32 %v655_v55, 0.0  ;;  %v2405_v14 = vmul.f32 %v10290_v38, %v10139_v48 }
 0x1c4   : > { %v3494_v39 = vmax.f32 %v3492_v52, %v3493_v0  ;;  %v1425_v53 = vmax.f32 %v1423_v46, %v1424_v16  ;;  %v1431_v22 = vrot.slane %v1430_v41, 1  ;;  %v3458_v51 = vrot.slane %v3457_v2, 1  ;;  %v4834_v0 = vpop.trf.xlu0 }
 0x1c5   : > { %v2487_v24 = vrot.slane %v2406_v43, 7  ;;  %v1017_v56 = vcombine.high %v873_v7, %v873_v7  ;;  %v1461_v28 = vsel %vm1138_vm3, %v873_v7, -inf  ;;  %v10310_v33 = vmax.f32 %v10216_v49, %v3437_v3  ;;  %9651 = vmatmul.mubr.msk.bf16.gmra.mxu0 %vm413_vm2, %v4834_v0 }
 0x1c6   : > { %v10313_v59 = vmax.f32 %v10278_v8, %v3416_v1  ;;  %v10316_v55 = vmax.f32 %v10280_v31, %v3423_v36  ;;  %v3465_v40 = vrot.slane %v3464_v5, 1  ;;  %v10324_v58 = vmax.f32 %v4405_v9, %v3487_v30  ;;  %v2841_v9 = vpop.f32.mrf.mxu1 }
 0x1c7   : > { %v10319_v62 = vsel %vm2308_vm4, %v2487_v24, %v2405_v14  ;;  %v1462_v54 = vrot.slane %v1461_v28, 4  ;;  %v1468_v49 = vsel %vm1138_vm3, %v1017_v56, -inf  ;;  %v13813_v3 = vmax.f32 %v10245_v12, %v10247_v4  ;;  %v6989_v4 = vpop.trf.xlu1 }
 0x1c8   : > { %v1432_v31 = vmax.f32 %v1430_v41, %v1431_v22  ;;  %v13814_v52 = vmax.f32 %v10193_v44, %v10253_v17  ;;  %v1469_v6 = vrot.slane %v1468_v49, 4  ;;  %v10335_v23 = vmax.f32 %v3457_v2, %v3458_v51  ;;  %9709 = vmatmul.mubr.msk.bf16.gmra.mxu1 %vm413_vm2, %v6989_v4 }
 0x1c9   : > { %v10330_v8 = vmax.f32 %v13813_v3, %v3494_v39  ;;  %v1463_v34 = vmax.f32 %v1461_v28, %v1462_v54  ;;  %v2850_v13 = vadd.f32 %v10262_v25, %v9523_v18  ;;  %v647_v19 = vadd.f32 %v10262_v25, %v646_v27 }
 0x1ca   : > { %v2178_v46 = vmax.f32 %v13814_v52, %v1425_v53  ;;  %v10339_v1 = vmax.f32 %v3464_v5, %v3465_v40  ;;  %v1470_v36 = vmax.f32 %v1468_v49, %v1469_v6  ;;  %v10342_v12 = vrot.slane %v10139_v48, 2 }
 0x1cb   : > { %v1464_v44 = vrot.slane %v1463_v34, 2  ;;  %v3116_v17 = vmax.f32 %v2850_v13, 0.0  ;;  %v871_v16 = vmax.f32 %v647_v19, 0.0  ;;  %v13816_v41 = vrot.slane %v10156_v15, 4 }
 0x1cc   : > { %13815 = vst [vmem:[#allocation9_spill] sm:$0xff] %v10342_v12  ;;  %v13817_v5 = vmax.f32 %v10195_v45, %v10255_v47  ;;  %v1471_v30 = vrot.slane %v1470_v36, 2  ;;  %v2842_v7 = vadd.f32 %v10262_v25, %v2841_v9  ;;  %v13818_v51 = vrot.slane %v10167_v32, 3 }
 0x1cd   : > { %v2477_v2 = vsel %vm2476_vm7, %v13816_v41, %v10173_v35  ;;  %v1465_v14 = vmax.f32 %v1463_v34, %v1464_v44  ;;  %v3260_v39 = vcombine.high %v3116_v17, %v3116_v17  ;;  %v3495_v53 = vsel %vm1138_vm3, %v3116_v17, -inf  ;;  %v9468_v44 = vpop.f32.mrf.mxu0 }
 0x1ce   : > { %v2181_v43 = vmax.f32 %v13817_v5, %v1432_v31  ;;  %v1015_v22 = vcombine.high %v871_v16, %v871_v16  ;;  %v1472_v15 = vmax.f32 %v1470_v36, %v1471_v30  ;;  %v3496_v24 = vrot.slane %v3495_v53, 4 }
 0x1cf   : > { %v1433_v35 = vsel %vm1138_vm3, %v871_v16, -inf  ;;  %v10359_v56 = vsel %vm2479_vm8, %v13818_v51, %v2477_v2  ;;  %v1466_v45 = vrot.slane %v1465_v14, 1  ;;  %v3502_v47 = vsel %vm1138_vm3, %v3260_v39, -inf }
 0x1d0   : > { %v1434_v28 = vrot.slane %v1433_v35, 4  ;;  %v1440_v18 = vsel %vm1138_vm3, %v1015_v22, -inf  ;;  %v1473_v40 = vrot.slane %v1472_v15, 1  ;;  %v3497_v27 = vmax.f32 %v3495_v53, %v3496_v24 }
 0x1d1   : > { %v3503_v54 = vrot.slane %v3502_v47, 4  ;;  %v1441_v49 = vrot.slane %v1440_v18, 4  ;;  %v1467_v3 = vmax.f32 %v1465_v14, %v1466_v45  ;;  %v10364_v31 = vrot.slane %v10139_v48, 3 }
 0x1d2   : > { %v1435_v52 = vmax.f32 %v1433_v35, %v1434_v28  ;;  %v3114_v6 = vmax.f32 %v2842_v7, 0.0  ;;  %v1474_v32 = vmax.f32 %v1472_v15, %v1473_v40  ;;  %v3498_v34 = vrot.slane %v3497_v27, 2 }
 0x1d3   : > { %13819 = vst [vmem:[#allocation10_spill] sm:$0xff] %v10364_v31  ;;  %v3504_v13 = vmax.f32 %v3502_v47, %v3503_v54  ;;  %v1442_v19 = vmax.f32 %v1440_v18, %v1441_v49  ;;  %v2179_v9 = vmax.f32 %v2178_v46, %v1467_v3  ;;  %v10371_v46 = vrot.slane %v10099_v37, 6 }
 0x1d4   : > { %v1436_v36 = vrot.slane %v1435_v52, 2  ;;  %v3258_v4 = vcombine.high %v3114_v6, %v3114_v6  ;;  %v3467_v0 = vsel %vm1138_vm3, %v3114_v6, -inf  ;;  %v2182_v17 = vmax.f32 %v2181_v43, %v1474_v32 }
 0x1d5   : > { %v3499_v16 = vmax.f32 %v3497_v27, %v3498_v34  ;;  %v3505_v41 = vrot.slane %v3504_v13, 2  ;;  %v1443_v2 = vrot.slane %v1442_v19, 2  ;;  %v2261_v5 = vmax.f32 %v10295_v50, %v2179_v9  ;;  %13820 = vst [vmem:[#allocation11_spill] sm:$0xff] %v10371_v46  ;;  %v9526_v27 = vpop.f32.mrf.mxu1  ;;  %v659_v34 = vpop.f32.mrf.mxu0 }
 0x1d6   : > { %v2407_v48 = vmul.f32 %v10342_v12, %v2179_v9  ;;  %v1437_v30 = vmax.f32 %v1435_v52, %v1436_v36  ;;  %v3468_v7 = vrot.slane %v3467_v0, 4  ;;  %v2408_v14 = vmul.f32 %v10364_v31, %v2182_v17 }
 0x1d7   : > { %v1444_v39 = vmax.f32 %v1442_v19, %v1443_v2  ;;  %v668_v53 = vadd.f32 %v10262_v25, %v9468_v44  ;;  %v10374_v22 = vmax.f32 %v2261_v5, %v2182_v17  ;;  %v3500_v51 = vrot.slane %v3499_v16, 1 }
 0x1d8   : > { %v2489_v43 = vrot.slane %v2407_v48, 6  ;;  %v1438_v15 = vrot.slane %v1437_v30, 1  ;;  %v3469_v24 = vmax.f32 %v3467_v0, %v3468_v7  ;;  %v2491_v35 = vrot.slane %v2408_v14, 5  ;;  %v6998_v7 = vpop.trf.xlu1 }
 0x1d9   : > { %13821 = vst [vmem:[#allocation12_spill] sm:$0xff] %v10374_v22  ;;  %v3506_v50 = vmax.f32 %v3504_v13, %v3505_v41  ;;  %v1445_v45 = vrot.slane %v1444_v39, 1  ;;  %v3474_v40 = vsel %vm1138_vm3, %v3258_v4, -inf  ;;  %v4411_v54 = vmax.f32 %v10313_v59, %v10335_v23  ;;  %9712 = vmatprep.mubr.msk.bf16.mxu1 %vm413_vm2, %v6998_v7 }
 0x1da   : > { %v2490_v47 = vsel %vm2311_vm5, %v2489_v43, %v10319_v62  ;;  %v1439_v28 = vmax.f32 %v1437_v30, %v1438_v15  ;;  %v3470_v18 = vrot.slane %v3469_v24, 2  ;;  %v4414_v49 = vmax.f32 %v10316_v55, %v10339_v1  ;;  %v2854_v43 = vpop.f32.mrf.mxu1  ;;  %v4843_v15 = vpop.trf.xlu0 }
 0x1db   : > { %v10384_v3 = vsel %vm2314_vm6, %v2491_v35, %v2490_v47  ;;  %v1446_v52 = vmax.f32 %v1444_v39, %v1445_v45  ;;  %v3475_v32 = vrot.slane %v3474_v40, 4  ;;  %v876_v62 = vmax.f32 %v668_v53, 0.0  ;;  %9654 = vmatprep.mubr.msk.bf16.mxu0 %vm413_vm2, %v4843_v15 }
 0x1dc   : > { %v2167_v6 = vmax.f32 %v10207_v10, %v1439_v28  ;;  %v3501_v13 = vmax.f32 %v3499_v16, %v3500_v51  ;;  %v3507_v19 = vrot.slane %v3506_v50, 1  ;;  %v2863_v36 = vadd.f32 %v10262_v25, %v9526_v27  ;;  %v9527_v15 = vpop.f32.mrf.mxu1 }
 0x1dd   : > { %v2170_v9 = vmax.f32 %v10212_v42, %v1446_v52  ;;  %v3471_v23 = vmax.f32 %v3469_v24, %v3470_v18  ;;  %v3476_v55 = vmax.f32 %v3474_v40, %v3475_v32  ;;  %v1020_v1 = vcombine.high %v876_v62, %v876_v62 }
 0x1de   : > { %v2403_v59 = vmul.f32 %v10371_v46, %v2167_v6  ;;  %v1503_v0 = vsel %vm1138_vm3, %v876_v62, -inf  ;;  %v3119_v44 = vmax.f32 %v2863_v36, 0.0  ;;  %v660_v10 = vadd.f32 %v10262_v25, %v659_v34 }
 0x1df   : > { %v2259_v4 = vmax.f32 %v2167_v6, %v2170_v9  ;;  %v10393_v17 = vrot.slane %v10099_v37, 7  ;;  %v3477_v41 = vrot.slane %v3476_v55, 2  ;;  %v1504_v2 = vrot.slane %v1503_v0, 4 }
 0x1e0   : > { %v2481_v16 = vrot.slane %v2403_v59, 2  ;;  %v3508_v42 = vmax.f32 %v3506_v50, %v3507_v19  ;;  %v1510_v48 = vsel %vm1138_vm3, %v1020_v1, -inf  ;;  %v3263_v30 = vcombine.high %v3119_v44, %v3119_v44 }
 0x1e1   : > { %13822 = vst [vmem:[#allocation13_spill] sm:$0xff] %v10393_v17  ;;  %v10396_v5 = vmax.f32 %v2259_v4, %v10290_v38  ;;  %v10399_v14 = vmax.f32 %v4411_v54, %v3501_v13  ;;  %v3472_v53 = vrot.slane %v3471_v23, 1  ;;  %v1505_v37 = vmax.f32 %v1503_v0, %v1504_v2 }
 0x1e2   : > { %v10403_v39 = vsel %vm2482_vm9, %v2481_v16, %v10359_v56  ;;  %v1511_v24 = vrot.slane %v1510_v48, 4  ;;  %v3537_v38 = vsel %vm1138_vm3, %v3119_v44, -inf  ;;  %v3544_v35 = vsel %vm1138_vm3, %v3263_v30, -inf }
 0x1e3   : > { %13823 = vst [vmem:[#allocation14_spill] sm:$0xff] %v10396_v5  ;;  %13824 = vst [vmem:[#allocation15_spill] sm:$0xff] %v10403_v39  ;;  %v874_v51 = vmax.f32 %v660_v10, 0.0  ;;  %v3478_v50 = vmax.f32 %v3476_v55, %v3477_v41  ;;  %v1506_v45 = vrot.slane %v1505_v37, 2  ;;  %v3538_v47 = vrot.slane %v3537_v38, 4 }
 0x1e4   : > { %v3545_v28 = vrot.slane %v3544_v35, 4  ;;  %v1512_v56 = vmax.f32 %v1510_v48, %v1511_v24  ;;  %v2855_v27 = vadd.f32 %v10262_v25, %v2854_v43  ;;  %v4415_v54 = vmax.f32 %v4414_v49, %v3508_v42  ;;  %v9469_v49 = vpop.f32.mrf.mxu0 }
 0x1e5   : > { %v1018_v18 = vcombine.high %v874_v51, %v874_v51  ;;  %v1475_v40 = vsel %vm1138_vm3, %v874_v51, -inf  ;;  %v10412_v52 = vmul.f32 %v10393_v17, %v2170_v9  ;;  %v3539_v6 = vmax.f32 %v3537_v38, %v3538_v47 }
 0x1e6   : > { %v3546_v32 = vmax.f32 %v3544_v35, %v3545_v28  ;;  %v1513_v62 = vrot.slane %v1512_v56, 2  ;;  %v1476_v34 = vrot.slane %v1475_v40, 4  ;;  %v3117_v19 = vmax.f32 %v2855_v27, 0.0 }
 0x1e7   : > { %13825 = vst [vmem:[#allocation16_spill] sm:$0xff] %v10412_v52  ;;  %v1482_v13 = vsel %vm1138_vm3, %v1018_v18, -inf  ;;  %v10415_v36 = vmax.f32 %v3471_v23, %v3472_v53  ;;  %v3479_v59 = vrot.slane %v3478_v50, 1  ;;  %v3540_v55 = vrot.slane %v3539_v6, 2 }
 0x1e8   : > { %v3547_v1 = vrot.slane %v3546_v32, 2  ;;  %v1507_v4 = vmax.f32 %v1505_v37, %v1506_v45  ;;  %v1477_v0 = vmax.f32 %v1475_v40, %v1476_v34  ;;  %v1483_v44 = vrot.slane %v1482_v13, 4 }
 0x1e9   : > { %v3261_v10 = vcombine.high %v3117_v19, %v3117_v19  ;;  %v1514_v16 = vmax.f32 %v1512_v56, %v1513_v62  ;;  %v3541_v9 = vmax.f32 %v3539_v6, %v3540_v55  ;;  %v3509_v2 = vsel %vm1138_vm3, %v3117_v19, -inf }
 0x1ea   : > { %v3548_v41 = vmax.f32 %v3546_v32, %v3547_v1  ;;  %v1478_v48 = vrot.slane %v1477_v0, 2  ;;  %v1484_v30 = vmax.f32 %v1482_v13, %v1483_v44  ;;  %v3510_v7 = vrot.slane %v3509_v2, 4 }
 0x1eb   : > { %v3542_v23 = vrot.slane %v3541_v9, 1  ;;  %v3516_v43 = vsel %vm1138_vm3, %v3261_v10, -inf  ;;  %v671_v37 = vadd.f32 %v10262_v25, %v9469_v49  ;;  %v10421_v24 = vmax.f32 %v3478_v50, %v3479_v59 }
 0x1ec   : > { %v3549_v53 = vrot.slane %v3548_v41, 1  ;;  %v1508_v38 = vrot.slane %v1507_v4, 1  ;;  %v1479_v35 = vmax.f32 %v1477_v0, %v1478_v48  ;;  %v3511_v51 = vmax.f32 %v3509_v2, %v3510_v7  ;;  %v2857_v2 = vpop.f32.mrf.mxu1 }
 0x1ed   : > { %v1515_v45 = vrot.slane %v1514_v16, 1  ;;  %v1485_v47 = vrot.slane %v1484_v30, 2  ;;  %v3517_v28 = vrot.slane %v3516_v43, 4  ;;  %v877_v56 = vmax.f32 %v671_v37, 0.0 }
 0x1ee   : > { %v4417_v18 = vmax.f32 %v10300_v29, %v10415_v36  ;;  %v3543_v40 = vmax.f32 %v3541_v9, %v3542_v23  ;;  %v3512_v27 = vrot.slane %v3511_v51, 2  ;;  %v2866_v6 = vadd.f32 %v10262_v25, %v9527_v15  ;;  %v6999_v23 = vpop.trf.xlu1 }
 0x1ef   : > { %v3550_v32 = vmax.f32 %v3548_v41, %v3549_v53  ;;  %v1480_v62 = vrot.slane %v1479_v35, 1  ;;  %v3518_v34 = vmax.f32 %v3516_v43, %v3517_v28  ;;  %v1021_v13 = vcombine.high %v877_v56, %v877_v56  ;;  %v662_v41 = vpop.f32.mrf.mxu0  ;;  %9713 = vmatmul.mubr.msk.bf16.gmra.mxu1 %vm413_vm2, %v6999_v23 }
 0x1f0   : > { %v4420_v50 = vmax.f32 %v10310_v33, %v10421_v24  ;;  %v10428_v19 = vmax.f32 %v1507_v4, %v1508_v38  ;;  %v3513_v59 = vmax.f32 %v3511_v51, %v3512_v27  ;;  %v1517_v55 = vsel %vm1138_vm3, %v877_v56, -inf }
 0x1f1   : > { %v10431_v1 = vmax.f32 %v1514_v16, %v1515_v45  ;;  %v10433_v0 = vmax.f32 %v1484_v30, %v1485_v47  ;;  %v3519_v29 = vrot.slane %v3518_v34, 2  ;;  %v1518_v36 = vrot.slane %v1517_v55, 4  ;;  %v4844_v30 = vpop.trf.xlu0 }
 0x1f2   : > { %v10436_v44 = vmax.f32 %v10399_v14, %v3543_v40  ;;  %v3514_v10 = vrot.slane %v3513_v59, 1  ;;  %v1524_v49 = vsel %vm1138_vm3, %v1021_v13, -inf  ;;  %v3120_v9 = vmax.f32 %v2866_v6, 0.0  ;;  %9655 = vmatmul.mubr.msk.bf16.gmra.mxu0 %vm413_vm2, %v4844_v30 }
 0x1f3   : > { %v10439_v4 = vmax.f32 %v4415_v54, %v3550_v32  ;;  %v10441_v48 = vmax.f32 %v1479_v35, %v1480_v62  ;;  %v3520_v7 = vmax.f32 %v3518_v34, %v3519_v29  ;;  %v1519_v16 = vmax.f32 %v1517_v55, %v1518_v36 }
 0x1f4   : > { %v3515_v53 = vmax.f32 %v3513_v59, %v3514_v10  ;;  %v1525_v43 = vrot.slane %v1524_v49, 4  ;;  %v3264_v37 = vcombine.high %v3120_v9, %v3120_v9  ;;  %v3551_v14 = vsel %vm1138_vm3, %v3120_v9, -inf  ;;  %v9472_v59 = vpop.f32.mrf.mxu0 }
 0x1f5   : > { %v3521_v15 = vrot.slane %v3520_v7, 1  ;;  %v1520_v38 = vrot.slane %v1519_v16, 2  ;;  %v3552_v51 = vrot.slane %v3551_v14, 4  ;;  %v663_v54 = vadd.f32 %v10262_v25, %v662_v41 }
 0x1f6   : > { %v1487_v35 = vrot.slane %v10433_v0, 1  ;;  %v1526_v45 = vmax.f32 %v1524_v49, %v1525_v43  ;;  %v3558_v47 = vsel %vm1138_vm3, %v3264_v37, -inf  ;;  %v2858_v28 = vadd.f32 %v10262_v25, %v2857_v2 }
 0x1f7   : > { %v10452_v56 = vmul.f32 %v10436_v44, %v10110_v60  ;;  %v10456_v40 = vmul.f32 %v10439_v4, %v10113_v57  ;;  %v3553_v27 = vmax.f32 %v3551_v14, %v3552_v51  ;;  %v3559_v6 = vrot.slane %v3558_v47, 4 }
 0x1f8   : > { %v1521_v32 = vmax.f32 %v1519_v16, %v1520_v38  ;;  %v1527_v62 = vrot.slane %v1526_v45, 2  ;;  %v875_v34 = vmax.f32 %v663_v54, 0.0  ;;  %v3118_v13 = vmax.f32 %v2858_v28, 0.0 }
 0x1f9   : > { %v3522_v55 = vmax.f32 %v3520_v7, %v3521_v15  ;;  %v4418_v29 = vmax.f32 %v4417_v18, %v3515_v53  ;;  %v3554_v36 = vrot.slane %v3553_v27, 2  ;;  %v3560_v10 = vmax.f32 %v3558_v47, %v3559_v6 }
 0x1fa   : > { %v1528_v49 = vmax.f32 %v1526_v45, %v1527_v62  ;;  %v1019_v9 = vcombine.high %v875_v34, %v875_v34  ;;  %v1489_v41 = vsel %vm1138_vm3, %v875_v34, -inf  ;;  %v3262_v2 = vcombine.high %v3118_v13, %v3118_v13 }
 0x1fb   : > { %v3555_v23 = vmax.f32 %v3553_v27, %v3554_v36  ;;  %v3561_v30 = vrot.slane %v3560_v10, 2  ;;  %v1490_v43 = vrot.slane %v1489_v41, 4  ;;  %v684_v37 = vadd.f32 %v10262_v25, %v9472_v59 }
 0x1fc   : > { %v1522_v14 = vrot.slane %v1521_v32, 1  ;;  %v1496_v16 = vsel %vm1138_vm3, %v1019_v9, -inf  ;;  %v3523_v38 = vsel %vm1138_vm3, %v3118_v13, -inf  ;;  %v3530_v7 = vsel %vm1138_vm3, %v3262_v2, -inf }
 0x1fd   : > { %v1529_v18 = vrot.slane %v1528_v49, 1  ;;  %v3556_v53 = vrot.slane %v3555_v23, 1  ;;  %v3562_v15 = vmax.f32 %v3560_v10, %v3561_v30  ;;  %v1491_v51 = vmax.f32 %v1489_v41, %v1490_v43 }
 0x1fe   : > { %v4421_v54 = vmax.f32 %v4420_v50, %v3522_v55  ;;  %v1497_v45 = vrot.slane %v1496_v16, 4  ;;  %v3524_v47 = vrot.slane %v3523_v38, 4  ;;  %v3531_v28 = vrot.slane %v3530_v7, 4 }
 0x1ff   : > { %v3557_v27 = vmax.f32 %v3555_v23, %v3556_v53  ;;  %v3563_v6 = vrot.slane %v3562_v15, 1  ;;  %v1492_v62 = vrot.slane %v1491_v51, 2  ;;  %v880_v34 = vmax.f32 %v684_v37, 0.0  ;;  %v9530_v37 = vpop.f32.mrf.mxu1 }
 0x200   : > { %v10467_v59 = vmax.f32 %v10433_v0, %v1487_v35  ;;  %v1498_v13 = vmax.f32 %v1496_v16, %v1497_v45  ;;  %v3525_v36 = vmax.f32 %v3523_v38, %v3524_v47  ;;  %v3532_v9 = vmax.f32 %v3530_v7, %v3531_v28  ;;  %v675_v38 = vpop.f32.mrf.mxu0 }
 0x201   : > { %v10469_v2 = vmax.f32 %v1521_v32, %v1522_v14  ;;  %v10471_v10 = vmax.f32 %v1528_v49, %v1529_v18  ;;  %v3564_v41 = vmax.f32 %v3562_v15, %v3563_v6  ;;  %v4419_v33 = vmax.f32 %v4418_v29, %v3557_v27  ;;  %v2870_v27 = vpop.f32.mrf.mxu1 }
 0x202   : > { %v4646_v24 = vrot.slane %v10452_v56, 6  ;;  %v3526_v50 = vrot.slane %v3525_v36, 2  ;;  %v3533_v55 = vrot.slane %v3532_v9, 2  ;;  %v1559_v23 = vsel %vm1138_vm3, %v880_v34, -inf }
 0x203   : > { %v4422_v30 = vmax.f32 %v4421_v54, %v3564_v41  ;;  %v4515_v43 = vmax.f32 %v10439_v4, %v4419_v33  ;;  %v10476_v0 = vmax.f32 %v1491_v51, %v1492_v62  ;;  %v1024_v35 = vcombine.high %v880_v34, %v880_v34 }
 0x204   : > { %v1499_v16 = vrot.slane %v1498_v13, 2  ;;  %v3527_v32 = vmax.f32 %v3525_v36, %v3526_v50  ;;  %v3534_v14 = vmax.f32 %v3532_v9, %v3533_v55  ;;  %v1560_v49 = vrot.slane %v1559_v23, 4  ;;  %v9473_v55 = vpop.f32.mrf.mxu0 }
 0x205   : > { %v4648_v29 = vrot.slane %v10456_v40, 5  ;;  %v2183_v7 = vmax.f32 %v10441_v48, %v10469_v2  ;;  %v2186_v18 = vmax.f32 %v10467_v59, %v10471_v10  ;;  %v10483_v53 = vmax.f32 %v4515_v43, %v4422_v30 }
 0x206   : > { %v10486_v4 = vmul.f32 %v4419_v33, %v10116_v11  ;;  %v3528_v15 = vrot.slane %v3527_v32, 1  ;;  %v3535_v51 = vrot.slane %v3534_v14, 1  ;;  %v1561_v54 = vmax.f32 %v1559_v23, %v1560_v49  ;;  %v7000_v23 = vpop.trf.xlu1 }
 0x207   : > { %13826 = vst [vmem:[#allocation17_spill] sm:$0xff] %v10483_v53  ;;  %v1494_v45 = vrot.slane %v10476_v0, 1  ;;  %v1566_v47 = vsel %vm1138_vm3, %v1024_v35, -inf  ;;  %v2879_v40 = vadd.f32 %v10262_v25, %v9530_v37  ;;  %v676_v28 = vadd.f32 %v10262_v25, %v675_v38  ;;  %v4845_v38 = vpop.trf.xlu0  ;;  %9716 = vmatprep.mubr.msk.bf16.mxu1 %vm413_vm2, %v7000_v23 }
 0x208   : > { %v1500_v6 = vmax.f32 %v1498_v13, %v1499_v16  ;;  %v3529_v62 = vmax.f32 %v3527_v32, %v3528_v15  ;;  %v3536_v34 = vmax.f32 %v3534_v14, %v3535_v51  ;;  %v1562_v36 = vrot.slane %v1561_v54, 2  ;;  %9658 = vmatprep.mubr.msk.bf16.mxu0 %vm413_vm2, %v4845_v38 }
 0x209   : > { %v10493_v9 = vmul.f32 %v4422_v30, %v10119_v20  ;;  %v1567_v41 = vrot.slane %v1566_v47, 4  ;;  %v3123_v33 = vmax.f32 %v2879_v40, 0.0  ;;  %v878_v50 = vmax.f32 %v676_v28, 0.0 }
 0x20a   : > { %v4407_v43 = vmax.f32 %v10324_v58, %v3529_v62  ;;  %v4410_v35 = vmax.f32 %v10330_v8, %v3536_v34  ;;  %v1563_v37 = vmax.f32 %v1561_v54, %v1562_v36  ;;  %v2871_v49 = vadd.f32 %v10262_v25, %v2870_v27  ;;  %v9761_v58 = vld [vmem:[%s13699_s5] sm:$0xff] }
 0x20b   : > { %v1568_v13 = vmax.f32 %v1566_v47, %v1567_v41  ;;  %v3267_v16 = vcombine.high %v3123_v33, %v3123_v33  ;;  %v3593_v30 = vsel %vm1138_vm3, %v3123_v33, -inf  ;;  %v1022_v32 = vcombine.high %v878_v50, %v878_v50 }
 0x20c   : > { %v4513_v14 = vmax.f32 %v4407_v43, %v4410_v35  ;;  %v4572_v15 = vmul.f32 %v9761_v58, %v4407_v43  ;;  %v4573_v8 = vmul.f32 %v4410_v35, %v10128_v26  ;;  %v687_v51 = vadd.f32 %v10262_v25, %v9473_v55 }
 0x20d   : > { %v1569_v54 = vrot.slane %v1568_v13, 2  ;;  %v3594_v40 = vrot.slane %v3593_v30, 4  ;;  %v3600_v47 = vsel %vm1138_vm3, %v3267_v16, -inf  ;;  %v1531_v28 = vsel %vm1138_vm3, %v878_v50, -inf }
 0x20e   : > { %v10509_v27 = vmax.f32 %v4513_v14, %v10436_v44  ;;  %v4644_v62 = vrot.slane %v4573_v8, 7  ;;  %v1564_v34 = vrot.slane %v1563_v37, 1  ;;  %v3601_v36 = vrot.slane %v3600_v47, 4 }
 0x20f   : > { %v1570_v41 = vmax.f32 %v1568_v13, %v1569_v54  ;;  %v3595_v33 = vmax.f32 %v3593_v30, %v3594_v40  ;;  %v1532_v23 = vrot.slane %v1531_v28, 4  ;;  %v1538_v43 = vsel %vm1138_vm3, %v1022_v32, -inf }
 0x210   : > { %13827 = vst [vmem:[#allocation18_spill] sm:$0xff] %v10509_v27  ;;  %v4645_v55 = vsel %vm2308_vm4, %v4644_v62, %v4572_v15  ;;  %v3602_v38 = vmax.f32 %v3600_v47, %v3601_v36  ;;  %v1539_v58 = vrot.slane %v1538_v43, 4  ;;  %v10515_v16 = vmax.f32 %v10476_v0, %v1494_v45 }
 0x211   : > { %v1501_v50 = vrot.slane %v1500_v6, 1  ;;  %v4647_v44 = vsel %vm2311_vm5, %v4646_v24, %v4645_v55  ;;  %v1533_v14 = vmax.f32 %v1531_v28, %v1532_v23  ;;  %v1571_v30 = vrot.slane %v1570_v41, 1 }
 0x212   : > { %v10521_v13 = vsel %vm2314_vm6, %v4648_v29, %v4647_v44  ;;  %v1540_v32 = vmax.f32 %v1538_v43, %v1539_v58  ;;  %v3121_v8 = vmax.f32 %v2871_v49, 0.0  ;;  %v1565_v54 = vmax.f32 %v1563_v37, %v1564_v34  ;;  %v9531_v37 = vpop.f32.mrf.mxu1  ;;  %v678_v44 = vpop.f32.mrf.mxu0 }
 0x213   : > { %v3596_v40 = vrot.slane %v3595_v33, 2  ;;  %v1534_v15 = vrot.slane %v1533_v14, 2  ;;  %v881_v47 = vmax.f32 %v687_v51, 0.0  ;;  %v3603_v62 = vrot.slane %v3602_v38, 2 }
 0x214   : > { %v1541_v36 = vrot.slane %v1540_v32, 2  ;;  %v3265_v0 = vcombine.high %v3121_v8, %v3121_v8  ;;  %v3565_v45 = vsel %vm1138_vm3, %v3121_v8, -inf  ;;  %v10525_v42 = vmax.f32 %v1500_v6, %v1501_v50 }
 0x215   : > { %v1535_v24 = vmax.f32 %v1533_v14, %v1534_v15  ;;  %v3566_v28 = vrot.slane %v3565_v45, 4  ;;  %v1572_v29 = vmax.f32 %v1570_v41, %v1571_v30  ;;  %v1025_v49 = vcombine.high %v881_v47, %v881_v47 }
 0x216   : > { %v1542_v23 = vmax.f32 %v1540_v32, %v1541_v36  ;;  %v3572_v43 = vsel %vm1138_vm3, %v3265_v0, -inf  ;;  %v10528_v34 = vmax.f32 %v3595_v33, %v3596_v40  ;;  %v10533_v8 = vmax.f32 %v2183_v7, %v1565_v54  ;;  %v2873_v7 = vpop.f32.mrf.mxu1  ;;  %v7001_v36 = vpop.trf.xlu1 }
 0x217   : > { %v1536_v51 = vrot.slane %v1535_v24, 1  ;;  %v3567_v55 = vmax.f32 %v3565_v45, %v3566_v28  ;;  %v3573_v58 = vrot.slane %v3572_v43, 4  ;;  %v10535_v6 = vmax.f32 %v3602_v38, %v3603_v62  ;;  %v4846_v0 = vpop.trf.xlu0  ;;  %9717 = vmatmul.mubr.msk.bf16.gmra.mxu1 %vm413_vm2, %v7001_v36 }
 0x218   : > { %v1573_v41 = vsel %vm1138_vm3, %v881_v47, -inf  ;;  %v1580_v50 = vsel %vm1138_vm3, %v1025_v49, -inf  ;;  %v1543_v30 = vrot.slane %v1542_v23, 1  ;;  %v10544_v40 = vmax.f32 %v2186_v18, %v1572_v29  ;;  %9659 = vmatmul.mubr.msk.bf16.gmra.mxu0 %vm413_vm2, %v4846_v0 }
 0x219   : > { %v10539_v14 = vmax.f32 %v1535_v24, %v1536_v51  ;;  %v3574_v33 = vmax.f32 %v3572_v43, %v3573_v58  ;;  %v1574_v32 = vrot.slane %v1573_v41, 4  ;;  %v1581_v15 = vrot.slane %v1580_v50, 4 }
 0x21a   : > { %v2882_v48 = vadd.f32 %v10262_v25, %v9531_v37  ;;  %v679_v2 = vadd.f32 %v10262_v25, %v678_v44  ;;  %v3568_v54 = vrot.slane %v3567_v55, 2  ;;  %v10552_v10 = vmax.f32 %v1542_v23, %v1543_v30 }
 0x21b   : > { %v3575_v47 = vrot.slane %v3574_v33, 2  ;;  %v1575_v62 = vmax.f32 %v1573_v41, %v1574_v32  ;;  %v1582_v24 = vmax.f32 %v1580_v50, %v1581_v15  ;;  %v2874_v43 = vadd.f32 %v10262_v25, %v2873_v7 }
 0x21c   : > { %v3124_v28 = vmax.f32 %v2882_v48, 0.0  ;;  %v879_v59 = vmax.f32 %v679_v2, 0.0  ;;  %v3569_v44 = vmax.f32 %v3567_v55, %v3568_v54  ;;  %v9476_v2 = vpop.f32.mrf.mxu0  ;;  %v2192_v7 = vmax.f32 %v10525_v42, %v10552_v10 }
 0x21d   : > { %v1576_v29 = vrot.slane %v1575_v62, 2  ;;  %v1583_v49 = vrot.slane %v1582_v24, 2  ;;  %v3576_v41 = vmax.f32 %v3574_v33, %v3575_v47  ;;  %v3122_v33 = vmax.f32 %v2874_v43, 0.0 }
 0x21e   : > { %v3268_v37 = vcombine.high %v3124_v28, %v3124_v28  ;;  %v3607_v51 = vsel %vm1138_vm3, %v3124_v28, -inf  ;;  %v1023_v58 = vcombine.high %v879_v59, %v879_v59  ;;  %v1545_v23 = vsel %vm1138_vm3, %v879_v59, -inf }
 0x21f   : > { %v1577_v50 = vmax.f32 %v1575_v62, %v1576_v29  ;;  %v3608_v32 = vrot.slane %v3607_v51, 4  ;;  %v1584_v15 = vmax.f32 %v1582_v24, %v1583_v49  ;;  %v1546_v35 = vrot.slane %v1545_v23, 4 }
 0x220   : > { %v3614_v48 = vsel %vm1138_vm3, %v3268_v37, -inf  ;;  %v1552_v30 = vsel %vm1138_vm3, %v1023_v58, -inf  ;;  %v3570_v54 = vrot.slane %v3569_v44, 1  ;;  %v700_v24 = vadd.f32 %v10262_v25, %v9476_v2 }
 0x221   : > { %v1578_v36 = vrot.slane %v1577_v50, 1  ;;  %v3609_v0 = vmax.f32 %v3607_v51, %v3608_v32  ;;  %v3615_v56 = vrot.slane %v3614_v48, 4  ;;  %v1585_v28 = vrot.slane %v1584_v15, 1 }
 0x222   : > { %v1553_v55 = vrot.slane %v1552_v30, 4  ;;  %v3577_v29 = vrot.slane %v3576_v41, 1  ;;  %v1547_v59 = vmax.f32 %v1545_v23, %v1546_v35  ;;  %v3266_v37 = vcombine.high %v3122_v33, %v3122_v33 }
 0x223   : > { %v3610_v47 = vrot.slane %v3609_v0, 2  ;;  %v3616_v62 = vmax.f32 %v3614_v48, %v3615_v56  ;;  %v1579_v58 = vmax.f32 %v1577_v50, %v1578_v36  ;;  %v3579_v42 = vsel %vm1138_vm3, %v3122_v33, -inf }
 0x224   : > { %v1554_v49 = vmax.f32 %v1552_v30, %v1553_v55  ;;  %v1586_v10 = vmax.f32 %v1584_v15, %v1585_v28  ;;  %v1548_v51 = vrot.slane %v1547_v59, 2  ;;  %v3580_v38 = vrot.slane %v3579_v42, 4 }
 0x225   : > { %v3611_v18 = vmax.f32 %v3609_v0, %v3610_v47  ;;  %v3617_v45 = vrot.slane %v3616_v62, 2  ;;  %v3586_v27 = vsel %vm1138_vm3, %v3266_v37, -inf  ;;  %v884_v56 = vmax.f32 %v700_v24, 0.0  ;;  %v9534_v0 = vpop.f32.mrf.mxu1 }
 0x226   : > { %v1555_v32 = vrot.slane %v1554_v49, 2  ;;  %v1549_v48 = vmax.f32 %v1547_v59, %v1548_v51  ;;  %v3581_v2 = vmax.f32 %v3579_v42, %v3580_v38  ;;  %v3587_v35 = vrot.slane %v3586_v27, 4 }
 0x227   : > { %v3612_v53 = vrot.slane %v3611_v18, 1  ;;  %v3618_v43 = vmax.f32 %v3616_v62, %v3617_v45  ;;  %v1028_v30 = vcombine.high %v884_v56, %v884_v56  ;;  %v1615_v36 = vsel %vm1138_vm3, %v884_v56, -inf  ;;  %v2886_v56 = vpop.f32.mrf.mxu1 }
 0x228   : > { %v1556_v25 = vmax.f32 %v1554_v49, %v1555_v32  ;;  %v1550_v15 = vrot.slane %v1549_v48, 1  ;;  %v3582_v55 = vrot.slane %v3581_v2, 2  ;;  %v3588_v33 = vmax.f32 %v3586_v27, %v3587_v35 }
 0x229   : > { %v10566_v23 = vmax.f32 %v3611_v18, %v3612_v53  ;;  %v3619_v50 = vrot.slane %v3618_v43, 1  ;;  %v13828_v45 = vrot.slane %v10528_v34, 1  ;;  %v1616_v38 = vrot.slane %v1615_v36, 4 }
 0x22a   : > { %v1557_v28 = vrot.slane %v1556_v25, 1  ;;  %v1622_v53 = vsel %vm1138_vm3, %v1028_v30, -inf  ;;  %v13829_v18 = vrot.slane %v10535_v6, 1  ;;  %v10582_v59 = vmax.f32 %v3569_v44, %v3570_v54  ;;  %v7002_v54 = vpop.trf.xlu1 }
 0x22b   : > { %v10572_v47 = vmax.f32 %v10528_v34, %v13828_v45  ;;  %v10574_v62 = vmax.f32 %v3618_v43, %v3619_v50  ;;  %v10584_v49 = vmax.f32 %v3576_v41, %v3577_v29  ;;  %v10586_v27 = vmax.f32 %v1549_v48, %v1550_v15  ;;  %v691_v43 = vpop.f32.mrf.mxu0  ;;  %9720 = vmatprep.mubr.msk.bf16.mxu1 %vm413_vm2, %v7002_v54 }
 0x22c   : > { %v10580_v24 = vmax.f32 %v10535_v6, %v13829_v18  ;;  %v13830_v34 = vmax.f32 %v10515_v16, %v10539_v14  ;;  %v10591_v42 = vmax.f32 %v1556_v25, %v1557_v28  ;;  %v1617_v51 = vmax.f32 %v1615_v36, %v1616_v38  ;;  %v10602_v14 = vld [vmem:[%s13696_s2] ss:$0 sm:$0xff] }
 0x22d   : > { %v1623_v32 = vrot.slane %v1622_v53, 4  ;;  %v2193_v35 = vmax.f32 %v2192_v7, %v1586_v10  ;;  %v10595_v44 = vmax.f32 %v3581_v2, %v3582_v55  ;;  %v3589_v41 = vrot.slane %v3588_v33, 2  ;;  %v10611_v10 = vld [vmem:[%s13699_s5 + $0x8] sm:$0xff] }
 0x22e   : > { %v2190_v37 = vmax.f32 %v13830_v34, %v1579_v58  ;;  %v1618_v48 = vrot.slane %v1617_v51, 2  ;;  %v2895_v58 = vadd.f32 %v10602_v14, %v9534_v0  ;;  %v10614_v25 = vrot.slane %v10611_v10, 6 }
 0x22f   : > { %v1624_v16 = vmax.f32 %v1622_v53, %v1623_v32  ;;  %v692_v2 = vadd.f32 %v10602_v14, %v691_v43  ;;  %v2887_v50 = vadd.f32 %v10602_v14, %v2886_v56  ;;  %v3584_v28 = vrot.slane %v10595_v44, 1 }
 0x230   : > { %13831 = vst [vmem:[#allocation19_spill] sm:$0xff] %v10614_v25  ;;  %v1619_v36 = vmax.f32 %v1617_v51, %v1618_v48  ;;  %v3127_v15 = vmax.f32 %v2895_v58, 0.0  ;;  %v3590_v55 = vmax.f32 %v3588_v33, %v3589_v41 }
 0x231   : > { %v1625_v0 = vrot.slane %v1624_v16, 2  ;;  %v882_v45 = vmax.f32 %v692_v2, 0.0  ;;  %v3125_v38 = vmax.f32 %v2887_v50, 0.0 }
 0x232   : > { %v1620_v53 = vrot.slane %v1619_v36, 1  ;;  %v3271_v34 = vcombine.high %v3127_v15, %v3127_v15  ;;  %v3649_v32 = vsel %vm1138_vm3, %v3127_v15, -inf  ;;  %v3591_v2 = vrot.slane %v3590_v55, 1 }
 0x233   : > { %v1626_v18 = vmax.f32 %v1624_v16, %v1625_v0  ;;  %v3650_v54 = vrot.slane %v3649_v32, 4  ;;  %v1026_v43 = vcombine.high %v882_v45, %v882_v45  ;;  %v1587_v56 = vsel %vm1138_vm3, %v882_v45, -inf  ;;  %v9477_v16 = vpop.f32.mrf.mxu0 }
 0x234   : > { %v3269_v29 = vcombine.high %v3125_v38, %v3125_v38  ;;  %v1621_v7 = vmax.f32 %v1619_v36, %v1620_v53  ;;  %v3656_v51 = vsel %vm1138_vm3, %v3271_v34, -inf  ;;  %v1588_v48 = vrot.slane %v1587_v56, 4 }
 0x235   : > { %v1627_v30 = vrot.slane %v1626_v18, 1  ;;  %v3651_v58 = vmax.f32 %v3649_v32, %v3650_v54  ;;  %v3657_v6 = vrot.slane %v3656_v51, 4  ;;  %v1594_v33 = vsel %vm1138_vm3, %v1026_v43, -inf }
 0x236   : > { %v3621_v41 = vsel %vm1138_vm3, %v3125_v38, -inf  ;;  %v1589_v0 = vmax.f32 %v1587_v56, %v1588_v48  ;;  %v1595_v15 = vrot.slane %v1594_v33, 4  ;;  %v3628_v36 = vsel %vm1138_vm3, %v3269_v29, -inf }
 0x237   : > { %v1628_v50 = vmax.f32 %v1626_v18, %v1627_v30  ;;  %v3652_v52 = vrot.slane %v3651_v58, 2  ;;  %v3658_v39 = vmax.f32 %v3656_v51, %v3657_v6  ;;  %v3622_v45 = vrot.slane %v3621_v41, 4 }
 0x238   : > { %v10627_v53 = vmax.f32 %v2190_v37, %v1621_v7  ;;  %v1590_v34 = vrot.slane %v1589_v0, 2  ;;  %v1596_v61 = vmax.f32 %v1594_v33, %v1595_v15  ;;  %v703_v32 = vadd.f32 %v10602_v14, %v9477_v16 }
 0x239   : > { %v3653_v54 = vmax.f32 %v3651_v58, %v3652_v52  ;;  %v3659_v43 = vrot.slane %v3658_v39, 2  ;;  %v3623_v22 = vmax.f32 %v3621_v41, %v3622_v45  ;;  %v3629_v38 = vrot.slane %v3628_v36, 4 }
 0x23a   : > { %v10630_v21 = vmax.f32 %v2193_v35, %v1628_v50  ;;  %v10633_v30 = vrot.slane %v10611_v10, 7  ;;  %v1591_v18 = vmax.f32 %v1589_v0, %v1590_v34  ;;  %v1597_v6 = vrot.slane %v1596_v61, 2 }
 0x23b   : > { %v3654_v56 = vrot.slane %v3653_v54, 1  ;;  %v3660_v51 = vmax.f32 %v3658_v39, %v3659_v43  ;;  %v3624_v29 = vrot.slane %v3623_v22, 2  ;;  %v3630_v37 = vmax.f32 %v3628_v36, %v3629_v38  ;;  %v10647_v39 = vld [vmem:[%s13699_s5 + $0x10] sm:$0xff] }
 0x23c   : > { %13832 = vst [vmem:[#allocation20_spill] sm:$0xff] %v10633_v30  ;;  %v10636_v7 = vmax.f32 %v10595_v44, %v3584_v28  ;;  %v1592_v48 = vrot.slane %v1591_v18, 1  ;;  %v1598_v33 = vmax.f32 %v1596_v61, %v1597_v6  ;;  %v885_v52 = vmax.f32 %v703_v32, 0.0 }
 0x23d   : > { %v10638_v58 = vmax.f32 %v3590_v55, %v3591_v2  ;;  %v10642_v35 = vmul.f32 %v10614_v25, %v10627_v53  ;;  %v3625_v41 = vmax.f32 %v3623_v22, %v3624_v29  ;;  %v3631_v16 = vrot.slane %v3630_v37, 2  ;;  %v9535_v2 = vpop.f32.mrf.mxu1  ;;  %v694_v22 = vpop.f32.mrf.mxu0 }
 0x23e   : > { %v10651_v44 = vmul.f32 %v10633_v30, %v10630_v21  ;;  %v1599_v28 = vrot.slane %v1598_v33, 1  ;;  %v1029_v61 = vcombine.high %v885_v52, %v885_v52  ;;  %v1629_v55 = vsel %vm1138_vm3, %v885_v52, -inf }
 0x23f   : > { %13833 = vst [vmem:[#allocation21_spill] sm:$0xff] %v10642_v35  ;;  %v3655_v50 = vmax.f32 %v3653_v54, %v3654_v56  ;;  %v3661_v0 = vrot.slane %v3660_v51, 1  ;;  %v1593_v15 = vmax.f32 %v1591_v18, %v1592_v48  ;;  %v3632_v45 = vmax.f32 %v3630_v37, %v3631_v16  ;;  %v2889_v56 = vpop.f32.mrf.mxu1 }
 0x240   : > { %13834 = vst [vmem:[#allocation22_spill] sm:$0xff] %v10651_v44  ;;  %v3626_v36 = vrot.slane %v3625_v41, 1  ;;  %v1630_v34 = vrot.slane %v1629_v55, 4  ;;  %v1636_v32 = vsel %vm1138_vm3, %v1029_v61, -inf  ;;  %v10656_v43 = vrot.slane %v10647_v39, 1 }
 0x241   : > { %v1600_v6 = vmax.f32 %v1598_v33, %v1599_v28  ;;  %v3633_v29 = vrot.slane %v3632_v45, 1  ;;  %v1637_v5 = vrot.slane %v1636_v32, 4  ;;  %v2898_v54 = vadd.f32 %v10602_v14, %v9535_v2 }
 0x242   : > { %13835 = vst [vmem:[#allocation23_spill] sm:$0xff] %v10656_v43  ;;  %v1631_v20 = vmax.f32 %v1629_v55, %v1630_v34  ;;  %v695_v18 = vadd.f32 %v10602_v14, %v694_v22  ;;  %v10662_v37 = vmax.f32 %v3660_v51, %v3661_v0  ;;  %v13836_v48 = vmax.f32 %v10582_v59, %v10566_v23  ;;  %v7003_v59 = vpop.trf.xlu1 }
 0x243   : > { %v13837_v33 = vmax.f32 %v10428_v19, %v10586_v27  ;;  %v1638_v61 = vmax.f32 %v1636_v32, %v1637_v5  ;;  %v10672_v38 = vmax.f32 %v3625_v41, %v3626_v36  ;;  %v3128_v34 = vmax.f32 %v2898_v54, 0.0  ;;  %9721 = vmatmul.mubr.msk.bf16.gmra.mxu1 %vm413_vm2, %v7003_v59 }
 0x244   : > { %v10667_v16 = vmax.f32 %v13836_v48, %v3655_v50  ;;  %v1632_v55 = vrot.slane %v1631_v20, 2  ;;  %v883_v2 = vmax.f32 %v695_v18, 0.0  ;;  %v13838_v22 = vmax.f32 %v10431_v1, %v10591_v42 }
 0x245   : > { %v2196_v28 = vmax.f32 %v13837_v33, %v1593_v15  ;;  %v10677_v0 = vmax.f32 %v3632_v45, %v3633_v29  ;;  %v1639_v52 = vrot.slane %v1638_v61, 2  ;;  %v2890_v23 = vadd.f32 %v10602_v14, %v2889_v56 }
 0x246   : > { %v2199_v51 = vmax.f32 %v13838_v22, %v1600_v6  ;;  %v1633_v50 = vmax.f32 %v1631_v20, %v1632_v55  ;;  %v3272_v48 = vcombine.high %v3128_v34, %v3128_v34  ;;  %v3663_v19 = vsel %vm1138_vm3, %v3128_v34, -inf }
 0x247   : > { %v1027_v5 = vcombine.high %v883_v2, %v883_v2  ;;  %v1640_v27 = vmax.f32 %v1638_v61, %v1639_v52  ;;  %v3664_v41 = vrot.slane %v3663_v19, 4  ;;  %v1601_v15 = vsel %vm1138_vm3, %v883_v2, -inf }
 0x248   : > { %v3126_v36 = vmax.f32 %v2890_v23, 0.0  ;;  %v1634_v1 = vrot.slane %v1633_v50, 1  ;;  %v3670_v42 = vsel %vm1138_vm3, %v3272_v48, -inf  ;;  %v1602_v45 = vrot.slane %v1601_v15, 4 }
 0x249   : > { %v1608_v32 = vsel %vm1138_vm3, %v1027_v5, -inf  ;;  %v1641_v6 = vrot.slane %v1640_v27, 1  ;;  %v3665_v29 = vmax.f32 %v3663_v19, %v3664_v41  ;;  %v3671_v20 = vrot.slane %v3670_v42, 4 }
 0x24a   : > { %v1609_v54 = vrot.slane %v1608_v32, 4  ;;  %v1635_v18 = vmax.f32 %v1633_v50, %v1634_v1  ;;  %v1603_v56 = vmax.f32 %v1601_v15, %v1602_v45  ;;  %v3270_v33 = vcombine.high %v3126_v36, %v3126_v36  ;;  %v9480_v50 = vpop.f32.mrf.mxu0 }
 0x24b   : > { %v3635_v55 = vsel %vm1138_vm3, %v3126_v36, -inf  ;;  %v1642_v52 = vmax.f32 %v1640_v27, %v1641_v6  ;;  %v3666_v61 = vrot.slane %v3665_v29, 2  ;;  %v3672_v34 = vmax.f32 %v3670_v42, %v3671_v20 }
 0x24c   : > { %v1610_v2 = vmax.f32 %v1608_v32, %v1609_v54  ;;  %v4429_v22 = vmax.f32 %v10636_v7, %v10672_v38  ;;  %v1604_v23 = vrot.slane %v1603_v56, 2  ;;  %v3636_v59 = vrot.slane %v3635_v55, 4 }
 0x24d   : > { %v3642_v48 = vsel %vm1138_vm3, %v3270_v33, -inf  ;;  %v2200_v5 = vmax.f32 %v2199_v51, %v1642_v52  ;;  %v3667_v19 = vmax.f32 %v3665_v29, %v3666_v61  ;;  %v3673_v41 = vrot.slane %v3672_v34, 2 }
 0x24e   : > { %v1611_v44 = vrot.slane %v1610_v2, 2  ;;  %v1605_v15 = vmax.f32 %v1603_v56, %v1604_v23  ;;  %v10690_v1 = vrot.slane %v10611_v10, 4  ;;  %v3637_v27 = vmax.f32 %v3635_v55, %v3636_v59 }
 0x24f   : > { %v716_v36 = vadd.f32 %v10602_v14, %v9480_v50  ;;  %v2197_v42 = vmax.f32 %v2196_v28, %v1635_v18  ;;  %v2414_v45 = vmul.f32 %v10656_v43, %v2200_v5  ;;  %v3674_v7 = vmax.f32 %v3672_v34, %v3673_v41  ;;  %v9538_v18 = vpop.f32.mrf.mxu1 }
 0x250   : > { %13839 = vst [vmem:[#allocation24_spill] sm:$0xff] %v10690_v1  ;;  %v1612_v38 = vmax.f32 %v1610_v2, %v1611_v44  ;;  %v1606_v32 = vrot.slane %v1605_v15, 1  ;;  %v10695_v6 = vrot.slane %v10611_v10, 5  ;;  %v3638_v51 = vrot.slane %v3637_v27, 2 }
 0x251   : > { %v3643_v29 = vrot.slane %v3642_v48, 4  ;;  %v4432_v20 = vmax.f32 %v10638_v58, %v10677_v0  ;;  %v3668_v54 = vrot.slane %v3667_v19, 1  ;;  %v3675_v56 = vrot.slane %v3674_v7, 1 }
 0x252   : > { %13840 = vst [vmem:[#allocation25_spill] sm:$0xff] %v10695_v6  ;;  %v1613_v33 = vrot.slane %v1612_v38, 1  ;;  %v1607_v55 = vmax.f32 %v1605_v15, %v1606_v32  ;;  %v3639_v52 = vmax.f32 %v3637_v27, %v3638_v51  ;;  %v888_v28 = vmax.f32 %v716_v36, 0.0 }
 0x253   : > { %v3644_v61 = vmax.f32 %v3642_v48, %v3643_v29  ;;  %v2265_v34 = vmax.f32 %v10630_v21, %v2197_v42  ;;  %v2413_v44 = vmul.f32 %v2197_v42, %v10647_v39  ;;  %v2501_v2 = vrot.slane %v2414_v45, 7 }
 0x254   : > { %v1614_v23 = vmax.f32 %v1612_v38, %v1613_v33  ;;  %v2185_v59 = vmax.f32 %v10533_v8, %v1607_v55  ;;  %v3640_v41 = vrot.slane %v3639_v52, 1  ;;  %v1032_v35 = vcombine.high %v888_v28, %v888_v28 }
 0x255   : > { %v3645_v50 = vrot.slane %v3644_v61, 2  ;;  %v3669_v58 = vmax.f32 %v3667_v19, %v3668_v54  ;;  %v1671_v15 = vsel %vm1138_vm3, %v888_v28, -inf  ;;  %v2911_v48 = vadd.f32 %v10602_v14, %v9538_v18  ;;  %v707_v54 = vpop.f32.mrf.mxu0 }
 0x256   : > { %v2188_v0 = vmax.f32 %v10544_v40, %v1614_v23  ;;  %v3676_v27 = vmax.f32 %v3674_v7, %v3675_v56  ;;  %v2409_v36 = vmul.f32 %v10690_v1, %v2185_v59  ;;  %v1672_v32 = vrot.slane %v1671_v15, 4 }
 0x257   : > { %v3646_v21 = vmax.f32 %v3644_v61, %v3645_v50  ;;  %v13841_v42 = vmax.f32 %v10584_v49, %v10574_v62  ;;  %v10712_v45 = vmax.f32 %v3639_v52, %v3640_v41  ;;  %v1678_v19 = vsel %vm1138_vm3, %v1032_v35, -inf  ;;  %v2902_v61 = vpop.f32.mrf.mxu1 }
 0x258   : > { %v3131_v40 = vmax.f32 %v2911_v48, 0.0  ;;  %v10715_v38 = vmax.f32 %v2265_v34, %v2200_v5  ;;  %v10718_v51 = vsel %vm2308_vm4, %v2501_v2, %v2413_v44  ;;  %v2410_v7 = vmul.f32 %v10695_v6, %v2188_v0  ;;  %v7004_v5 = vpop.trf.xlu1 }
 0x259   : > { %v10710_v8 = vmax.f32 %v13841_v42, %v10662_v37  ;;  %v2493_v29 = vrot.slane %v2409_v36, 4  ;;  %v10721_v56 = vmax.f32 %v4429_v22, %v3669_v58  ;;  %v1673_v33 = vmax.f32 %v1671_v15, %v1672_v32  ;;  %9724 = vmatprep.mubr.msk.bf16.mxu1 %vm413_vm2, %v7004_v5 }
 0x25a   : > { %13842 = vst [vmem:[#allocation26_spill] sm:$0xff] %v10715_v38  ;;  %v1679_v62 = vrot.slane %v1678_v19, 4  ;;  %v3275_v49 = vcombine.high %v3131_v40, %v3131_v40  ;;  %v4433_v37 = vmax.f32 %v4432_v20, %v3676_v27  ;;  %v2263_v55 = vmax.f32 %v2185_v59, %v2188_v0  ;;  %v9481_v59 = vpop.f32.mrf.mxu0 }
 0x25b   : > { %v3647_v52 = vrot.slane %v3646_v21, 1  ;;  %v3705_v35 = vsel %vm1138_vm3, %v3131_v40, -inf  ;;  %v2494_v22 = vsel %vm2476_vm7, %v2493_v29, %v10384_v3  ;;  %v2495_v2 = vrot.slane %v2410_v7, 3 }
 0x25c   : > { %v1680_v18 = vmax.f32 %v1678_v19, %v1679_v62  ;;  %v3706_v34 = vrot.slane %v3705_v35, 4  ;;  %v3712_v44 = vsel %vm1138_vm3, %v3275_v49, -inf  ;;  %v708_v23 = vadd.f32 %v10602_v14, %v707_v54 }
 0x25d   : > { %v3713_v20 = vrot.slane %v3712_v44, 4  ;;  %v1674_v41 = vrot.slane %v1673_v33, 2  ;;  %v2903_v58 = vadd.f32 %v10602_v14, %v2902_v61  ;;  %v719_v0 = vadd.f32 %v10602_v14, %v9481_v59 }
 0x25e   : > { %v3707_v50 = vmax.f32 %v3705_v35, %v3706_v34  ;;  %v10734_v15 = vmax.f32 %v2263_v55, %v10627_v53  ;;  %v10736_v48 = vmax.f32 %v3646_v21, %v3647_v52  ;;  %v886_v36 = vmax.f32 %v708_v23, 0.0 }
 0x25f   : > { %v3714_v27 = vmax.f32 %v3712_v44, %v3713_v20  ;;  %v1681_v32 = vrot.slane %v1680_v18, 2  ;;  %v3129_v42 = vmax.f32 %v2903_v58, 0.0  ;;  %v889_v19 = vmax.f32 %v719_v0, 0.0 }
 0x260   : > { %13843 = vst [vmem:[#allocation27_spill] sm:$0xff] %v10734_v15  ;;  %v3708_v3 = vrot.slane %v3707_v50, 2  ;;  %v10739_v40 = vsel %vm2479_vm8, %v2495_v2, %v2494_v22  ;;  %v1030_v29 = vcombine.high %v886_v36, %v886_v36  ;;  %v1643_v54 = vsel %vm1138_vm3, %v886_v36, -inf }
 0x261   : > { %13844 = vst [vmem:[#allocation28_spill] sm:$0xff] %v10739_v40  ;;  %v3715_v7 = vrot.slane %v3714_v27, 2  ;;  %v1675_v62 = vmax.f32 %v1673_v33, %v1674_v41  ;;  %v1644_v35 = vrot.slane %v1643_v54, 4  ;;  %v3273_v53 = vcombine.high %v3129_v42, %v3129_v42  ;;  %v9539_v33 = vpop.f32.mrf.mxu1 }
 0x262   : > { %v3709_v49 = vmax.f32 %v3707_v50, %v3708_v3  ;;  %v1650_v21 = vsel %vm1138_vm3, %v1030_v29, -inf  ;;  %v3677_v52 = vsel %vm1138_vm3, %v3129_v42, -inf  ;;  %v1033_v61 = vcombine.high %v889_v19, %v889_v19 }
 0x263   : > { %v3716_v55 = vmax.f32 %v3714_v27, %v3715_v7  ;;  %v1682_v5 = vmax.f32 %v1680_v18, %v1681_v32  ;;  %v1645_v44 = vmax.f32 %v1643_v54, %v1644_v35  ;;  %v1651_v20 = vrot.slane %v1650_v21, 4 }
 0x264   : > { %v3710_v34 = vrot.slane %v3709_v49, 1  ;;  %v3678_v2 = vrot.slane %v3677_v52, 4  ;;  %v3684_v23 = vsel %vm1138_vm3, %v3273_v53, -inf  ;;  %v1685_v59 = vsel %vm1138_vm3, %v889_v19, -inf }
 0x265   : > { %v3717_v22 = vrot.slane %v3716_v55, 1  ;;  %v1646_v50 = vrot.slane %v1645_v44, 2  ;;  %v1652_v58 = vmax.f32 %v1650_v21, %v1651_v20  ;;  %v3685_v0 = vrot.slane %v3684_v23, 4 }
 0x266   : > { %v3711_v41 = vmax.f32 %v3709_v49, %v3710_v34  ;;  %v3679_v36 = vmax.f32 %v3677_v52, %v3678_v2  ;;  %v1686_v3 = vrot.slane %v1685_v59, 4  ;;  %v1692_v42 = vsel %vm1138_vm3, %v1033_v61, -inf }
 0x267   : > { %v3718_v27 = vmax.f32 %v3716_v55, %v3717_v22  ;;  %v1647_v18 = vmax.f32 %v1645_v44, %v1646_v50  ;;  %v1653_v32 = vrot.slane %v1652_v58, 2  ;;  %v3686_v7 = vmax.f32 %v3684_v23, %v3685_v0  ;;  %v7005_v23 = vpop.trf.xlu1  ;;  %v2905_v0 = vpop.f32.mrf.mxu1 }
 0x268   : > { %v2914_v29 = vadd.f32 %v10602_v14, %v9539_v33  ;;  %v3680_v35 = vrot.slane %v3679_v36, 2  ;;  %v1687_v53 = vmax.f32 %v1685_v59, %v1686_v3  ;;  %v1693_v19 = vrot.slane %v1692_v42, 4  ;;  %9725 = vmatmul.mubr.msk.bf16.gmra.mxu1 %vm413_vm2, %v7005_v23 }
 0x269   : > { %v10748_v54 = vmax.f32 %v4433_v37, %v3718_v27  ;;  %v1676_v28 = vrot.slane %v1675_v62, 1  ;;  %v1683_v49 = vrot.slane %v1682_v5, 1  ;;  %v1654_v34 = vmax.f32 %v1652_v58, %v1653_v32  ;;  %v710_v32 = vpop.f32.mrf.mxu0 }
 0x26a   : > { %v3687_v21 = vrot.slane %v3686_v7, 2  ;;  %v10751_v55 = vmax.f32 %v10721_v56, %v3711_v41  ;;  %v3681_v52 = vmax.f32 %v3679_v36, %v3680_v35  ;;  %v1688_v20 = vrot.slane %v1687_v53, 2 }
 0x26b   : > { %v1694_v61 = vmax.f32 %v1692_v42, %v1693_v19  ;;  %v4438_v44 = vmax.f32 %v10580_v24, %v10736_v48  ;;  %v1648_v22 = vrot.slane %v1647_v18, 1  ;;  %v3132_v37 = vmax.f32 %v2914_v29, 0.0 }
 0x26c   : > { %v3688_v2 = vmax.f32 %v3686_v7, %v3687_v21  ;;  %v10757_v59 = vmul.f32 %v10748_v54, %v10149_v63  ;;  %v1655_v33 = vrot.slane %v1654_v34, 1  ;;  %v3682_v50 = vrot.slane %v3681_v52, 1 }
 0x26d   : > { %v1689_v58 = vmax.f32 %v1687_v53, %v1688_v20  ;;  %v10760_v56 = vmax.f32 %v1675_v62, %v1676_v28  ;;  %v1695_v41 = vrot.slane %v1694_v61, 2  ;;  %v3276_v27 = vcombine.high %v3132_v37, %v3132_v37 }
 0x26e   : > { %v3719_v24 = vsel %vm1138_vm3, %v3132_v37, -inf  ;;  %v10763_v48 = vmax.f32 %v1682_v5, %v1683_v49  ;;  %v10767_v36 = vmul.f32 %v10611_v10, %v10751_v55  ;;  %v3683_v3 = vmax.f32 %v3681_v52, %v3682_v50 }
 0x26f   : > { %v3689_v42 = vrot.slane %v3688_v2, 1  ;;  %v10769_v7 = vmax.f32 %v1647_v18, %v1648_v22  ;;  %v3720_v29 = vrot.slane %v3719_v24, 4  ;;  %v3726_v35 = vsel %vm1138_vm3, %v3276_v27, -inf }
 0x270   : > { %v711_v28 = vadd.f32 %v10602_v14, %v710_v32  ;;  %v4658_v62 = vrot.slane %v10757_v59, 7  ;;  %v10774_v53 = vmax.f32 %v1654_v34, %v1655_v33  ;;  %v1690_v5 = vrot.slane %v1689_v58, 1 }
 0x271   : > { %v3727_v19 = vrot.slane %v3726_v35, 4  ;;  %v1696_v49 = vmax.f32 %v1694_v61, %v1695_v41  ;;  %v3721_v21 = vmax.f32 %v3719_v24, %v3720_v29  ;;  %v2906_v52 = vadd.f32 %v10602_v14, %v2905_v0 }
 0x272   : > { %v887_v10 = vmax.f32 %v711_v28, 0.0  ;;  %v3690_v20 = vmax.f32 %v3688_v2, %v3689_v42  ;;  %v13845_v18 = vmax.f32 %v10572_v47, %v10712_v45  ;;  %v13846_v23 = vrot.slane %v10486_v4, 4 }
 0x273   : > { %v3728_v37 = vmax.f32 %v3726_v35, %v3727_v19  ;;  %v3722_v34 = vrot.slane %v3721_v21, 2  ;;  %v3130_v61 = vmax.f32 %v2906_v52, 0.0  ;;  %v10785_v41 = vmax.f32 %v1689_v58, %v1690_v5  ;;  %v9484_v35 = vpop.f32.mrf.mxu0  ;;  %v9542_v19 = vpop.f32.mrf.mxu1 }
 0x274   : > { %v4436_v22 = vmax.f32 %v13845_v18, %v3683_v3  ;;  %v4651_v59 = vsel %vm2476_vm7, %v13846_v23, %v10521_v13  ;;  %v1031_v33 = vcombine.high %v887_v10, %v887_v10  ;;  %v1657_v50 = vsel %vm1138_vm3, %v887_v10, -inf }
 0x275   : > { %v3729_v27 = vrot.slane %v3728_v37, 2  ;;  %v1658_v0 = vrot.slane %v1657_v50, 4  ;;  %v13847_v2 = vrot.slane %v10493_v9, 3  ;;  %v3723_v45 = vmax.f32 %v3721_v21, %v3722_v34 }
 0x276   : > { %v1664_v24 = vsel %vm1138_vm3, %v1031_v33, -inf  ;;  %v3274_v4 = vcombine.high %v3130_v61, %v3130_v61  ;;  %v3691_v13 = vsel %vm1138_vm3, %v3130_v61, -inf  ;;  %v4439_v58 = vmax.f32 %v4438_v44, %v3690_v20 }
 0x277   : > { %v10790_v47 = vsel %vm2479_vm8, %v13847_v2, %v4651_v59  ;;  %v3730_v3 = vmax.f32 %v3728_v37, %v3729_v27  ;;  %v1659_v42 = vmax.f32 %v1657_v50, %v1658_v0  ;;  %v1665_v32 = vrot.slane %v1664_v24, 4 }
 0x278   : > { %v3692_v29 = vrot.slane %v3691_v13, 4  ;;  %v3724_v28 = vrot.slane %v3723_v45, 1  ;;  %v3698_v5 = vsel %vm1138_vm3, %v3274_v4, -inf  ;;  %v732_v9 = vadd.f32 %v10602_v14, %v9484_v35 }
 0x279   : > { %v3731_v10 = vrot.slane %v3730_v3, 1  ;;  %v1660_v52 = vrot.slane %v1659_v42, 2  ;;  %v1666_v21 = vmax.f32 %v1664_v24, %v1665_v32  ;;  %v1697_v23 = vrot.slane %v1696_v49, 1 }
 0x27a   : > { %v3693_v18 = vmax.f32 %v3691_v13, %v3692_v29  ;;  %v3725_v59 = vmax.f32 %v3723_v45, %v3724_v28  ;;  %v3699_v34 = vrot.slane %v3698_v5, 4  ;;  %v892_v33 = vmax.f32 %v732_v9, 0.0 }
 0x27b   : > { %v3732_v37 = vmax.f32 %v3730_v3, %v3731_v10  ;;  %v1667_v50 = vrot.slane %v1666_v21, 2  ;;  %v2927_v27 = vadd.f32 %v10602_v14, %v9542_v19  ;;  %v1661_v20 = vmax.f32 %v1659_v42, %v1660_v52 }
 0x27c   : > { %v3694_v61 = vrot.slane %v3693_v18, 2  ;;  %v4437_v44 = vmax.f32 %v4436_v22, %v3725_v59  ;;  %v3700_v0 = vmax.f32 %v3698_v5, %v3699_v34  ;;  %v1727_v2 = vsel %vm1138_vm3, %v892_v33, -inf }
 0x27d   : > { %v4440_v4 = vmax.f32 %v4439_v58, %v3732_v37  ;;  %v1668_v35 = vmax.f32 %v1666_v21, %v1667_v50  ;;  %v1036_v38 = vcombine.high %v892_v33, %v892_v33  ;;  %v4659_v24 = vsel %vm2308_vm4, %v4658_v62, %v10767_v36 }
 0x27e   : > { %v3695_v40 = vmax.f32 %v3693_v18, %v3694_v61  ;;  %v4582_v45 = vmul.f32 %v4437_v44, %v10342_v12  ;;  %v3701_v13 = vrot.slane %v3700_v0, 2  ;;  %v1728_v3 = vrot.slane %v1727_v2, 4 }
 0x27f   : > { %v10801_v32 = vmax.f32 %v1696_v49, %v1697_v23  ;;  %v4583_v29 = vmul.f32 %v4440_v4, %v10364_v31  ;;  %v3135_v42 = vmax.f32 %v2927_v27, 0.0  ;;  %v2201_v28 = vmax.f32 %v10769_v7, %v10785_v41  ;;  %v2918_v23 = vpop.f32.mrf.mxu1 }
 0x280   : > { %v3696_v22 = vrot.slane %v3695_v40, 1  ;;  %v1662_v58 = vrot.slane %v1661_v20, 1  ;;  %v3702_v5 = vmax.f32 %v3700_v0, %v3701_v13  ;;  %v1729_v9 = vmax.f32 %v1727_v2, %v1728_v3  ;;  %v7014_v0 = vpop.trf.xlu1 }
 0x281   : > { %v4519_v19 = vmax.f32 %v10748_v54, %v4437_v44  ;;  %v1669_v10 = vrot.slane %v1668_v35, 1  ;;  %v1734_v62 = vsel %vm1138_vm3, %v1036_v38, -inf  ;;  %v4660_v52 = vrot.slane %v4582_v45, 6  ;;  %v723_v54 = vpop.f32.mrf.mxu0  ;;  %9728 = vmatprep.mubr.msk.bf16.mxu1 %vm413_vm2, %v7014_v0 }
 0x282   : > { %v3697_v36 = vmax.f32 %v3695_v40, %v3696_v22  ;;  %v3703_v21 = vrot.slane %v3702_v5, 1  ;;  %v1730_v49 = vrot.slane %v1729_v9, 2  ;;  %v1735_v18 = vrot.slane %v1734_v62, 4 }
 0x283   : > { %v4662_v59 = vrot.slane %v4583_v29, 5  ;;  %v3279_v33 = vcombine.high %v3135_v42, %v3135_v42  ;;  %v3761_v7 = vsel %vm1138_vm3, %v3135_v42, -inf  ;;  %v724_v27 = vadd.f32 %v10602_v14, %v723_v54 }
 0x284   : > { %v4425_v34 = vmax.f32 %v10667_v16, %v3697_v36  ;;  %v3704_v41 = vmax.f32 %v3702_v5, %v3703_v21  ;;  %v1731_v37 = vmax.f32 %v1729_v9, %v1730_v49  ;;  %v1736_v50 = vmax.f32 %v1734_v62, %v1735_v18 }
 0x285   : > { %v3762_v61 = vrot.slane %v3761_v7, 4  ;;  %v3768_v38 = vsel %vm1138_vm3, %v3279_v33, -inf  ;;  %v2919_v44 = vadd.f32 %v10602_v14, %v2918_v23  ;;  %v4661_v2 = vsel %vm2311_vm5, %v4660_v52, %v4659_v24 }
 0x286   : > { %v4578_v40 = vmul.f32 %v4425_v34, %v10371_v46  ;;  %v4428_v16 = vmax.f32 %v10710_v8, %v3704_v41  ;;  %v1732_v45 = vrot.slane %v1731_v37, 1  ;;  %v1737_v13 = vrot.slane %v1736_v50, 2 }
 0x287   : > { %v3763_v29 = vmax.f32 %v3761_v7, %v3762_v61  ;;  %v3769_v22 = vrot.slane %v3768_v38, 4  ;;  %v890_v42 = vmax.f32 %v724_v27, 0.0  ;;  %v2204_v5 = vmax.f32 %v10774_v53, %v10801_v32  ;;  %v9485_v7 = vpop.f32.mrf.mxu0 }
 0x288   : > { %v4654_v3 = vrot.slane %v4578_v40, 2  ;;  %v10819_v9 = vmax.f32 %v1661_v20, %v1662_v58  ;;  %v4517_v36 = vmax.f32 %v4425_v34, %v4428_v16  ;;  %v3133_v62 = vmax.f32 %v2919_v44, 0.0  ;;  %v9543_v40 = vpop.f32.mrf.mxu1 }
 0x289   : > { %v10821_v21 = vmax.f32 %v4519_v19, %v4440_v4  ;;  %v10824_v24 = vmul.f32 %v4428_v16, %v10393_v17  ;;  %v1738_v8 = vmax.f32 %v1736_v50, %v1737_v13  ;;  %v1034_v52 = vcombine.high %v890_v42, %v890_v42 }
 0x28a   : > { %v10827_v49 = vsel %vm2314_vm6, %v4662_v59, %v4661_v2  ;;  %v10829_v18 = vmax.f32 %v1668_v35, %v1669_v10  ;;  %v10833_v23 = vsel %vm2482_vm9, %v4654_v3, %v10790_v47  ;;  %v1733_v53 = vmax.f32 %v1731_v37, %v1732_v45 }
 0x28b   : > { %13848 = vst [vmem:[#allocation29_spill] sm:$0xff] %v10821_v21  ;;  %13849 = vst [vmem:[#allocation30_spill] sm:$0xff] %v10824_v24  ;;  %v3764_v20 = vrot.slane %v3763_v29, 2  ;;  %v3770_v32 = vmax.f32 %v3768_v38, %v3769_v22  ;;  %v1699_v4 = vsel %vm1138_vm3, %v890_v42, -inf  ;;  %v1706_v58 = vsel %vm1138_vm3, %v1034_v52, -inf }
 0x28c   : > { %13850 = vst [vmem:[#allocation31_spill] sm:$0xff] %v10833_v23  ;;  %v10838_v19 = vmax.f32 %v4517_v36, %v10751_v55  ;;  %v1700_v34 = vrot.slane %v1699_v4, 4  ;;  %v1707_v33 = vrot.slane %v1706_v58, 4  ;;  %v3277_v59 = vcombine.high %v3133_v62, %v3133_v62 }
 0x28d   : > { %v1739_v10 = vrot.slane %v1738_v8, 1  ;;  %v3733_v47 = vsel %vm1138_vm3, %v3133_v62, -inf  ;;  %v735_v41 = vadd.f32 %v10602_v14, %v9485_v7  ;;  %v10843_v37 = vmax.f32 %v2201_v28, %v1733_v53 }
 0x28e   : > { %13851 = vst [vmem:[#allocation32_spill] sm:$0xff] %v10838_v19  ;;  %v1701_v50 = vmax.f32 %v1699_v4, %v1700_v34  ;;  %v1708_v61 = vmax.f32 %v1706_v58, %v1707_v33  ;;  %v3734_v54 = vrot.slane %v3733_v47, 4  ;;  %v3765_v38 = vmax.f32 %v3763_v29, %v3764_v20 }
 0x28f   : > { %v3771_v55 = vrot.slane %v3770_v32, 2  ;;  %v3740_v27 = vsel %vm1138_vm3, %v3277_v59, -inf  ;;  %v893_v44 = vmax.f32 %v735_v41, 0.0  ;;  %v1740_v13 = vmax.f32 %v1738_v8, %v1739_v10  ;;  %v726_v41 = vpop.f32.mrf.mxu0 }
 0x290   : > { %v1702_v0 = vrot.slane %v1701_v50, 2  ;;  %v1709_v2 = vrot.slane %v1708_v61, 2  ;;  %v3735_v16 = vmax.f32 %v3733_v47, %v3734_v54  ;;  %v3741_v45 = vrot.slane %v3740_v27, 4 }
 0x291   : > { %v1037_v3 = vcombine.high %v893_v44, %v893_v44  ;;  %v1741_v22 = vsel %vm1138_vm3, %v893_v44, -inf  ;;  %v2930_v28 = vadd.f32 %v10602_v14, %v9543_v40  ;;  %v3766_v53 = vrot.slane %v3765_v38, 1 }
 0x292   : > { %v1703_v42 = vmax.f32 %v1701_v50, %v1702_v0  ;;  %v1710_v36 = vmax.f32 %v1708_v61, %v1709_v2  ;;  %v3736_v62 = vrot.slane %v3735_v16, 2  ;;  %v3742_v52 = vmax.f32 %v3740_v27, %v3741_v45  ;;  %v2921_v0 = vpop.f32.mrf.mxu1 }
 0x293   : > { %v1742_v29 = vrot.slane %v1741_v22, 4  ;;  %v1748_v20 = vsel %vm1138_vm3, %v1037_v3, -inf  ;;  %v3136_v4 = vmax.f32 %v2930_v28, 0.0  ;;  %v10849_v58 = vmax.f32 %v3770_v32, %v3771_v55 }
 0x294   : > { %v1704_v34 = vrot.slane %v1703_v42, 1  ;;  %v1711_v33 = vrot.slane %v1710_v36, 1  ;;  %v10851_v59 = vmax.f32 %v3735_v16, %v3736_v62  ;;  %v1749_v7 = vrot.slane %v1748_v20, 4  ;;  %v9488_v62 = vpop.f32.mrf.mxu0 }
 0x295   : > { %v1743_v8 = vmax.f32 %v1741_v22, %v1742_v29  ;;  %v3280_v10 = vcombine.high %v3136_v4, %v3136_v4  ;;  %v3775_v47 = vsel %vm1138_vm3, %v3136_v4, -inf  ;;  %v10854_v50 = vmax.f32 %v2204_v5, %v1740_v13  ;;  %v7015_v13 = vpop.trf.xlu1 }
 0x296   : > { %v10856_v61 = vmax.f32 %v1703_v42, %v1704_v34  ;;  %v3743_v54 = vrot.slane %v3742_v52, 2  ;;  %v727_v40 = vadd.f32 %v10602_v14, %v726_v41  ;;  %v1750_v32 = vmax.f32 %v1748_v20, %v1749_v7  ;;  %9729 = vmatmul.mubr.msk.bf16.gmra.mxu1 %vm413_vm2, %v7015_v13 }
 0x297   : > { %v1744_v27 = vrot.slane %v1743_v8, 2  ;;  %v3776_v55 = vrot.slane %v3775_v47, 4  ;;  %v3782_v44 = vsel %vm1138_vm3, %v3280_v10, -inf  ;;  %v10860_v2 = vmax.f32 %v3765_v38, %v3766_v53 }
 0x298   : > { %v3773_v16 = vrot.slane %v10849_v58, 1  ;;  %v10863_v45 = vmax.f32 %v1710_v36, %v1711_v33  ;;  %v3738_v5 = vrot.slane %v10851_v59, 1  ;;  %v1751_v22 = vrot.slane %v1750_v32, 2 }
 0x299   : > { %v1745_v3 = vmax.f32 %v1743_v8, %v1744_v27  ;;  %v3777_v28 = vmax.f32 %v3775_v47, %v3776_v55  ;;  %v3783_v42 = vrot.slane %v3782_v44, 4  ;;  %v3744_v29 = vmax.f32 %v3742_v52, %v3743_v54 }
 0x29a   : > { %v891_v20 = vmax.f32 %v727_v40, 0.0  ;;  %v2922_v4 = vadd.f32 %v10602_v14, %v2921_v0  ;;  %v748_v38 = vadd.f32 %v10602_v14, %v9488_v62  ;;  %v2207_v36 = vmax.f32 %v10819_v9, %v10856_v61 }
 0x29b   : > { %v1752_v53 = vmax.f32 %v1750_v32, %v1751_v22  ;;  %v3778_v34 = vrot.slane %v3777_v28, 2  ;;  %v3784_v33 = vmax.f32 %v3782_v44, %v3783_v42  ;;  %v1746_v7 = vrot.slane %v1745_v3, 1 }
 0x29c   : > { %v1035_v8 = vcombine.high %v891_v20, %v891_v20  ;;  %v1713_v10 = vsel %vm1138_vm3, %v891_v20, -inf  ;;  %v3134_v47 = vmax.f32 %v2922_v4, 0.0  ;;  %v896_v52 = vmax.f32 %v748_v38, 0.0 }
 0x29d   : > { %v1753_v41 = vrot.slane %v1752_v53, 1  ;;  %v3779_v27 = vmax.f32 %v3777_v28, %v3778_v34  ;;  %v3785_v55 = vrot.slane %v3784_v33, 2  ;;  %v1714_v54 = vrot.slane %v1713_v10, 4 }
 0x29e   : > { %v1720_v40 = vsel %vm1138_vm3, %v1035_v8, -inf  ;;  %v3278_v0 = vcombine.high %v3134_v47, %v3134_v47  ;;  %v3747_v14 = vsel %vm1138_vm3, %v3134_v47, -inf  ;;  %v2210_v9 = vmax.f32 %v10829_v18, %v10863_v45 }
 0x29f   : > { %v3745_v61 = vrot.slane %v3744_v29, 1  ;;  %v3780_v32 = vrot.slane %v3779_v27, 1  ;;  %v3786_v44 = vmax.f32 %v3784_v33, %v3785_v55  ;;  %v1715_v13 = vmax.f32 %v1713_v10, %v1714_v54 }
 0x2a0   : > { %v1721_v22 = vrot.slane %v1720_v40, 4  ;;  %v3748_v42 = vrot.slane %v3747_v14, 4  ;;  %v3754_v62 = vsel %vm1138_vm3, %v3278_v0, -inf  ;;  %v1747_v28 = vmax.f32 %v1745_v3, %v1746_v7  ;;  %v9546_v0 = vpop.f32.mrf.mxu1 }
 0x2a1   : > { %v1754_v20 = vmax.f32 %v1752_v53, %v1753_v41  ;;  %v3787_v4 = vrot.slane %v3786_v44, 1  ;;  %v3755_v38 = vrot.slane %v3754_v62, 4  ;;  %v1716_v34 = vrot.slane %v1715_v13, 2 }
 0x2a2   : > { %v1722_v8 = vmax.f32 %v1720_v40, %v1721_v22  ;;  %v3749_v35 = vmax.f32 %v3747_v14, %v3748_v42  ;;  %v1040_v24 = vcombine.high %v896_v52, %v896_v52  ;;  %v10877_v47 = vmax.f32 %v3779_v27, %v3780_v32  ;;  %v10894_v22 = vld [vmem:[%s13696_s2] ss:$0 sm:$0xff] }
 0x2a3   : > { %v10879_v23 = vmax.f32 %v3786_v44, %v3787_v4  ;;  %v3756_v18 = vmax.f32 %v3754_v62, %v3755_v38  ;;  %v1783_v45 = vsel %vm1138_vm3, %v896_v52, -inf  ;;  %v1717_v33 = vmax.f32 %v1715_v13, %v1716_v34 }
 0x2a4   : > { %v1723_v10 = vrot.slane %v1722_v8, 2  ;;  %v3750_v55 = vrot.slane %v3749_v35, 2  ;;  %v1784_v54 = vrot.slane %v1783_v45, 4  ;;  %v10883_v3 = vmax.f32 %v10849_v58, %v3773_v16 }
 0x2a5   : > { %v10886_v53 = vmax.f32 %v10851_v59, %v3738_v5  ;;  %v10888_v7 = vmax.f32 %v3744_v29, %v3745_v61  ;;  %v1790_v41 = vsel %vm1138_vm3, %v1040_v24, -inf  ;;  %v2208_v27 = vmax.f32 %v2207_v36, %v1747_v28  ;;  %v7016_v59 = vpop.trf.xlu1  ;;  %v739_v36 = vpop.f32.mrf.mxu0 }
 0x2a6   : > { %v1718_v40 = vrot.slane %v1717_v33, 1  ;;  %v3757_v14 = vrot.slane %v3756_v18, 2  ;;  %v1785_v32 = vmax.f32 %v1783_v45, %v1784_v54  ;;  %v2211_v52 = vmax.f32 %v2210_v9, %v1754_v20  ;;  %9732 = vmatprep.mubr.msk.bf16.mxu1 %vm413_vm2, %v7016_v59 }
 0x2a7   : > { %v1724_v44 = vmax.f32 %v1722_v8, %v1723_v10  ;;  %v1791_v13 = vrot.slane %v1790_v41, 4  ;;  %v2943_v58 = vadd.f32 %v10894_v22, %v9546_v0  ;;  %v10901_v5 = vmax.f32 %v3749_v35, %v3750_v55  ;;  %v2934_v35 = vpop.f32.mrf.mxu1 }
 0x2a8   : > { %v1786_v29 = vrot.slane %v1785_v32, 2  ;;  %v10905_v61 = vrot.slane %v10647_v39, 4  ;;  %v740_v62 = vadd.f32 %v10894_v22, %v739_v36  ;;  %v10908_v28 = vmax.f32 %v1717_v33, %v1718_v40 }
 0x2a9   : > { %v1792_v9 = vmax.f32 %v1790_v41, %v1791_v13  ;;  %v3139_v42 = vmax.f32 %v2943_v58, 0.0  ;;  %v10910_v20 = vmax.f32 %v3756_v18, %v3757_v14  ;;  %v10913_v38 = vrot.slane %v10647_v39, 5  ;;  %v9489_v13 = vpop.f32.mrf.mxu0 }
 0x2aa   : > { %13852 = vst [vmem:[#allocation33_spill] sm:$0xff] %v10905_v61  ;;  %v1787_v4 = vmax.f32 %v1785_v32, %v1786_v29  ;;  %v1725_v34 = vrot.slane %v1724_v44, 1  ;;  %v3752_v55 = vrot.slane %v10901_v5, 1  ;;  %v894_v41 = vmax.f32 %v740_v62, 0.0 }
 0x2ab   : > { %13853 = vst [vmem:[#allocation34_spill] sm:$0xff] %v10913_v38  ;;  %v1793_v8 = vrot.slane %v1792_v9, 2  ;;  %v3283_v45 = vcombine.high %v3139_v42, %v3139_v42  ;;  %v3817_v10 = vsel %vm1138_vm3, %v3139_v42, -inf  ;;  %v2935_v40 = vadd.f32 %v10894_v22, %v2934_v35 }
 0x2ac   : > { %v1788_v54 = vrot.slane %v1787_v4, 1  ;;  %v3818_v0 = vrot.slane %v3817_v10, 4  ;;  %v751_v39 = vadd.f32 %v10894_v22, %v9489_v13  ;;  %v1038_v59 = vcombine.high %v894_v41, %v894_v41 }
 0x2ad   : > { %v1794_v33 = vmax.f32 %v1792_v9, %v1793_v8  ;;  %v3824_v18 = vsel %vm1138_vm3, %v3283_v45, -inf  ;;  %v3759_v29 = vrot.slane %v10910_v20, 1  ;;  %v1755_v42 = vsel %vm1138_vm3, %v894_v41, -inf }
 0x2ae   : > { %v1789_v14 = vmax.f32 %v1787_v4, %v1788_v54  ;;  %v3819_v32 = vmax.f32 %v3817_v10, %v3818_v0  ;;  %v3825_v58 = vrot.slane %v3824_v18, 4  ;;  %v3137_v24 = vmax.f32 %v2935_v40, 0.0 }
 0x2af   : > { %v1795_v36 = vrot.slane %v1794_v33, 1  ;;  %v1756_v21 = vrot.slane %v1755_v42, 4  ;;  %v897_v9 = vmax.f32 %v751_v39, 0.0  ;;  %v1762_v45 = vsel %vm1138_vm3, %v1038_v59, -inf }
 0x2b0   : > { %v3820_v16 = vrot.slane %v3819_v32, 2  ;;  %v3826_v62 = vmax.f32 %v3824_v18, %v3825_v58  ;;  %v3281_v35 = vcombine.high %v3137_v24, %v3137_v24  ;;  %v3789_v13 = vsel %vm1138_vm3, %v3137_v24, -inf }
 0x2b1   : > { %v1796_v8 = vmax.f32 %v1794_v33, %v1795_v36  ;;  %v10924_v4 = vmax.f32 %v2208_v27, %v1789_v14  ;;  %v1757_v0 = vmax.f32 %v1755_v42, %v1756_v21  ;;  %v1763_v15 = vrot.slane %v1762_v45, 4 }
 0x2b2   : > { %v3821_v10 = vmax.f32 %v3819_v32, %v3820_v16  ;;  %v3827_v54 = vrot.slane %v3826_v62, 2  ;;  %v3790_v41 = vrot.slane %v3789_v13, 4  ;;  %v3796_v40 = vsel %vm1138_vm3, %v3281_v35, -inf }
 0x2b3   : > { %v10926_v19 = vmax.f32 %v2211_v52, %v1796_v8  ;;  %v10929_v18 = vmax.f32 %v1724_v44, %v1725_v34  ;;  %v1758_v58 = vrot.slane %v1757_v0, 2  ;;  %v2213_v59 = vmax.f32 %v10760_v56, %v10908_v28 }
 0x2b4   : > { %v3822_v39 = vrot.slane %v3821_v10, 1  ;;  %v3828_v33 = vmax.f32 %v3826_v62, %v3827_v54  ;;  %v1764_v24 = vmax.f32 %v1762_v45, %v1763_v15  ;;  %v3791_v27 = vmax.f32 %v3789_v13, %v3790_v41  ;;  %v9547_v54 = vpop.f32.mrf.mxu1 }
 0x2b5   : > { %v3797_v14 = vrot.slane %v3796_v40, 4  ;;  %v10935_v21 = vmul.f32 %v10905_v61, %v10924_v4  ;;  %v1759_v16 = vmax.f32 %v1757_v0, %v1758_v58  ;;  %v1041_v32 = vcombine.high %v897_v9, %v897_v9 }
 0x2b6   : > { %v3829_v52 = vrot.slane %v3828_v33, 1  ;;  %v10939_v44 = vmul.f32 %v10913_v38, %v10926_v19  ;;  %v1765_v34 = vrot.slane %v1764_v24, 2  ;;  %v3792_v36 = vrot.slane %v3791_v27, 2 }
 0x2b7   : > { %v3798_v42 = vmax.f32 %v3796_v40, %v3797_v14  ;;  %v3823_v62 = vmax.f32 %v3821_v10, %v3822_v39  ;;  %v1760_v56 = vrot.slane %v1759_v16, 1  ;;  %v1797_v15 = vsel %vm1138_vm3, %v897_v9, -inf }
 0x2b8   : > { %13854 = vst [vmem:[#allocation35_spill] sm:$0xff] %v10939_v44  ;;  %v3830_v8 = vmax.f32 %v3828_v33, %v3829_v52  ;;  %v1766_v28 = vmax.f32 %v1764_v24, %v1765_v34  ;;  %v3793_v45 = vmax.f32 %v3791_v27, %v3792_v36  ;;  %v1798_v13 = vrot.slane %v1797_v15, 4  ;;  %v742_v24 = vpop.f32.mrf.mxu0  ;;  %v10967_v34 = vld [vmem:[%s13699_s5 + $0x10] sm:$0xff] }
 0x2b9   : > { %v3799_v35 = vrot.slane %v3798_v42, 2  ;;  %v2216_v0 = vmax.f32 %v10763_v48, %v10929_v18  ;;  %v10945_v41 = vmax.f32 %v10901_v5, %v3752_v55  ;;  %v10948_v58 = vmax.f32 %v10910_v20, %v3759_v29 }
 0x2ba   : > { %v1804_v10 = vsel %vm1138_vm3, %v1041_v32, -inf  ;;  %v1761_v39 = vmax.f32 %v1759_v16, %v1760_v56  ;;  %v1767_v9 = vrot.slane %v1766_v28, 1  ;;  %v1799_v33 = vmax.f32 %v1797_v15, %v1798_v13  ;;  %v7017_v13 = vpop.trf.xlu1  ;;  %v9492_v27 = vpop.f32.mrf.mxu0 }
 0x2bb   : > { %v13855_v14 = vmax.f32 %v10886_v53, %v10877_v47  ;;  %v1805_v5 = vrot.slane %v1804_v10, 4  ;;  %v2946_v55 = vadd.f32 %v10894_v22, %v9547_v54  ;;  %v13856_v20 = vmax.f32 %v10888_v7, %v10879_v23 }
 0x2bc   : > { %v3794_v18 = vrot.slane %v3793_v45, 1  ;;  %v3800_v52 = vmax.f32 %v3798_v42, %v3799_v35  ;;  %v1800_v16 = vrot.slane %v1799_v33, 2  ;;  %v10970_v47 = vrot.slane %v10967_v34, 6 }
 0x2bd   : > { %v10956_v48 = vmax.f32 %v13855_v14, %v3823_v62  ;;  %v10962_v29 = vmax.f32 %v13856_v20, %v3830_v8  ;;  %v1806_v32 = vmax.f32 %v1804_v10, %v1805_v5  ;;  %v3140_v53 = vmax.f32 %v2946_v55, 0.0  ;;  %v2937_v55 = vpop.f32.mrf.mxu1  ;;  %9733 = vmatmul.mubr.msk.bf16.gmra.mxu1 %vm413_vm2, %v7017_v13 }
 0x2be   : > { %13857 = vst [vmem:[#allocation36_spill] sm:$0xff] %v10970_v47  ;;  %v743_v36 = vadd.f32 %v10894_v22, %v742_v24  ;;  %v1768_v62 = vmax.f32 %v1766_v28, %v1767_v9  ;;  %v2214_v56 = vmax.f32 %v2213_v59, %v1761_v39  ;;  %v1801_v23 = vmax.f32 %v1799_v33, %v1800_v16 }
 0x2bf   : > { %v10974_v7 = vrot.slane %v10967_v34, 7  ;;  %v1807_v42 = vrot.slane %v1806_v32, 2  ;;  %v3284_v8 = vcombine.high %v3140_v53, %v3140_v53  ;;  %v3831_v15 = vsel %vm1138_vm3, %v3140_v53, -inf }
 0x2c0   : > { %v895_v35 = vmax.f32 %v743_v36, 0.0  ;;  %v10977_v54 = vmax.f32 %v3793_v45, %v3794_v18  ;;  %v3801_v10 = vrot.slane %v3800_v52, 1  ;;  %v1802_v14 = vrot.slane %v1801_v23, 1 }
 0x2c1   : > { %13858 = vst [vmem:[#allocation37_spill] sm:$0xff] %v10974_v7  ;;  %v3832_v5 = vrot.slane %v3831_v15, 4  ;;  %v1808_v28 = vmax.f32 %v1806_v32, %v1807_v42  ;;  %v3838_v59 = vsel %vm1138_vm3, %v3284_v8, -inf  ;;  %v2217_v33 = vmax.f32 %v2216_v0, %v1768_v62 }
 0x2c2   : > { %v1039_v39 = vcombine.high %v895_v35, %v895_v35  ;;  %v1769_v9 = vsel %vm1138_vm3, %v895_v35, -inf  ;;  %v3839_v20 = vrot.slane %v3838_v59, 4  ;;  %v1803_v53 = vmax.f32 %v1801_v23, %v1802_v14 }
 0x2c3   : > { %v3833_v24 = vmax.f32 %v3831_v15, %v3832_v5  ;;  %v1770_v16 = vrot.slane %v1769_v9, 4  ;;  %v1809_v36 = vrot.slane %v1808_v28, 1  ;;  %v2938_v18 = vadd.f32 %v10894_v22, %v2937_v55 }
 0x2c4   : > { %v1776_v45 = vsel %vm1138_vm3, %v1039_v39, -inf  ;;  %v3840_v44 = vmax.f32 %v3838_v59, %v3839_v20  ;;  %v764_v32 = vadd.f32 %v10894_v22, %v9492_v27  ;;  %v10985_v42 = vmax.f32 %v3800_v52, %v3801_v10 }
 0x2c5   : > { %v3834_v40 = vrot.slane %v3833_v24, 2  ;;  %v1771_v13 = vmax.f32 %v1769_v9, %v1770_v16  ;;  %v1810_v8 = vmax.f32 %v1808_v28, %v1809_v36  ;;  %v1777_v35 = vrot.slane %v1776_v45, 4 }
 0x2c6   : > { %v3138_v0 = vmax.f32 %v2938_v18, 0.0  ;;  %v3841_v15 = vrot.slane %v3840_v44, 2  ;;  %v10990_v14 = vrot.slane %v10967_v34, 2  ;;  %v2215_v5 = vmax.f32 %v2214_v56, %v1803_v53 }
 0x2c7   : > { %v3835_v23 = vmax.f32 %v3833_v24, %v3834_v40  ;;  %v1772_v55 = vrot.slane %v1771_v13, 2  ;;  %v1778_v39 = vmax.f32 %v1776_v45, %v1777_v35  ;;  %v2218_v9 = vmax.f32 %v2217_v33, %v1810_v8 }
 0x2c8   : > { %13859 = vst [vmem:[#allocation38_spill] sm:$0xff] %v10990_v14  ;;  %v3282_v59 = vcombine.high %v3138_v0, %v3138_v0  ;;  %v3842_v20 = vmax.f32 %v3840_v44, %v3841_v15  ;;  %v3803_v27 = vsel %vm1138_vm3, %v3138_v0, -inf  ;;  %v900_v52 = vmax.f32 %v764_v32, 0.0  ;;  %v9550_v15 = vpop.f32.mrf.mxu1 }
 0x2c9   : > { %v4450_v10 = vmax.f32 %v10948_v58, %v10985_v42  ;;  %v1773_v28 = vmax.f32 %v1771_v13, %v1772_v55  ;;  %v1779_v16 = vrot.slane %v1778_v39, 2  ;;  %v10996_v40 = vrot.slane %v10967_v34, 3 }
 0x2ca   : > { %v2269_v24 = vmax.f32 %v10926_v19, %v2215_v5  ;;  %v3836_v36 = vrot.slane %v3835_v23, 1  ;;  %v3804_v56 = vrot.slane %v3803_v27, 4  ;;  %v3810_v53 = vsel %vm1138_vm3, %v3282_v59, -inf }
 0x2cb   : > { %13860 = vst [vmem:[#allocation39_spill] sm:$0xff] %v10996_v40  ;;  %v11001_v33 = vmul.f32 %v10970_v47, %v2215_v5  ;;  %v1774_v44 = vrot.slane %v1773_v28, 1  ;;  %v1780_v45 = vmax.f32 %v1778_v39, %v1779_v16  ;;  %v3811_v18 = vrot.slane %v3810_v53, 4 }
 0x2cc   : > { %v11004_v32 = vmul.f32 %v10974_v7, %v2218_v9  ;;  %v3843_v58 = vrot.slane %v3842_v20, 1  ;;  %v3805_v13 = vmax.f32 %v3803_v27, %v3804_v56  ;;  %v1044_v42 = vcombine.high %v900_v52, %v900_v52  ;;  %v755_v56 = vpop.f32.mrf.mxu0 }
 0x2cd   : > { %13861 = vst [vmem:[#allocation40_spill] sm:$0xff] %v11001_v33  ;;  %v1775_v8 = vmax.f32 %v1773_v28, %v1774_v44  ;;  %v1781_v35 = vrot.slane %v1780_v45, 1  ;;  %v3812_v0 = vmax.f32 %v3810_v53, %v3811_v18  ;;  %v1839_v19 = vsel %vm1138_vm3, %v900_v52, -inf }
 0x2ce   : > { %13862 = vst [vmem:[#allocation41_spill] sm:$0xff] %v11004_v32  ;;  %v3837_v55 = vmax.f32 %v3835_v23, %v3836_v36  ;;  %v3806_v59 = vrot.slane %v3805_v13, 2  ;;  %v1840_v62 = vrot.slane %v1839_v19, 4  ;;  %v1846_v5 = vsel %vm1138_vm3, %v1044_v42, -inf }
 0x2cf   : > { %v1782_v17 = vmax.f32 %v1780_v45, %v1781_v35  ;;  %v2203_v39 = vmax.f32 %v10843_v37, %v1775_v8  ;;  %v3813_v16 = vrot.slane %v3812_v0, 2  ;;  %v1847_v46 = vrot.slane %v1846_v5, 4 }
 0x2d0   : > { %v3844_v31 = vmax.f32 %v3842_v20, %v3843_v58  ;;  %v3807_v12 = vmax.f32 %v3805_v13, %v3806_v59  ;;  %v1841_v27 = vmax.f32 %v1839_v19, %v1840_v62  ;;  %v2959_v28 = vadd.f32 %v10894_v22, %v9550_v15 }
 0x2d1   : > { %v2206_v53 = vmax.f32 %v10854_v50, %v1782_v17  ;;  %v2415_v52 = vmul.f32 %v10990_v14, %v2203_v39  ;;  %v3814_v23 = vmax.f32 %v3812_v0, %v3813_v16  ;;  %v756_v36 = vadd.f32 %v10894_v22, %v755_v56  ;;  %v2950_v16 = vpop.f32.mrf.mxu1 }
 0x2d2   : > { %v3808_v44 = vrot.slane %v3807_v12, 1  ;;  %v1842_v18 = vrot.slane %v1841_v27, 2  ;;  %v1848_v45 = vmax.f32 %v1846_v5, %v1847_v46  ;;  %v3143_v42 = vmax.f32 %v2959_v28, 0.0 }
 0x2d3   : > { %v2267_v8 = vmax.f32 %v2203_v39, %v2206_v53  ;;  %v2416_v20 = vmul.f32 %v10996_v40, %v2206_v53  ;;  %v2503_v62 = vrot.slane %v2415_v52, 6  ;;  %v3815_v13 = vrot.slane %v3814_v23, 1  ;;  %v9493_v52 = vpop.f32.mrf.mxu0 }
 0x2d4   : > { %v11015_v58 = vmax.f32 %v3807_v12, %v3808_v44  ;;  %v11017_v35 = vmax.f32 %v1841_v27, %v1842_v18  ;;  %v3287_v17 = vcombine.high %v3143_v42, %v3143_v42  ;;  %v11019_v50 = vmax.f32 %v2269_v24, %v2218_v9 }
 0x2d5   : > { %v13864_v46 = vmax.f32 %v10945_v41, %v10977_v54  ;;  %v898_v15 = vmax.f32 %v756_v36, 0.0  ;;  %v11027_v59 = vmax.f32 %v4450_v10, %v3844_v31  ;;  %v11030_v5 = vmax.f32 %v2267_v8, %v10924_v4 }
 0x2d6   : > { %13863 = vst [vmem:[#allocation42_spill] sm:$0xff] %v11019_v50  ;;  %v1849_v12 = vrot.slane %v1848_v45, 2  ;;  %v3873_v39 = vsel %vm1138_vm3, %v3143_v42, -inf  ;;  %v2504_v9 = vsel %vm2311_vm5, %v2503_v62, %v10718_v51  ;;  %v2505_v24 = vrot.slane %v2416_v20, 5 }
 0x2d7   : > { %v11025_v19 = vmax.f32 %v13864_v46, %v3837_v55  ;;  %13865 = vst [vmem:[#allocation43_spill] sm:$0xff] %v11030_v5  ;;  %v3874_v27 = vrot.slane %v3873_v39, 4  ;;  %v3880_v28 = vsel %vm1138_vm3, %v3287_v17, -inf  ;;  %v11036_v41 = vmax.f32 %v3814_v23, %v3815_v13  ;;  %v9551_v23 = vpop.f32.mrf.mxu1 }
 0x2d8   : > { %v1844_v54 = vrot.slane %v11017_v35, 1  ;;  %v3881_v4 = vrot.slane %v3880_v28, 4  ;;  %v1042_v55 = vcombine.high %v898_v15, %v898_v15  ;;  %v1811_v56 = vsel %vm1138_vm3, %v898_v15, -inf }
 0x2d9   : > { %v3875_v10 = vmax.f32 %v3873_v39, %v3874_v27  ;;  %v2951_v53 = vadd.f32 %v10894_v22, %v2950_v16  ;;  %v1850_v51 = vmax.f32 %v1848_v45, %v1849_v12  ;;  %v1812_v44 = vrot.slane %v1811_v56, 4 }
 0x2da   : > { %v3882_v36 = vmax.f32 %v3880_v28, %v3881_v4  ;;  %v767_v18 = vadd.f32 %v10894_v22, %v9493_v52  ;;  %v2506_v42 = vsel %vm2314_vm6, %v2505_v24, %v2504_v9  ;;  %v1818_v20 = vsel %vm1138_vm3, %v1042_v55, -inf }
 0x2db   : > { %v3876_v8 = vrot.slane %v3875_v10, 2  ;;  %v3141_v62 = vmax.f32 %v2951_v53, 0.0  ;;  %v1813_v17 = vmax.f32 %v1811_v56, %v1812_v44  ;;  %v1819_v46 = vrot.slane %v1818_v20, 4 }
 0x2dc   : > { %v3883_v13 = vrot.slane %v3882_v36, 2  ;;  %v901_v39 = vmax.f32 %v767_v18, 0.0  ;;  %v2962_v45 = vadd.f32 %v10894_v22, %v9551_v23 }
 0x2dd   : > { %v3877_v15 = vmax.f32 %v3875_v10, %v3876_v8  ;;  %v3285_v27 = vcombine.high %v3141_v62, %v3141_v62  ;;  %v3845_v16 = vsel %vm1138_vm3, %v3141_v62, -inf  ;;  %v1814_v28 = vrot.slane %v1813_v17, 2 }
 0x2de   : > { %v3884_v12 = vmax.f32 %v3882_v36, %v3883_v13  ;;  %v1820_v4 = vmax.f32 %v1818_v20, %v1819_v46  ;;  %v3846_v52 = vrot.slane %v3845_v16, 4  ;;  %v1045_v24 = vcombine.high %v901_v39, %v901_v39 }
 0x2df   : > { %v3878_v0 = vrot.slane %v3877_v15, 1  ;;  %v3852_v9 = vsel %vm1138_vm3, %v3285_v27, -inf  ;;  %v1853_v55 = vsel %vm1138_vm3, %v901_v39, -inf  ;;  %v1815_v18 = vmax.f32 %v1813_v17, %v1814_v28 }
 0x2e0   : > { %v3885_v53 = vrot.slane %v3884_v12, 1  ;;  %v1821_v10 = vrot.slane %v1820_v4, 2  ;;  %v3847_v44 = vmax.f32 %v3845_v16, %v3846_v52  ;;  %v3853_v8 = vrot.slane %v3852_v9, 4 }
 0x2e1   : > { %v1854_v62 = vrot.slane %v1853_v55, 4  ;;  %v1860_v36 = vsel %vm1138_vm3, %v1045_v24, -inf  ;;  %v3879_v23 = vmax.f32 %v3877_v15, %v3878_v0  ;;  %v3144_v46 = vmax.f32 %v2962_v45, 0.0 }
 0x2e2   : > { %v3886_v20 = vmax.f32 %v3884_v12, %v3885_v53  ;;  %v3848_v13 = vrot.slane %v3847_v44, 2  ;;  %v1822_v37 = vmax.f32 %v1820_v4, %v1821_v10  ;;  %v3854_v27 = vmax.f32 %v3852_v9, %v3853_v8  ;;  %v758_v8 = vpop.f32.mrf.mxu0 }
 0x2e3   : > { %v1855_v31 = vmax.f32 %v1853_v55, %v1854_v62  ;;  %v1861_v32 = vrot.slane %v1860_v36, 4  ;;  %v13866_v39 = vrot.slane %v10935_v21, 4  ;;  %v11059_v16 = vmax.f32 %v11017_v35, %v1844_v54  ;;  %v2953_v35 = vpop.f32.mrf.mxu1 }
 0x2e4   : > { %v1851_v17 = vrot.slane %v1850_v51, 1  ;;  %v3849_v28 = vmax.f32 %v3847_v44, %v3848_v13  ;;  %v1816_v52 = vrot.slane %v1815_v18, 1  ;;  %v3855_v24 = vrot.slane %v3854_v27, 2 }
 0x2e5   : > { %v11056_v56 = vsel %vm2476_vm7, %v13866_v39, %v2506_v42  ;;  %v1856_v0 = vrot.slane %v1855_v31, 2  ;;  %v1862_v15 = vmax.f32 %v1860_v36, %v1861_v32  ;;  %v11062_v45 = vmax.f32 %v11025_v19, %v3879_v23  ;;  %v9554_v33 = vpop.f32.mrf.mxu1 }
 0x2e6   : > { %13867 = vst [vmem:[#allocation44_spill] sm:$0xff] %v11056_v56  ;;  %v11065_v12 = vmax.f32 %v11027_v59, %v3886_v20  ;;  %v3850_v4 = vrot.slane %v3849_v28, 1  ;;  %v3288_v21 = vcombine.high %v3144_v46, %v3144_v46  ;;  %v1823_v9 = vrot.slane %v1822_v37, 1 }
 0x2e7   : > { %v3856_v42 = vmax.f32 %v3854_v27, %v3855_v24  ;;  %v1857_v55 = vmax.f32 %v1855_v31, %v1856_v0  ;;  %v1863_v53 = vrot.slane %v1862_v15, 2  ;;  %v11067_v54 = vmax.f32 %v1850_v51, %v1851_v17  ;;  %v9496_v0 = vpop.f32.mrf.mxu0 }
 0x2e8   : > { %v3851_v10 = vmax.f32 %v3849_v28, %v3850_v4  ;;  %v3887_v44 = vsel %vm1138_vm3, %v3144_v46, -inf  ;;  %v3894_v32 = vsel %vm1138_vm3, %v3288_v21, -inf  ;;  %v11071_v19 = vmax.f32 %v1815_v18, %v1816_v52 }
 0x2e9   : > { %v3857_v62 = vrot.slane %v3856_v42, 1  ;;  %v1858_v59 = vrot.slane %v1857_v55, 1  ;;  %v3888_v36 = vrot.slane %v3887_v44, 4  ;;  %v11075_v23 = vmul.f32 %v11062_v45, %v10614_v25 }
 0x2ea   : > { %v3895_v31 = vrot.slane %v3894_v32, 4  ;;  %v759_v20 = vadd.f32 %v10894_v22, %v758_v8  ;;  %v2954_v51 = vadd.f32 %v10894_v22, %v2953_v35  ;;  %v11081_v13 = vmul.f32 %v11065_v12, %v10633_v30 }
 0x2eb   : > { %13868 = vst [vmem:[#allocation45_spill] sm:$0xff] %v11075_v23  ;;  %v11083_v46 = vmax.f32 %v1822_v37, %v1823_v9  ;;  %v1864_v18 = vmax.f32 %v1862_v15, %v1863_v53  ;;  %v3889_v27 = vmax.f32 %v3887_v44, %v3888_v36  ;;  %v13870_v39 = vmax.f32 %v10860_v2, %v11015_v58 }
 0x2ec   : > { %13869 = vst [vmem:[#allocation46_spill] sm:$0xff] %v11081_v13  ;;  %v3896_v28 = vmax.f32 %v3894_v32, %v3895_v31  ;;  %v899_v52 = vmax.f32 %v759_v20, 0.0  ;;  %v3142_v24 = vmax.f32 %v2954_v51, 0.0  ;;  %v3858_v4 = vmax.f32 %v3856_v42, %v3857_v62 }
 0x2ed   : > { %v4454_v17 = vmax.f32 %v13870_v39, %v3851_v10  ;;  %v11088_v21 = vmax.f32 %v1857_v55, %v1858_v59  ;;  %v3890_v35 = vrot.slane %v3889_v27, 2  ;;  %v780_v8 = vadd.f32 %v10894_v22, %v9496_v0 }
 0x2ee   : > { %v3897_v30 = vrot.slane %v3896_v28, 2  ;;  %v1043_v25 = vcombine.high %v899_v52, %v899_v52  ;;  %v1825_v37 = vsel %vm1138_vm3, %v899_v52, -inf  ;;  %v3286_v15 = vcombine.high %v3142_v24, %v3142_v24 }
 0x2ef   : > { %v1865_v9 = vrot.slane %v1864_v18, 1  ;;  %v3891_v53 = vmax.f32 %v3889_v27, %v3890_v35  ;;  %v1826_v44 = vrot.slane %v1825_v37, 4  ;;  %v3859_v2 = vsel %vm1138_vm3, %v3142_v24, -inf }
 0x2f0   : > { %v3898_v58 = vmax.f32 %v3896_v28, %v3897_v30  ;;  %v1832_v10 = vsel %vm1138_vm3, %v1043_v25, -inf  ;;  %v3860_v32 = vrot.slane %v3859_v2, 4  ;;  %v3866_v42 = vsel %vm1138_vm3, %v3286_v15, -inf }
 0x2f1   : > { %v3892_v55 = vrot.slane %v3891_v53, 1  ;;  %v1827_v62 = vmax.f32 %v1825_v37, %v1826_v44  ;;  %v1833_v59 = vrot.slane %v1832_v10, 4  ;;  %v3867_v36 = vrot.slane %v3866_v42, 4 }
 0x2f2   : > { %v13871_v31 = vmax.f32 %v10883_v3, %v11036_v41  ;;  %v3899_v51 = vrot.slane %v3898_v58, 1  ;;  %v3861_v39 = vmax.f32 %v3859_v2, %v3860_v32  ;;  %v904_v27 = vmax.f32 %v780_v8, 0.0 }
 0x2f3   : > { %v3893_v52 = vmax.f32 %v3891_v53, %v3892_v55  ;;  %v1828_v0 = vrot.slane %v1827_v62, 2  ;;  %v1834_v24 = vmax.f32 %v1832_v10, %v1833_v59  ;;  %v3868_v30 = vmax.f32 %v3866_v42, %v3867_v36 }
 0x2f4   : > { %v4457_v20 = vmax.f32 %v13871_v31, %v3858_v4  ;;  %v3900_v28 = vmax.f32 %v3898_v58, %v3899_v51  ;;  %v3862_v25 = vrot.slane %v3861_v39, 2  ;;  %v1048_v35 = vcombine.high %v904_v27, %v904_v27 }
 0x2f5   : > { %v1895_v15 = vsel %vm1138_vm3, %v904_v27, -inf  ;;  %v11099_v37 = vmax.f32 %v1864_v18, %v1865_v9  ;;  %v4455_v44 = vmax.f32 %v4454_v17, %v3893_v52  ;;  %v1835_v56 = vrot.slane %v1834_v24, 2 }
 0x2f6   : > { %v3869_v50 = vrot.slane %v3868_v30, 2  ;;  %v1829_v3 = vmax.f32 %v1827_v62, %v1828_v0  ;;  %v3863_v41 = vmax.f32 %v3861_v39, %v3862_v25  ;;  %v1896_v4 = vrot.slane %v1895_v15, 4 }
 0x2f7   : > { %v1902_v8 = vsel %vm1138_vm3, %v1048_v35, -inf  ;;  %v4458_v58 = vmax.f32 %v4457_v20, %v3900_v28  ;;  %v2975_v10 = vadd.f32 %v10894_v22, %v9554_v33  ;;  %v1836_v32 = vmax.f32 %v1834_v24, %v1835_v56  ;;  %v771_v20 = vpop.f32.mrf.mxu0 }
 0x2f8   : > { %v3864_v42 = vrot.slane %v3863_v41, 1  ;;  %v3870_v55 = vmax.f32 %v3868_v30, %v3869_v50  ;;  %v1897_v18 = vmax.f32 %v1895_v15, %v1896_v4  ;;  %v2219_v17 = vmax.f32 %v11071_v19, %v11088_v21 }
 0x2f9   : > { %v2222_v9 = vmax.f32 %v11083_v46, %v11099_v37  ;;  %v4523_v62 = vmax.f32 %v11065_v12, %v4455_v44  ;;  %v1903_v59 = vrot.slane %v1902_v8, 4  ;;  %v1830_v36 = vrot.slane %v1829_v3, 1 }
 0x2fa   : > { %v3865_v31 = vmax.f32 %v3863_v41, %v3864_v42  ;;  %v3871_v51 = vrot.slane %v3870_v55, 1  ;;  %v1898_v39 = vrot.slane %v1897_v18, 2  ;;  %v4589_v33 = vmul.f32 %v4458_v58, %v10656_v43 }
 0x2fb   : > { %v1904_v56 = vmax.f32 %v1902_v8, %v1903_v59  ;;  %v3147_v27 = vmax.f32 %v2975_v10, 0.0  ;;  %v772_v50 = vadd.f32 %v10894_v22, %v771_v20  ;;  %v1837_v52 = vrot.slane %v1836_v32, 1 }
 0x2fc   : > { %v3872_v0 = vmax.f32 %v3870_v55, %v3871_v51  ;;  %v4443_v19 = vmax.f32 %v10956_v48, %v3865_v31  ;;  %v1899_v21 = vmax.f32 %v1897_v18, %v1898_v39  ;;  %v4672_v4 = vrot.slane %v4589_v33, 7  ;;  %v2966_v31 = vpop.f32.mrf.mxu1 }
 0x2fd   : > { %v1905_v24 = vrot.slane %v1904_v56, 2  ;;  %v3291_v30 = vcombine.high %v3147_v27, %v3147_v27  ;;  %v3929_v12 = vsel %vm1138_vm3, %v3147_v27, -inf  ;;  %v902_v28 = vmax.f32 %v772_v50, 0.0 }
 0x2fe   : > { %v4446_v25 = vmax.f32 %v10962_v29, %v3872_v0  ;;  %v4584_v35 = vmul.f32 %v4443_v19, %v10690_v1  ;;  %v1900_v15 = vrot.slane %v1899_v21, 1  ;;  %v3930_v41 = vrot.slane %v3929_v12, 4 }
 0x2ff   : > { %v1906_v8 = vmax.f32 %v1904_v56, %v1905_v24  ;;  %v3936_v10 = vsel %vm1138_vm3, %v3291_v30, -inf  ;;  %v1867_v42 = vsel %vm1138_vm3, %v902_v28, -inf  ;;  %v4588_v48 = vmul.f32 %v10967_v34, %v4455_v44  ;;  %v9497_v24 = vpop.f32.mrf.mxu0 }
 0x300   : > { %v4521_v55 = vmax.f32 %v4443_v19, %v4446_v25  ;;  %v4585_v18 = vmul.f32 %v4446_v25, %v10695_v6  ;;  %v1046_v59 = vcombine.high %v902_v28, %v902_v28  ;;  %v4664_v51 = vrot.slane %v4584_v35, 4 }
 0x301   : > { %v3931_v39 = vmax.f32 %v3929_v12, %v3930_v41  ;;  %v3937_v29 = vrot.slane %v3936_v10, 4  ;;  %v1868_v20 = vrot.slane %v1867_v42, 4  ;;  %v11120_v27 = vmax.f32 %v4523_v62, %v4458_v58  ;;  %v9555_v62 = vpop.f32.mrf.mxu1 }
 0x302   : > { %v11122_v50 = vmax.f32 %v1829_v3, %v1830_v36  ;;  %v11124_v33 = vmax.f32 %v1836_v32, %v1837_v52  ;;  %v1901_v56 = vmax.f32 %v1899_v21, %v1900_v15  ;;  %v11127_v0 = vsel %vm2308_vm4, %v4672_v4, %v4588_v48 }
 0x303   : > { %13872 = vst [vmem:[#allocation47_spill] sm:$0xff] %v11120_v27  ;;  %v1907_v34 = vrot.slane %v1906_v8, 1  ;;  %v3938_v44 = vmax.f32 %v3936_v10, %v3937_v29  ;;  %v1869_v19 = vmax.f32 %v1867_v42, %v1868_v20  ;;  %v11130_v30 = vmax.f32 %v4521_v55, %v11062_v45 }
 0x304   : > { %v1874_v12 = vsel %vm1138_vm3, %v1046_v59, -inf  ;;  %v2967_v58 = vadd.f32 %v10894_v22, %v2966_v31  ;;  %v783_v3 = vadd.f32 %v10894_v22, %v9497_v24  ;;  %v4665_v32 = vsel %vm2476_vm7, %v4664_v51, %v10827_v49  ;;  %v774_v31 = vpop.f32.mrf.mxu0 }
 0x305   : > { %13873 = vst [vmem:[#allocation48_spill] sm:$0xff] %v11130_v30  ;;  %v4666_v36 = vrot.slane %v4585_v18, 3  ;;  %v3932_v52 = vrot.slane %v3931_v39, 2  ;;  %v1870_v21 = vrot.slane %v1869_v19, 2  ;;  %v11137_v28 = vmax.f32 %v2219_v17, %v1901_v56 }
 0x306   : > { %v1875_v25 = vrot.slane %v1874_v12, 4  ;;  %v3145_v35 = vmax.f32 %v2967_v58, 0.0  ;;  %v905_v15 = vmax.f32 %v783_v3, 0.0  ;;  %v1908_v45 = vmax.f32 %v1906_v8, %v1907_v34 }
 0x307   : > { %v3939_v41 = vrot.slane %v3938_v44, 2  ;;  %v1871_v4 = vmax.f32 %v1869_v19, %v1870_v21  ;;  %v2978_v10 = vadd.f32 %v10894_v22, %v9555_v62  ;;  %v11142_v49 = vsel %vm2479_vm8, %v4666_v36, %v4665_v32 }
 0x308   : > { %v1876_v42 = vmax.f32 %v1874_v12, %v1875_v25  ;;  %v3289_v48 = vcombine.high %v3145_v35, %v3145_v35  ;;  %v3901_v55 = vsel %vm1138_vm3, %v3145_v35, -inf  ;;  %v1049_v59 = vcombine.high %v905_v15, %v905_v15  ;;  %13874 = vst [vmem:[#allocation49_spill] sm:$0xff] %v11142_v49 }
 0x309   : > { %v3933_v18 = vmax.f32 %v3931_v39, %v3932_v52  ;;  %v3902_v17 = vrot.slane %v3901_v55, 4  ;;  %v775_v51 = vadd.f32 %v10894_v22, %v774_v31  ;;  %v1909_v20 = vsel %vm1138_vm3, %v905_v15, -inf }
 0x30a   : > { %v1877_v29 = vrot.slane %v1876_v42, 2  ;;  %v3908_v8 = vsel %vm1138_vm3, %v3289_v48, -inf  ;;  %v1916_v56 = vsel %vm1138_vm3, %v1049_v59, -inf  ;;  %v3940_v34 = vmax.f32 %v3938_v44, %v3939_v41 }
 0x30b   : > { %v1872_v19 = vrot.slane %v1871_v4, 1  ;;  %v3903_v24 = vmax.f32 %v3901_v55, %v3902_v17  ;;  %v3909_v12 = vrot.slane %v3908_v8, 4  ;;  %v11151_v58 = vmax.f32 %v2222_v9, %v1908_v45 }
 0x30c   : > { %v1910_v39 = vrot.slane %v1909_v20, 4  ;;  %v1917_v3 = vrot.slane %v1916_v56, 4  ;;  %v3148_v62 = vmax.f32 %v2978_v10, 0.0  ;;  %v3934_v32 = vrot.slane %v3933_v18, 1 }
 0x30d   : > { %v1878_v36 = vmax.f32 %v1876_v42, %v1877_v29  ;;  %v3910_v52 = vmax.f32 %v3908_v8, %v3909_v12  ;;  %v903_v21 = vmax.f32 %v775_v51, 0.0  ;;  %v3904_v25 = vrot.slane %v3903_v24, 2 }
 0x30e   : > { %v1911_v35 = vmax.f32 %v1909_v20, %v1910_v39  ;;  %v1918_v15 = vmax.f32 %v1916_v56, %v1917_v3  ;;  %v3292_v48 = vcombine.high %v3148_v62, %v3148_v62  ;;  %v3941_v44 = vrot.slane %v3940_v34, 1  ;;  %v2969_v39 = vpop.f32.mrf.mxu1 }
 0x30f   : > { %v1873_v41 = vmax.f32 %v1871_v4, %v1872_v19  ;;  %v3911_v55 = vrot.slane %v3910_v52, 2  ;;  %v3943_v59 = vsel %vm1138_vm3, %v3148_v62, -inf  ;;  %v1047_v9 = vcombine.high %v903_v21, %v903_v21 }
 0x310   : > { %v1912_v31 = vrot.slane %v1911_v35, 2  ;;  %v1919_v46 = vrot.slane %v1918_v15, 2  ;;  %v3944_v37 = vrot.slane %v3943_v59, 4  ;;  %v11154_v45 = vmax.f32 %v3933_v18, %v3934_v32 }
 0x311   : > { %v1879_v10 = vrot.slane %v1878_v36, 1  ;;  %v3950_v42 = vsel %vm1138_vm3, %v3292_v48, -inf  ;;  %v1881_v17 = vsel %vm1138_vm3, %v903_v21, -inf  ;;  %v3905_v51 = vmax.f32 %v3903_v24, %v3904_v25 }
 0x312   : > { %v1913_v29 = vmax.f32 %v1911_v35, %v1912_v31  ;;  %v1920_v8 = vmax.f32 %v1918_v15, %v1919_v46  ;;  %v3945_v20 = vmax.f32 %v3943_v59, %v3944_v37  ;;  %v11158_v56 = vmax.f32 %v3940_v34, %v3941_v44  ;;  %v9500_v15 = vpop.f32.mrf.mxu0 }
 0x313   : > { %v2225_v4 = vmax.f32 %v11122_v50, %v1873_v41  ;;  %v3951_v19 = vrot.slane %v3950_v42, 4  ;;  %v1882_v12 = vrot.slane %v1881_v17, 4  ;;  %v3912_v3 = vmax.f32 %v3910_v52, %v3911_v55 }
 0x314   : > { %v1914_v62 = vrot.slane %v1913_v29, 1  ;;  %v3946_v18 = vrot.slane %v3945_v20, 2  ;;  %v1888_v32 = vsel %vm1138_vm3, %v1047_v9, -inf  ;;  %v1880_v2 = vmax.f32 %v1878_v36, %v1879_v10 }
 0x315   : > { %v3952_v48 = vmax.f32 %v3950_v42, %v3951_v19  ;;  %v1883_v53 = vmax.f32 %v1881_v17, %v1882_v12  ;;  %v1889_v21 = vrot.slane %v1888_v32, 4  ;;  %v3906_v24 = vrot.slane %v3905_v51, 1  ;;  %v9558_v12 = vpop.f32.mrf.mxu1 }
 0x316   : > { %v1921_v25 = vrot.slane %v1920_v8, 1  ;;  %v3947_v35 = vmax.f32 %v3945_v20, %v3946_v18  ;;  %v2970_v34 = vadd.f32 %v10894_v22, %v2969_v39  ;;  %v796_v59 = vadd.f32 %v10894_v22, %v9500_v15  ;;  %v787_v15 = vpop.f32.mrf.mxu0 }
 0x317   : > { %v3953_v44 = vrot.slane %v3952_v48, 2  ;;  %v1884_v50 = vrot.slane %v1883_v53, 2  ;;  %v1890_v41 = vmax.f32 %v1888_v32, %v1889_v21  ;;  %v3913_v52 = vrot.slane %v3912_v3, 1 }
 0x318   : > { %v1915_v55 = vmax.f32 %v1913_v29, %v1914_v62  ;;  %v3948_v31 = vrot.slane %v3947_v35, 1  ;;  %v3146_v46 = vmax.f32 %v2970_v34, 0.0  ;;  %v908_v10 = vmax.f32 %v796_v59, 0.0  ;;  %v9501_v23 = vpop.f32.mrf.mxu0 }
 0x319   : > { %v3954_v37 = vmax.f32 %v3952_v48, %v3953_v44  ;;  %v1885_v36 = vmax.f32 %v1883_v53, %v1884_v50  ;;  %v1891_v9 = vrot.slane %v1890_v41, 2  ;;  %v2228_v42 = vmax.f32 %v11124_v33, %v1880_v2  ;;  %v11174_v53 = vld [vmem:[%s13699_s5 + $0x18] sm:$0xff]  ;;  %v2982_v44 = vpop.f32.mrf.mxu1 }
 0x31a   : > { %v1922_v17 = vmax.f32 %v1920_v8, %v1921_v25  ;;  %v3290_v20 = vcombine.high %v3146_v46, %v3146_v46  ;;  %v3915_v19 = vsel %vm1138_vm3, %v3146_v46, -inf  ;;  %v11166_v39 = vmax.f32 %v3947_v35, %v3948_v31  ;;  %v11194_v31 = vld [vmem:[%s13696_s2] ss:$0 sm:$0xff] }
 0x31b   : > { %v3955_v18 = vrot.slane %v3954_v37, 1  ;;  %v1892_v32 = vmax.f32 %v1890_v41, %v1891_v9  ;;  %v3916_v22 = vrot.slane %v3915_v19, 4  ;;  %v11168_v21 = vmax.f32 %v3905_v51, %v3906_v24 }
 0x31c   : > { %v3922_v29 = vsel %vm1138_vm3, %v3290_v20, -inf  ;;  %v1052_v2 = vcombine.high %v908_v10, %v908_v10  ;;  %v1951_v33 = vsel %vm1138_vm3, %v908_v10, -inf  ;;  %v11177_v8 = vmax.f32 %v3912_v3, %v3913_v52 }
 0x31d   : > { %v11179_v62 = vmax.f32 %v2225_v4, %v1915_v55  ;;  %v1886_v48 = vrot.slane %v1885_v36, 1  ;;  %v3917_v25 = vmax.f32 %v3915_v19, %v3916_v22  ;;  %v11181_v35 = vmax.f32 %v2228_v42, %v1922_v17 }
 0x31e   : > { %v3923_v51 = vrot.slane %v3922_v29, 4  ;;  %v1952_v24 = vrot.slane %v1951_v33, 4  ;;  %v1958_v34 = vsel %vm1138_vm3, %v1052_v2, -inf  ;;  %v11184_v50 = vmax.f32 %v3954_v37, %v3955_v18 }
 0x31f   : > { %v1893_v59 = vrot.slane %v1892_v32, 1  ;;  %v11189_v3 = vrot.slane %v11174_v53, 2  ;;  %v3918_v4 = vrot.slane %v3917_v25, 2  ;;  %v1959_v55 = vrot.slane %v1958_v34, 4 }
 0x320   : > { %v1953_v52 = vmax.f32 %v1951_v33, %v1952_v24  ;;  %v2991_v46 = vadd.f32 %v11194_v31, %v9558_v12  ;;  %v11197_v9 = vmax.f32 %v1885_v36, %v1886_v48  ;;  %v11200_v37 = vrot.slane %v11174_v53, 3 }
 0x321   : > { %13875 = vst [vmem:[#allocation50_spill] sm:$0xff] %v11189_v3  ;;  %v788_v10 = vadd.f32 %v11194_v31, %v787_v15  ;;  %v2983_v42 = vadd.f32 %v11194_v31, %v2982_v44  ;;  %v3924_v17 = vmax.f32 %v3922_v29, %v3923_v51  ;;  %v1960_v19 = vmax.f32 %v1958_v34, %v1959_v55 }
 0x322   : > { %13876 = vst [vmem:[#allocation51_spill] sm:$0xff] %v11200_v37  ;;  %v1954_v20 = vrot.slane %v1953_v52, 2  ;;  %v3151_v18 = vmax.f32 %v2991_v46, 0.0  ;;  %v11206_v2 = vmax.f32 %v1892_v32, %v1893_v59  ;;  %v11208_v36 = vmax.f32 %v3917_v25, %v3918_v4 }
 0x323   : > { %v906_v33 = vmax.f32 %v788_v10, 0.0  ;;  %v3149_v12 = vmax.f32 %v2983_v42, 0.0  ;;  %v1961_v24 = vrot.slane %v1960_v19, 2  ;;  %v3925_v44 = vrot.slane %v3924_v17, 2 }
 0x324   : > { %v1955_v48 = vmax.f32 %v1953_v52, %v1954_v20  ;;  %v3295_v41 = vcombine.high %v3151_v18, %v3151_v18  ;;  %v3985_v29 = vsel %vm1138_vm3, %v3151_v18, -inf  ;;  %v3920_v52 = vrot.slane %v11208_v36, 1 }
 0x325   : > { %v1050_v51 = vcombine.high %v906_v33, %v906_v33  ;;  %v1923_v34 = vsel %vm1138_vm3, %v906_v33, -inf  ;;  %v1962_v46 = vmax.f32 %v1960_v19, %v1961_v24  ;;  %v3986_v32 = vrot.slane %v3985_v29, 4 }
 0x326   : > { %v1956_v55 = vrot.slane %v1955_v48, 1  ;;  %v3992_v59 = vsel %vm1138_vm3, %v3295_v41, -inf  ;;  %v1924_v10 = vrot.slane %v1923_v34, 4  ;;  %v3293_v4 = vcombine.high %v3149_v12, %v3149_v12 }
 0x327   : > { %v1930_v25 = vsel %vm1138_vm3, %v1050_v51, -inf  ;;  %v1963_v20 = vrot.slane %v1962_v46, 1  ;;  %v3987_v22 = vmax.f32 %v3985_v29, %v3986_v32  ;;  %v3993_v15 = vrot.slane %v3992_v59, 4 }
 0x328   : > { %v1957_v42 = vmax.f32 %v1955_v48, %v1956_v55  ;;  %v1925_v18 = vmax.f32 %v1923_v34, %v1924_v10  ;;  %v1931_v13 = vrot.slane %v1930_v25, 4  ;;  %v3957_v33 = vsel %vm1138_vm3, %v3149_v12, -inf }
 0x329   : > { %v3926_v49 = vmax.f32 %v3924_v17, %v3925_v44  ;;  %v1964_v19 = vmax.f32 %v1962_v46, %v1963_v20  ;;  %v3988_v24 = vrot.slane %v3987_v22, 2  ;;  %v3958_v27 = vrot.slane %v3957_v33, 4 }
 0x32a   : > { %v3994_v41 = vmax.f32 %v3992_v59, %v3993_v15  ;;  %v1926_v30 = vrot.slane %v1925_v18, 2  ;;  %v1932_v6 = vmax.f32 %v1930_v25, %v1931_v13  ;;  %v3964_v51 = vsel %vm1138_vm3, %v3293_v4, -inf }
 0x32b   : > { %v11220_v1 = vmax.f32 %v11179_v62, %v1957_v42  ;;  %v3989_v48 = vmax.f32 %v3987_v22, %v3988_v24  ;;  %v3959_v29 = vmax.f32 %v3957_v33, %v3958_v27  ;;  %v799_v34 = vadd.f32 %v11194_v31, %v9501_v23 }
 0x32c   : > { %v3995_v55 = vrot.slane %v3994_v41, 2  ;;  %v1927_v32 = vmax.f32 %v1925_v18, %v1926_v30  ;;  %v1933_v12 = vrot.slane %v1932_v6, 2  ;;  %v3965_v10 = vrot.slane %v3964_v51, 4  ;;  %v9559_v18 = vpop.f32.mrf.mxu1 }
 0x32d   : > { %v3927_v17 = vrot.slane %v3926_v49, 1  ;;  %v11224_v44 = vmax.f32 %v11181_v35, %v1964_v19  ;;  %v3990_v15 = vrot.slane %v3989_v48, 1  ;;  %v3960_v46 = vrot.slane %v3959_v29, 2 }
 0x32e   : > { %v3996_v13 = vmax.f32 %v3994_v41, %v3995_v55  ;;  %v1928_v59 = vrot.slane %v1927_v32, 1  ;;  %v1934_v25 = vmax.f32 %v1932_v6, %v1933_v12  ;;  %v3966_v4 = vmax.f32 %v3964_v51, %v3965_v10 }
 0x32f   : > { %v11228_v62 = vmul.f32 %v11189_v3, %v11220_v1  ;;  %v11232_v23 = vmul.f32 %v11200_v37, %v11224_v44  ;;  %v3961_v27 = vmax.f32 %v3959_v29, %v3960_v46  ;;  %v909_v30 = vmax.f32 %v799_v34, 0.0 }
 0x330   : > { %v3991_v22 = vmax.f32 %v3989_v48, %v3990_v15  ;;  %v3997_v42 = vrot.slane %v3996_v13, 1  ;;  %v1935_v35 = vrot.slane %v1934_v25, 1  ;;  %v3967_v20 = vrot.slane %v3966_v4, 2 }
 0x331   : > { %v1929_v33 = vmax.f32 %v1927_v32, %v1928_v59  ;;  %v3962_v19 = vrot.slane %v3961_v27, 1  ;;  %v1053_v24 = vcombine.high %v909_v30, %v909_v30  ;;  %v1965_v6 = vsel %vm1138_vm3, %v909_v30, -inf  ;;  %v790_v32 = vpop.f32.mrf.mxu0 }
 0x332   : > { %v2234_v41 = vmax.f32 %v11067_v54, %v11206_v2  ;;  %v11238_v51 = vmax.f32 %v11208_v36, %v3920_v52  ;;  %v11240_v55 = vmax.f32 %v3926_v49, %v3927_v17  ;;  %v3998_v29 = vmax.f32 %v3996_v13, %v3997_v42  ;;  %v2985_v36 = vpop.f32.mrf.mxu1 }
 0x333   : > { %v1936_v34 = vmax.f32 %v1934_v25, %v1935_v35  ;;  %v1966_v12 = vrot.slane %v1965_v6, 4  ;;  %v1972_v10 = vsel %vm1138_vm3, %v1053_v24, -inf  ;;  %v13877_v46 = vmax.f32 %v11168_v21, %v11166_v39  ;;  %v9504_v5 = vpop.f32.mrf.mxu0 }
 0x334   : > { %v3968_v54 = vmax.f32 %v3966_v4, %v3967_v20  ;;  %v1973_v2 = vrot.slane %v1972_v10, 4  ;;  %v13878_v49 = vmax.f32 %v11059_v16, %v11197_v9  ;;  %v11253_v17 = vmax.f32 %v3961_v27, %v3962_v19 }
 0x335   : > { %v11248_v59 = vmax.f32 %v13877_v46, %v3991_v22  ;;  %v1967_v13 = vmax.f32 %v1965_v6, %v1966_v12  ;;  %v2994_v25 = vadd.f32 %v11194_v31, %v9559_v18  ;;  %v13879_v30 = vmax.f32 %v11177_v8, %v11184_v50 }
 0x336   : > { %v2232_v52 = vmax.f32 %v13878_v49, %v1929_v33  ;;  %v1974_v39 = vmax.f32 %v1972_v10, %v1973_v2  ;;  %v11262_v21 = vrot.slane %v11174_v53, 4  ;;  %v791_v4 = vadd.f32 %v11194_v31, %v790_v32 }
 0x337   : > { %v11259_v42 = vmax.f32 %v13879_v30, %v3998_v29  ;;  %v2235_v22 = vmax.f32 %v2234_v41, %v1936_v34  ;;  %v1968_v35 = vrot.slane %v1967_v13, 2  ;;  %v3152_v16 = vmax.f32 %v2994_v25, 0.0 }
 0x338   : > { %13880 = vst [vmem:[#allocation52_spill] sm:$0xff] %v11262_v21  ;;  %v2986_v9 = vadd.f32 %v11194_v31, %v2985_v36  ;;  %v3969_v27 = vrot.slane %v3968_v54, 1  ;;  %v1975_v20 = vrot.slane %v1974_v39, 2  ;;  %v11267_v18 = vrot.slane %v11174_v53, 5 }
 0x339   : > { %v907_v33 = vmax.f32 %v791_v4, 0.0  ;;  %v1969_v8 = vmax.f32 %v1967_v13, %v1968_v35  ;;  %v3296_v50 = vcombine.high %v3152_v16, %v3152_v16  ;;  %v3999_v19 = vsel %vm1138_vm3, %v3152_v16, -inf }
 0x33a   : > { %13881 = vst [vmem:[#allocation53_spill] sm:$0xff] %v11267_v18  ;;  %v3150_v24 = vmax.f32 %v2986_v9, 0.0  ;;  %v1976_v6 = vmax.f32 %v1974_v39, %v1975_v20  ;;  %v4000_v29 = vrot.slane %v3999_v19, 4  ;;  %v11274_v15 = vmax.f32 %v3968_v54, %v3969_v27 }
 0x33b   : > { %v1051_v12 = vcombine.high %v907_v33, %v907_v33  ;;  %v1937_v41 = vsel %vm1138_vm3, %v907_v33, -inf  ;;  %v1970_v34 = vrot.slane %v1969_v8, 1  ;;  %v4006_v10 = vsel %vm1138_vm3, %v3296_v50, -inf  ;;  %v9562_v33 = vpop.f32.mrf.mxu1 }
 0x33c   : > { %v1938_v32 = vrot.slane %v1937_v41, 4  ;;  %v3294_v46 = vcombine.high %v3150_v24, %v3150_v24  ;;  %v1977_v2 = vrot.slane %v1976_v6, 1  ;;  %v4001_v36 = vmax.f32 %v3999_v19, %v4000_v29 }
 0x33d   : > { %v4007_v49 = vrot.slane %v4006_v10, 4  ;;  %v1944_v25 = vsel %vm1138_vm3, %v1051_v12, -inf  ;;  %v1971_v13 = vmax.f32 %v1969_v8, %v1970_v34  ;;  %v3971_v35 = vsel %vm1138_vm3, %v3150_v24, -inf }
 0x33e   : > { %v1939_v30 = vmax.f32 %v1937_v41, %v1938_v32  ;;  %v1945_v4 = vrot.slane %v1944_v25, 4  ;;  %v1978_v39 = vmax.f32 %v1976_v6, %v1977_v2  ;;  %v4002_v16 = vrot.slane %v4001_v36, 2 }
 0x33f   : > { %v4008_v9 = vmax.f32 %v4006_v10, %v4007_v49  ;;  %v3972_v20 = vrot.slane %v3971_v35, 4  ;;  %v2233_v50 = vmax.f32 %v2232_v52, %v1971_v13  ;;  %v812_v8 = vadd.f32 %v11194_v31, %v9504_v5 }
 0x340   : > { %v1940_v48 = vrot.slane %v1939_v30, 2  ;;  %v1946_v43 = vmax.f32 %v1944_v25, %v1945_v4  ;;  %v4003_v19 = vmax.f32 %v4001_v36, %v4002_v16  ;;  %v3978_v24 = vsel %vm1138_vm3, %v3294_v46, -inf }
 0x341   : > { %v4009_v29 = vrot.slane %v4008_v9, 2  ;;  %v3973_v63 = vmax.f32 %v3971_v35, %v3972_v20  ;;  %v3007_v6 = vadd.f32 %v11194_v31, %v9562_v33  ;;  %v2236_v34 = vmax.f32 %v2235_v22, %v1978_v39 }
 0x342   : > { %v1941_v12 = vmax.f32 %v1939_v30, %v1940_v48  ;;  %v1947_v41 = vrot.slane %v1946_v43, 2  ;;  %v2273_v10 = vmax.f32 %v11224_v44, %v2233_v50  ;;  %v11281_v54 = vmul.f32 %v11262_v21, %v2233_v50 }
 0x343   : > { %v3974_v52 = vrot.slane %v3973_v63, 2  ;;  %v4465_v27 = vmax.f32 %v11238_v51, %v11253_v17  ;;  %v4010_v32 = vmax.f32 %v4008_v9, %v4009_v29  ;;  %v4468_v5 = vmax.f32 %v11240_v55, %v11274_v15 }
 0x344   : > { %13882 = vst [vmem:[#allocation54_spill] sm:$0xff] %v11281_v54  ;;  %v1942_v2 = vrot.slane %v1941_v12, 1  ;;  %v1948_v36 = vmax.f32 %v1946_v43, %v1947_v41  ;;  %v4004_v48 = vrot.slane %v4003_v19, 1  ;;  %v11288_v46 = vrot.slane %v11174_v53, 1 }
 0x345   : > { %v3975_v22 = vmax.f32 %v3973_v63, %v3974_v52  ;;  %v3979_v25 = vrot.slane %v3978_v24, 4  ;;  %v912_v13 = vmax.f32 %v812_v8, 0.0  ;;  %v11290_v30 = vmax.f32 %v2273_v10, %v2236_v34  ;;  %v803_v52 = vpop.f32.mrf.mxu0 }
 0x346   : > { %13883 = vst [vmem:[#allocation55_spill] sm:$0xff] %v11288_v46  ;;  %v1943_v49 = vmax.f32 %v1941_v12, %v1942_v2  ;;  %v1949_v44 = vrot.slane %v1948_v36, 1  ;;  %v11293_v4 = vmul.f32 %v11267_v18, %v2236_v34  ;;  %v3155_v43 = vmax.f32 %v3007_v6, 0.0 }
 0x347   : > { %v4011_v17 = vrot.slane %v4010_v32, 1  ;;  %v3980_v55 = vmax.f32 %v3978_v24, %v3979_v25  ;;  %v1056_v15 = vcombine.high %v912_v13, %v912_v13  ;;  %v4005_v39 = vmax.f32 %v4003_v19, %v4004_v48  ;;  %v2998_v48 = vpop.f32.mrf.mxu1 }
 0x348   : > { %13884 = vst [vmem:[#allocation56_spill] sm:$0xff] %v11293_v4  ;;  %v1950_v35 = vmax.f32 %v1948_v36, %v1949_v44  ;;  %v3976_v16 = vrot.slane %v3975_v22, 1  ;;  %v2007_v63 = vsel %vm1138_vm3, %v912_v13, -inf  ;;  %v3299_v9 = vcombine.high %v3155_v43, %v3155_v43 }
 0x349   : > { %v2221_v20 = vmax.f32 %v11137_v28, %v1943_v49  ;;  %v3981_v50 = vrot.slane %v3980_v55, 2  ;;  %v2008_v29 = vrot.slane %v2007_v63, 4  ;;  %v2014_v12 = vsel %vm1138_vm3, %v1056_v15, -inf }
 0x34a   : > { %v2224_v33 = vmax.f32 %v11151_v58, %v1950_v35  ;;  %v4041_v41 = vsel %vm1138_vm3, %v3155_v43, -inf  ;;  %v4048_v24 = vsel %vm1138_vm3, %v3299_v9, -inf  ;;  %v4012_v6 = vmax.f32 %v4010_v32, %v4011_v17 }
 0x34b   : > { %v3982_v34 = vmax.f32 %v3980_v55, %v3981_v50  ;;  %v2009_v10 = vmax.f32 %v2007_v63, %v2008_v29  ;;  %v2015_v2 = vrot.slane %v2014_v12, 4  ;;  %v4042_v28 = vrot.slane %v4041_v41, 4 }
 0x34c   : > { %v2422_v19 = vmul.f32 %v11288_v46, %v2224_v33  ;;  %v4049_v36 = vrot.slane %v4048_v24, 4  ;;  %v804_v58 = vadd.f32 %v11194_v31, %v803_v52  ;;  %v11305_v49 = vmax.f32 %v4465_v27, %v4005_v39 }
 0x34d   : > { %v2271_v44 = vmax.f32 %v2221_v20, %v2224_v33  ;;  %v11307_v25 = vmax.f32 %v3975_v22, %v3976_v16  ;;  %v2010_v13 = vrot.slane %v2009_v10, 2  ;;  %v2016_v43 = vmax.f32 %v2014_v12, %v2015_v2 }
 0x34e   : > { %v4043_v35 = vmax.f32 %v4041_v41, %v4042_v28  ;;  %v4050_v32 = vmax.f32 %v4048_v24, %v4049_v36  ;;  %v910_v17 = vmax.f32 %v804_v58, 0.0  ;;  %v4469_v15 = vmax.f32 %v4468_v5, %v4012_v6  ;;  %v9505_v36 = vpop.f32.mrf.mxu0 }
 0x34f   : > { %v2421_v55 = vmul.f32 %v2221_v20, %v11174_v53  ;;  %v2515_v63 = vrot.slane %v2422_v19, 7  ;;  %v2999_v9 = vadd.f32 %v11194_v31, %v2998_v48  ;;  %v3983_v50 = vrot.slane %v3982_v34, 1 }
 0x350   : > { %v2017_v29 = vrot.slane %v2016_v43, 2  ;;  %v4044_v52 = vrot.slane %v4043_v35, 2  ;;  %v4051_v8 = vrot.slane %v4050_v32, 2  ;;  %v11312_v27 = vmax.f32 %v2271_v44, %v11220_v1 }
 0x351   : > { %v4471_v22 = vmax.f32 %v11154_v45, %v11307_v25  ;;  %v2011_v39 = vmax.f32 %v2009_v10, %v2010_v13  ;;  %v1054_v16 = vcombine.high %v910_v17, %v910_v17  ;;  %v1979_v53 = vsel %vm1138_vm3, %v910_v17, -inf }
 0x352   : > { %v2018_v33 = vmax.f32 %v2016_v43, %v2017_v29  ;;  %v4045_v12 = vmax.f32 %v4043_v35, %v4044_v52  ;;  %v4052_v5 = vmax.f32 %v4050_v32, %v4051_v8  ;;  %v2516_v20 = vsel %vm2308_vm4, %v2515_v63, %v2421_v55 }
 0x353   : > { %v1980_v41 = vrot.slane %v1979_v53, 4  ;;  %v1986_v24 = vsel %vm1138_vm3, %v1054_v16, -inf  ;;  %v3153_v6 = vmax.f32 %v2999_v9, 0.0  ;;  %v11319_v19 = vmax.f32 %v3982_v34, %v3983_v50  ;;  %v9563_v16 = vpop.f32.mrf.mxu1 }
 0x354   : > { %v4046_v1 = vrot.slane %v4045_v12, 1  ;;  %v4053_v2 = vrot.slane %v4052_v5, 1  ;;  %v1987_v28 = vrot.slane %v1986_v24, 4  ;;  %v815_v8 = vadd.f32 %v11194_v31, %v9505_v36 }
 0x355   : > { %v1981_v58 = vmax.f32 %v1979_v53, %v1980_v41  ;;  %v3297_v10 = vcombine.high %v3153_v6, %v3153_v6  ;;  %v4013_v48 = vsel %vm1138_vm3, %v3153_v6, -inf  ;;  %v13885_v44 = vrot.slane %v11228_v62, 6 }
 0x356   : > { %v2012_v43 = vrot.slane %v2011_v39, 1  ;;  %v2019_v35 = vrot.slane %v2018_v33, 1  ;;  %v1988_v32 = vmax.f32 %v1986_v24, %v1987_v28  ;;  %v4014_v34 = vrot.slane %v4013_v48, 4 }
 0x357   : > { %v2518_v13 = vsel %vm2311_vm5, %v13885_v44, %v2516_v20  ;;  %v1982_v17 = vrot.slane %v1981_v58, 2  ;;  %v4020_v55 = vsel %vm1138_vm3, %v3297_v10, -inf  ;;  %v913_v63 = vmax.f32 %v815_v8, 0.0  ;;  %v3001_v44 = vpop.f32.mrf.mxu1 }
 0x358   : > { %v4047_v9 = vmax.f32 %v4045_v12, %v4046_v1  ;;  %v4054_v50 = vmax.f32 %v4052_v5, %v4053_v2  ;;  %v1989_v29 = vrot.slane %v1988_v32, 2  ;;  %v4021_v52 = vrot.slane %v4020_v55, 4 }
 0x359   : > { %v1983_v53 = vmax.f32 %v1981_v58, %v1982_v17  ;;  %v4015_v41 = vmax.f32 %v4013_v48, %v4014_v34  ;;  %v1057_v6 = vcombine.high %v913_v63, %v913_v63  ;;  %v2021_v62 = vsel %vm1138_vm3, %v913_v63, -inf  ;;  %v9566_v54 = vpop.f32.mrf.mxu1 }
 0x35a   : > { %v13886_v20 = vrot.slane %v11232_v23, 5  ;;  %v4474_v24 = vmax.f32 %v11158_v56, %v11319_v19  ;;  %v1990_v28 = vmax.f32 %v1988_v32, %v1989_v29  ;;  %v4022_v10 = vmax.f32 %v4020_v55, %v4021_v52  ;;  %v806_v32 = vpop.f32.mrf.mxu0 }
 0x35b   : > { %v11335_v12 = vmax.f32 %v2011_v39, %v2012_v43  ;;  %v4016_v5 = vrot.slane %v4015_v41, 2  ;;  %v2022_v1 = vrot.slane %v2021_v62, 4  ;;  %v2028_v2 = vsel %vm1138_vm3, %v1057_v6, -inf }
 0x35c   : > { %v11331_v36 = vsel %vm2314_vm6, %v13886_v20, %v2518_v13  ;;  %v11338_v58 = vmax.f32 %v2018_v33, %v2019_v35  ;;  %v11341_v48 = vmax.f32 %v11305_v49, %v4047_v9  ;;  %v11343_v23 = vmax.f32 %v4469_v15, %v4054_v50 }
 0x35d   : > { %13887 = vst [vmem:[#allocation57_spill] sm:$0xff] %v11331_v36  ;;  %v4023_v8 = vrot.slane %v4022_v10, 2  ;;  %v1984_v13 = vrot.slane %v1983_v53, 1  ;;  %v4017_v17 = vmax.f32 %v4015_v41, %v4016_v5  ;;  %v2023_v56 = vmax.f32 %v2021_v62, %v2022_v1 }
 0x35e   : > { %v2029_v19 = vrot.slane %v2028_v2, 4  ;;  %v1991_v39 = vrot.slane %v1990_v28, 1  ;;  %v3010_v34 = vadd.f32 %v11194_v31, %v9563_v16  ;;  %v807_v55 = vadd.f32 %v11194_v31, %v806_v32 }
 0x35f   : > { %v4024_v43 = vmax.f32 %v4022_v10, %v4023_v8  ;;  %v4018_v33 = vrot.slane %v4017_v17, 1  ;;  %v2024_v35 = vrot.slane %v2023_v56, 2  ;;  %v3002_v49 = vadd.f32 %v11194_v31, %v3001_v44 }
 0x360   : > { %v2030_v63 = vmax.f32 %v2028_v2, %v2029_v19  ;;  %v11350_v15 = vmul.f32 %v11341_v48, %v10905_v61  ;;  %v11354_v9 = vmul.f32 %v11343_v23, %v10913_v38  ;;  %v3156_v50 = vmax.f32 %v3010_v34, 0.0  ;;  %v9508_v19 = vpop.f32.mrf.mxu0 }
 0x361   : > { %v911_v29 = vmax.f32 %v807_v55, 0.0  ;;  %v11356_v52 = vmax.f32 %v1983_v53, %v1984_v13  ;;  %v4019_v16 = vmax.f32 %v4017_v17, %v4018_v33  ;;  %v4025_v41 = vrot.slane %v4024_v43, 1 }
 0x362   : > { %13888 = vst [vmem:[#allocation58_spill] sm:$0xff] %v11354_v9  ;;  %v2031_v6 = vrot.slane %v2030_v63, 2  ;;  %v3300_v62 = vcombine.high %v3156_v50, %v3156_v50  ;;  %v4055_v20 = vsel %vm1138_vm3, %v3156_v50, -inf  ;;  %v3154_v5 = vmax.f32 %v3002_v49, 0.0 }
 0x363   : > { %v1055_v10 = vcombine.high %v911_v29, %v911_v29  ;;  %v11359_v1 = vmax.f32 %v1990_v28, %v1991_v39  ;;  %v2025_v2 = vmax.f32 %v2023_v56, %v2024_v35  ;;  %v4056_v44 = vrot.slane %v4055_v20, 4 }
 0x364   : > { %v2032_v8 = vmax.f32 %v2030_v63, %v2031_v6  ;;  %v4062_v32 = vsel %vm1138_vm3, %v3300_v62, -inf  ;;  %v1993_v34 = vsel %vm1138_vm3, %v911_v29, -inf  ;;  %v828_v13 = vadd.f32 %v11194_v31, %v9508_v19 }
 0x365   : > { %v2000_v53 = vsel %vm1138_vm3, %v1055_v10, -inf  ;;  %v4026_v17 = vmax.f32 %v4024_v43, %v4025_v41  ;;  %v4472_v55 = vmax.f32 %v4471_v22, %v4019_v16  ;;  %v4057_v33 = vmax.f32 %v4055_v20, %v4056_v44 }
 0x366   : > { %v4063_v28 = vrot.slane %v4062_v32, 4  ;;  %v1994_v39 = vrot.slane %v1993_v34, 4  ;;  %v2001_v56 = vrot.slane %v2000_v53, 4  ;;  %v3298_v35 = vcombine.high %v3154_v5, %v3154_v5 }
 0x367   : > { %v4027_v63 = vsel %vm1138_vm3, %v3154_v5, -inf  ;;  %v2026_v49 = vrot.slane %v2025_v2, 1  ;;  %v2033_v50 = vrot.slane %v2032_v8, 1  ;;  %v4058_v6 = vrot.slane %v4057_v33, 2 }
 0x368   : > { %v4064_v29 = vmax.f32 %v4062_v32, %v4063_v28  ;;  %v1995_v62 = vmax.f32 %v1993_v34, %v1994_v39  ;;  %v2002_v10 = vmax.f32 %v2000_v53, %v2001_v56  ;;  %v4028_v51 = vrot.slane %v4027_v63, 4 }
 0x369   : > { %v4034_v43 = vsel %vm1138_vm3, %v3298_v35, -inf  ;;  %v4475_v41 = vmax.f32 %v4474_v24, %v4026_v17  ;;  %v4059_v19 = vmax.f32 %v4057_v33, %v4058_v6  ;;  %v916_v44 = vmax.f32 %v828_v13, 0.0 }
 0x36a   : > { %v4065_v45 = vrot.slane %v4064_v29, 2  ;;  %v4035_v25 = vrot.slane %v4034_v43, 4  ;;  %v1996_v22 = vrot.slane %v1995_v62, 2  ;;  %v2003_v16 = vrot.slane %v2002_v10, 2 }
 0x36b   : > { %v4029_v20 = vmax.f32 %v4027_v63, %v4028_v51  ;;  %v11370_v38 = vmax.f32 %v2025_v2, %v2026_v49  ;;  %v4060_v5 = vrot.slane %v4059_v19, 1  ;;  %v11372_v32 = vmax.f32 %v2032_v8, %v2033_v50 }
 0x36c   : > { %v4066_v61 = vmax.f32 %v4064_v29, %v4065_v45  ;;  %v4036_v4 = vmax.f32 %v4034_v43, %v4035_v25  ;;  %v1997_v34 = vmax.f32 %v1995_v62, %v1996_v22  ;;  %v1060_v28 = vcombine.high %v916_v44, %v916_v44 }
 0x36d   : > { %v4030_v53 = vrot.slane %v4029_v20, 2  ;;  %v4061_v39 = vmax.f32 %v4059_v19, %v4060_v5  ;;  %v2063_v33 = vsel %vm1138_vm3, %v916_v44, -inf  ;;  %v2004_v56 = vmax.f32 %v2002_v10, %v2003_v16 }
 0x36e   : > { %v4067_v24 = vrot.slane %v4066_v61, 1  ;;  %v4037_v17 = vrot.slane %v4036_v4, 2  ;;  %v2064_v51 = vrot.slane %v2063_v33, 4  ;;  %v3023_v2 = vadd.f32 %v11194_v31, %v9566_v54 }
 0x36f   : > { %v4031_v35 = vmax.f32 %v4029_v20, %v4030_v53  ;;  %v1998_v63 = vrot.slane %v1997_v34, 1  ;;  %v2070_v6 = vsel %vm1138_vm3, %v1060_v28, -inf  ;;  %v4678_v8 = vrot.slane %v11350_v15, 4 }
 0x370   : > { %v4068_v13 = vmax.f32 %v4066_v61, %v4067_v24  ;;  %v4038_v49 = vmax.f32 %v4036_v4, %v4037_v17  ;;  %v2065_v62 = vmax.f32 %v2063_v33, %v2064_v51  ;;  %v2237_v43 = vmax.f32 %v11356_v52, %v11370_v38  ;;  %v819_v38 = vpop.f32.mrf.mxu0 }
 0x371   : > { %v4032_v29 = vrot.slane %v4031_v35, 1  ;;  %v2240_v10 = vmax.f32 %v11359_v1, %v11372_v32  ;;  %v4473_v19 = vmax.f32 %v4472_v55, %v4061_v39  ;;  %v2071_v25 = vrot.slane %v2070_v6, 4 }
 0x372   : > { %v4039_v45 = vrot.slane %v4038_v49, 1  ;;  %v2066_v61 = vrot.slane %v2065_v62, 2  ;;  %v3159_v4 = vmax.f32 %v3023_v2, 0.0  ;;  %v4476_v22 = vmax.f32 %v4475_v41, %v4068_v13 }
 0x373   : > { %v4033_v54 = vmax.f32 %v4031_v35, %v4032_v29  ;;  %v11383_v16 = vmax.f32 %v1997_v34, %v1998_v63  ;;  %v2005_v20 = vrot.slane %v2004_v56, 1  ;;  %v2072_v28 = vmax.f32 %v2070_v6, %v2071_v25 }
 0x374   : > { %v4040_v44 = vmax.f32 %v4038_v49, %v4039_v45  ;;  %v2067_v53 = vmax.f32 %v2065_v62, %v2066_v61  ;;  %v3303_v24 = vcombine.high %v3159_v4, %v3159_v4  ;;  %v4527_v52 = vmax.f32 %v11343_v23, %v4473_v19  ;;  %v3014_v23 = vpop.f32.mrf.mxu1 }
 0x375   : > { %v4461_v5 = vmax.f32 %v11248_v59, %v4033_v54  ;;  %v4097_v39 = vsel %vm1138_vm3, %v3159_v4, -inf  ;;  %v820_v17 = vadd.f32 %v11194_v31, %v819_v38  ;;  %v2073_v33 = vrot.slane %v2072_v28, 2 }
 0x376   : > { %v4464_v55 = vmax.f32 %v11259_v42, %v4040_v44  ;;  %v2068_v34 = vrot.slane %v2067_v53, 1  ;;  %v4098_v35 = vrot.slane %v4097_v39, 4  ;;  %v11392_v51 = vmul.f32 %v4473_v19, %v10970_v47 }
 0x377   : > { %v4590_v41 = vmul.f32 %v4461_v5, %v10990_v14  ;;  %v4104_v2 = vsel %vm1138_vm3, %v3303_v24, -inf  ;;  %v914_v13 = vmax.f32 %v820_v17, 0.0  ;;  %v11397_v42 = vmul.f32 %v4476_v22, %v10974_v7 }
 0x378   : > { %13889 = vst [vmem:[#allocation59_spill] sm:$0xff] %v11392_v51  ;;  %v4591_v59 = vmul.f32 %v4464_v55, %v10996_v40  ;;  %v2074_v49 = vmax.f32 %v2072_v28, %v2073_v33  ;;  %v4099_v6 = vmax.f32 %v4097_v39, %v4098_v35  ;;  %v11399_v29 = vmax.f32 %v2004_v56, %v2005_v20  ;;  %v9567_v39 = vpop.f32.mrf.mxu1 }
 0x379   : > { %13890 = vst [vmem:[#allocation60_spill] sm:$0xff] %v11397_v42  ;;  %v4674_v63 = vrot.slane %v4590_v41, 6  ;;  %v4105_v45 = vrot.slane %v4104_v2, 4  ;;  %v1058_v54 = vcombine.high %v914_v13, %v914_v13  ;;  %v11401_v61 = vmax.f32 %v4527_v52, %v4476_v22  ;;  %v9509_v22 = vpop.f32.mrf.mxu0 }
 0x37a   : > { %v4676_v62 = vrot.slane %v4591_v59, 5  ;;  %v4525_v19 = vmax.f32 %v4461_v5, %v4464_v55  ;;  %v2069_v4 = vmax.f32 %v2067_v53, %v2068_v34  ;;  %v4100_v24 = vrot.slane %v4099_v6, 2 }
 0x37b   : > { %13891 = vst [vmem:[#allocation61_spill] sm:$0xff] %v11401_v61  ;;  %v4675_v25 = vsel %vm2311_vm5, %v4674_v63, %v11127_v0  ;;  %v2035_v38 = vsel %vm1138_vm3, %v914_v13, -inf  ;;  %v2042_v28 = vsel %vm1138_vm3, %v1058_v54, -inf  ;;  %v2075_v20 = vrot.slane %v2074_v49, 1 }
 0x37c   : > { %v4106_v17 = vmax.f32 %v4104_v2, %v4105_v45  ;;  %v2036_v41 = vrot.slane %v2035_v38, 4  ;;  %v4677_v5 = vsel %vm2314_vm6, %v4676_v62, %v4675_v25  ;;  %v2043_v52 = vrot.slane %v2042_v28, 4 }
 0x37d   : > { %v3015_v0 = vadd.f32 %v11194_v31, %v3014_v23  ;;  %v831_v53 = vadd.f32 %v11194_v31, %v9509_v22  ;;  %v11413_v55 = vmax.f32 %v4525_v19, %v11341_v48  ;;  %v11415_v34 = vmax.f32 %v2237_v43, %v2069_v4 }
 0x37e   : > { %v2037_v33 = vmax.f32 %v2035_v38, %v2036_v41  ;;  %v3026_v35 = vadd.f32 %v11194_v31, %v9567_v39  ;;  %v4101_v59 = vmax.f32 %v4099_v6, %v4100_v24  ;;  %v2044_v13 = vmax.f32 %v2042_v28, %v2043_v52 }
 0x37f   : > { %13892 = vst [vmem:[#allocation62_spill] sm:$0xff] %v11413_v55  ;;  %v3157_v2 = vmax.f32 %v3015_v0, 0.0  ;;  %v917_v63 = vmax.f32 %v831_v53, 0.0  ;;  %v11421_v62 = vsel %vm2476_vm7, %v4678_v8, %v4677_v5  ;;  %v2076_v23 = vmax.f32 %v2074_v49, %v2075_v20  ;;  %v822_v5 = vpop.f32.mrf.mxu0 }
 0x380   : > { %13893 = vst [vmem:[#allocation63_spill] sm:$0xff] %v11421_v62  ;;  %v4107_v45 = vrot.slane %v4106_v17, 2  ;;  %v2038_v54 = vrot.slane %v2037_v33, 2  ;;  %v2045_v25 = vrot.slane %v2044_v13, 2  ;;  %v3160_v19 = vmax.f32 %v3026_v35, 0.0 }
 0x381   : > { %v3301_v48 = vcombine.high %v3157_v2, %v3157_v2  ;;  %v4069_v43 = vsel %vm1138_vm3, %v3157_v2, -inf  ;;  %v1061_v39 = vcombine.high %v917_v63, %v917_v63  ;;  %v2077_v6 = vsel %vm1138_vm3, %v917_v63, -inf }
 0x382   : > { %v2039_v4 = vmax.f32 %v2037_v33, %v2038_v54  ;;  %v4070_v38 = vrot.slane %v4069_v43, 4  ;;  %v4102_v24 = vrot.slane %v4101_v59, 1  ;;  %v2046_v28 = vmax.f32 %v2044_v13, %v2045_v25 }
 0x383   : > { %v4076_v15 = vsel %vm1138_vm3, %v3301_v48, -inf  ;;  %v2078_v41 = vrot.slane %v2077_v6, 4  ;;  %v4108_v8 = vmax.f32 %v4106_v17, %v4107_v45  ;;  %v2084_v20 = vsel %vm1138_vm3, %v1061_v39, -inf }
 0x384   : > { %v4071_v22 = vmax.f32 %v4069_v43, %v4070_v38  ;;  %v4077_v49 = vrot.slane %v4076_v15, 4  ;;  %v2085_v0 = vrot.slane %v2084_v20, 4  ;;  %v3304_v53 = vcombine.high %v3160_v19, %v3160_v19 }
 0x385   : > { %v2079_v52 = vmax.f32 %v2077_v6, %v2078_v41  ;;  %v823_v33 = vadd.f32 %v11194_v31, %v822_v5  ;;  %v2040_v35 = vrot.slane %v2039_v4, 1  ;;  %v4111_v63 = vsel %vm1138_vm3, %v3160_v19, -inf }
 0x386   : > { %v4072_v2 = vrot.slane %v4071_v22, 2  ;;  %v4078_v54 = vmax.f32 %v4076_v15, %v4077_v49  ;;  %v2047_v13 = vrot.slane %v2046_v28, 1  ;;  %v2086_v48 = vmax.f32 %v2084_v20, %v2085_v0  ;;  %v3017_v15 = vpop.f32.mrf.mxu1 }
 0x387   : > { %v2080_v25 = vrot.slane %v2079_v52, 2  ;;  %v4112_v56 = vrot.slane %v4111_v63, 4  ;;  %v11432_v17 = vmax.f32 %v2240_v10, %v2076_v23  ;;  %v4109_v45 = vrot.slane %v4108_v8, 1 }
 0x388   : > { %v4079_v43 = vrot.slane %v4078_v54, 2  ;;  %v4118_v38 = vsel %vm1138_vm3, %v3304_v53, -inf  ;;  %v4073_v39 = vmax.f32 %v4071_v22, %v4072_v2  ;;  %v2087_v41 = vrot.slane %v2086_v48, 2 }
 0x389   : > { %v2081_v6 = vmax.f32 %v2079_v52, %v2080_v25  ;;  %v4113_v5 = vmax.f32 %v4111_v63, %v4112_v56  ;;  %v11435_v49 = vmax.f32 %v4101_v59, %v4102_v24  ;;  %v4119_v44 = vrot.slane %v4118_v38, 4 }
 0x38a   : > { %v4080_v19 = vmax.f32 %v4078_v54, %v4079_v43  ;;  %v915_v20 = vmax.f32 %v823_v33, 0.0  ;;  %v2041_v0 = vmax.f32 %v2039_v4, %v2040_v35  ;;  %v2048_v50 = vmax.f32 %v2046_v28, %v2047_v13 }
 0x38b   : > { %v2088_v40 = vmax.f32 %v2086_v48, %v2087_v41  ;;  %v4114_v1 = vrot.slane %v4113_v5, 2  ;;  %v11437_v32 = vmax.f32 %v4108_v8, %v4109_v45  ;;  %v4120_v10 = vmax.f32 %v4118_v38, %v4119_v44  ;;  %v9512_v44 = vpop.f32.mrf.mxu0 }
 0x38c   : > { %v1059_v23 = vcombine.high %v915_v20, %v915_v20  ;;  %v3018_v53 = vadd.f32 %v11194_v31, %v3017_v15  ;;  %v4074_v22 = vrot.slane %v4073_v39, 1  ;;  %v4081_v52 = vrot.slane %v4080_v19, 1 }
 0x38d   : > { %v2082_v2 = vrot.slane %v2081_v6, 1  ;;  %v2049_v56 = vsel %vm1138_vm3, %v915_v20, -inf  ;;  %v4115_v59 = vmax.f32 %v4113_v5, %v4114_v1  ;;  %v4121_v24 = vrot.slane %v4120_v10, 2  ;;  %v9570_v5 = vpop.f32.mrf.mxu1 }
 0x38e   : > { %v2050_v54 = vrot.slane %v2049_v56, 4  ;;  %v2056_v33 = vsel %vm1138_vm3, %v1059_v23, -inf  ;;  %v2243_v4 = vmax.f32 %v11383_v16, %v2041_v0  ;;  %v2246_v28 = vmax.f32 %v11399_v29, %v2048_v50 }
 0x38f   : > { %v2089_v8 = vrot.slane %v2088_v40, 1  ;;  %v2057_v35 = vrot.slane %v2056_v33, 4  ;;  %v4122_v63 = vmax.f32 %v4120_v10, %v4121_v24  ;;  %v3158_v25 = vmax.f32 %v3018_v53, 0.0 }
 0x390   : > { %v2051_v13 = vmax.f32 %v2049_v56, %v2050_v54  ;;  %v844_v48 = vadd.f32 %v11194_v31, %v9512_v44  ;;  %v11445_v45 = vmax.f32 %v4073_v39, %v4074_v22  ;;  %v11447_v43 = vmax.f32 %v4080_v19, %v4081_v52  ;;  %v11459_v54 = vld [vmem:[%s13699_s5 + $0x20] sm:$0xf] }
 0x391   : > { %v2083_v38 = vmax.f32 %v2081_v6, %v2082_v2  ;;  %v2058_v41 = vmax.f32 %v2056_v33, %v2057_v35  ;;  %v4116_v15 = vrot.slane %v4115_v59, 1  ;;  %v3302_v16 = vcombine.high %v3158_v25, %v3158_v25 }
 0x392   : > { %v2052_v20 = vrot.slane %v2051_v13, 2  ;;  %v4083_v50 = vsel %vm1138_vm3, %v3158_v25, -inf  ;;  %v4123_v29 = vrot.slane %v4122_v63, 1  ;;  %v920_v10 = vmax.f32 %v844_v48, 0.0 }
 0x393   : > { %v2059_v0 = vrot.slane %v2058_v41, 2  ;;  %v4084_v1 = vrot.slane %v4083_v50, 4  ;;  %v2090_v23 = vmax.f32 %v2088_v40, %v2089_v8  ;;  %v4090_v56 = vsel %vm1138_vm3, %v3302_v16, -inf }
 0x394   : > { %v2053_v53 = vmax.f32 %v2051_v13, %v2052_v20  ;;  %v3039_v39 = vadd.f32 %v11194_v31, %v9570_v5  ;;  %v4091_v6 = vrot.slane %v4090_v56, 4  ;;  %v1064_v52 = vcombine.high %v920_v10, %v920_v10 }
 0x395   : > { %v2060_v19 = vmax.f32 %v2058_v41, %v2059_v0  ;;  %v4085_v22 = vmax.f32 %v4083_v50, %v4084_v1  ;;  %v11452_v2 = vmax.f32 %v2243_v4, %v2083_v38  ;;  %v11454_v24 = vmax.f32 %v4115_v59, %v4116_v15  ;;  %v835_v15 = vpop.f32.mrf.mxu0  ;;  %v3030_v50 = vpop.f32.mrf.mxu1 }
 0x396   : > { %v2119_v40 = vsel %vm1138_vm3, %v920_v10, -inf  ;;  %v3163_v33 = vmax.f32 %v3039_v39, 0.0  ;;  %v11462_v8 = vmax.f32 %v4122_v63, %v4123_v29  ;;  %v2054_v35 = vrot.slane %v2053_v53, 1 }
 0x397   : > { %v4086_v31 = vrot.slane %v4085_v22, 2  ;;  %v2120_v44 = vrot.slane %v2119_v40, 4  ;;  %v11464_v13 = vmax.f32 %v2246_v28, %v2090_v23  ;;  %v2126_v4 = vsel %vm1138_vm3, %v1064_v52, -inf }
 0x398   : > { %v3307_v25 = vcombine.high %v3163_v33, %v3163_v33  ;;  %v4153_v59 = vsel %vm1138_vm3, %v3163_v33, -inf  ;;  %v2061_v48 = vrot.slane %v2060_v19, 1  ;;  %v4092_v38 = vmax.f32 %v4090_v56, %v4091_v6  ;;  %v11481_v6 = vld [vmem:[%s13696_s2] ss:$0 sm:$0xff] }
 0x399   : > { %v2121_v41 = vmax.f32 %v2119_v40, %v2120_v44  ;;  %v11469_v5 = vrot.slane %v11459_v54, 1  ;;  %v2127_v20 = vrot.slane %v2126_v4, 4  ;;  %v4154_v16 = vrot.slane %v4153_v59, 4 }
 0x39a   : > { %v4160_v28 = vsel %vm1138_vm3, %v3307_v25, -inf  ;;  %v11476_v0 = vmax.f32 %v2053_v53, %v2054_v35  ;;  %v4087_v1 = vmax.f32 %v4085_v22, %v4086_v31  ;;  %v836_v52 = vadd.f32 %v11481_v6, %v835_v15 }
 0x39b   : > { %13894 = vst [vmem:[#allocation64_spill] sm:$0xff] %v11469_v5  ;;  %v2122_v10 = vrot.slane %v2121_v41, 2  ;;  %v2128_v23 = vmax.f32 %v2126_v4, %v2127_v20  ;;  %v4155_v56 = vmax.f32 %v4153_v59, %v4154_v16  ;;  %v4161_v39 = vrot.slane %v4160_v28, 4 }
 0x39c   : > { %v11484_v40 = vmax.f32 %v2060_v19, %v2061_v48  ;;  %v4093_v33 = vrot.slane %v4092_v38, 2  ;;  %v3031_v25 = vadd.f32 %v11481_v6, %v3030_v50  ;;  %v918_v31 = vmax.f32 %v836_v52, 0.0  ;;  %v9513_v19 = vpop.f32.mrf.mxu0 }
 0x39d   : > { %v2123_v44 = vmax.f32 %v2121_v41, %v2122_v10  ;;  %v2129_v53 = vrot.slane %v2128_v23, 2  ;;  %v4156_v35 = vrot.slane %v4155_v56, 2  ;;  %v4162_v22 = vmax.f32 %v4160_v28, %v4161_v39 }
 0x39e   : > { %v4088_v59 = vrot.slane %v4087_v1, 1  ;;  %v3161_v16 = vmax.f32 %v3031_v25, 0.0  ;;  %v1062_v15 = vcombine.high %v918_v31, %v918_v31  ;;  %v4094_v48 = vmax.f32 %v4092_v38, %v4093_v33 }
 0x39f   : > { %v2124_v20 = vrot.slane %v2123_v44, 1  ;;  %v2130_v29 = vmax.f32 %v2128_v23, %v2129_v53  ;;  %v4157_v63 = vmax.f32 %v4155_v56, %v4156_v35  ;;  %v4163_v14 = vrot.slane %v4162_v22, 2 }
 0x3a0   : > { %v2091_v41 = vsel %vm1138_vm3, %v918_v31, -inf  ;;  %v3305_v10 = vcombine.high %v3161_v16, %v3161_v16  ;;  %v4125_v50 = vsel %vm1138_vm3, %v3161_v16, -inf  ;;  %v2098_v4 = vsel %vm1138_vm3, %v1062_v15, -inf }
 0x3a1   : > { %v2125_v7 = vmax.f32 %v2123_v44, %v2124_v20  ;;  %v2131_v28 = vrot.slane %v2130_v29, 1  ;;  %v4164_v39 = vmax.f32 %v4162_v22, %v4163_v14  ;;  %v2092_v52 = vrot.slane %v2091_v41, 4 }
 0x3a2   : > { %v4126_v47 = vrot.slane %v4125_v50, 4  ;;  %v4132_v25 = vsel %vm1138_vm3, %v3305_v10, -inf  ;;  %v847_v23 = vadd.f32 %v11481_v6, %v9513_v19  ;;  %v4158_v53 = vrot.slane %v4157_v63, 1 }
 0x3a3   : > { %v2132_v56 = vmax.f32 %v2130_v29, %v2131_v28  ;;  %v4165_v35 = vrot.slane %v4164_v39, 1  ;;  %v2093_v38 = vmax.f32 %v2091_v41, %v2092_v52  ;;  %v2099_v31 = vrot.slane %v2098_v4, 4 }
 0x3a4   : > { %v4127_v16 = vmax.f32 %v4125_v50, %v4126_v47  ;;  %v4133_v44 = vrot.slane %v4132_v25, 4  ;;  %v11496_v20 = vmax.f32 %v4087_v1, %v4088_v59  ;;  %v4095_v14 = vrot.slane %v4094_v48, 1  ;;  %v9571_v59 = vpop.f32.mrf.mxu1 }
 0x3a5   : > { %v11499_v22 = vmax.f32 %v11452_v2, %v2125_v7  ;;  %v2094_v15 = vrot.slane %v2093_v38, 2  ;;  %v2100_v10 = vmax.f32 %v2098_v4, %v2099_v31  ;;  %v921_v29 = vmax.f32 %v847_v23, 0.0  ;;  %v838_v23 = vpop.f32.mrf.mxu0 }
 0x3a6   : > { %v4128_v42 = vrot.slane %v4127_v16, 2  ;;  %v4134_v19 = vmax.f32 %v4132_v25, %v4133_v44  ;;  %v11502_v28 = vmax.f32 %v11464_v13, %v2132_v56  ;;  %v4159_v41 = vmax.f32 %v4157_v63, %v4158_v53 }
 0x3a7   : > { %v4166_v52 = vmax.f32 %v4164_v39, %v4165_v35  ;;  %v2095_v33 = vmax.f32 %v2093_v38, %v2094_v15  ;;  %v2101_v51 = vrot.slane %v2100_v10, 2  ;;  %v1065_v1 = vcombine.high %v921_v29, %v921_v29 }
 0x3a8   : > { %v4129_v47 = vmax.f32 %v4127_v16, %v4128_v42  ;;  %v4135_v50 = vrot.slane %v4134_v19, 2  ;;  %v11504_v9 = vmax.f32 %v4094_v48, %v4095_v14  ;;  %v2430_v7 = vmul.f32 %v11469_v5, %v11502_v28 }
 0x3a9   : > { %v2096_v2 = vrot.slane %v2095_v33, 1  ;;  %v2133_v4 = vsel %vm1138_vm3, %v921_v29, -inf  ;;  %v2429_v13 = vmul.f32 %v11499_v22, %v11459_v54  ;;  %v2102_v25 = vmax.f32 %v2100_v10, %v2101_v51 }
 0x3aa   : > { %v4136_v63 = vmax.f32 %v4134_v19, %v4135_v50  ;;  %v2134_v39 = vrot.slane %v2133_v4, 4  ;;  %v13895_v42 = vmax.f32 %v11445_v45, %v11454_v24  ;;  %v13896_v48 = vmax.f32 %v11447_v43, %v11462_v8  ;;  %v3033_v50 = vpop.f32.mrf.mxu1 }
 0x3ab   : > { %v2140_v35 = vsel %vm1138_vm3, %v1065_v1, -inf  ;;  %v3042_v38 = vadd.f32 %v11481_v6, %v9571_v59  ;;  %v2097_v31 = vmax.f32 %v2095_v33, %v2096_v2  ;;  %v4130_v16 = vrot.slane %v4129_v47, 1 }
 0x3ac   : > { %v11514_v56 = vmax.f32 %v13895_v42, %v4159_v41  ;;  %v11519_v53 = vmax.f32 %v13896_v48, %v4166_v52  ;;  %v2135_v51 = vmax.f32 %v2133_v4, %v2134_v39  ;;  %v11524_v44 = vrot.slane %v11459_v54, 2 }
 0x3ad   : > { %v2529_v14 = vrot.slane %v2430_v7, 7  ;;  %v2141_v15 = vrot.slane %v2140_v35, 4  ;;  %v3164_v45 = vmax.f32 %v3042_v38, 0.0  ;;  %v839_v24 = vadd.f32 %v11481_v6, %v838_v23 }
 0x3ae   : > { %13897 = vst [vmem:[#allocation65_spill] sm:$0xff] %v11524_v44  ;;  %v2103_v10 = vrot.slane %v2102_v25, 1  ;;  %v4137_v19 = vrot.slane %v4136_v63, 1  ;;  %v2136_v43 = vrot.slane %v2135_v51, 2  ;;  %v11528_v8 = vrot.slane %v11459_v54, 3 }
 0x3af   : > { %v2142_v29 = vmax.f32 %v2140_v35, %v2141_v15  ;;  %v3308_v41 = vcombine.high %v3164_v45, %v3164_v45  ;;  %v4167_v33 = vsel %vm1138_vm3, %v3164_v45, -inf  ;;  %v919_v52 = vmax.f32 %v839_v24, 0.0 }
 0x3b0   : > { %13898 = vst [vmem:[#allocation66_spill] sm:$0xff] %v11528_v8  ;;  %v13899_v1 = vmax.f32 %v11335_v12, %v11476_v0  ;;  %v11534_v7 = vmax.f32 %v4129_v47, %v4130_v16  ;;  %v2137_v2 = vmax.f32 %v2135_v51, %v2136_v43  ;;  %v4168_v4 = vrot.slane %v4167_v33, 4  ;;  %v9574_v0 = vpop.f32.mrf.mxu1 }
 0x3b1   : > { %v2143_v39 = vrot.slane %v2142_v29, 2  ;;  %v4174_v23 = vsel %vm1138_vm3, %v3308_v41, -inf  ;;  %v1063_v42 = vcombine.high %v919_v52, %v919_v52  ;;  %v2105_v54 = vsel %vm1138_vm3, %v919_v52, -inf }
 0x3b2   : > { %v2250_v59 = vmax.f32 %v13899_v1, %v2097_v31  ;;  %v2138_v48 = vrot.slane %v2137_v2, 1  ;;  %v4169_v35 = vmax.f32 %v4167_v33, %v4168_v4  ;;  %v4175_v38 = vrot.slane %v4174_v23, 4 }
 0x3b3   : > { %v2106_v15 = vrot.slane %v2105_v54, 4  ;;  %v2104_v45 = vmax.f32 %v2102_v25, %v2103_v10  ;;  %v11538_v24 = vmax.f32 %v4136_v63, %v4137_v19  ;;  %v2144_v62 = vmax.f32 %v2142_v29, %v2143_v39 }
 0x3b4   : > { %v2112_v12 = vsel %vm1138_vm3, %v1063_v42, -inf  ;;  %v2139_v47 = vmax.f32 %v2137_v2, %v2138_v48  ;;  %v4170_v31 = vrot.slane %v4169_v35, 2  ;;  %v4176_v16 = vmax.f32 %v4174_v23, %v4175_v38 }
 0x3b5   : > { %v2107_v51 = vmax.f32 %v2105_v54, %v2106_v15  ;;  %v11542_v43 = vsel %vm2308_vm4, %v2529_v14, %v2429_v13  ;;  %v2145_v41 = vrot.slane %v2144_v62, 1  ;;  %v2113_v52 = vrot.slane %v2112_v12, 4 }
 0x3b6   : > { %13900 = vst [vmem:[#allocation67_spill] sm:$0xff] %v11542_v43  ;;  %v3034_v33 = vadd.f32 %v11481_v6, %v3033_v50  ;;  %v4171_v1 = vmax.f32 %v4169_v35, %v4170_v31  ;;  %v4177_v4 = vrot.slane %v4176_v16, 2  ;;  %v3055_v63 = vadd.f32 %v11481_v6, %v9574_v0 }
 0x3b7   : > { %v2108_v25 = vrot.slane %v2107_v51, 2  ;;  %v4483_v10 = vmax.f32 %v11496_v20, %v11534_v7  ;;  %v2251_v19 = vmax.f32 %v2250_v59, %v2139_v47  ;;  %v2114_v29 = vmax.f32 %v2112_v12, %v2113_v52  ;;  %v11556_v20 = vld [vmem:[%s13699_s5 + $0x18] sm:$0xff] }
 0x3b8   : > { %v3162_v2 = vmax.f32 %v3034_v33, 0.0  ;;  %v13901_v39 = vmax.f32 %v11338_v58, %v11484_v40  ;;  %v4486_v14 = vmax.f32 %v11504_v9, %v11538_v24  ;;  %v2146_v23 = vmax.f32 %v2144_v62, %v2145_v41  ;;  %v3046_v41 = vpop.f32.mrf.mxu1 }
 0x3b9   : > { %v4178_v50 = vmax.f32 %v4176_v16, %v4177_v4  ;;  %v4172_v42 = vrot.slane %v4171_v1, 1  ;;  %v2109_v54 = vmax.f32 %v2107_v51, %v2108_v25  ;;  %v2115_v48 = vrot.slane %v2114_v29, 2 }
 0x3ba   : > { %v2253_v13 = vmax.f32 %v13901_v39, %v2104_v45  ;;  %v3306_v35 = vcombine.high %v3162_v2, %v3162_v2  ;;  %v11559_v59 = vrot.slane %v11556_v20, 6  ;;  %v11562_v58 = vrot.slane %v11556_v20, 7 }
 0x3bb   : > { %v4139_v40 = vsel %vm1138_vm3, %v3162_v2, -inf  ;;  %v3167_v9 = vmax.f32 %v3055_v63, 0.0  ;;  %v2277_v62 = vmax.f32 %v11502_v28, %v2251_v19  ;;  %v4179_v7 = vrot.slane %v4178_v50, 1  ;;  %v9592_v2 = vpop.f32.mrf.mxu0 }
 0x3bc   : > { %13902 = vst [vmem:[#allocation68_spill] sm:$0xff] %v11559_v59  ;;  %13903 = vst [vmem:[#allocation69_spill] sm:$0xff] %v11562_v58  ;;  %v2110_v38 = vrot.slane %v2109_v54, 1  ;;  %v2116_v15 = vmax.f32 %v2114_v29, %v2115_v48  ;;  %v2254_v45 = vmax.f32 %v2253_v13, %v2146_v23  ;;  %v11567_v24 = vmul.f32 %v11524_v44, %v2251_v19 }
 0x3bd   : > { %v4140_v12 = vrot.slane %v4139_v40, 4  ;;  %v4146_v0 = vsel %vm1138_vm3, %v3306_v35, -inf  ;;  %v4173_v47 = vmax.f32 %v4171_v1, %v4172_v42  ;;  %v3311_v28 = vcombine.high %v3167_v9, %v3167_v9 }
 0x3be   : > { %13904 = vst [vmem:[#allocation70_spill] sm:$0xff] %v11567_v24  ;;  %v2111_v31 = vmax.f32 %v2109_v54, %v2110_v38  ;;  %v2117_v16 = vrot.slane %v2116_v15, 1  ;;  %v4147_v51 = vrot.slane %v4146_v0, 4  ;;  %v11571_v52 = vmul.f32 %v11528_v8, %v2254_v45 }
 0x3bf   : > { %v4141_v33 = vmax.f32 %v4139_v40, %v4140_v12  ;;  %v4209_v4 = vsel %vm1138_vm3, %v3167_v9, -inf  ;;  %v4180_v25 = vmax.f32 %v4178_v50, %v4179_v7  ;;  %v4216_v13 = vsel %vm1138_vm3, %v3311_v28, -inf }
 0x3c0   : > { %13905 = vst [vmem:[#allocation71_spill] sm:$0xff] %v11571_v52  ;;  %v2118_v63 = vmax.f32 %v2116_v15, %v2117_v16  ;;  %v4148_v29 = vmax.f32 %v4146_v0, %v4147_v51  ;;  %v4210_v19 = vrot.slane %v4209_v4, 4  ;;  %v5002_v1 = vadd.f32 %v11481_v6, %v9592_v2 }
 0x3c1   : > { %v4142_v39 = vrot.slane %v4141_v33, 2  ;;  %v3047_v23 = vadd.f32 %v11481_v6, %v3046_v41  ;;  %v2239_v42 = vmax.f32 %v11415_v34, %v2111_v31  ;;  %v11579_v40 = vmax.f32 %v2277_v62, %v2254_v45 }
 0x3c2   : > { %v2242_v54 = vmax.f32 %v11432_v17, %v2118_v63  ;;  %v4149_v48 = vrot.slane %v4148_v29, 2  ;;  %v4211_v35 = vmax.f32 %v4209_v4, %v4210_v19  ;;  %v4217_v9 = vrot.slane %v4216_v13, 4 }
 0x3c3   : > { %v5282_v7 = vmax.f32 %v5002_v1, 0.0  ;;  %v4484_v15 = vmax.f32 %v4483_v10, %v4173_v47  ;;  %v4143_v12 = vmax.f32 %v4141_v33, %v4142_v39  ;;  %v3165_v0 = vmax.f32 %v3047_v23, 0.0 }
 0x3c4   : > { %v4150_v16 = vmax.f32 %v4148_v29, %v4149_v48  ;;  %v4212_v51 = vrot.slane %v4211_v35, 2  ;;  %v4218_v41 = vmax.f32 %v4216_v13, %v4217_v9  ;;  %v4487_v34 = vmax.f32 %v4486_v14, %v4180_v25  ;;  %v9575_v13 = vpop.f32.mrf.mxu1 }
 0x3c5   : > { %v5426_v28 = vcombine.high %v5282_v7, %v5282_v7  ;;  %v2275_v31 = vmax.f32 %v2239_v42, %v2242_v54  ;;  %v11584_v17 = vmul.f32 %v11559_v59, %v2239_v42  ;;  %v5596_v62 = vsel %vm1138_vm3, %v5282_v7, -inf }
 0x3c6   : > { %v11588_v45 = vmul.f32 %v11562_v58, %v2242_v54  ;;  %v4213_v4 = vmax.f32 %v4211_v35, %v4212_v51  ;;  %v4219_v63 = vrot.slane %v4218_v41, 2  ;;  %v5597_v19 = vrot.slane %v5596_v62, 4  ;;  %v4993_v51 = vpop.f32.mrf.mxu0 }
 0x3c7   : > { %13906 = vst [vmem:[#allocation72_spill] sm:$0xff] %v11584_v17  ;;  %v4144_v10 = vrot.slane %v4143_v12, 1  ;;  %v5603_v47 = vsel %vm1138_vm3, %v5426_v28, -inf  ;;  %v3309_v33 = vcombine.high %v3165_v0, %v3165_v0  ;;  %v4181_v29 = vsel %vm1138_vm3, %v3165_v0, -inf }
 0x3c8   : > { %13907 = vst [vmem:[#allocation73_spill] sm:$0xff] %v11588_v45  ;;  %v4151_v2 = vrot.slane %v4150_v16, 1  ;;  %v4214_v14 = vrot.slane %v4213_v4, 1  ;;  %v4220_v25 = vmax.f32 %v4218_v41, %v4219_v63  ;;  %v5598_v39 = vmax.f32 %v5596_v62, %v5597_v19 }
 0x3c9   : > { %v5604_v23 = vrot.slane %v5603_v47, 4  ;;  %v4182_v42 = vrot.slane %v4181_v29, 4  ;;  %v4188_v54 = vsel %vm1138_vm3, %v3309_v33, -inf  ;;  %v4994_v0 = vadd.f32 %v11481_v6, %v4993_v51 }
 0x3ca   : > { %v4215_v48 = vmax.f32 %v4213_v4, %v4214_v14  ;;  %v4221_v35 = vrot.slane %v4220_v25, 1  ;;  %v5599_v9 = vrot.slane %v5598_v39, 2  ;;  %v4189_v7 = vrot.slane %v4188_v54, 4 }
 0x3cb   : > { %v5605_v28 = vmax.f32 %v5603_v47, %v5604_v23  ;;  %v4183_v38 = vmax.f32 %v4181_v29, %v4182_v42  ;;  %v3058_v50 = vadd.f32 %v11481_v6, %v9575_v13  ;;  %v4145_v41 = vmax.f32 %v4143_v12, %v4144_v10 }
 0x3cc   : > { %v4152_v62 = vmax.f32 %v4150_v16, %v4151_v2  ;;  %v4222_v63 = vmax.f32 %v4220_v25, %v4221_v35  ;;  %v4190_v19 = vmax.f32 %v4188_v54, %v4189_v7  ;;  %v11597_v1 = vmax.f32 %v2275_v31, %v11499_v22 }
 0x3cd   : > { %v11599_v61 = vmax.f32 %v4484_v15, %v4215_v48  ;;  %v4184_v4 = vrot.slane %v4183_v38, 2  ;;  %v5280_v33 = vmax.f32 %v4994_v0, 0.0  ;;  %v5600_v14 = vmax.f32 %v5598_v39, %v5599_v9  ;;  %v3049_v48 = vpop.f32.mrf.mxu1  ;;  %v9593_v0 = vpop.f32.mrf.mxu0 }
 0x3ce   : > { %v5606_v55 = vrot.slane %v5605_v28, 2  ;;  %v4191_v52 = vrot.slane %v4190_v19, 2  ;;  %v3168_v47 = vmax.f32 %v3058_v50, 0.0  ;;  %v11601_v29 = vmax.f32 %v4487_v34, %v4222_v63 }
 0x3cf   : > { %v4185_v23 = vmax.f32 %v4183_v38, %v4184_v4  ;;  %v5424_v42 = vcombine.high %v5280_v33, %v5280_v33  ;;  %v5568_v12 = vsel %vm1138_vm3, %v5280_v33, -inf  ;;  %v4489_v10 = vmax.f32 %v11435_v49, %v4145_v41 }
 0x3d0   : > { %v4492_v22 = vmax.f32 %v11437_v32, %v4152_v62  ;;  %v4192_v15 = vmax.f32 %v4190_v19, %v4191_v52  ;;  %v11609_v31 = vmul.f32 %v11599_v61, %v11189_v3  ;;  %v5569_v25 = vrot.slane %v5568_v12, 4 }
 0x3d1   : > { %v4186_v2 = vrot.slane %v4185_v23, 1  ;;  %v5575_v50 = vsel %vm1138_vm3, %v5424_v42, -inf  ;;  %v5601_v34 = vrot.slane %v5600_v14, 1  ;;  %v3312_v13 = vcombine.high %v3168_v47, %v3168_v47 }
 0x3d2   : > { %v4193_v38 = vrot.slane %v4192_v15, 1  ;;  %v5576_v39 = vrot.slane %v5575_v50, 4  ;;  %v11614_v54 = vmul.f32 %v11601_v29, %v11200_v37  ;;  %v11616_v49 = vmax.f32 %v5605_v28, %v5606_v55 }
 0x3d3   : > { %v5570_v32 = vmax.f32 %v5568_v12, %v5569_v25  ;;  %v4223_v52 = vsel %vm1138_vm3, %v3168_v47, -inf  ;;  %v4187_v35 = vmax.f32 %v4185_v23, %v4186_v2  ;;  %v4230_v51 = vsel %vm1138_vm3, %v3312_v13, -inf  ;;  %v4996_v13 = vpop.f32.mrf.mxu0 }
 0x3d4   : > { %v5577_v9 = vmax.f32 %v5575_v50, %v5576_v39  ;;  %v4224_v7 = vrot.slane %v4223_v52, 4  ;;  %v4231_v63 = vrot.slane %v4230_v51, 4  ;;  %v5005_v19 = vadd.f32 %v11481_v6, %v9593_v0 }
 0x3d5   : > { %v5571_v62 = vrot.slane %v5570_v32, 2  ;;  %v11622_v4 = vmax.f32 %v5600_v14, %v5601_v34  ;;  %v4194_v55 = vmax.f32 %v4192_v15, %v4193_v38  ;;  %v3050_v33 = vadd.f32 %v11481_v6, %v3049_v48 }
 0x3d6   : > { %v4225_v28 = vmax.f32 %v4223_v52, %v4224_v7  ;;  %v5608_v47 = vrot.slane %v11616_v49, 1  ;;  %v5578_v23 = vrot.slane %v5577_v9, 2  ;;  %v4232_v42 = vmax.f32 %v4230_v51, %v4231_v63 }
 0x3d7   : > { %v5283_v12 = vmax.f32 %v5005_v19, 0.0  ;;  %v4490_v2 = vmax.f32 %v4489_v10, %v4187_v35  ;;  %v5572_v25 = vmax.f32 %v5570_v32, %v5571_v62  ;;  %v3166_v39 = vmax.f32 %v3050_v33, 0.0 }
 0x3d8   : > { %v4226_v50 = vrot.slane %v4225_v28, 2  ;;  %v4233_v16 = vrot.slane %v4232_v42, 2  ;;  %v4997_v14 = vadd.f32 %v11481_v6, %v4996_v13  ;;  %v4493_v15 = vmax.f32 %v4492_v22, %v4194_v55 }
 0x3d9   : > { %v5427_v41 = vcombine.high %v5283_v12, %v5283_v12  ;;  %v5610_v0 = vsel %vm1138_vm3, %v5283_v12, -inf  ;;  %v3310_v52 = vcombine.high %v3166_v39, %v3166_v39  ;;  %v5579_v48 = vmax.f32 %v5577_v9, %v5578_v23  ;;  %v9578_v23 = vpop.f32.mrf.mxu1 }
 0x3da   : > { %v4227_v34 = vmax.f32 %v4225_v28, %v4226_v50  ;;  %v5611_v38 = vrot.slane %v5610_v0, 4  ;;  %v4234_v7 = vmax.f32 %v4232_v42, %v4233_v16  ;;  %v4195_v10 = vsel %vm1138_vm3, %v3166_v39, -inf }
 0x3db   : > { %v5617_v51 = vsel %vm1138_vm3, %v5427_v41, -inf  ;;  %v5573_v32 = vrot.slane %v5572_v25, 1  ;;  %v4196_v33 = vrot.slane %v4195_v10, 4  ;;  %v4202_v12 = vsel %vm1138_vm3, %v3310_v52, -inf }
 0x3dc   : > { %v4228_v35 = vrot.slane %v4227_v34, 1  ;;  %v5612_v62 = vmax.f32 %v5610_v0, %v5611_v38  ;;  %v5618_v63 = vrot.slane %v5617_v51, 4  ;;  %v4235_v19 = vrot.slane %v4234_v7, 1 }
 0x3dd   : > { %v5281_v37 = vmax.f32 %v4997_v14, 0.0  ;;  %v4203_v28 = vrot.slane %v4202_v12, 4  ;;  %v4197_v9 = vmax.f32 %v4195_v10, %v4196_v33  ;;  %v5580_v42 = vrot.slane %v5579_v48, 1 }
 0x3de   : > { %v4229_v13 = vmax.f32 %v4227_v34, %v4228_v35  ;;  %v5613_v22 = vrot.slane %v5612_v62, 2  ;;  %v5619_v55 = vmax.f32 %v5617_v51, %v5618_v63  ;;  %v4236_v50 = vmax.f32 %v4234_v7, %v4235_v19 }
 0x3df   : > { %v5425_v16 = vcombine.high %v5281_v37, %v5281_v37  ;;  %v5582_v41 = vsel %vm1138_vm3, %v5281_v37, -inf  ;;  %v4204_v0 = vmax.f32 %v4202_v12, %v4203_v28  ;;  %v4690_v38 = vrot.slane %v11614_v54, 5 }
 0x3e0   : > { %v4491_v39 = vmax.f32 %v4490_v2, %v4229_v13  ;;  %v5620_v3 = vrot.slane %v5619_v55, 2  ;;  %v5614_v45 = vmax.f32 %v5612_v62, %v5613_v22  ;;  %v4198_v17 = vrot.slane %v4197_v9, 2 }
 0x3e1   : > { %v5583_v52 = vrot.slane %v5582_v41, 4  ;;  %v4494_v14 = vmax.f32 %v4493_v15, %v4236_v50  ;;  %v5589_v51 = vsel %vm1138_vm3, %v5425_v16, -inf  ;;  %v3071_v7 = vadd.f32 %v11481_v6, %v9578_v23 }
 0x3e2   : > { %v4531_v34 = vmax.f32 %v11601_v29, %v4491_v39  ;;  %v11637_v10 = vmul.f32 %v4491_v39, %v11262_v21  ;;  %v4199_v37 = vmax.f32 %v4197_v9, %v4198_v17  ;;  %v4205_v35 = vrot.slane %v4204_v0, 2  ;;  %v9596_v9 = vpop.f32.mrf.mxu0 }
 0x3e3   : > { %v5584_v2 = vmax.f32 %v5582_v41, %v5583_v52  ;;  %v11640_v63 = vmax.f32 %v11616_v49, %v5608_v47  ;;  %v11642_v19 = vmax.f32 %v5572_v25, %v5573_v32  ;;  %v11644_v62 = vmax.f32 %v5579_v48, %v5580_v42  ;;  %v3062_v32 = vpop.f32.mrf.mxu1 }
 0x3e4   : > { %13908 = vst [vmem:[#allocation74_spill] sm:$0xff] %v11637_v10  ;;  %v5621_v15 = vmax.f32 %v5619_v55, %v5620_v3  ;;  %v5615_v33 = vrot.slane %v5614_v45, 1  ;;  %v4200_v29 = vrot.slane %v4199_v37, 1  ;;  %v4206_v12 = vmax.f32 %v4204_v0, %v4205_v35 }
 0x3e5   : > { %v5585_v13 = vrot.slane %v5584_v2, 2  ;;  %v11646_v22 = vmax.f32 %v4531_v34, %v4494_v14  ;;  %v11649_v28 = vmul.f32 %v4494_v14, %v11267_v18  ;;  %v5590_v17 = vrot.slane %v5589_v51, 4 }
 0x3e6   : > { %v3171_v50 = vmax.f32 %v3071_v7, 0.0  ;;  %v4201_v47 = vmax.f32 %v4199_v37, %v4200_v29  ;;  %v4207_v25 = vrot.slane %v4206_v12, 1  ;;  %v5018_v48 = vadd.f32 %v11481_v6, %v9596_v9 }
 0x3e7   : > { %13909 = vst [vmem:[#allocation75_spill] sm:$0xff] %v11646_v22  ;;  %13910 = vst [vmem:[#allocation76_spill] sm:$0xff] %v11649_v28  ;;  %v5622_v3 = vrot.slane %v5621_v15, 1  ;;  %v5591_v55 = vmax.f32 %v5589_v51, %v5590_v17  ;;  %v5586_v39 = vmax.f32 %v5584_v2, %v5585_v13  ;;  %v3063_v7 = vadd.f32 %v11481_v6, %v3062_v32 }
 0x3e8   : > { %v3315_v16 = vcombine.high %v3171_v50, %v3171_v50  ;;  %v4265_v41 = vsel %vm1138_vm3, %v3171_v50, -inf  ;;  %v4208_v23 = vmax.f32 %v4206_v12, %v4207_v25  ;;  %v4479_v42 = vmax.f32 %v11514_v56, %v4201_v47 }
 0x3e9   : > { %v4266_v0 = vrot.slane %v4265_v41, 4  ;;  %v5592_v52 = vrot.slane %v5591_v55, 2  ;;  %v5286_v34 = vmax.f32 %v5018_v48, 0.0  ;;  %v11658_v35 = vmax.f32 %v5614_v45, %v5615_v33 }
 0x3ea   : > { %v4272_v14 = vsel %vm1138_vm3, %v3315_v16, -inf  ;;  %v4482_v51 = vmax.f32 %v11519_v53, %v4208_v23  ;;  %v11661_v17 = vmax.f32 %v5621_v15, %v5622_v3  ;;  %v4596_v2 = vmul.f32 %v11556_v20, %v4479_v42 }
 0x3eb   : > { %v4267_v29 = vmax.f32 %v4265_v41, %v4266_v0  ;;  %v4273_v12 = vrot.slane %v4272_v14, 4  ;;  %v5430_v50 = vcombine.high %v5286_v34, %v5286_v34  ;;  %v5652_v56 = vsel %vm1138_vm3, %v5286_v34, -inf  ;;  %v5009_v0 = vpop.f32.mrf.mxu0 }
 0x3ec   : > { %v4597_v13 = vmul.f32 %v4482_v51, %v11288_v46  ;;  %v5587_v9 = vrot.slane %v5586_v39, 1  ;;  %v5653_v47 = vrot.slane %v5652_v56, 4  ;;  %v5593_v25 = vmax.f32 %v5591_v55, %v5592_v52 }
 0x3ed   : > { %v4274_v48 = vmax.f32 %v4272_v14, %v4273_v12  ;;  %v5659_v45 = vsel %vm1138_vm3, %v5430_v50, -inf  ;;  %v3169_v33 = vmax.f32 %v3063_v7, 0.0  ;;  %v4529_v32 = vmax.f32 %v4479_v42, %v4482_v51  ;;  %v9579_v50 = vpop.f32.mrf.mxu1 }
 0x3ee   : > { %v4686_v53 = vrot.slane %v4597_v13, 7  ;;  %v4268_v16 = vrot.slane %v4267_v29, 2  ;;  %v5654_v15 = vmax.f32 %v5652_v56, %v5653_v47  ;;  %v5660_v20 = vrot.slane %v5659_v45, 4 }
 0x3ef   : > { %v3313_v23 = vcombine.high %v3169_v33, %v3169_v33  ;;  %v4275_v55 = vrot.slane %v4274_v48, 2  ;;  %v4237_v14 = vsel %vm1138_vm3, %v3169_v33, -inf  ;;  %v11673_v7 = vmax.f32 %v5586_v39, %v5587_v9  ;;  %v9597_v9 = vpop.f32.mrf.mxu0 }
 0x3f0   : > { %v4687_v34 = vsel %vm2308_vm4, %v4686_v53, %v4596_v2  ;;  %v5655_v52 = vrot.slane %v5654_v15, 2  ;;  %v5594_v42 = vrot.slane %v5593_v25, 1  ;;  %v5661_v51 = vmax.f32 %v5659_v45, %v5660_v20 }
 0x3f1   : > { %v4238_v12 = vrot.slane %v4237_v14, 4  ;;  %v11676_v56 = vmax.f32 %v4529_v32, %v11599_v61  ;;  %v11678_v13 = vmax.f32 %v4267_v29, %v4268_v16  ;;  %v4244_v37 = vsel %vm1138_vm3, %v3313_v23, -inf }
 0x3f2   : > { %v5656_v47 = vmax.f32 %v5654_v15, %v5655_v52  ;;  %v13912_v2 = vrot.slane %v11609_v31, 6  ;;  %v5662_v49 = vrot.slane %v5661_v51, 2  ;;  %v4245_v39 = vrot.slane %v4244_v37, 4 }
 0x3f3   : > { %13911 = vst [vmem:[#allocation77_spill] sm:$0xff] %v11676_v56  ;;  %v4239_v33 = vmax.f32 %v4237_v14, %v4238_v12  ;;  %v11684_v41 = vmax.f32 %v4274_v48, %v4275_v55  ;;  %v5010_v45 = vadd.f32 %v11481_v6, %v5009_v0  ;;  %v3074_v61 = vadd.f32 %v11481_v6, %v9579_v50 }
 0x3f4   : > { %v4689_v53 = vsel %vm2311_vm5, %v13912_v2, %v4687_v34  ;;  %v5021_v29 = vadd.f32 %v11481_v6, %v9597_v9  ;;  %v5657_v32 = vrot.slane %v5656_v47, 1  ;;  %v5663_v16 = vmax.f32 %v5661_v51, %v5662_v49 }
 0x3f5   : > { %v4240_v15 = vrot.slane %v4239_v33, 2  ;;  %v4246_v20 = vmax.f32 %v4244_v37, %v4245_v39  ;;  %v11689_v23 = vmax.f32 %v5593_v25, %v5594_v42  ;;  %v5284_v31 = vmax.f32 %v5010_v45, 0.0  ;;  %v3065_v25 = vpop.f32.mrf.mxu1 }
 0x3f6   : > { %v3172_v34 = vmax.f32 %v3074_v61, 0.0  ;;  %v5287_v52 = vmax.f32 %v5021_v29, 0.0  ;;  %v4270_v14 = vrot.slane %v11678_v13, 1  ;;  %v5664_v12 = vrot.slane %v5663_v16, 1 }
 0x3f7   : > { %v11692_v48 = vmax.f32 %v4239_v33, %v4240_v15  ;;  %v4247_v55 = vrot.slane %v4246_v20, 2  ;;  %v11697_v0 = vsel %vm2314_vm6, %v4690_v38, %v4689_v53  ;;  %v5428_v50 = vcombine.high %v5284_v31, %v5284_v31 }
 0x3f8   : > { %13913 = vst [vmem:[#allocation78_spill] sm:$0xff] %v11697_v0  ;;  %v5624_v49 = vsel %vm1138_vm3, %v5284_v31, -inf  ;;  %v3316_v37 = vcombine.high %v3172_v34, %v3172_v34  ;;  %v4277_v42 = vrot.slane %v11684_v41, 1  ;;  %v5658_v51 = vmax.f32 %v5656_v47, %v5657_v32 }
 0x3f9   : > { %v4248_v2 = vmax.f32 %v4246_v20, %v4247_v55  ;;  %v5625_v39 = vrot.slane %v5624_v49, 4  ;;  %v5631_v9 = vsel %vm1138_vm3, %v5428_v50, -inf  ;;  %v4279_v33 = vsel %vm1138_vm3, %v3172_v34, -inf }
 0x3fa   : > { %v4286_v45 = vsel %vm1138_vm3, %v3316_v37, -inf  ;;  %v5431_v54 = vcombine.high %v5287_v52, %v5287_v52  ;;  %v5665_v61 = vmax.f32 %v5663_v16, %v5664_v12  ;;  %v4242_v38 = vrot.slane %v11692_v48, 1  ;;  %v5012_v16 = vpop.f32.mrf.mxu0 }
 0x3fb   : > { %v5626_v53 = vmax.f32 %v5624_v49, %v5625_v39  ;;  %v3066_v29 = vadd.f32 %v11481_v6, %v3065_v25  ;;  %v5632_v15 = vrot.slane %v5631_v9, 4  ;;  %v4280_v31 = vrot.slane %v4279_v33, 4 }
 0x3fc   : > { %v4287_v3 = vrot.slane %v4286_v45, 4  ;;  %v5666_v47 = vsel %vm1138_vm3, %v5287_v52, -inf  ;;  %v4249_v32 = vrot.slane %v4248_v2, 1  ;;  %v5673_v50 = vsel %vm1138_vm3, %v5431_v54, -inf }
 0x3fd   : > { %v5627_v20 = vrot.slane %v5626_v53, 2  ;;  %v5667_v55 = vrot.slane %v5666_v47, 4  ;;  %v5633_v34 = vmax.f32 %v5631_v9, %v5632_v15  ;;  %v4281_v46 = vmax.f32 %v4279_v33, %v4280_v31 }
 0x3fe   : > { %v4288_v37 = vmax.f32 %v4286_v45, %v4287_v3  ;;  %v5674_v18 = vrot.slane %v5673_v50, 4  ;;  %v3170_v49 = vmax.f32 %v3066_v29, 0.0  ;;  %v5013_v25 = vadd.f32 %v11481_v6, %v5012_v16 }
 0x3ff   : > { %v5628_v12 = vmax.f32 %v5626_v53, %v5627_v20  ;;  %v5668_v21 = vmax.f32 %v5666_v47, %v5667_v55  ;;  %v5634_v39 = vrot.slane %v5633_v34, 2  ;;  %v4282_v28 = vrot.slane %v4281_v46, 2 }
 0x400   : > { %v4289_v10 = vrot.slane %v4288_v37, 2  ;;  %v5675_v0 = vmax.f32 %v5673_v50, %v5674_v18  ;;  %v3314_v56 = vcombine.high %v3170_v49, %v3170_v49  ;;  %v4251_v24 = vsel %vm1138_vm3, %v3170_v49, -inf }
 0x401   : > { %v5629_v52 = vrot.slane %v5628_v12, 1  ;;  %v5669_v22 = vrot.slane %v5668_v21, 2  ;;  %v5635_v54 = vmax.f32 %v5633_v34, %v5634_v39  ;;  %v4283_v9 = vmax.f32 %v4281_v46, %v4282_v28  ;;  %v9582_v28 = vpop.f32.mrf.mxu1 }
 0x402   : > { %v4290_v33 = vmax.f32 %v4288_v37, %v4289_v10  ;;  %v5676_v3 = vrot.slane %v5675_v0, 2  ;;  %v4252_v53 = vrot.slane %v4251_v24, 4  ;;  %v4258_v29 = vsel %vm1138_vm3, %v3314_v56, -inf }
 0x403   : > { %v5630_v45 = vmax.f32 %v5628_v12, %v5629_v52  ;;  %v5670_v15 = vmax.f32 %v5668_v21, %v5669_v22  ;;  %v5636_v31 = vrot.slane %v5635_v54, 1  ;;  %v4284_v47 = vrot.slane %v4283_v9, 1 }
 0x404   : > { %v4291_v20 = vrot.slane %v4290_v33, 1  ;;  %v5677_v55 = vmax.f32 %v5675_v0, %v5676_v3  ;;  %v11712_v18 = vmax.f32 %v11678_v13, %v4270_v14  ;;  %v4253_v16 = vmax.f32 %v4251_v24, %v4252_v53 }
 0x405   : > { %v5671_v50 = vrot.slane %v5670_v15, 1  ;;  %v4259_v43 = vrot.slane %v4258_v29, 4  ;;  %v11715_v34 = vmax.f32 %v11684_v41, %v4277_v42  ;;  %v13914_v46 = vmax.f32 %v11642_v19, %v11658_v35 }
 0x406   : > { %v11722_v10 = vmax.f32 %v5635_v54, %v5636_v31  ;;  %v11724_v22 = vmax.f32 %v4283_v9, %v4284_v47  ;;  %v13915_v56 = vmax.f32 %v11644_v62, %v11661_v17  ;;  %v11731_v24 = vmax.f32 %v4290_v33, %v4291_v20  ;;  %v9600_v17 = vpop.f32.mrf.mxu0 }
 0x407   : > { %v11720_v21 = vmax.f32 %v13914_v46, %v5658_v51  ;;  %v5678_v14 = vrot.slane %v5677_v55, 1  ;;  %v5285_v41 = vmax.f32 %v5013_v25, 0.0  ;;  %v11734_v0 = vmax.f32 %v11692_v48, %v4242_v38  ;;  %v3078_v38 = vpop.f32.mrf.mxu1 }
 0x408   : > { %v11729_v13 = vmax.f32 %v13915_v56, %v5665_v61  ;;  %v11736_v19 = vmax.f32 %v4248_v2, %v4249_v32  ;;  %v6582_v35 = vmax.f32 %v11673_v7, %v5630_v45  ;;  %v5672_v42 = vmax.f32 %v5670_v15, %v5671_v50  ;;  %v5025_v47 = vpop.f32.mrf.mxu0 }
 0x409   : > { %v6585_v51 = vmax.f32 %v11689_v23, %v11722_v10  ;;  %v4254_v37 = vrot.slane %v4253_v16, 2  ;;  %v4260_v12 = vmax.f32 %v4258_v29, %v4259_v43  ;;  %v5429_v62 = vcombine.high %v5285_v41, %v5285_v41 }
 0x40a   : > { %v5638_v49 = vsel %vm1138_vm3, %v5285_v41, -inf  ;;  %v3087_v48 = vadd.f32 %v11481_v6, %v9582_v28  ;;  %v5034_v2 = vadd.f32 %v11481_v6, %v9600_v17  ;;  %v5679_v32 = vmax.f32 %v5677_v55, %v5678_v14 }
 0x40b   : > { %v5639_v25 = vrot.slane %v5638_v49, 4  ;;  %v5645_v23 = vsel %vm1138_vm3, %v5429_v62, -inf  ;;  %v11749_v43 = vmax.f32 %v6582_v35, %v5672_v42  ;;  %v4255_v9 = vmax.f32 %v4253_v16, %v4254_v37 }
 0x40c   : > { %v5646_v39 = vrot.slane %v5645_v23, 4  ;;  %v3175_v52 = vmax.f32 %v3087_v48, 0.0  ;;  %v5290_v54 = vmax.f32 %v5034_v2, 0.0  ;;  %v4261_v33 = vrot.slane %v4260_v12, 2 }
 0x40d   : > { %v5640_v3 = vmax.f32 %v5638_v49, %v5639_v25  ;;  %v3079_v45 = vadd.f32 %v11481_v6, %v3078_v38  ;;  %v5026_v46 = vadd.f32 %v11481_v6, %v5025_v47  ;;  %v4256_v37 = vrot.slane %v4255_v9, 1 }
 0x40e   : > { %v5647_v15 = vmax.f32 %v5645_v23, %v5646_v39  ;;  %v3319_v53 = vcombine.high %v3175_v52, %v3175_v52  ;;  %v4321_v29 = vsel %vm1138_vm3, %v3175_v52, -inf  ;;  %v5434_v31 = vcombine.high %v5290_v54, %v5290_v54 }
 0x40f   : > { %v5641_v20 = vrot.slane %v5640_v3, 2  ;;  %v4322_v55 = vrot.slane %v4321_v29, 4  ;;  %v5708_v50 = vsel %vm1138_vm3, %v5290_v54, -inf  ;;  %v3173_v49 = vmax.f32 %v3079_v45, 0.0 }
 0x410   : > { %v5648_v10 = vrot.slane %v5647_v15, 2  ;;  %v4328_v28 = vsel %vm1138_vm3, %v3319_v53, -inf  ;;  %v5709_v16 = vrot.slane %v5708_v50, 4  ;;  %v5715_v56 = vsel %vm1138_vm3, %v5434_v31, -inf }
 0x411   : > { %v5642_v14 = vmax.f32 %v5640_v3, %v5641_v20  ;;  %v4323_v41 = vmax.f32 %v4321_v29, %v4322_v55  ;;  %v4329_v35 = vrot.slane %v4328_v28, 4  ;;  %v5716_v42 = vrot.slane %v5715_v56, 4 }
 0x412   : > { %v5649_v62 = vmax.f32 %v5647_v15, %v5648_v10  ;;  %v5710_v17 = vmax.f32 %v5708_v50, %v5709_v16  ;;  %v4262_v48 = vmax.f32 %v4260_v12, %v4261_v33  ;;  %v3317_v6 = vcombine.high %v3173_v49, %v3173_v49 }
 0x413   : > { %v4324_v2 = vrot.slane %v4323_v41, 2  ;;  %v4330_v38 = vmax.f32 %v4328_v28, %v4329_v35  ;;  %v5717_v25 = vmax.f32 %v5715_v56, %v5716_v42  ;;  %v4293_v39 = vsel %vm1138_vm3, %v3173_v49, -inf }
 0x414   : > { %v5711_v23 = vrot.slane %v5710_v17, 2  ;;  %v5288_v52 = vmax.f32 %v5026_v46, 0.0  ;;  %v5643_v54 = vrot.slane %v5642_v14, 1  ;;  %v5650_v53 = vrot.slane %v5649_v62, 1 }
 0x415   : > { %v4331_v31 = vrot.slane %v4330_v38, 2  ;;  %v5718_v3 = vrot.slane %v5717_v25, 2  ;;  %v6586_v29 = vmax.f32 %v6585_v51, %v5679_v32  ;;  %v4294_v20 = vrot.slane %v4293_v39, 4 }
 0x416   : > { %v5712_v47 = vmax.f32 %v5710_v17, %v5711_v23  ;;  %v4300_v15 = vsel %vm1138_vm3, %v3317_v6, -inf  ;;  %v4263_v55 = vrot.slane %v4262_v48, 1  ;;  %v4325_v45 = vmax.f32 %v4323_v41, %v4324_v2 }
 0x417   : > { %v4332_v12 = vmax.f32 %v4330_v38, %v4331_v31  ;;  %v5719_v33 = vmax.f32 %v5717_v25, %v5718_v3  ;;  %v11759_v50 = vmax.f32 %v4255_v9, %v4256_v37  ;;  %v4295_v28 = vmax.f32 %v4293_v39, %v4294_v20  ;;  %v9583_v37 = vpop.f32.mrf.mxu1  ;;  %v11779_v3 = vld [vmem:[%s13696_s2] ss:$0 sm:$0xff]  ;;  %v9601_v20 = vpop.f32.mrf.mxu0 }
 0x418   : > { %v5713_v10 = vrot.slane %v5712_v47, 1  ;;  %v4301_v16 = vrot.slane %v4300_v15, 4  ;;  %v11761_v56 = vmax.f32 %v5642_v14, %v5643_v54  ;;  %v11763_v46 = vmax.f32 %v5649_v62, %v5650_v53 }
 0x419   : > { %v5720_v35 = vrot.slane %v5719_v33, 1  ;;  %v5432_v42 = vcombine.high %v5288_v52, %v5288_v52  ;;  %v4296_v32 = vrot.slane %v4295_v28, 2  ;;  %v5680_v49 = vsel %vm1138_vm3, %v5288_v52, -inf }
 0x41a   : > { %v5714_v51 = vmax.f32 %v5712_v47, %v5713_v10  ;;  %v4302_v17 = vmax.f32 %v4300_v15, %v4301_v16  ;;  %v11766_v23 = vmax.f32 %v4262_v48, %v4263_v55  ;;  %v4326_v41 = vrot.slane %v4325_v45, 1 }
 0x41b   : > { %v4333_v2 = vrot.slane %v4332_v12, 1  ;;  %v5681_v9 = vrot.slane %v5680_v49, 4  ;;  %v5721_v38 = vmax.f32 %v5719_v33, %v5720_v35  ;;  %v4297_v25 = vmax.f32 %v4295_v28, %v4296_v32 }
 0x41c   : > { %v4303_v6 = vrot.slane %v4302_v17, 2  ;;  %v5687_v14 = vsel %vm1138_vm3, %v5432_v42, -inf  ;;  %v11774_v48 = vmax.f32 %v11749_v43, %v5714_v51  ;;  %v3090_v47 = vadd.f32 %v11779_v3, %v9583_v37 }
 0x41d   : > { %v5682_v54 = vmax.f32 %v5680_v49, %v5681_v9  ;;  %v5688_v53 = vrot.slane %v5687_v14, 4  ;;  %v4298_v52 = vrot.slane %v4297_v25, 1  ;;  %v11782_v15 = vmax.f32 %v4325_v45, %v4326_v41  ;;  %v3081_v49 = vpop.f32.mrf.mxu1 }
 0x41e   : > { %v4304_v31 = vmax.f32 %v4302_v17, %v4303_v6  ;;  %v5037_v10 = vadd.f32 %v11779_v3, %v9601_v20  ;;  %v11785_v28 = vmax.f32 %v4332_v12, %v4333_v2  ;;  %v11787_v43 = vmax.f32 %v6586_v29, %v5721_v38  ;;  %v5028_v20 = vpop.f32.mrf.mxu0 }
 0x41f   : > { %v5683_v55 = vrot.slane %v5682_v54, 2  ;;  %v5689_v33 = vmax.f32 %v5687_v14, %v5688_v53  ;;  %v3176_v35 = vmax.f32 %v3090_v47, 0.0  ;;  %v11789_v42 = vmax.f32 %v4297_v25, %v4298_v52 }
 0x420   : > { %v4305_v16 = vrot.slane %v4304_v31, 1  ;;  %v5291_v17 = vmax.f32 %v5037_v10, 0.0  ;;  %v11793_v45 = vmul.f32 %v11774_v48, %v10110_v60  ;;  %v11800_v25 = vmul.f32 %v11787_v43, %v10113_v57 }
 0x421   : > { %v5684_v51 = vmax.f32 %v5682_v54, %v5683_v55  ;;  %v5690_v32 = vrot.slane %v5689_v33, 2  ;;  %v3320_v9 = vcombine.high %v3176_v35, %v3176_v35  ;;  %v4335_v12 = vsel %vm1138_vm3, %v3176_v35, -inf }
 0x422   : > { %v11795_v41 = vmax.f32 %v4304_v31, %v4305_v16  ;;  %v4336_v37 = vrot.slane %v4335_v12, 4  ;;  %v5435_v38 = vcombine.high %v5291_v17, %v5291_v17  ;;  %v5722_v14 = vsel %vm1138_vm3, %v5291_v17, -inf }
 0x423   : > { %v5685_v2 = vrot.slane %v5684_v51, 1  ;;  %v5691_v29 = vmax.f32 %v5689_v33, %v5690_v32  ;;  %v4342_v6 = vsel %vm1138_vm3, %v3320_v9, -inf  ;;  %v3082_v54 = vadd.f32 %v11779_v3, %v3081_v49 }
 0x424   : > { %v4337_v31 = vmax.f32 %v4335_v12, %v4336_v37  ;;  %v4343_v47 = vrot.slane %v4342_v6, 4  ;;  %v5723_v55 = vrot.slane %v5722_v14, 4  ;;  %v5729_v33 = vsel %vm1138_vm3, %v5435_v38, -inf }
 0x425   : > { %v5692_v52 = vrot.slane %v5691_v29, 1  ;;  %v3174_v10 = vmax.f32 %v3082_v54, 0.0  ;;  %v5029_v16 = vadd.f32 %v11779_v3, %v5028_v20  ;;  %v4504_v35 = vmax.f32 %v11766_v23, %v11795_v41 }
 0x426   : > { %v5686_v32 = vmax.f32 %v5684_v51, %v5685_v2  ;;  %v4338_v17 = vrot.slane %v4337_v31, 2  ;;  %v4344_v9 = vmax.f32 %v4342_v6, %v4343_v47  ;;  %v5724_v49 = vmax.f32 %v5722_v14, %v5723_v55 }
 0x427   : > { %v5730_v7 = vrot.slane %v5729_v33, 4  ;;  %v3318_v61 = vcombine.high %v3174_v10, %v3174_v10  ;;  %v4307_v53 = vsel %vm1138_vm3, %v3174_v10, -inf  ;;  %v5693_v12 = vmax.f32 %v5691_v29, %v5692_v52 }
 0x428   : > { %v4339_v37 = vmax.f32 %v4337_v31, %v4338_v17  ;;  %v4345_v39 = vrot.slane %v4344_v9, 2  ;;  %v4308_v62 = vrot.slane %v4307_v53, 4  ;;  %v5725_v36 = vrot.slane %v5724_v49, 2 }
 0x429   : > { %v5731_v38 = vmax.f32 %v5729_v33, %v5730_v7  ;;  %v4314_v54 = vsel %vm1138_vm3, %v3318_v61, -inf  ;;  %v5289_v20 = vmax.f32 %v5029_v16, 0.0  ;;  %v13916_v29 = vmax.f32 %v11622_v4, %v11761_v56 }
 0x42a   : > { %v4340_v57 = vrot.slane %v4339_v37, 1  ;;  %v4346_v60 = vmax.f32 %v4344_v9, %v4345_v39  ;;  %v4309_v23 = vmax.f32 %v4307_v53, %v4308_v62  ;;  %v4315_v51 = vrot.slane %v4314_v54, 4  ;;  %v9586_v39 = vpop.f32.mrf.mxu1 }
 0x42b   : > { %v5726_v41 = vmax.f32 %v5724_v49, %v5725_v36  ;;  %v5732_v2 = vrot.slane %v5731_v38, 2  ;;  %v5433_v6 = vcombine.high %v5289_v20, %v5289_v20  ;;  %v5694_v14 = vsel %vm1138_vm3, %v5289_v20, -inf }
 0x42c   : > { %v6589_v52 = vmax.f32 %v13916_v29, %v5686_v32  ;;  %v4347_v31 = vrot.slane %v4346_v60, 1  ;;  %v4310_v47 = vrot.slane %v4309_v23, 2  ;;  %v4316_v55 = vmax.f32 %v4314_v54, %v4315_v51 }
 0x42d   : > { %v5727_v7 = vrot.slane %v5726_v41, 1  ;;  %v5733_v33 = vmax.f32 %v5731_v38, %v5732_v2  ;;  %v5695_v61 = vrot.slane %v5694_v14, 4  ;;  %v5701_v10 = vsel %vm1138_vm3, %v5433_v6, -inf }
 0x42e   : > { %v13917_v36 = vmax.f32 %v11640_v63, %v11763_v46  ;;  %v4341_v53 = vmax.f32 %v4339_v37, %v4340_v57  ;;  %v4311_v16 = vmax.f32 %v4309_v23, %v4310_v47  ;;  %v4317_v17 = vrot.slane %v4316_v55, 2 }
 0x42f   : > { %v5728_v9 = vmax.f32 %v5726_v41, %v5727_v7  ;;  %v5734_v49 = vrot.slane %v5733_v33, 1  ;;  %v5696_v4 = vmax.f32 %v5694_v14, %v5695_v61  ;;  %v5702_v56 = vrot.slane %v5701_v10, 4 }
 0x430   : > { %v6592_v62 = vmax.f32 %v13917_v36, %v5693_v12  ;;  %v4348_v32 = vmax.f32 %v4346_v60, %v4347_v31  ;;  %v4312_v20 = vrot.slane %v4311_v16, 1  ;;  %v4318_v54 = vmax.f32 %v4316_v55, %v4317_v17 }
 0x431   : > { %v3103_v38 = vadd.f32 %v11779_v3, %v9586_v39  ;;  %v5735_v51 = vmax.f32 %v5733_v33, %v5734_v49  ;;  %v6590_v2 = vmax.f32 %v6589_v52, %v5728_v9  ;;  %v5697_v6 = vrot.slane %v5696_v4, 2  ;;  %v3094_v33 = vpop.f32.mrf.mxu1 }
 0x432   : > { %v5703_v29 = vmax.f32 %v5701_v10, %v5702_v56  ;;  %v13918_v63 = vmax.f32 %v11734_v0, %v11724_v22  ;;  %v13919_v46 = vmax.f32 %v11736_v19, %v11731_v24  ;;  %v6817_v60 = vrot.slane %v11793_v45, 6  ;;  %v9604_v0 = vpop.f32.mrf.mxu0 }
 0x433   : > { %v3179_v37 = vmax.f32 %v3103_v38, 0.0  ;;  %v6819_v23 = vrot.slane %v11800_v25, 5  ;;  %v13920_v41 = vmax.f32 %v11759_v50, %v11789_v42  ;;  %v4319_v52 = vrot.slane %v4318_v54, 1 }
 0x434   : > { %v11826_v57 = vmax.f32 %v13918_v63, %v11782_v15  ;;  %v11832_v12 = vmax.f32 %v13919_v46, %v11785_v28  ;;  %v5698_v22 = vmax.f32 %v5696_v4, %v5697_v6  ;;  %v11841_v15 = vmax.f32 %v4311_v16, %v4312_v20 }
 0x435   : > { %v11839_v14 = vmax.f32 %v13920_v41, %v4341_v53  ;;  %v5704_v31 = vrot.slane %v5703_v29, 2  ;;  %v3323_v47 = vcombine.high %v3179_v37, %v3179_v37  ;;  %v5050_v24 = vadd.f32 %v11779_v3, %v9604_v0 }
 0x436   : > { %v11844_v19 = vmax.f32 %v4504_v35, %v4348_v32  ;;  %v6593_v28 = vmax.f32 %v6592_v62, %v5735_v51  ;;  %v6686_v55 = vmax.f32 %v11787_v43, %v6590_v2  ;;  %v5699_v7 = vrot.slane %v5698_v22, 1  ;;  %v5041_v51 = vpop.f32.mrf.mxu0 }
 0x437   : > { %v11848_v50 = vmul.f32 %v6590_v2, %v10116_v11  ;;  %v5705_v42 = vmax.f32 %v5703_v29, %v5704_v31  ;;  %v4377_v61 = vsel %vm1138_vm3, %v3179_v37, -inf  ;;  %v4384_v10 = vsel %vm1138_vm3, %v3323_v47, -inf  ;;  %v9770_v47 = vld [vmem:[%s13699_s5] sm:$0xff] }
 0x438   : > { %v11852_v39 = vmax.f32 %v4318_v54, %v4319_v52  ;;  %v5700_v36 = vmax.f32 %v5698_v22, %v5699_v7  ;;  %v4378_v53 = vrot.slane %v4377_v61, 4  ;;  %v4385_v16 = vrot.slane %v4384_v10, 4 }
 0x439   : > { %v4507_v35 = vmax.f32 %v11712_v18, %v11841_v15  ;;  %v5706_v62 = vrot.slane %v5705_v42, 1  ;;  %v5294_v43 = vmax.f32 %v5050_v24, 0.0  ;;  %v3095_v17 = vadd.f32 %v11779_v3, %v3094_v33 }
 0x43a   : > { %v11857_v9 = vmax.f32 %v6686_v55, %v6593_v28  ;;  %v6578_v49 = vmax.f32 %v11720_v21, %v5700_v36  ;;  %v4379_v4 = vmax.f32 %v4377_v61, %v4378_v53  ;;  %v4386_v56 = vmax.f32 %v4384_v10, %v4385_v16  ;;  %v13922_v36 = vld [vmem:[#allocation5_spill] sm:$0xff] }
 0x43b   : > { %v5707_v32 = vmax.f32 %v5705_v42, %v5706_v62  ;;  %v5438_v20 = vcombine.high %v5294_v43, %v5294_v43  ;;  %v5764_v54 = vsel %vm1138_vm3, %v5294_v43, -inf  ;;  %v3177_v38 = vmax.f32 %v3095_v17, 0.0  ;;  %v9587_v17 = vpop.f32.mrf.mxu1 }
 0x43c   : > { %13921 = vst [vmem:[#allocation79_spill] sm:$0xff] %v11857_v9  ;;  %v4380_v2 = vrot.slane %v4379_v4, 2  ;;  %v4387_v6 = vrot.slane %v4386_v56, 2  ;;  %v5765_v29 = vrot.slane %v5764_v54, 4  ;;  %v5042_v63 = vadd.f32 %v11779_v3, %v5041_v51 }
 0x43d   : > { %v6581_v46 = vmax.f32 %v11729_v13, %v5707_v32  ;;  %v5771_v37 = vsel %vm1138_vm3, %v5438_v20, -inf  ;;  %v3321_v41 = vcombine.high %v3177_v38, %v3177_v38  ;;  %v4349_v21 = vsel %vm1138_vm3, %v3177_v38, -inf }
 0x43e   : > { %v4381_v52 = vmax.f32 %v4379_v4, %v4380_v2  ;;  %v4388_v22 = vmax.f32 %v4386_v56, %v4387_v6  ;;  %v5766_v0 = vmax.f32 %v5764_v54, %v5765_v29  ;;  %v5772_v31 = vrot.slane %v5771_v37, 4 }
 0x43f   : > { %v6743_v24 = vmul.f32 %v9770_v47, %v6578_v49  ;;  %v6744_v55 = vmul.f32 %v6581_v46, %v10128_v26  ;;  %v4350_v7 = vrot.slane %v4349_v21, 4  ;;  %v4356_v33 = vsel %vm1138_vm3, %v3321_v41, -inf }
 0x440   : > { %v4382_v13 = vrot.slane %v4381_v52, 1  ;;  %v4389_v42 = vrot.slane %v4388_v22, 1  ;;  %v5767_v61 = vrot.slane %v5766_v0, 2  ;;  %v5773_v10 = vmax.f32 %v5771_v37, %v5772_v31 }
 0x441   : > { %v11871_v53 = vmul.f32 %v6593_v28, %v13922_v36  ;;  %v6815_v16 = vrot.slane %v6744_v55, 7  ;;  %v4351_v62 = vmax.f32 %v4349_v21, %v4350_v7  ;;  %v4357_v43 = vrot.slane %v4356_v33, 4 }
 0x442   : > { %v6684_v4 = vmax.f32 %v6578_v49, %v6581_v46  ;;  %v4383_v56 = vmax.f32 %v4381_v52, %v4382_v13  ;;  %v4390_v32 = vmax.f32 %v4388_v22, %v4389_v42  ;;  %v5768_v20 = vmax.f32 %v5766_v0, %v5767_v61  ;;  %v3097_v13 = vpop.f32.mrf.mxu1 }
 0x443   : > { %v6816_v54 = vsel %vm2308_vm4, %v6815_v16, %v6743_v24  ;;  %v4352_v38 = vrot.slane %v4351_v62, 2  ;;  %v4358_v51 = vmax.f32 %v4356_v33, %v4357_v43  ;;  %v5292_v2 = vmax.f32 %v5042_v63, 0.0  ;;  %v9605_v16 = vpop.f32.mrf.mxu0 }
 0x444   : > { %v4510_v29 = vmax.f32 %v11715_v34, %v11852_v39  ;;  %v5774_v28 = vrot.slane %v5773_v10, 2  ;;  %v3106_v37 = vadd.f32 %v11779_v3, %v9587_v17  ;;  %v6818_v49 = vsel %vm2311_vm5, %v6817_v60, %v6816_v54 }
 0x445   : > { %v11882_v46 = vmax.f32 %v11839_v14, %v4383_v56  ;;  %v4353_v41 = vmax.f32 %v4351_v62, %v4352_v38  ;;  %v4359_v21 = vrot.slane %v4358_v51, 2  ;;  %v11886_v63 = vmax.f32 %v6684_v4, %v11774_v48  ;;  %v9771_v48 = vld [vmem:[%s13699_s5 + $0x20] sm:$0xf] }
 0x446   : > { %v11889_v22 = vmax.f32 %v11844_v19, %v4390_v32  ;;  %v5436_v34 = vcombine.high %v5292_v2, %v5292_v2  ;;  %v5769_v39 = vrot.slane %v5768_v20, 1  ;;  %v5736_v45 = vsel %vm1138_vm3, %v5292_v2, -inf }
 0x447   : > { %13923 = vst [vmem:[#allocation5_spill] sm:$0xff] %v11886_v63  ;;  %v4354_v0 = vrot.slane %v4353_v41, 1  ;;  %v4360_v31 = vmax.f32 %v4358_v51, %v4359_v21  ;;  %v11895_v60 = vsel %vm2314_vm6, %v6819_v23, %v6818_v49  ;;  %v5737_v14 = vrot.slane %v5736_v45, 4 }
 0x448   : > { %v5743_v47 = vsel %vm1138_vm3, %v5436_v34, -inf  ;;  %v3180_v24 = vmax.f32 %v3106_v37, 0.0  ;;  %v11902_v19 = vmul.f32 %v9771_v48, %v11882_v46  ;;  %v11904_v55 = vmax.f32 %v5773_v10, %v5774_v28  ;;  %v5044_v34 = vpop.f32.mrf.mxu0 }
 0x449   : > { %v4361_v7 = vrot.slane %v4360_v31, 1  ;;  %v5744_v33 = vrot.slane %v5743_v47, 4  ;;  %v11908_v25 = vmul.f32 %v11889_v22, %v11469_v5  ;;  %v5738_v23 = vmax.f32 %v5736_v45, %v5737_v14 }
 0x44a   : > { %v3324_v42 = vcombine.high %v3180_v24, %v3180_v24  ;;  %v4391_v61 = vsel %vm1138_vm3, %v3180_v24, -inf  ;;  %v4355_v62 = vmax.f32 %v4353_v41, %v4354_v0  ;;  %v5053_v32 = vadd.f32 %v11779_v3, %v9605_v16  ;;  %v9608_v15 = vpop.f32.mrf.mxu0 }
 0x44b   : > { %v4362_v43 = vmax.f32 %v4360_v31, %v4361_v7  ;;  %v5745_v17 = vmax.f32 %v5743_v47, %v5744_v33  ;;  %v4392_v4 = vrot.slane %v4391_v61, 4  ;;  %v5739_v56 = vrot.slane %v5738_v23, 2 }
 0x44c   : > { %v4398_v10 = vsel %vm1138_vm3, %v3324_v42, -inf  ;;  %v3098_v54 = vadd.f32 %v11779_v3, %v3097_v13  ;;  %v11914_v38 = vmax.f32 %v5768_v20, %v5769_v39  ;;  %v5776_v51 = vrot.slane %v11904_v55, 1 }
 0x44d   : > { %v4393_v2 = vmax.f32 %v4391_v61, %v4392_v4  ;;  %v4399_v28 = vrot.slane %v4398_v10, 4  ;;  %v4700_v37 = vrot.slane %v11908_v25, 7  ;;  %v5746_v49 = vrot.slane %v5745_v17, 2 }
 0x44e   : > { %v5295_v41 = vmax.f32 %v5053_v32, 0.0  ;;  %v3178_v21 = vmax.f32 %v3098_v54, 0.0  ;;  %v4508_v0 = vmax.f32 %v4507_v35, %v4355_v62  ;;  %v4511_v31 = vmax.f32 %v4510_v29, %v4362_v43 }
 0x44f   : > { %v4394_v45 = vrot.slane %v4393_v2, 2  ;;  %v4400_v14 = vmax.f32 %v4398_v10, %v4399_v28  ;;  %v5740_v47 = vmax.f32 %v5738_v23, %v5739_v56  ;;  %v5045_v13 = vadd.f32 %v11779_v3, %v5044_v34 }
 0x450   : > { %v5439_v20 = vcombine.high %v5295_v41, %v5295_v41  ;;  %v5778_v39 = vsel %vm1138_vm3, %v5295_v41, -inf  ;;  %v3322_v24 = vcombine.high %v3178_v21, %v3178_v21  ;;  %v5747_v25 = vmax.f32 %v5745_v17, %v5746_v49 }
 0x451   : > { %v4395_v48 = vmax.f32 %v4393_v2, %v4394_v45  ;;  %v4401_v7 = vrot.slane %v4400_v14, 2  ;;  %v5779_v33 = vrot.slane %v5778_v39, 4  ;;  %v4363_v61 = vsel %vm1138_vm3, %v3178_v21, -inf }
 0x452   : > { %v5785_v42 = vsel %vm1138_vm3, %v5439_v20, -inf  ;;  %v4370_v18 = vsel %vm1138_vm3, %v3322_v24, -inf  ;;  %v5066_v16 = vadd.f32 %v11779_v3, %v9608_v15  ;;  %v5741_v62 = vrot.slane %v5740_v47, 1 }
 0x453   : > { %v4396_v35 = vrot.slane %v4395_v48, 1  ;;  %v4402_v29 = vmax.f32 %v4400_v14, %v4401_v7  ;;  %v5780_v23 = vmax.f32 %v5778_v39, %v5779_v33  ;;  %v5786_v43 = vrot.slane %v5785_v42, 4 }
 0x454   : > { %v4364_v4 = vrot.slane %v4363_v61, 4  ;;  %v4371_v56 = vrot.slane %v4370_v18, 4  ;;  %v5293_v17 = vmax.f32 %v5045_v13, 0.0  ;;  %v5748_v2 = vrot.slane %v5747_v25, 1 }
 0x455   : > { %v4397_v10 = vmax.f32 %v4395_v48, %v4396_v35  ;;  %v4403_v32 = vrot.slane %v4402_v29, 1  ;;  %v5781_v54 = vrot.slane %v5780_v23, 2  ;;  %v5787_v28 = vmax.f32 %v5785_v42, %v5786_v43 }
 0x456   : > { %v4365_v49 = vmax.f32 %v4363_v61, %v4364_v4  ;;  %v4372_v41 = vmax.f32 %v4370_v18, %v4371_v56  ;;  %v5750_v14 = vsel %vm1138_vm3, %v5293_v17, -inf  ;;  %v5437_v52 = vcombine.high %v5293_v17, %v5293_v17 }
 0x457   : > { %v4404_v21 = vmax.f32 %v4402_v29, %v4403_v32  ;;  %v4509_v34 = vmax.f32 %v4508_v0, %v4397_v10  ;;  %v5782_v45 = vmax.f32 %v5780_v23, %v5781_v54  ;;  %v5788_v20 = vrot.slane %v5787_v28, 2 }
 0x458   : > { %v4366_v39 = vrot.slane %v4365_v49, 2  ;;  %v4373_v24 = vrot.slane %v4372_v41, 2  ;;  %v5751_v7 = vrot.slane %v5750_v14, 4  ;;  %v5298_v48 = vmax.f32 %v5066_v16, 0.0  ;;  %v9666_v16 = vpop.f32.mrf.mxu1 }
 0x459   : > { %v4512_v33 = vmax.f32 %v4511_v31, %v4404_v21  ;;  %v5783_v15 = vrot.slane %v5782_v45, 1  ;;  %v5789_v35 = vmax.f32 %v5787_v28, %v5788_v20  ;;  %v11930_v42 = vsel %vm2308_vm4, %v4700_v37, %v11902_v19  ;;  %v5057_v20 = vpop.f32.mrf.mxu0 }
 0x45a   : > { %v4367_v6 = vmax.f32 %v4365_v49, %v4366_v39  ;;  %v4374_v13 = vmax.f32 %v4372_v41, %v4373_v24  ;;  %v5752_v9 = vmax.f32 %v5750_v14, %v5751_v7  ;;  %13924 = vst [vmem:[#allocation80_spill] sm:$0xff] %v11930_v42  ;;  %v11933_v0 = vmax.f32 %v11904_v55, %v5776_v51 }
 0x45b   : > { %v11935_v61 = vmax.f32 %v5740_v47, %v5741_v62  ;;  %v4535_v18 = vmax.f32 %v11889_v22, %v4509_v34  ;;  %v5790_v29 = vrot.slane %v5789_v35, 1  ;;  %v11938_v4 = vmax.f32 %v5747_v25, %v5748_v2 }
 0x45c   : > { %v4368_v31 = vrot.slane %v4367_v6, 1  ;;  %v4375_v23 = vrot.slane %v4374_v13, 1  ;;  %v5753_v43 = vrot.slane %v5752_v9, 2  ;;  %v11941_v56 = vmul.f32 %v4509_v34, %v11524_v44 }
 0x45d   : > { %v5757_v19 = vsel %vm1138_vm3, %v5437_v52, -inf  ;;  %v5442_v37 = vcombine.high %v5298_v48, %v5298_v48  ;;  %v11945_v55 = vmul.f32 %v4512_v33, %v11528_v8  ;;  %v11947_v51 = vmax.f32 %v5782_v45, %v5783_v15 }
 0x45e   : > { %13925 = vst [vmem:[#allocation81_spill] sm:$0xff] %v11941_v56  ;;  %v4369_v47 = vmax.f32 %v4367_v6, %v4368_v31  ;;  %v4376_v22 = vmax.f32 %v4374_v13, %v4375_v23  ;;  %v5758_v62 = vrot.slane %v5757_v19, 4  ;;  %v5820_v10 = vsel %vm1138_vm3, %v5298_v48, -inf }
 0x45f   : > { %13926 = vst [vmem:[#allocation82_spill] sm:$0xff] %v11945_v55  ;;  %v5827_v32 = vsel %vm1138_vm3, %v5442_v37, -inf  ;;  %v7173_v25 = vadd.f32 %v11779_v3, %v9666_v16  ;;  %v11952_v54 = vmax.f32 %v4535_v18, %v4512_v33  ;;  %v11954_v17 = vmax.f32 %v5789_v35, %v5790_v29 }
 0x460   : > { %v4500_v52 = vmax.f32 %v11832_v12, %v4376_v22  ;;  %v5754_v2 = vmax.f32 %v5752_v9, %v5753_v43  ;;  %v5759_v28 = vmax.f32 %v5757_v19, %v5758_v62  ;;  %v5821_v49 = vrot.slane %v5820_v10, 4  ;;  %v7164_v12 = vpop.f32.mrf.mxu1  ;;  %v9609_v19 = vpop.f32.mrf.mxu0 }
 0x461   : > { %v5828_v41 = vrot.slane %v5827_v32, 4  ;;  %v7453_v21 = vmax.f32 %v7173_v25, 0.0  ;;  %v4497_v14 = vmax.f32 %v11826_v57, %v4369_v47  ;;  %v5058_v43 = vadd.f32 %v11779_v3, %v5057_v20 }
 0x462   : > { %v5760_v39 = vrot.slane %v5759_v28, 2  ;;  %v5822_v24 = vmax.f32 %v5820_v10, %v5821_v49  ;;  %v5755_v48 = vrot.slane %v5754_v2, 1  ;;  %v7165_v16 = vadd.f32 %v11779_v3, %v7164_v12 }
 0x463   : > { %v5829_v7 = vmax.f32 %v5827_v32, %v5828_v41  ;;  %v7597_v33 = vcombine.high %v7453_v21, %v7453_v21  ;;  %v4533_v15 = vmax.f32 %v4497_v14, %v4500_v52  ;;  %v7767_v35 = vsel %vm1138_vm3, %v7453_v21, -inf }
 0x464   : > { %v5761_v13 = vmax.f32 %v5759_v28, %v5760_v39  ;;  %v5823_v18 = vrot.slane %v5822_v24, 2  ;;  %v7768_v31 = vrot.slane %v7767_v35, 4  ;;  %v11966_v23 = vmul.f32 %v4497_v14, %v11559_v59 }
 0x465   : > { %v5830_v29 = vrot.slane %v5829_v7, 2  ;;  %v7774_v57 = vsel %vm1138_vm3, %v7597_v33, -inf  ;;  %v11972_v37 = vmul.f32 %v4500_v52, %v11562_v58  ;;  %v5069_v62 = vadd.f32 %v11779_v3, %v9609_v19 }
 0x466   : > { %13927 = vst [vmem:[#allocation83_spill] sm:$0xff] %v11966_v23  ;;  %v5824_v47 = vmax.f32 %v5822_v24, %v5823_v18  ;;  %v7769_v22 = vmax.f32 %v7767_v35, %v7768_v31  ;;  %v11975_v10 = vmax.f32 %v5754_v2, %v5755_v48  ;;  %v7775_v32 = vrot.slane %v7774_v57, 4 }
 0x467   : > { %13928 = vst [vmem:[#allocation84_spill] sm:$0xff] %v11972_v37  ;;  %v5296_v25 = vmax.f32 %v5058_v43, 0.0  ;;  %v7451_v28 = vmax.f32 %v7165_v16, 0.0  ;;  %v11978_v49 = vmax.f32 %v4533_v15, %v11882_v46  ;;  %v5762_v41 = vrot.slane %v5761_v13, 1 }
 0x468   : > { %v5825_v21 = vrot.slane %v5824_v47, 1  ;;  %v5831_v14 = vmax.f32 %v5829_v7, %v5830_v29  ;;  %v7776_v20 = vmax.f32 %v7774_v57, %v7775_v32  ;;  %v7770_v12 = vrot.slane %v7769_v22, 2 }
 0x469   : > { %v5440_v39 = vcombine.high %v5296_v25, %v5296_v25  ;;  %v5792_v52 = vsel %vm1138_vm3, %v5296_v25, -inf  ;;  %v7595_v33 = vcombine.high %v7451_v28, %v7451_v28  ;;  %v5299_v2 = vmax.f32 %v5069_v62, 0.0  ;;  %v9667_v25 = vpop.f32.mrf.mxu1 }
 0x46a   : > { %v5793_v35 = vrot.slane %v5792_v52, 4  ;;  %v7777_v48 = vrot.slane %v7776_v20, 2  ;;  %v7739_v31 = vsel %vm1138_vm3, %v7451_v28, -inf  ;;  %v11986_v7 = vmax.f32 %v5761_v13, %v5762_v41 }
 0x46b   : > { %v5799_v18 = vsel %vm1138_vm3, %v5440_v39, -inf  ;;  %v7746_v46 = vsel %vm1138_vm3, %v7595_v33, -inf  ;;  %v5832_v29 = vrot.slane %v5831_v14, 1  ;;  %v5826_v43 = vmax.f32 %v5824_v47, %v5825_v21 }
 0x46c   : > { %v5794_v57 = vmax.f32 %v5792_v52, %v5793_v35  ;;  %v5800_v16 = vrot.slane %v5799_v18, 4  ;;  %v7740_v19 = vrot.slane %v7739_v31, 4  ;;  %v7747_v32 = vrot.slane %v7746_v46, 4 }
 0x46d   : > { %v7771_v34 = vmax.f32 %v7769_v22, %v7770_v12  ;;  %v5443_v6 = vcombine.high %v5299_v2, %v5299_v2  ;;  %v5834_v39 = vsel %vm1138_vm3, %v5299_v2, -inf  ;;  %v7778_v24 = vmax.f32 %v7776_v20, %v7777_v48 }
 0x46e   : > { %v5795_v62 = vrot.slane %v5794_v57, 2  ;;  %v5801_v28 = vmax.f32 %v5799_v18, %v5800_v16  ;;  %v7741_v9 = vmax.f32 %v7739_v31, %v7740_v19  ;;  %v7748_v33 = vmax.f32 %v7746_v46, %v7747_v32 }
 0x46f   : > { %v5835_v15 = vrot.slane %v5834_v39, 4  ;;  %v5841_v13 = vsel %vm1138_vm3, %v5443_v6, -inf  ;;  %v7176_v41 = vadd.f32 %v11779_v3, %v9667_v25  ;;  %v5833_v47 = vmax.f32 %v5831_v14, %v5832_v29  ;;  %v5060_v6 = vpop.f32.mrf.mxu0 }
 0x470   : > { %v5796_v45 = vmax.f32 %v5794_v57, %v5795_v62  ;;  %v5802_v21 = vrot.slane %v5801_v28, 2  ;;  %v7742_v52 = vrot.slane %v7741_v9, 2  ;;  %v7749_v35 = vrot.slane %v7748_v33, 2  ;;  %v7167_v62 = vpop.f32.mrf.mxu1 }
 0x471   : > { %v5836_v22 = vmax.f32 %v5834_v39, %v5835_v15  ;;  %v5842_v12 = vrot.slane %v5841_v13, 4  ;;  %v7454_v58 = vmax.f32 %v7176_v41, 0.0  ;;  %v7772_v59 = vrot.slane %v7771_v34, 1 }
 0x472   : > { %v5797_v63 = vrot.slane %v5796_v45, 1  ;;  %v7779_v2 = vrot.slane %v7778_v24, 1  ;;  %v5803_v20 = vmax.f32 %v5801_v28, %v5802_v21  ;;  %v7743_v48 = vmax.f32 %v7741_v9, %v7742_v52 }
 0x473   : > { %v7750_v31 = vmax.f32 %v7748_v33, %v7749_v35  ;;  %v5843_v46 = vmax.f32 %v5841_v13, %v5842_v12  ;;  %v7598_v57 = vcombine.high %v7454_v58, %v7454_v58  ;;  %v13929_v14 = vmax.f32 %v11935_v61, %v11947_v51 }
 0x474   : > { %v11991_v18 = vmax.f32 %v5796_v45, %v5797_v63  ;;  %v5837_v16 = vrot.slane %v5836_v22, 2  ;;  %v7781_v15 = vsel %vm1138_vm3, %v7454_v58, -inf  ;;  %v5061_v19 = vadd.f32 %v11779_v3, %v5060_v6 }
 0x475   : > { %v11996_v29 = vmax.f32 %v13929_v14, %v5826_v43  ;;  %v13930_v32 = vmax.f32 %v11938_v4, %v11954_v17  ;;  %v5804_v63 = vrot.slane %v5803_v20, 1  ;;  %v5844_v45 = vrot.slane %v5843_v46, 2  ;;  %v9612_v4 = vpop.f32.mrf.mxu0 }
 0x476   : > { %v7782_v25 = vrot.slane %v7781_v15, 4  ;;  %v12005_v39 = vmax.f32 %v7771_v34, %v7772_v59  ;;  %v12007_v28 = vmax.f32 %v7778_v24, %v7779_v2  ;;  %v7744_v61 = vrot.slane %v7743_v48, 1 }
 0x477   : > { %v12003_v9 = vmax.f32 %v13930_v32, %v5833_v47  ;;  %v7788_v51 = vsel %vm1138_vm3, %v7598_v57, -inf  ;;  %v6600_v58 = vmax.f32 %v11975_v10, %v11991_v18  ;;  %v7751_v43 = vrot.slane %v7750_v31, 1 }
 0x478   : > { %v7783_v33 = vmax.f32 %v7781_v15, %v7782_v25  ;;  %v7789_v13 = vrot.slane %v7788_v51, 4  ;;  %v5838_v17 = vmax.f32 %v5836_v22, %v5837_v16  ;;  %v5297_v41 = vmax.f32 %v5061_v19, 0.0 }
 0x479   : > { %v7168_v47 = vadd.f32 %v11779_v3, %v7167_v62  ;;  %v5082_v21 = vadd.f32 %v11779_v3, %v9612_v4  ;;  %v5805_v59 = vmax.f32 %v5803_v20, %v5804_v63  ;;  %v5845_v34 = vmax.f32 %v5843_v46, %v5844_v45 }
 0x47a   : > { %v7784_v24 = vrot.slane %v7783_v33, 2  ;;  %v7790_v52 = vmax.f32 %v7788_v51, %v7789_v13  ;;  %v5441_v35 = vcombine.high %v5297_v41, %v5297_v41  ;;  %v5806_v12 = vsel %vm1138_vm3, %v5297_v41, -inf }
 0x47b   : > { %v7452_v2 = vmax.f32 %v7168_v47, 0.0  ;;  %v5302_v57 = vmax.f32 %v5082_v21, 0.0  ;;  %v12015_v10 = vmax.f32 %v7743_v48, %v7744_v61  ;;  %v12017_v18 = vmax.f32 %v7750_v31, %v7751_v43  ;;  %v9670_v47 = vpop.f32.mrf.mxu1 }
 0x47c   : > { %v7785_v6 = vmax.f32 %v7783_v33, %v7784_v24  ;;  %v7791_v22 = vrot.slane %v7790_v52, 2  ;;  %v5807_v14 = vrot.slane %v5806_v12, 4  ;;  %v5813_v16 = vsel %vm1138_vm3, %v5441_v35, -inf }
 0x47d   : > { %v7596_v15 = vcombine.high %v7452_v2, %v7452_v2  ;;  %v7753_v20 = vsel %vm1138_vm3, %v7452_v2, -inf  ;;  %v6603_v46 = vmax.f32 %v11986_v7, %v5805_v59  ;;  %v5839_v19 = vrot.slane %v5838_v17, 1 }
 0x47e   : > { %v5846_v32 = vrot.slane %v5845_v34, 1  ;;  %v5814_v63 = vrot.slane %v5813_v16, 4  ;;  %v5808_v45 = vmax.f32 %v5806_v12, %v5807_v14  ;;  %v7754_v25 = vrot.slane %v7753_v20, 4 }
 0x47f   : > { %v7760_v48 = vsel %vm1138_vm3, %v7596_v15, -inf  ;;  %v5446_v62 = vcombine.high %v5302_v57, %v5302_v57  ;;  %v7786_v31 = vrot.slane %v7785_v6, 1  ;;  %v7792_v61 = vmax.f32 %v7790_v52, %v7791_v22 }
 0x480   : > { %v5815_v51 = vmax.f32 %v5813_v16, %v5814_v63  ;;  %v7761_v43 = vrot.slane %v7760_v48, 4  ;;  %v5809_v33 = vrot.slane %v5808_v45, 2  ;;  %v7755_v13 = vmax.f32 %v7753_v20, %v7754_v25  ;;  %v5073_v20 = vpop.f32.mrf.mxu0 }
 0x481   : > { %v5876_v4 = vsel %vm1138_vm3, %v5302_v57, -inf  ;;  %v5883_v41 = vsel %vm1138_vm3, %v5446_v62, -inf  ;;  %v5840_v7 = vmax.f32 %v5838_v17, %v5839_v19  ;;  %v5847_v21 = vmax.f32 %v5845_v34, %v5846_v32 }
 0x482   : > { %v5816_v59 = vrot.slane %v5815_v51, 2  ;;  %v7762_v24 = vmax.f32 %v7760_v48, %v7761_v43  ;;  %v5810_v35 = vmax.f32 %v5808_v45, %v5809_v33  ;;  %v7756_v12 = vrot.slane %v7755_v13, 2 }
 0x483   : > { %v5877_v2 = vrot.slane %v5876_v4, 4  ;;  %v5884_v14 = vrot.slane %v5883_v41, 4  ;;  %v12025_v15 = vmax.f32 %v7785_v6, %v7786_v31  ;;  %v7793_v52 = vrot.slane %v7792_v61, 1 }
 0x484   : > { %v5817_v22 = vmax.f32 %v5815_v51, %v5816_v59  ;;  %v7189_v16 = vadd.f32 %v11779_v3, %v9670_v47  ;;  %v5811_v63 = vrot.slane %v5810_v35, 1  ;;  %v7763_v57 = vrot.slane %v7762_v24, 2 }
 0x485   : > { %v5878_v25 = vmax.f32 %v5876_v4, %v5877_v2  ;;  %v5885_v62 = vmax.f32 %v5883_v41, %v5884_v14  ;;  %v6601_v8 = vmax.f32 %v6600_v58, %v5840_v7  ;;  %v7757_v34 = vmax.f32 %v7755_v13, %v7756_v12  ;;  %v7180_v13 = vpop.f32.mrf.mxu1  ;;  %v9613_v7 = vpop.f32.mrf.mxu0 }
 0x486   : > { %v5818_v17 = vrot.slane %v5817_v22, 1  ;;  %v7457_v19 = vmax.f32 %v7189_v16, 0.0  ;;  %v6604_v32 = vmax.f32 %v6603_v46, %v5847_v21  ;;  %v5074_v43 = vadd.f32 %v11779_v3, %v5073_v20 }
 0x487   : > { %v5879_v45 = vrot.slane %v5878_v25, 2  ;;  %v5886_v48 = vrot.slane %v5885_v62, 2  ;;  %v12029_v6 = vmax.f32 %v7792_v61, %v7793_v52  ;;  %v12034_v47 = vmax.f32 %v5810_v35, %v5811_v63  ;;  %v5076_v42 = vpop.f32.mrf.mxu0 }
 0x488   : > { %v7601_v51 = vcombine.high %v7457_v19, %v7457_v19  ;;  %v7823_v33 = vsel %vm1138_vm3, %v7457_v19, -inf  ;;  %v7764_v4 = vmax.f32 %v7762_v24, %v7763_v57  ;;  %v12036_v46 = vmax.f32 %v5817_v22, %v5818_v17 }
 0x489   : > { %v5880_v58 = vmax.f32 %v5878_v25, %v5879_v45  ;;  %v5887_v41 = vmax.f32 %v5885_v62, %v5886_v48  ;;  %v7758_v21 = vrot.slane %v7757_v34, 1  ;;  %v7824_v59 = vrot.slane %v7823_v33, 4 }
 0x48a   : > { %v7830_v61 = vsel %vm1138_vm3, %v7601_v51, -inf  ;;  %v5300_v52 = vmax.f32 %v5074_v43, 0.0  ;;  %v7181_v24 = vadd.f32 %v11779_v3, %v7180_v13  ;;  %v5085_v20 = vadd.f32 %v11779_v3, %v9613_v7 }
 0x48b   : > { %v5881_v12 = vrot.slane %v5880_v58, 1  ;;  %v5888_v2 = vrot.slane %v5887_v41, 1  ;;  %v7831_v14 = vrot.slane %v7830_v61, 4  ;;  %v7825_v35 = vmax.f32 %v7823_v33, %v7824_v59 }
 0x48c   : > { %v7765_v63 = vrot.slane %v7764_v4, 1  ;;  %v5444_v25 = vcombine.high %v5300_v52, %v5300_v52  ;;  %v5848_v19 = vsel %vm1138_vm3, %v5300_v52, -inf  ;;  %v7455_v45 = vmax.f32 %v7181_v24, 0.0  ;;  %v9671_v24 = vpop.f32.mrf.mxu1 }
 0x48d   : > { %v5889_v57 = vmax.f32 %v5887_v41, %v5888_v2  ;;  %v7832_v22 = vmax.f32 %v7830_v61, %v7831_v14  ;;  %v7826_v17 = vrot.slane %v7825_v35, 2  ;;  %v12048_v43 = vmax.f32 %v7757_v34, %v7758_v21  ;;  %v13931_v21 = vld [vmem:[#allocation7_spill] sm:$0xff] }
 0x48e   : > { %v5882_v51 = vmax.f32 %v5880_v58, %v5881_v12  ;;  %v5849_v33 = vrot.slane %v5848_v19, 4  ;;  %v5855_v13 = vsel %vm1138_vm3, %v5444_v25, -inf  ;;  %v7599_v7 = vcombine.high %v7455_v45, %v7455_v45 }
 0x48f   : > { %v7795_v41 = vsel %vm1138_vm3, %v7455_v45, -inf  ;;  %v5303_v59 = vmax.f32 %v5085_v20, 0.0  ;;  %v12052_v61 = vmax.f32 %v7764_v4, %v7765_v63  ;;  %v12054_v2 = vmax.f32 %v6604_v32, %v5889_v57 }
 0x490   : > { %v7833_v14 = vrot.slane %v7832_v22, 2  ;;  %v5850_v52 = vmax.f32 %v5848_v19, %v5849_v33  ;;  %v7827_v16 = vmax.f32 %v7825_v35, %v7826_v17  ;;  %v5856_v31 = vrot.slane %v5855_v13, 4  ;;  %v9772_v35 = vld [vmem:[%s13699_s5 + $0x8] sm:$0xff] }
 0x491   : > { %v7796_v48 = vrot.slane %v7795_v41, 4  ;;  %v7802_v34 = vsel %vm1138_vm3, %v7599_v7, -inf  ;;  %v12057_v58 = vmax.f32 %v6601_v8, %v5882_v51  ;;  %v6752_v12 = vmul.f32 %v12054_v2, %v13931_v21 }
 0x492   : > { %v5851_v25 = vrot.slane %v5850_v52, 2  ;;  %v7803_v45 = vrot.slane %v7802_v34, 4  ;;  %v5857_v20 = vmax.f32 %v5855_v13, %v5856_v31  ;;  %v5447_v63 = vcombine.high %v5303_v59, %v5303_v59 }
 0x493   : > { %v7797_v4 = vmax.f32 %v7795_v41, %v7796_v48  ;;  %v7192_v32 = vadd.f32 %v11779_v3, %v9671_v24  ;;  %v6751_v57 = vmul.f32 %v9772_v35, %v12057_v58  ;;  %v7834_v17 = vmax.f32 %v7832_v22, %v7833_v14 }
 0x494   : > { %v5852_v19 = vmax.f32 %v5850_v52, %v5851_v25  ;;  %v7804_v8 = vmax.f32 %v7802_v34, %v7803_v45  ;;  %v7828_v51 = vrot.slane %v7827_v16, 1  ;;  %v5858_v33 = vrot.slane %v5857_v20, 2 }
 0x495   : > { %v7798_v7 = vrot.slane %v7797_v4, 2  ;;  %v5890_v62 = vsel %vm1138_vm3, %v5303_v59, -inf  ;;  %v6829_v44 = vrot.slane %v6752_v12, 7  ;;  %v5897_v24 = vsel %vm1138_vm3, %v5447_v63, -inf }
 0x496   : > { %v5853_v31 = vrot.slane %v5852_v19, 1  ;;  %v7805_v48 = vrot.slane %v7804_v8, 2  ;;  %v5891_v13 = vrot.slane %v5890_v62, 4  ;;  %v5859_v41 = vmax.f32 %v5857_v20, %v5858_v33 }
 0x497   : > { %v7799_v3 = vmax.f32 %v7797_v4, %v7798_v7  ;;  %v7458_v5 = vmax.f32 %v7192_v32, 0.0  ;;  %v7835_v37 = vrot.slane %v7834_v17, 1  ;;  %v5898_v22 = vrot.slane %v5897_v24, 4  ;;  %v7183_v7 = vpop.f32.mrf.mxu1 }
 0x498   : > { %v7806_v55 = vmax.f32 %v7804_v8, %v7805_v48  ;;  %v5892_v35 = vmax.f32 %v5890_v62, %v5891_v13  ;;  %v5854_v14 = vmax.f32 %v5852_v19, %v5853_v31  ;;  %v5860_v52 = vrot.slane %v5859_v41, 1 }
 0x499   : > { %v7602_v34 = vcombine.high %v7458_v5, %v7458_v5  ;;  %v7837_v25 = vsel %vm1138_vm3, %v7458_v5, -inf  ;;  %v7829_v45 = vmax.f32 %v7827_v16, %v7828_v51  ;;  %v7800_v59 = vrot.slane %v7799_v3, 1 }
 0x49a   : > { %v5893_v12 = vrot.slane %v5892_v35, 2  ;;  %v5899_v56 = vmax.f32 %v5897_v24, %v5898_v22  ;;  %v12070_v20 = vsel %vm2308_vm4, %v6829_v44, %v6751_v57  ;;  %v7807_v4 = vrot.slane %v7806_v55, 1  ;;  %v12079_v44 = vld [vmem:[%s13696_s2] ss:$0 sm:$0xff] }
 0x49b   : > { %v7838_v63 = vrot.slane %v7837_v25, 4  ;;  %v7844_v32 = vsel %vm1138_vm3, %v7602_v34, -inf  ;;  %v5861_v8 = vmax.f32 %v5859_v41, %v5860_v52  ;;  %v7836_v31 = vmax.f32 %v7834_v17, %v7835_v37 }
 0x49c   : > { %v5894_v62 = vmax.f32 %v5892_v35, %v5893_v12  ;;  %v5900_v33 = vrot.slane %v5899_v56, 2  ;;  %v7845_v19 = vrot.slane %v7844_v32, 4  ;;  %v13932_v5 = vmax.f32 %v11914_v38, %v12034_v47 }
 0x49d   : > { %v7839_v51 = vmax.f32 %v7837_v25, %v7838_v63  ;;  %v5077_v57 = vadd.f32 %v12079_v44, %v5076_v42  ;;  %v12082_v48 = vmax.f32 %v7799_v3, %v7800_v59  ;;  %v12084_v35 = vmax.f32 %v7806_v55, %v7807_v4 }
 0x49e   : > { %v6607_v16 = vmax.f32 %v13932_v5, %v5854_v14  ;;  %v5895_v13 = vrot.slane %v5894_v62, 1  ;;  %v5901_v41 = vmax.f32 %v5899_v56, %v5900_v33  ;;  %v7846_v24 = vmax.f32 %v7844_v32, %v7845_v19  ;;  %v13936_v33 = vld [vmem:[#allocation9_spill] sm:$0xff] }
 0x49f   : > { %v7840_v37 = vrot.slane %v7839_v51, 2  ;;  %v5301_v17 = vmax.f32 %v5077_v57, 0.0  ;;  %v7184_v38 = vadd.f32 %v12079_v44, %v7183_v7  ;;  %v13933_v47 = vmax.f32 %v11933_v0, %v12036_v46 }
 0x4a0   : > { %v5896_v14 = vmax.f32 %v5894_v62, %v5895_v13  ;;  %v5902_v52 = vrot.slane %v5901_v41, 1  ;;  %v7847_v34 = vrot.slane %v7846_v24, 2  ;;  %v13934_v63 = vmax.f32 %v12015_v10, %v12025_v15 }
 0x4a1   : > { %v6610_v22 = vmax.f32 %v13933_v47, %v5861_v8  ;;  %v7841_v25 = vmax.f32 %v7839_v51, %v7840_v37  ;;  %v5445_v42 = vcombine.high %v5301_v17, %v5301_v17  ;;  %v5862_v3 = vsel %vm1138_vm3, %v5301_v17, -inf  ;;  %v9674_v17 = vpop.f32.mrf.mxu1 }
 0x4a2   : > { %v7456_v59 = vmax.f32 %v7184_v38, 0.0  ;;  %v5903_v56 = vmax.f32 %v5901_v41, %v5902_v52  ;;  %v12091_v12 = vmax.f32 %v6607_v16, %v5896_v14  ;;  %v7848_v55 = vmax.f32 %v7846_v24, %v7847_v34  ;;  %v9616_v34 = vpop.f32.mrf.mxu0 }
 0x4a3   : > { %v5863_v4 = vrot.slane %v5862_v3, 4  ;;  %v12096_v32 = vmax.f32 %v13934_v63, %v7829_v45  ;;  %v13935_v0 = vmax.f32 %v12017_v18, %v12029_v6  ;;  %v5869_v8 = vsel %vm1138_vm3, %v5445_v42, -inf }
 0x4a4   : > { %v7809_v62 = vsel %vm1138_vm3, %v7456_v59, -inf  ;;  %v6753_v19 = vmul.f32 %v12091_v12, %v13936_v33  ;;  %v7842_v7 = vrot.slane %v7841_v25, 1  ;;  %v13937_v5 = vrot.slane %v11848_v50, 4 }
 0x4a5   : > { %v12101_v46 = vmax.f32 %v13935_v0, %v7836_v31  ;;  %v7600_v15 = vcombine.high %v7456_v59, %v7456_v59  ;;  %v8753_v45 = vmax.f32 %v12048_v43, %v12082_v48  ;;  %v5864_v18 = vmax.f32 %v5862_v3, %v5863_v4  ;;  %v13939_v48 = vld [vmem:[#allocation10_spill] sm:$0xff] }
 0x4a6   : > { %v6822_v10 = vsel %vm2476_vm7, %v13937_v5, %v11895_v60  ;;  %v5870_v6 = vrot.slane %v5869_v8, 4  ;;  %v7810_v31 = vrot.slane %v7809_v62, 4  ;;  %v8756_v16 = vmax.f32 %v12052_v61, %v12084_v35 }
 0x4a7   : > { %v6611_v51 = vmax.f32 %v6610_v22, %v5903_v56  ;;  %v6831_v57 = vrot.slane %v6753_v19, 6  ;;  %v7849_v13 = vrot.slane %v7848_v55, 1  ;;  %v5865_v41 = vrot.slane %v5864_v18, 2  ;;  %v13941_v19 = vld [vmem:[#allocation8_spill] sm:$0xff] }
 0x4a8   : > { %v5871_v24 = vmax.f32 %v5869_v8, %v5870_v6  ;;  %v13938_v37 = vrot.slane %v11871_v53, 3  ;;  %v7811_v60 = vmax.f32 %v7809_v62, %v7810_v31  ;;  %v6690_v43 = vmax.f32 %v12054_v2, %v12091_v12  ;;  %v7196_v8 = vpop.f32.mrf.mxu1  ;;  %v13940_v62 = vld [vmem:[#allocation14_spill] sm:$0xff] }
 0x4a9   : > { %v6754_v38 = vmul.f32 %v6611_v51, %v13939_v48  ;;  %v7843_v47 = vmax.f32 %v7841_v25, %v7842_v7  ;;  %v7816_v61 = vsel %vm1138_vm3, %v7600_v15, -inf  ;;  %v5866_v35 = vmax.f32 %v5864_v18, %v5865_v41 }
 0x4aa   : > { %v12118_v50 = vsel %vm2479_vm8, %v13938_v37, %v6822_v10  ;;  %v5872_v22 = vrot.slane %v5871_v24, 2  ;;  %v7812_v14 = vrot.slane %v7811_v60, 2  ;;  %v7817_v52 = vrot.slane %v7816_v61, 4 }
 0x4ab   : > { %v6832_v53 = vsel %vm2311_vm5, %v6831_v57, %v12070_v20  ;;  %v7850_v42 = vmax.f32 %v7848_v55, %v7849_v13  ;;  %v5098_v3 = vadd.f32 %v12079_v44, %v9616_v34  ;;  %v7205_v59 = vadd.f32 %v12079_v44, %v9674_v17 }
 0x4ac   : > { %v5867_v56 = vrot.slane %v5866_v35, 1  ;;  %v5873_v2 = vmax.f32 %v5871_v24, %v5872_v22  ;;  %v7813_v12 = vmax.f32 %v7811_v60, %v7812_v14  ;;  %v7818_v4 = vmax.f32 %v7816_v61, %v7817_v52 }
 0x4ad   : > { %v6833_v25 = vrot.slane %v6754_v38, 5  ;;  %v5306_v63 = vmax.f32 %v5098_v3, 0.0  ;;  %v7461_v0 = vmax.f32 %v7205_v59, 0.0  ;;  %v2279_v7 = vmax.f32 %v13941_v19, %v13940_v62 }
 0x4ae   : > { %v5868_v5 = vmax.f32 %v5866_v35, %v5867_v56  ;;  %v5874_v10 = vrot.slane %v5873_v2, 1  ;;  %v7814_v15 = vrot.slane %v7813_v12, 1  ;;  %v7819_v20 = vrot.slane %v7818_v4, 2  ;;  %v13942_v35 = vld [vmem:[#allocation11_spill] sm:$0xff] }
 0x4af   : > { %v5450_v55 = vcombine.high %v5306_v63, %v5306_v63  ;;  %v5932_v18 = vsel %vm1138_vm3, %v5306_v63, -inf  ;;  %v7605_v6 = vcombine.high %v7461_v0, %v7461_v0  ;;  %v7879_v31 = vsel %vm1138_vm3, %v7461_v0, -inf }
 0x4b0   : > { %v5875_v57 = vmax.f32 %v5873_v2, %v5874_v10  ;;  %v6596_v13 = vmax.f32 %v11996_v29, %v5868_v5  ;;  %v7820_v41 = vmax.f32 %v7818_v4, %v7819_v20  ;;  %v7197_v24 = vadd.f32 %v12079_v44, %v7196_v8  ;;  %v13944_v5 = vld [vmem:[#allocation13_spill] sm:$0xff] }
 0x4b1   : > { %v5933_v37 = vrot.slane %v5932_v18, 4  ;;  %v5939_v60 = vsel %vm1138_vm3, %v5450_v55, -inf  ;;  %v7880_v17 = vrot.slane %v7879_v31, 4  ;;  %v7886_v38 = vsel %vm1138_vm3, %v7605_v6, -inf }
 0x4b2   : > { %v6599_v61 = vmax.f32 %v12003_v9, %v5875_v57  ;;  %v6749_v22 = vmul.f32 %v6596_v13, %v13942_v35  ;;  %v12138_v14 = vmax.f32 %v7813_v12, %v7814_v15  ;;  %v7821_v52 = vrot.slane %v7820_v41, 1  ;;  %v13949_v57 = vld [vmem:[#allocation27_spill] sm:$0xff] }
 0x4b3   : > { %v5934_v34 = vmax.f32 %v5932_v18, %v5933_v37  ;;  %v5940_v3 = vrot.slane %v5939_v60, 4  ;;  %v7881_v59 = vmax.f32 %v7879_v31, %v7880_v17  ;;  %v7887_v29 = vrot.slane %v7886_v38, 4 }
 0x4b4   : > { %v12140_v56 = vmax.f32 %v6690_v43, %v6611_v51  ;;  %v8754_v2 = vmax.f32 %v8753_v45, %v7843_v47  ;;  %v6688_v4 = vmax.f32 %v6596_v13, %v6599_v61  ;;  %v7459_v63 = vmax.f32 %v7197_v24, 0.0 }
 0x4b5   : > { %v8757_v0 = vmax.f32 %v8756_v16, %v7850_v42  ;;  %v5935_v8 = vrot.slane %v5934_v34, 2  ;;  %v7882_v62 = vrot.slane %v7881_v59, 2  ;;  %v7888_v19 = vmax.f32 %v7886_v38, %v7887_v29 }
 0x4b6   : > { %13943 = vst [vmem:[#allocation7_spill] sm:$0xff] %v12140_v56  ;;  %v12143_v9 = vsel %vm2314_vm6, %v6833_v25, %v6832_v53  ;;  %v12146_v12 = vmul.f32 %v6599_v61, %v13944_v5  ;;  %v6825_v10 = vrot.slane %v6749_v22, 2  ;;  %v8759_v15 = vmax.f32 %v12005_v39, %v12138_v14  ;;  %v13947_v53 = vld [vmem:[#allocation12_spill] sm:$0xff]  ;;  %v13948_v25 = vld [vmem:[#allocation6_spill] sm:$0xff]  ;;  %v285_v22 = vld [vmem:[%s13698_s4] sm:$0xf] }
 0x4b7   : > { %v12150_v20 = vmax.f32 %v7820_v41, %v7821_v52  ;;  %v5941_v51 = vmax.f32 %v5939_v60, %v5940_v3  ;;  %v7883_v45 = vmax.f32 %v7881_v59, %v7882_v62  ;;  %v7889_v43 = vrot.slane %v7888_v19, 2  ;;  %v13952_v52 = vld [vmem:[#allocation26_spill] sm:$0xff] }
 0x4b8   : > { %13945 = vst [vmem:[#allocation9_spill] sm:$0xff] %v12146_v12  ;;  %v12153_v16 = vmax.f32 %v6688_v4, %v12057_v58  ;;  %v7603_v47 = vcombine.high %v7459_v63, %v7459_v63  ;;  %v7851_v42 = vsel %vm1138_vm3, %v7459_v63, -inf  ;;  %v2281_v55 = vmax.f32 %v13948_v25, %v13947_v53  ;;  %v13951_v58 = vld [vmem:[#allocation43_spill] sm:$0xff]  ;;  %v13953_v59 = vld [vmem:[#allocation42_spill] sm:$0xff]  ;;  %v13982_v4 = vld [vmem:[#allocation72_spill] sm:$0xff] }
 0x4b9   : > { %v5936_v18 = vmax.f32 %v5934_v34, %v5935_v8  ;;  %v7884_v6 = vrot.slane %v7883_v45, 1  ;;  %v7890_v31 = vmax.f32 %v7888_v19, %v7889_v43  ;;  %v2280_v13 = vmax.f32 %v2279_v7, %v13949_v57 }
 0x4ba   : > { %13946 = vst [vmem:[#allocation10_spill] sm:$0xff] %v12153_v16  ;;  %v12161_v41 = vsel %vm2482_vm9, %v6825_v10, %v12118_v50  ;;  %v7852_v24 = vrot.slane %v7851_v42, 4  ;;  %v7858_v37 = vsel %vm1138_vm3, %v7603_v47, -inf  ;;  %v2283_v60 = vmax.f32 %v13951_v58, %v11312_v27  ;;  %v5089_v58 = vpop.f32.mrf.mxu0 }
 0x4bb   : > { %13950 = vst [vmem:[#allocation14_spill] sm:$0xff] %v12161_v41  ;;  %v5942_v17 = vrot.slane %v5941_v51, 2  ;;  %v7885_v38 = vmax.f32 %v7883_v45, %v7884_v6  ;;  %v7891_v61 = vrot.slane %v7890_v31, 1  ;;  %v2282_v34 = vmax.f32 %v2281_v55, %v13952_v52 }
 0x4bc   : > { %v7853_v7 = vmax.f32 %v7851_v42, %v7852_v24  ;;  %v7859_v3 = vrot.slane %v7858_v37, 4  ;;  %v2284_v50 = vmax.f32 %v2283_v60, %v11597_v1  ;;  %v2285_v29 = vmax.f32 %v13953_v59, %v11290_v30 }
 0x4bd   : > { %v5937_v63 = vrot.slane %v5936_v18, 1  ;;  %v7892_v27 = vmax.f32 %v7890_v31, %v7891_v61  ;;  %v2287_v8 = vmax.f32 %v2280_v13, %v2282_v34  ;;  %v12175_v45 = vrot.slane %v285_v22, 1 }
 0x4be   : > { %v7854_v62 = vrot.slane %v7853_v7, 2  ;;  %v7860_v19 = vmax.f32 %v7858_v37, %v7859_v3  ;;  %v2286_v10 = vmax.f32 %v2285_v29, %v11579_v40  ;;  %v12177_v43 = vmax.f32 %v5941_v51, %v5942_v17  ;;  %v13959_v3 = vld [vmem:[#allocation15_spill] sm:$0xff] }
 0x4bf   : > { %13954 = vst [vmem:[#allocation8_spill] sm:$0xff] %v12175_v45  ;;  %v12179_v47 = vmax.f32 %v8754_v2, %v7885_v38  ;;  %v12181_v42 = vrot.slane %v285_v22, 2  ;;  %v12183_v1 = vrot.slane %v285_v22, 3  ;;  %v12185_v30 = vmax.f32 %v8757_v0, %v7892_v27  ;;  %v13957_v38 = vld [vmem:[#allocation3_spill] sm:$0xff]  ;;  %v13963_v27 = vld [vmem:[#allocation21_spill] sm:$0xff] }
 0x4c0   : > { %v7855_v53 = vmax.f32 %v7853_v7, %v7854_v62  ;;  %v7861_v25 = vrot.slane %v7860_v19, 2  ;;  %v2288_v55 = vmax.f32 %v2284_v50, %v2286_v10  ;;  %v2299_v31 = vmul.f32 %v2280_v13, %v285_v22  ;;  %v13958_v13 = vld [vmem:[#allocation4_spill] sm:$0xff] }
 0x4c1   : > { %13955 = vst [vmem:[#allocation11_spill] sm:$0xff] %v12181_v42  ;;  %13956 = vst [vmem:[#allocation13_spill] sm:$0xff] %v12183_v1  ;;  %v2300_v40 = vmul.f32 %v12175_v45, %v2282_v34  ;;  %v2301_v51 = vmul.f32 %v12181_v42, %v2284_v50  ;;  %v12191_v57 = vmax.f32 %v5936_v18, %v5937_v63  ;;  %v284_v34 = vld [vmem:[%s13697_s3] sm:$0x1]  ;;  %v13960_v50 = vld [vmem:[#allocation16_spill] sm:$0xff]  ;;  %v13964_v62 = vrot.slane %v13963_v27, 2 }
 0x4c2   : > { %v7856_v2 = vrot.slane %v7855_v53, 1  ;;  %v7862_v24 = vmax.f32 %v7860_v19, %v7861_v25  ;;  %v2302_v37 = vmul.f32 %v12183_v1, %v2286_v10  ;;  %v12197_v61 = vmul.f32 %v12179_v47, %v13957_v38  ;;  %v13962_v63 = vld [vmem:[#allocation28_spill] sm:$0xff]  ;;  %v13966_v25 = vld [vmem:[#allocation35_spill] sm:$0xff]  ;;  %v13972_v27 = vld [vmem:[#allocation57_spill] sm:$0xff] }
 0x4c3   : > { %v2307_v60 = vrot.slane %v2300_v40, 7  ;;  %v2310_v17 = vrot.slane %v2301_v51, 6  ;;  %v12201_v22 = vmul.f32 %v12185_v30, %v13958_v13  ;;  %v2289_v18 = vmax.f32 %v2287_v8, %v2288_v55  ;;  %v13965_v10 = vld [vmem:[#allocation44_spill] sm:$0xff]  ;;  %v9617_v13 = vpop.f32.mrf.mxu0 }
 0x4c4   : > { %v2313_v52 = vrot.slane %v2302_v37, 5  ;;  %v13961_v59 = vrot.slane %v13960_v50, 1  ;;  %v2498_v19 = vsel %vm2482_vm9, %v13964_v62, %v13962_v63  ;;  %v13967_v8 = vrot.slane %v13966_v25, 3  ;;  %v13970_v50 = vld [vmem:[#allocation40_spill] sm:$0xff]  ;;  %v13973_v62 = vld [vmem:[#allocation54_spill] sm:$0xff] }
 0x4c5   : > { %v2309_v7 = vsel %vm2308_vm4, %v2307_v60, %v2299_v31  ;;  %v7857_v40 = vmax.f32 %v7855_v53, %v7856_v2  ;;  %v7863_v51 = vrot.slane %v7862_v24, 1  ;;  %v13968_v31 = vld [vmem:[#allocation22_spill] sm:$0xff]  ;;  %v13974_v25 = vrot.slane %v13973_v62, 4  ;;  %v13975_v53 = vld [vmem:[#allocation67_spill] sm:$0xff] }
 0x4c6   : > { %v2486_v29 = vsel %vm2485_vm10, %v13961_v59, %v13959_v3  ;;  %v2510_v55 = vsel %vm2479_vm8, %v13967_v8, %v13965_v10  ;;  %v2312_v37 = vsel %vm2311_vm5, %v2310_v17, %v2309_v7  ;;  %v13969_v60 = vrot.slane %v13968_v31, 1  ;;  %v13976_v2 = vld [vmem:[#allocation70_spill] sm:$0xff]  ;;  %v13978_v31 = vld [vmem:[#allocation41_spill] sm:$0xff] }
 0x4c7   : > { %v2315_v3 = vsel %vm2314_vm6, %v2313_v52, %v2312_v37  ;;  %v13971_v59 = vrot.slane %v13970_v50, 2  ;;  %v2522_v10 = vsel %vm2476_vm7, %v13974_v25, %v13972_v27  ;;  %v13977_v8 = vrot.slane %v13976_v2, 6  ;;  %v13980_v37 = vld [vmem:[#allocation56_spill] sm:$0xff]  ;;  %v13984_v2 = vld [vmem:[#allocation71_spill] sm:$0xff] }
 0x4c8   : > { %v2500_v38 = vsel %vm2485_vm10, %v13969_v60, %v2498_v19  ;;  %v2290_v7 = vmul.f32 %v2289_v18, %v284_v34  ;;  %v2317_v19 = vsel %vm1138_vm3, %v2315_v3, 0.0  ;;  %v13979_v60 = vrot.slane %v13978_v31, 1 }
 0x4c9   : > { %v2512_v63 = vsel %vm2482_vm9, %v13971_v59, %v2510_v55  ;;  %v2532_v17 = vsel %vm2311_vm5, %v13977_v8, %v13975_v53  ;;  %v13981_v50 = vrot.slane %v13980_v37, 3  ;;  %v9675_v59 = vpop.f32.mrf.mxu1  ;;  %v2318_v62 = vrot.slane %v2317_v19, 4  ;;  %v13986_v53 = vld [vmem:[#allocation73_spill] sm:$0xff] }
 0x4ca   : > { %v2514_v52 = vsel %vm2485_vm10, %v13979_v60, %v2512_v63  ;;  %v13983_v27 = vrot.slane %v13982_v4, 2  ;;  %v13985_v0 = vrot.slane %v13984_v2, 5  ;;  %v2540_v34 = vadd.f32 %v2500_v38, %v2486_v29  ;;  %v5092_v60 = vpop.f32.mrf.mxu0 }
 0x4cb   : > { %v2524_v55 = vsel %vm2479_vm8, %v13981_v50, %v2522_v10  ;;  %v7864_v3 = vmax.f32 %v7862_v24, %v7863_v51  ;;  %v13987_v8 = vrot.slane %v13986_v53, 1  ;;  %v5090_v31 = vadd.f32 %v12079_v44, %v5089_v58 }
 0x4cc   : > { %v2526_v25 = vsel %vm2482_vm9, %v13983_v27, %v2524_v55  ;;  %v2534_v18 = vsel %vm2314_vm6, %v13985_v0, %v2532_v17  ;;  %v5101_v10 = vadd.f32 %v12079_v44, %v9617_v13  ;;  %v2319_v37 = vadd.f32 %v2318_v62, %v2317_v19 }
 0x4cd   : > { %v2528_v63 = vsel %vm2485_vm10, %v13987_v8, %v2526_v25  ;;  %v2541_v50 = vadd.f32 %v2540_v34, %v2514_v52  ;;  %v7208_v4 = vadd.f32 %v12079_v44, %v9675_v59  ;;  %v5093_v55 = vadd.f32 %v12079_v44, %v5092_v60 }
 0x4ce   : > { %v12258_v0 = vmax.f32 %v8759_v15, %v7857_v40  ;;  %v2543_v24 = vsel %vm1138_vm3, %v2534_v18, 0.0  ;;  %v5304_v29 = vmax.f32 %v5090_v31, 0.0  ;;  %v5307_v51 = vmax.f32 %v5101_v10, 0.0 }
 0x4cf   : > { %v2320_v38 = vrot.slane %v2319_v37, 2  ;;  %v2542_v58 = vadd.f32 %v2541_v50, %v2528_v63  ;;  %v7462_v17 = vmax.f32 %v7208_v4, 0.0  ;;  %v5305_v13 = vmax.f32 %v5093_v55, 0.0 }
 0x4d0   : > { %v5448_v27 = vcombine.high %v5304_v29, %v5304_v29  ;;  %v5904_v19 = vsel %vm1138_vm3, %v5304_v29, -inf  ;;  %v5451_v52 = vcombine.high %v5307_v51, %v5307_v51  ;;  %v5946_v59 = vsel %vm1138_vm3, %v5307_v51, -inf }
 0x4d1   : > { %v2321_v62 = vadd.f32 %v2320_v38, %v2319_v37  ;;  %v2544_v25 = vadd.f32 %v2543_v24, %v2542_v58  ;;  %v5905_v2 = vrot.slane %v5904_v19, 4  ;;  %v5947_v39 = vrot.slane %v5946_v59, 4 }
 0x4d2   : > { %v5911_v14 = vsel %vm1138_vm3, %v5448_v27, -inf  ;;  %v5953_v15 = vsel %vm1138_vm3, %v5451_v52, -inf  ;;  %v7606_v40 = vcombine.high %v7462_v17, %v7462_v17  ;;  %v7893_v18 = vsel %vm1138_vm3, %v7462_v17, -inf }
 0x4d3   : > { %v2322_v34 = vrot.slane %v2321_v62, 1  ;;  %v2545_v53 = vrot.slane %v2544_v25, 4  ;;  %v5906_v8 = vmax.f32 %v5904_v19, %v5905_v2  ;;  %v5912_v63 = vrot.slane %v5911_v14, 4 }
 0x4d4   : > { %v5948_v31 = vmax.f32 %v5946_v59, %v5947_v39  ;;  %v5954_v10 = vrot.slane %v5953_v15, 4  ;;  %v7894_v60 = vrot.slane %v7893_v18, 4  ;;  %v7900_v50 = vsel %vm1138_vm3, %v7606_v40, -inf  ;;  %v7199_v39 = vpop.f32.mrf.mxu1 }
 0x4d5   : > { %v2323_v37 = vadd.f32 %v2322_v34, %v2321_v62  ;;  %v2546_v4 = vadd.f32 %v2545_v53, %v2544_v25  ;;  %v5907_v55 = vrot.slane %v5906_v8, 2  ;;  %v5913_v24 = vmax.f32 %v5911_v14, %v5912_v63 }
 0x4d6   : > { %v5949_v29 = vrot.slane %v5948_v31, 2  ;;  %v5955_v51 = vmax.f32 %v5953_v15, %v5954_v10  ;;  %v7895_v38 = vmax.f32 %v7893_v18, %v7894_v60  ;;  %v7901_v58 = vrot.slane %v7900_v50, 4 }
 0x4d7   : > { %v2324_v27 = vadd.f32 %v2323_v37, %v2290_v7  ;;  %v2547_v52 = vrot.slane %v2546_v4, 2  ;;  %v5908_v17 = vmax.f32 %v5906_v8, %v5907_v55  ;;  %v5914_v6 = vrot.slane %v5913_v24, 2  ;;  %v9620_v37 = vpop.f32.mrf.mxu0 }
 0x4d8   : > { %v5950_v12 = vmax.f32 %v5948_v31, %v5949_v29  ;;  %v5956_v19 = vrot.slane %v5955_v51, 2  ;;  %v7896_v2 = vrot.slane %v7895_v38, 2  ;;  %v7902_v59 = vmax.f32 %v7900_v50, %v7901_v58 }
 0x4d9   : > { %v2548_v41 = vadd.f32 %v2547_v52, %v2546_v4  ;;  %v5909_v56 = vrot.slane %v5908_v17, 1  ;;  %v5915_v40 = vmax.f32 %v5913_v24, %v5914_v6  ;;  %v5449_v62 = vcombine.high %v5305_v13, %v5305_v13 }
 0x4da   : > { %v5951_v25 = vrot.slane %v5950_v12, 1  ;;  %v5957_v34 = vmax.f32 %v5955_v51, %v5956_v19  ;;  %v7897_v14 = vmax.f32 %v7895_v38, %v7896_v2  ;;  %v7903_v53 = vrot.slane %v7902_v59, 2 }
 0x4db   : > { %v13988_v15 = vmax.f32 %v12007_v28, %v12150_v20  ;;  %v2549_v18 = vrot.slane %v2548_v41, 1  ;;  %v5918_v8 = vsel %vm1138_vm3, %v5305_v13, -inf  ;;  %v7200_v63 = vadd.f32 %v12079_v44, %v7199_v39 }
 0x4dc   : > { %v5916_v31 = vrot.slane %v5915_v40, 1  ;;  %v5958_v10 = vrot.slane %v5957_v34, 1  ;;  %v7898_v60 = vrot.slane %v7897_v14, 1  ;;  %v7904_v50 = vmax.f32 %v7902_v59, %v7903_v53 }
 0x4dd   : > { %v8763_v7 = vmax.f32 %v13988_v15, %v7864_v3  ;;  %v2550_v6 = vadd.f32 %v2549_v18, %v2548_v41  ;;  %v5919_v4 = vrot.slane %v5918_v8, 4  ;;  %v5925_v55 = vsel %vm1138_vm3, %v5449_v62, -inf  ;;  %v9678_v15 = vpop.f32.mrf.mxu1 }
 0x4de   : > { %v5114_v24 = vadd.f32 %v12079_v44, %v9620_v37  ;;  %v12274_v29 = vmax.f32 %v5908_v17, %v5909_v56  ;;  %v12276_v28 = vmax.f32 %v5950_v12, %v5951_v25  ;;  %v7899_v20 = vmax.f32 %v7897_v14, %v7898_v60 }
 0x4df   : > { %v7905_v3 = vrot.slane %v7904_v50, 1  ;;  %v2551_v13 = vadd.f32 %v2550_v6, %v2324_v27  ;;  %v5920_v51 = vmax.f32 %v5918_v8, %v5919_v4  ;;  %v5926_v38 = vrot.slane %v5925_v55, 4 }
 0x4e0   : > { %v7460_v58 = vmax.f32 %v7200_v63, 0.0  ;;  %v12278_v52 = vmax.f32 %v5915_v40, %v5916_v31  ;;  %v12280_v19 = vmax.f32 %v5957_v34, %v5958_v10  ;;  %v8761_v2 = vmax.f32 %v12258_v0, %v7899_v20 }
 0x4e1   : > { %v7906_v41 = vmax.f32 %v7904_v50, %v7905_v3  ;;  %v2552_v59 = vsel %vm522_vm0, %v2551_v13, 0.0  ;;  %v5927_v39 = vmax.f32 %v5925_v55, %v5926_v38  ;;  %v5310_v17 = vmax.f32 %v5114_v24, 0.0  ;;  %v5105_v3 = vpop.f32.mrf.mxu0 }
 0x4e2   : > { %v7604_v56 = vcombine.high %v7460_v58, %v7460_v58  ;;  %v13989_v12 = vrot.slane %v12177_v43, 1  ;;  %v8988_v27 = vrot.slane %v12197_v61, 6  ;;  %2553 = vadd.xlane.f32.xlu0 %v2552_v59  ;;  %v5921_v40 = vrot.slane %v5920_v51, 2 }
 0x4e3   : > { %v7865_v25 = vsel %vm1138_vm3, %v7460_v58, -inf  ;;  %v8764_v34 = vmax.f32 %v8763_v7, %v7906_v41  ;;  %v8857_v14 = vmax.f32 %v12185_v30, %v8761_v2  ;;  %v6612_v8 = vmax.f32 %v12274_v29, %v12276_v28 }
 0x4e4   : > { %v12287_v62 = vmax.f32 %v12177_v43, %v13989_v12  ;;  %v7866_v0 = vrot.slane %v7865_v25, 4  ;;  %v7872_v53 = vsel %vm1138_vm3, %v7604_v56, -inf  ;;  %v6615_v43 = vmax.f32 %v12278_v52, %v12280_v19 }
 0x4e5   : > { %v7873_v63 = vrot.slane %v7872_v53, 4  ;;  %v12299_v31 = vmul.f32 %v8761_v2, %v10116_v11  ;;  %v5928_v10 = vrot.slane %v5927_v39, 2  ;;  %v5454_v60 = vcombine.high %v5310_v17, %v5310_v17 }
 0x4e6   : > { %v7867_v7 = vmax.f32 %v7865_v25, %v7866_v0  ;;  %v12301_v30 = vmax.f32 %v5920_v51, %v5921_v40  ;;  %v5988_v37 = vsel %vm1138_vm3, %v5310_v17, -inf  ;;  %v7221_v6 = vadd.f32 %v12079_v44, %v9678_v15 }
 0x4e7   : > { %v7874_v50 = vmax.f32 %v7872_v53, %v7873_v63  ;;  %v12305_v4 = vmax.f32 %v8857_v14, %v8764_v34  ;;  %v12308_v55 = vmul.f32 %v8764_v34, %v13922_v36  ;;  %v5989_v20 = vrot.slane %v5988_v37, 4 }
 0x4e8   : > { %v7868_v24 = vrot.slane %v7867_v7, 2  ;;  %v5995_v13 = vsel %vm1138_vm3, %v5454_v60, -inf  ;;  %v7465_v38 = vmax.f32 %v7221_v6, 0.0  ;;  %v5106_v51 = vadd.f32 %v12079_v44, %v5105_v3 }
 0x4e9   : > { %13990 = vst [vmem:[#allocation12_spill] sm:$0xff] %v12305_v4  ;;  %v7875_v11 = vrot.slane %v7874_v50, 2  ;;  %v5929_v58 = vmax.f32 %v5927_v39, %v5928_v10  ;;  %v5990_v2 = vmax.f32 %v5988_v37, %v5989_v20  ;;  %v5996_v59 = vrot.slane %v5995_v13, 4 }
 0x4ea   : > { %v7869_v41 = vmax.f32 %v7867_v7, %v7868_v24  ;;  %v7609_v17 = vcombine.high %v7465_v38, %v7465_v38  ;;  %v7935_v12 = vsel %vm1138_vm3, %v7465_v38, -inf  ;;  %v5308_v40 = vmax.f32 %v5106_v51, 0.0 }
 0x4eb   : > { %v7876_v56 = vmax.f32 %v7874_v50, %v7875_v11  ;;  %v5991_v25 = vrot.slane %v5990_v2, 2  ;;  %v5997_v34 = vmax.f32 %v5995_v13, %v5996_v59  ;;  %v7936_v14 = vrot.slane %v7935_v12, 4 }
 0x4ec   : > { %v7870_v36 = vrot.slane %v7869_v41, 1  ;;  %v7942_v53 = vsel %vm1138_vm3, %v7609_v17, -inf  ;;  %v5452_v15 = vcombine.high %v5308_v40, %v5308_v40  ;;  %v5960_v63 = vsel %vm1138_vm3, %v5308_v40, -inf  ;;  %v7212_v40 = vpop.f32.mrf.mxu1 }
 0x4ed   : > { %v7877_v0 = vrot.slane %v7876_v56, 1  ;;  %v5992_v39 = vmax.f32 %v5990_v2, %v5991_v25  ;;  %v5998_v10 = vrot.slane %v5997_v34, 2  ;;  %v7937_v7 = vmax.f32 %v7935_v12, %v7936_v14 }
 0x4ee   : > { %v7871_v60 = vmax.f32 %v7869_v41, %v7870_v36  ;;  %v7943_v50 = vrot.slane %v7942_v53, 4  ;;  %v5961_v6 = vrot.slane %v5960_v63, 4  ;;  %v5967_v24 = vsel %vm1138_vm3, %v5452_v15, -inf }
 0x4ef   : > { %v7878_v37 = vmax.f32 %v7876_v56, %v7877_v0  ;;  %v5923_v20 = vrot.slane %v12301_v30, 1  ;;  %v5993_v3 = vrot.slane %v5992_v39, 1  ;;  %v5999_v11 = vmax.f32 %v5997_v34, %v5998_v10 }
 0x4f0   : > { %v7938_v13 = vrot.slane %v7937_v7, 2  ;;  %v7944_v51 = vmax.f32 %v7942_v53, %v7943_v50  ;;  %v5962_v59 = vmax.f32 %v5960_v63, %v5961_v6  ;;  %v5968_v17 = vrot.slane %v5967_v24, 4  ;;  %v9679_v50 = vpop.f32.mrf.mxu1  ;;  %v9774_v6 = vld [vmem:[%s13699_s5] sm:$0xff] }
 0x4f1   : > { %v8752_v38 = vmax.f32 %v12101_v46, %v7878_v37  ;;  %v5930_v41 = vrot.slane %v5929_v58, 1  ;;  %v8749_v2 = vmax.f32 %v12096_v32, %v7871_v60  ;;  %v6000_v12 = vrot.slane %v5999_v11, 1 }
 0x4f2   : > { %v7939_v56 = vmax.f32 %v7937_v7, %v7938_v13  ;;  %v5994_v25 = vmax.f32 %v5992_v39, %v5993_v3  ;;  %v7945_v14 = vrot.slane %v7944_v51, 2  ;;  %v5963_v0 = vrot.slane %v5962_v59, 2  ;;  %v9621_v7 = vpop.f32.mrf.mxu0 }
 0x4f3   : > { %v8915_v36 = vmul.f32 %v8752_v38, %v10128_v26  ;;  %v8855_v34 = vmax.f32 %v8749_v2, %v8752_v38  ;;  %v6001_v10 = vmax.f32 %v5999_v11, %v6000_v12  ;;  %v5969_v18 = vmax.f32 %v5967_v24, %v5968_v17 }
 0x4f4   : > { %v7940_v63 = vrot.slane %v7939_v56, 1  ;;  %v12322_v37 = vmax.f32 %v7944_v51, %v7945_v14  ;;  %v12325_v32 = vmax.f32 %v12301_v30, %v5923_v20  ;;  %v12327_v60 = vmax.f32 %v5929_v58, %v5930_v41 }
 0x4f5   : > { %v8986_v53 = vrot.slane %v8915_v36, 7  ;;  %v5970_v26 = vrot.slane %v5969_v18, 2  ;;  %v7213_v39 = vadd.f32 %v12079_v44, %v7212_v40  ;;  %v8914_v24 = vmul.f32 %v9774_v6, %v8749_v2 }
 0x4f6   : > { %v12336_v3 = vmax.f32 %v6612_v8, %v5994_v25  ;;  %v5964_v11 = vmax.f32 %v5962_v59, %v5963_v0  ;;  %v5117_v30 = vadd.f32 %v12079_v44, %v9621_v7  ;;  %v12340_v58 = vmax.f32 %v8855_v34, %v12179_v47 }
 0x4f7   : > { %v12345_v20 = vmax.f32 %v6615_v43, %v6001_v10  ;;  %v7463_v13 = vmax.f32 %v7213_v39, 0.0  ;;  %v7224_v38 = vadd.f32 %v12079_v44, %v9679_v50  ;;  %v8987_v51 = vsel %vm2308_vm4, %v8986_v53, %v8914_v24  ;;  %v5108_v50 = vpop.f32.mrf.mxu0 }
 0x4f8   : > { %13991 = vst [vmem:[#allocation6_spill] sm:$0xff] %v12340_v58  ;;  %v12349_v17 = vmax.f32 %v7939_v56, %v7940_v63  ;;  %v7947_v29 = vrot.slane %v12322_v37, 1  ;;  %v5311_v28 = vmax.f32 %v5117_v30, 0.0  ;;  %v5971_v8 = vmax.f32 %v5969_v18, %v5970_v26 }
 0x4f9   : > { %v7607_v59 = vcombine.high %v7463_v13, %v7463_v13  ;;  %v7907_v47 = vsel %vm1138_vm3, %v7463_v13, -inf  ;;  %v7466_v40 = vmax.f32 %v7224_v38, 0.0  ;;  %v5965_v41 = vrot.slane %v5964_v11, 1  ;;  %v7215_v13 = vpop.f32.mrf.mxu1 }
 0x4fa   : > { %v7908_v2 = vrot.slane %v7907_v47, 4  ;;  %v5455_v52 = vcombine.high %v5311_v28, %v5311_v28  ;;  %v6002_v19 = vsel %vm1138_vm3, %v5311_v28, -inf  ;;  %v8989_v43 = vsel %vm2311_vm5, %v8988_v27, %v8987_v51 }
 0x4fb   : > { %v7914_v12 = vsel %vm1138_vm3, %v7607_v59, -inf  ;;  %v6003_v56 = vrot.slane %v6002_v19, 4  ;;  %v7610_v36 = vcombine.high %v7466_v40, %v7466_v40  ;;  %v7949_v0 = vsel %vm1138_vm3, %v7466_v40, -inf }
 0x4fc   : > { %v7909_v25 = vmax.f32 %v7907_v47, %v7908_v2  ;;  %v7915_v14 = vrot.slane %v7914_v12, 4  ;;  %v6009_v18 = vsel %vm1138_vm3, %v5455_v52, -inf  ;;  %v5972_v34 = vrot.slane %v5971_v8, 1 }
 0x4fd   : > { %v6004_v10 = vmax.f32 %v6002_v19, %v6003_v56  ;;  %v6010_v53 = vrot.slane %v6009_v18, 4  ;;  %v7950_v63 = vrot.slane %v7949_v0, 4  ;;  %v7956_v61 = vsel %vm1138_vm3, %v7610_v36, -inf }
 0x4fe   : > { %v7910_v26 = vrot.slane %v7909_v25, 2  ;;  %v7916_v39 = vmax.f32 %v7914_v12, %v7915_v14  ;;  %v5109_v27 = vadd.f32 %v12079_v44, %v5108_v50  ;;  %v7957_v30 = vrot.slane %v7956_v61, 4 }
 0x4ff   : > { %v6005_v7 = vrot.slane %v6004_v10, 2  ;;  %v6011_v6 = vmax.f32 %v6009_v18, %v6010_v53  ;;  %v7951_v24 = vmax.f32 %v7949_v0, %v7950_v63  ;;  %v5966_v38 = vmax.f32 %v5964_v11, %v5965_v41 }
 0x500   : > { %v7911_v51 = vmax.f32 %v7909_v25, %v7910_v26  ;;  %v7917_v28 = vrot.slane %v7916_v39, 2  ;;  %v5309_v59 = vmax.f32 %v5109_v27, 0.0  ;;  %v7958_v52 = vmax.f32 %v7956_v61, %v7957_v30  ;;  %v9624_v30 = vpop.f32.mrf.mxu0 }
 0x501   : > { %v6006_v47 = vmax.f32 %v6004_v10, %v6005_v7  ;;  %v6012_v40 = vrot.slane %v6011_v6, 2  ;;  %v7952_v2 = vrot.slane %v7951_v24, 2  ;;  %v5973_v19 = vmax.f32 %v5971_v8, %v5972_v34 }
 0x502   : > { %v5453_v56 = vcombine.high %v5309_v59, %v5309_v59  ;;  %v5974_v12 = vsel %vm1138_vm3, %v5309_v59, -inf  ;;  %v7216_v36 = vadd.f32 %v12079_v44, %v7215_v13  ;;  %v7918_v14 = vmax.f32 %v7916_v39, %v7917_v28  ;;  %v9682_v59 = vpop.f32.mrf.mxu1 }
 0x503   : > { %v6013_v50 = vmax.f32 %v6011_v6, %v6012_v40  ;;  %v7953_v18 = vmax.f32 %v7951_v24, %v7952_v2  ;;  %v7959_v0 = vrot.slane %v7958_v52, 2  ;;  %v13992_v53 = vrot.slane %v12201_v22, 5 }
 0x504   : > { %v12370_v41 = vmax.f32 %v12322_v37, %v7947_v29  ;;  %v5975_v25 = vrot.slane %v5974_v12, 4  ;;  %v5981_v8 = vsel %vm1138_vm3, %v5453_v56, -inf  ;;  %v7912_v34 = vrot.slane %v7911_v51, 1 }
 0x505   : > { %v12367_v11 = vsel %vm2314_vm6, %v13992_v53, %v8989_v43  ;;  %v6007_v10 = vrot.slane %v6006_v47, 1  ;;  %v6014_v63 = vrot.slane %v6013_v50, 1  ;;  %v7960_v26 = vmax.f32 %v7958_v52, %v7959_v0 }
 0x506   : > { %v6618_v39 = vmax.f32 %v12325_v32, %v5966_v38  ;;  %v5976_v61 = vmax.f32 %v5974_v12, %v5975_v25  ;;  %v5982_v27 = vrot.slane %v5981_v8, 4  ;;  %v7464_v7 = vmax.f32 %v7216_v36, 0.0  ;;  %v5121_v25 = vpop.f32.mrf.mxu0 }
 0x507   : > { %v6621_v22 = vmax.f32 %v12327_v60, %v5973_v19  ;;  %v7919_v6 = vrot.slane %v7918_v14, 1  ;;  %v7954_v43 = vrot.slane %v7953_v18, 1  ;;  %v7961_v24 = vrot.slane %v7960_v26, 1 }
 0x508   : > { %v5977_v37 = vrot.slane %v5976_v61, 2  ;;  %v5983_v29 = vmax.f32 %v5981_v8, %v5982_v27  ;;  %v7608_v13 = vcombine.high %v7464_v7, %v7464_v7  ;;  %v7921_v28 = vsel %vm1138_vm3, %v7464_v7, -inf }
 0x509   : > { %v12376_v40 = vmax.f32 %v7911_v51, %v7912_v34  ;;  %v6008_v2 = vmax.f32 %v6006_v47, %v6007_v10  ;;  %v6015_v52 = vmax.f32 %v6013_v50, %v6014_v63  ;;  %v7922_v32 = vrot.slane %v7921_v28, 4 }
 0x50a   : > { %v5978_v38 = vmax.f32 %v5976_v61, %v5977_v37  ;;  %v5984_v56 = vrot.slane %v5983_v29, 2  ;;  %v7928_v12 = vsel %vm1138_vm3, %v7608_v13, -inf  ;;  %v5130_v60 = vadd.f32 %v12079_v44, %v9624_v30  ;;  %v7228_v30 = vpop.f32.mrf.mxu1 }
 0x50b   : > { %v12380_v19 = vmax.f32 %v7918_v14, %v7919_v6  ;;  %v7923_v36 = vmax.f32 %v7921_v28, %v7922_v32  ;;  %v7929_v0 = vrot.slane %v7928_v12, 4  ;;  %v7237_v53 = vadd.f32 %v12079_v44, %v9682_v59 }
 0x50c   : > { %v12383_v8 = vmax.f32 %v7953_v18, %v7954_v43  ;;  %v12385_v51 = vmax.f32 %v7960_v26, %v7961_v24  ;;  %v5985_v47 = vmax.f32 %v5983_v29, %v5984_v56  ;;  %v5314_v50 = vmax.f32 %v5130_v60, 0.0 }
 0x50d   : > { %v6619_v34 = vmax.f32 %v6618_v39, %v6008_v2  ;;  %v12387_v10 = vmax.f32 %v6621_v22, %v6015_v52  ;;  %v7930_v63 = vmax.f32 %v7928_v12, %v7929_v0  ;;  %v7469_v61 = vmax.f32 %v7237_v53, 0.0 }
 0x50e   : > { %v5979_v27 = vrot.slane %v5978_v38, 1  ;;  %v5458_v7 = vcombine.high %v5314_v50, %v5314_v50  ;;  %v6044_v14 = vsel %vm1138_vm3, %v5314_v50, -inf  ;;  %v5122_v6 = vadd.f32 %v12079_v44, %v5121_v25 }
 0x50f   : > { %v5986_v37 = vrot.slane %v5985_v47, 1  ;;  %v7924_v13 = vrot.slane %v7923_v36, 2  ;;  %v6045_v18 = vrot.slane %v6044_v14, 4  ;;  %v7613_v43 = vcombine.high %v7469_v61, %v7469_v61 }
 0x510   : > { %v8765_v26 = vmax.f32 %v12376_v40, %v12383_v8  ;;  %v6051_v22 = vsel %vm1138_vm3, %v5458_v7, -inf  ;;  %v7991_v24 = vsel %vm1138_vm3, %v7469_v61, -inf  ;;  %v7931_v29 = vrot.slane %v7930_v63, 2 }
 0x511   : > { %v6046_v28 = vmax.f32 %v6044_v14, %v6045_v18  ;;  %v6052_v59 = vrot.slane %v6051_v22, 4  ;;  %v7229_v2 = vadd.f32 %v12079_v44, %v7228_v30  ;;  %v12398_v52 = vmax.f32 %v5978_v38, %v5979_v27 }
 0x512   : > { %v7992_v32 = vrot.slane %v7991_v24, 4  ;;  %v7998_v56 = vsel %vm1138_vm3, %v7613_v43, -inf  ;;  %v5312_v12 = vmax.f32 %v5122_v6, 0.0  ;;  %v12401_v60 = vmax.f32 %v5985_v47, %v5986_v37 }
 0x513   : > { %v7925_v0 = vmax.f32 %v7923_v36, %v7924_v13  ;;  %v6047_v53 = vrot.slane %v6046_v28, 2  ;;  %v6053_v25 = vmax.f32 %v6051_v22, %v6052_v59  ;;  %v7999_v7 = vrot.slane %v7998_v56, 4 }
 0x514   : > { %v7993_v50 = vmax.f32 %v7991_v24, %v7992_v32  ;;  %v5456_v46 = vcombine.high %v5312_v12, %v5312_v12  ;;  %v6016_v61 = vsel %vm1138_vm3, %v5312_v12, -inf  ;;  %v7932_v14 = vmax.f32 %v7930_v63, %v7931_v29 }
 0x515   : > { %v6048_v18 = vmax.f32 %v6046_v28, %v6047_v53  ;;  %v6054_v15 = vrot.slane %v6053_v25, 2  ;;  %v6017_v44 = vrot.slane %v6016_v61, 4  ;;  %v8000_v27 = vmax.f32 %v7998_v56, %v7999_v7  ;;  %v9625_v7 = vpop.f32.mrf.mxu0 }
 0x516   : > { %v7994_v38 = vrot.slane %v7993_v50, 2  ;;  %v6023_v30 = vsel %vm1138_vm3, %v5456_v46, -inf  ;;  %v7467_v43 = vmax.f32 %v7229_v2, 0.0  ;;  %v7926_v46 = vrot.slane %v7925_v0, 1 }
 0x517   : > { %v6049_v6 = vrot.slane %v6048_v18, 1  ;;  %v6055_v47 = vmax.f32 %v6053_v25, %v6054_v15  ;;  %v6018_v37 = vmax.f32 %v6016_v61, %v6017_v44  ;;  %v6024_v36 = vrot.slane %v6023_v30, 4 }
 0x518   : > { %v7995_v13 = vmax.f32 %v7993_v50, %v7994_v38  ;;  %v8001_v22 = vrot.slane %v8000_v27, 2  ;;  %v7611_v24 = vcombine.high %v7467_v43, %v7467_v43  ;;  %v7963_v59 = vsel %vm1138_vm3, %v7467_v43, -inf }
 0x519   : > { %v6050_v32 = vmax.f32 %v6048_v18, %v6049_v6  ;;  %v6056_v12 = vrot.slane %v6055_v47, 1  ;;  %v6019_v63 = vrot.slane %v6018_v37, 2  ;;  %v6025_v29 = vmax.f32 %v6023_v30, %v6024_v36 }
 0x51a   : > { %v7996_v28 = vrot.slane %v7995_v13, 1  ;;  %v8002_v53 = vmax.f32 %v8000_v27, %v8001_v22  ;;  %v7964_v39 = vrot.slane %v7963_v59, 4  ;;  %v7970_v56 = vsel %vm1138_vm3, %v7611_v24, -inf  ;;  %v9683_v24 = vpop.f32.mrf.mxu1 }
 0x51b   : > { %v12407_v2 = vmax.f32 %v6619_v34, %v6050_v32  ;;  %v6020_v15 = vmax.f32 %v6018_v37, %v6019_v63  ;;  %v6026_v25 = vrot.slane %v6025_v29, 2  ;;  %v6624_v50 = vmax.f32 %v12191_v57, %v12398_v52  ;;  %v13993_v32 = vld [vmem:[#allocation19_spill] sm:$0xff]  ;;  %v5124_v52 = vpop.f32.mrf.mxu0 }
 0x51c   : > { %v6057_v61 = vmax.f32 %v6055_v47, %v6056_v12  ;;  %v7965_v44 = vmax.f32 %v7963_v59, %v7964_v39  ;;  %v7971_v18 = vrot.slane %v7970_v56, 4  ;;  %v7933_v38 = vrot.slane %v7932_v14, 1 }
 0x51d   : > { %v8003_v43 = vrot.slane %v8002_v53, 1  ;;  %v6021_v30 = vrot.slane %v6020_v15, 1  ;;  %v6027_v6 = vmax.f32 %v6025_v29, %v6026_v25  ;;  %v6627_v27 = vmax.f32 %v12287_v62, %v12401_v60  ;;  %v12425_v62 = vld [vmem:[%s13696_s2] ss:$0 sm:$0xff] }
 0x51e   : > { %v7997_v36 = vmax.f32 %v7995_v13, %v7996_v28  ;;  %v7966_v22 = vrot.slane %v7965_v44, 2  ;;  %v7972_v34 = vmax.f32 %v7970_v56, %v7971_v18  ;;  %v12413_v37 = vmax.f32 %v7925_v0, %v7926_v46  ;;  %v13995_v56 = vld [vmem:[#allocation20_spill] sm:$0xff] }
 0x51f   : > { %v12417_v63 = vmul.f32 %v12407_v2, %v13993_v32  ;;  %v6022_v57 = vmax.f32 %v6020_v15, %v6021_v30  ;;  %v6028_v39 = vrot.slane %v6027_v6, 1  ;;  %v12420_v47 = vmax.f32 %v12387_v10, %v6057_v61 }
 0x520   : > { %v7967_v59 = vmax.f32 %v7965_v44, %v7966_v22  ;;  %v7973_v12 = vrot.slane %v7972_v34, 2  ;;  %v5133_v60 = vadd.f32 %v12425_v62, %v9625_v7  ;;  %v12428_v0 = vmax.f32 %v7932_v14, %v7933_v38  ;;  %v7231_v44 = vpop.f32.mrf.mxu1 }
 0x521   : > { %13994 = vst [vmem:[#allocation27_spill] sm:$0xff] %v12417_v63  ;;  %v12430_v13 = vmax.f32 %v8002_v53, %v8003_v43  ;;  %v6029_v29 = vmax.f32 %v6027_v6, %v6028_v39  ;;  %v7240_v28 = vadd.f32 %v12425_v62, %v9683_v24  ;;  %v12435_v10 = vmul.f32 %v12420_v47, %v13995_v56 }
 0x522   : > { %v12440_v46 = vmax.f32 %v8765_v26, %v7997_v36  ;;  %v5315_v15 = vmax.f32 %v5133_v60, 0.0  ;;  %v5125_v25 = vadd.f32 %v12425_v62, %v5124_v52  ;;  %v12444_v7 = vmax.f32 %v6624_v50, %v6022_v57  ;;  %v9628_v36 = vpop.f32.mrf.mxu0 }
 0x523   : > { %13996 = vst [vmem:[#allocation43_spill] sm:$0xff] %v12435_v10  ;;  %v7968_v53 = vrot.slane %v7967_v59, 1  ;;  %v7470_v61 = vmax.f32 %v7240_v28, 0.0  ;;  %v12446_v18 = vmax.f32 %v6627_v27, %v6029_v29  ;;  %v7974_v38 = vmax.f32 %v7972_v34, %v7973_v12 }
 0x524   : > { %v5459_v43 = vcombine.high %v5315_v15, %v5315_v15  ;;  %v6058_v30 = vsel %vm1138_vm3, %v5315_v15, -inf  ;;  %v5313_v26 = vmax.f32 %v5125_v25, 0.0  ;;  %v7232_v50 = vadd.f32 %v12425_v62, %v7231_v44 }
 0x525   : > { %v6059_v6 = vrot.slane %v6058_v30, 4  ;;  %v7614_v40 = vcombine.high %v7470_v61, %v7470_v61  ;;  %v8005_v8 = vsel %vm1138_vm3, %v7470_v61, -inf  ;;  %v5146_v57 = vadd.f32 %v12425_v62, %v9628_v36 }
 0x526   : > { %v6065_v22 = vsel %vm1138_vm3, %v5459_v43, -inf  ;;  %v8006_v24 = vrot.slane %v8005_v8, 4  ;;  %v5457_v52 = vcombine.high %v5313_v26, %v5313_v26  ;;  %v7975_v12 = vrot.slane %v7974_v38, 1 }
 0x527   : > { %v6060_v39 = vmax.f32 %v6058_v30, %v6059_v6  ;;  %v6066_v27 = vrot.slane %v6065_v22, 4  ;;  %v8012_v34 = vsel %vm1138_vm3, %v7614_v40, -inf  ;;  %v6030_v28 = vsel %vm1138_vm3, %v5313_v26, -inf }
 0x528   : > { %v8007_v60 = vmax.f32 %v8005_v8, %v8006_v24  ;;  %v8013_v29 = vrot.slane %v8012_v34, 4  ;;  %v6031_v61 = vrot.slane %v6030_v28, 4  ;;  %v6037_v43 = vsel %vm1138_vm3, %v5457_v52, -inf }
 0x529   : > { %v6061_v15 = vrot.slane %v6060_v39, 2  ;;  %v6067_v25 = vmax.f32 %v6065_v22, %v6066_v27  ;;  %v6038_v44 = vrot.slane %v6037_v43, 4  ;;  %v7468_v58 = vmax.f32 %v7232_v50, 0.0 }
 0x52a   : > { %v8008_v14 = vrot.slane %v8007_v60, 2  ;;  %v8014_v4 = vmax.f32 %v8012_v34, %v8013_v29  ;;  %v12456_v36 = vmax.f32 %v7967_v59, %v7968_v53  ;;  %v6032_v40 = vmax.f32 %v6030_v28, %v6031_v61 }
 0x52b   : > { %v6062_v30 = vmax.f32 %v6060_v39, %v6061_v15  ;;  %v6068_v6 = vrot.slane %v6067_v25, 2  ;;  %v6039_v8 = vmax.f32 %v6037_v43, %v6038_v44  ;;  %v7612_v24 = vcombine.high %v7468_v58, %v7468_v58 }
 0x52c   : > { %v8009_v63 = vmax.f32 %v8007_v60, %v8008_v14  ;;  %v8015_v16 = vrot.slane %v8014_v4, 2  ;;  %v6033_v32 = vrot.slane %v6032_v40, 2  ;;  %v7977_v22 = vsel %vm1138_vm3, %v7468_v58, -inf }
 0x52d   : > { %v6063_v56 = vrot.slane %v6062_v30, 1  ;;  %v6069_v26 = vmax.f32 %v6067_v25, %v6068_v6  ;;  %v7976_v27 = vmax.f32 %v7974_v38, %v7975_v12  ;;  %v6040_v23 = vrot.slane %v6039_v8, 2 }
 0x52e   : > { %v8016_v52 = vmax.f32 %v8014_v4, %v8015_v16  ;;  %v7978_v34 = vrot.slane %v7977_v22, 4  ;;  %v6034_v59 = vmax.f32 %v6032_v40, %v6033_v32  ;;  %v7984_v53 = vsel %vm1138_vm3, %v7612_v24, -inf }
 0x52f   : > { %v6064_v29 = vmax.f32 %v6062_v30, %v6063_v56  ;;  %v6070_v50 = vrot.slane %v6069_v26, 1  ;;  %v8010_v39 = vrot.slane %v8009_v63, 1  ;;  %v6041_v28 = vmax.f32 %v6039_v8, %v6040_v23  ;;  %v13998_v8 = vld [vmem:[#allocation23_spill] sm:$0xff] }
 0x530   : > { %v7979_v14 = vmax.f32 %v7977_v22, %v7978_v34  ;;  %v5318_v60 = vmax.f32 %v5146_v57, 0.0  ;;  %v8017_v61 = vrot.slane %v8016_v52, 1  ;;  %v6035_v43 = vrot.slane %v6034_v59, 1  ;;  %v13999_v22 = vld [vmem:[#allocation24_spill] sm:$0xff] }
 0x531   : > { %v6071_v15 = vmax.f32 %v6069_v26, %v6070_v50  ;;  %v7985_v25 = vrot.slane %v7984_v53, 4  ;;  %v13997_v58 = vmax.f32 %v12380_v19, %v12385_v51  ;;  %v8771_v4 = vmax.f32 %v12413_v37, %v12456_v36  ;;  %v9686_v37 = vpop.f32.mrf.mxu1 }
 0x532   : > { %v6042_v32 = vrot.slane %v6041_v28, 1  ;;  %v7980_v56 = vrot.slane %v7979_v14, 2  ;;  %v8774_v38 = vmax.f32 %v12428_v0, %v7976_v27  ;;  %v6626_v23 = vmax.f32 %v12444_v7, %v6064_v29 }
 0x533   : > { %v12464_v16 = vmax.f32 %v13997_v58, %v12430_v13  ;;  %v6629_v57 = vmax.f32 %v12446_v18, %v6071_v15  ;;  %v6036_v12 = vmax.f32 %v6034_v59, %v6035_v43  ;;  %v8011_v44 = vmax.f32 %v8009_v63, %v8010_v39 }
 0x534   : > { %v6043_v30 = vmax.f32 %v6041_v28, %v6042_v32  ;;  %v7981_v6 = vmax.f32 %v7979_v14, %v7980_v56  ;;  %v7986_v40 = vmax.f32 %v7984_v53, %v7985_v25  ;;  %v8018_v51 = vmax.f32 %v8016_v52, %v8017_v61  ;;  %v9776_v52 = vld [vmem:[%s13699_s5 + $0x10] sm:$0xff]  ;;  %v7244_v14 = vpop.f32.mrf.mxu1  ;;  %v5137_v25 = vpop.f32.mrf.mxu0 }
 0x535   : > { %v6760_v19 = vmul.f32 %v6629_v57, %v13998_v8  ;;  %v6614_v13 = vmax.f32 %v12336_v3, %v6036_v12  ;;  %v5462_v24 = vcombine.high %v5318_v60, %v5318_v60  ;;  %v6100_v7 = vsel %vm1138_vm3, %v5318_v60, -inf }
 0x536   : > { %v6617_v36 = vmax.f32 %v12345_v20, %v6043_v30  ;;  %v7982_v26 = vrot.slane %v7981_v6, 1  ;;  %v7987_v0 = vrot.slane %v7986_v40, 2  ;;  %v6694_v18 = vmax.f32 %v12420_v47, %v6626_v23  ;;  %v14000_v20 = vld [vmem:[#allocation25_spill] sm:$0xff] }
 0x537   : > { %v6755_v63 = vmul.f32 %v6614_v13, %v13999_v22  ;;  %v6101_v27 = vrot.slane %v6100_v7, 4  ;;  %v6107_v34 = vsel %vm1138_vm3, %v5462_v24, -inf  ;;  %v6759_v3 = vmul.f32 %v9776_v52, %v6626_v23 }
 0x538   : > { %v6843_v29 = vrot.slane %v6760_v19, 7  ;;  %v6692_v50 = vmax.f32 %v6614_v13, %v6617_v36  ;;  %v7988_v59 = vmax.f32 %v7986_v40, %v7987_v0  ;;  %v12482_v53 = vmul.f32 %v6617_v36, %v14000_v20 }
 0x539   : > { %v12484_v39 = vmax.f32 %v7981_v6, %v7982_v26  ;;  %v6102_v28 = vmax.f32 %v6100_v7, %v6101_v27  ;;  %v6108_v47 = vrot.slane %v6107_v34, 4  ;;  %v12487_v15 = vmax.f32 %v8771_v4, %v8011_v44 }
 0x53a   : > { %v6835_v61 = vrot.slane %v6755_v63, 4  ;;  %v7989_v43 = vrot.slane %v7988_v59, 1  ;;  %v12489_v58 = vmax.f32 %v6694_v18, %v6629_v57  ;;  %v12491_v32 = vmax.f32 %v8774_v38, %v8018_v51 }
 0x53b   : > { %v6103_v56 = vrot.slane %v6102_v28, 2  ;;  %v7253_v23 = vadd.f32 %v12425_v62, %v9686_v37  ;;  %v12495_v12 = vsel %vm2308_vm4, %v6843_v29, %v6759_v3  ;;  %v12498_v30 = vmax.f32 %v6692_v50, %v12407_v2  ;;  %v9629_v2 = vpop.f32.mrf.mxu0  ;;  %v9687_v37 = vpop.f32.mrf.mxu1 }
 0x53c   : > { %v5138_v6 = vadd.f32 %v12425_v62, %v5137_v25  ;;  %v7245_v4 = vadd.f32 %v12425_v62, %v7244_v14  ;;  %v6837_v44 = vrot.slane %v12482_v53, 3  ;;  %v6109_v38 = vmax.f32 %v6107_v34, %v6108_v47 }
 0x53d   : > { %v7473_v40 = vmax.f32 %v7253_v23, 0.0  ;;  %v6836_v19 = vsel %vm2476_vm7, %v6835_v61, %v12143_v9  ;;  %v12507_v51 = vmax.f32 %v7988_v59, %v7989_v43  ;;  %v6104_v36 = vmax.f32 %v6102_v28, %v6103_v56 }
 0x53e   : > { %v5316_v13 = vmax.f32 %v5138_v6, 0.0  ;;  %v7471_v24 = vmax.f32 %v7245_v4, 0.0  ;;  %v5149_v7 = vadd.f32 %v12425_v62, %v9629_v2  ;;  %v6110_v52 = vrot.slane %v6109_v38, 2 }
 0x53f   : > { %v7617_v26 = vcombine.high %v7473_v40, %v7473_v40  ;;  %v8047_v0 = vsel %vm1138_vm3, %v7473_v40, -inf  ;;  %v7256_v29 = vadd.f32 %v12425_v62, %v9687_v37  ;;  %v6105_v47 = vrot.slane %v6104_v36, 1 }
 0x540   : > { %v8048_v18 = vrot.slane %v8047_v0, 4  ;;  %v5460_v63 = vcombine.high %v5316_v13, %v5316_v13  ;;  %v6072_v27 = vsel %vm1138_vm3, %v5316_v13, -inf  ;;  %v7615_v34 = vcombine.high %v7471_v24, %v7471_v24 }
 0x541   : > { %v8054_v9 = vsel %vm1138_vm3, %v7617_v26, -inf  ;;  %v6073_v3 = vrot.slane %v6072_v27, 4  ;;  %v8019_v28 = vsel %vm1138_vm3, %v7471_v24, -inf  ;;  %v5319_v6 = vmax.f32 %v5149_v7, 0.0 }
 0x542   : > { %v8049_v50 = vmax.f32 %v8047_v0, %v8048_v18  ;;  %v8055_v59 = vrot.slane %v8054_v9, 4  ;;  %v6079_v53 = vsel %vm1138_vm3, %v5460_v63, -inf  ;;  %v8020_v43 = vrot.slane %v8019_v28, 4 }
 0x543   : > { %v6074_v14 = vmax.f32 %v6072_v27, %v6073_v3  ;;  %v6080_v61 = vrot.slane %v6079_v53, 4  ;;  %v8026_v23 = vsel %vm1138_vm3, %v7615_v34, -inf  ;;  %v5463_v0 = vcombine.high %v5319_v6, %v5319_v6 }
 0x544   : > { %v8050_v25 = vrot.slane %v8049_v50, 2  ;;  %v8056_v56 = vmax.f32 %v8054_v9, %v8055_v59  ;;  %v8021_v13 = vmax.f32 %v8019_v28, %v8020_v43  ;;  %v8027_v2 = vrot.slane %v8026_v23, 4 }
 0x545   : > { %v6075_v4 = vrot.slane %v6074_v14, 2  ;;  %v6081_v40 = vmax.f32 %v6079_v53, %v6080_v61  ;;  %v6114_v18 = vsel %vm1138_vm3, %v5319_v6, -inf  ;;  %v6111_v63 = vmax.f32 %v6109_v38, %v6110_v52 }
 0x546   : > { %v8051_v37 = vmax.f32 %v8049_v50, %v8050_v25  ;;  %v8057_v26 = vrot.slane %v8056_v56, 2  ;;  %v8022_v60 = vrot.slane %v8021_v13, 2  ;;  %v8028_v27 = vmax.f32 %v8026_v23, %v8027_v2 }
 0x547   : > { %v6082_v24 = vrot.slane %v6081_v40, 2  ;;  %v6115_v10 = vrot.slane %v6114_v18, 4  ;;  %v6121_v9 = vsel %vm1138_vm3, %v5463_v0, -inf  ;;  %v6076_v34 = vmax.f32 %v6074_v14, %v6075_v4 }
 0x548   : > { %v8052_v3 = vrot.slane %v8051_v37, 1  ;;  %v8058_v57 = vmax.f32 %v8056_v56, %v8057_v26  ;;  %v8023_v59 = vmax.f32 %v8021_v13, %v8022_v60  ;;  %v8029_v53 = vrot.slane %v8028_v27, 2 }
 0x549   : > { %v6083_v7 = vmax.f32 %v6081_v40, %v6082_v24  ;;  %v6116_v50 = vmax.f32 %v6114_v18, %v6115_v10  ;;  %v6122_v43 = vrot.slane %v6121_v9, 4  ;;  %v12520_v25 = vsel %vm2479_vm8, %v6837_v44, %v6836_v19 }
 0x54a   : > { %v8053_v28 = vmax.f32 %v8051_v37, %v8052_v3  ;;  %v8059_v61 = vrot.slane %v8058_v57, 1  ;;  %14001 = vst [vmem:[#allocation26_spill] sm:$0xff] %v12520_v25  ;;  %v6112_v38 = vrot.slane %v6111_v63, 1  ;;  %v8024_v52 = vrot.slane %v8023_v59, 1  ;;  %v7247_v37 = vpop.f32.mrf.mxu1  ;;  %v9777_v3 = vld [vmem:[%s13699_s5 + $0x8] sm:$0xff] }
 0x54b   : > { %v8030_v6 = vmax.f32 %v8028_v27, %v8029_v53  ;;  %v8780_v56 = vmax.f32 %v12370_v41, %v12507_v51  ;;  %v6117_v2 = vrot.slane %v6116_v50, 2  ;;  %v6123_v26 = vmax.f32 %v6121_v9, %v6122_v43 }
 0x54c   : > { %v8060_v23 = vmax.f32 %v8058_v57, %v8059_v61  ;;  %v12524_v14 = vmax.f32 %v6104_v36, %v6105_v47  ;;  %v6077_v60 = vrot.slane %v6076_v34, 1  ;;  %v7474_v40 = vmax.f32 %v7256_v29, 0.0 }
 0x54d   : > { %v8031_v4 = vrot.slane %v8030_v6, 1  ;;  %v12527_v10 = vmax.f32 %v12487_v15, %v8053_v28  ;;  %v6084_v19 = vrot.slane %v6083_v7, 1  ;;  %v6124_v13 = vrot.slane %v6123_v26, 2  ;;  %v5140_v15 = vpop.f32.mrf.mxu0 }
 0x54e   : > { %v12530_v44 = vmax.f32 %v12491_v32, %v8060_v23  ;;  %v12532_v0 = vmax.f32 %v6111_v63, %v6112_v38  ;;  %v8025_v41 = vmax.f32 %v8023_v59, %v8024_v52  ;;  %v7618_v57 = vcombine.high %v7474_v40, %v7474_v40 }
 0x54f   : > { %v8061_v51 = vsel %vm1138_vm3, %v7474_v40, -inf  ;;  %v8032_v47 = vmax.f32 %v8030_v6, %v8031_v4  ;;  %v6118_v29 = vmax.f32 %v6116_v50, %v6117_v2  ;;  %v12537_v24 = vmax.f32 %v6076_v34, %v6077_v60 }
 0x550   : > { %v8923_v36 = vmul.f32 %v12530_v44, %v13931_v21  ;;  %v8062_v18 = vrot.slane %v8061_v51, 4  ;;  %v8068_v32 = vsel %vm1138_vm3, %v7618_v57, -inf  ;;  %v5141_v27 = vadd.f32 %v12425_v62, %v5140_v15 }
 0x551   : > { %v7248_v63 = vadd.f32 %v12425_v62, %v7247_v37  ;;  %v8922_v9 = vmul.f32 %v9777_v3, %v12527_v10  ;;  %v12546_v59 = vmax.f32 %v6083_v7, %v6084_v19  ;;  %v6125_v21 = vmax.f32 %v6123_v26, %v6124_v13 }
 0x552   : > { %v8063_v53 = vmax.f32 %v8061_v51, %v8062_v18  ;;  %v14002_v34 = vmax.f32 %v12349_v17, %v12484_v39  ;;  %v8069_v61 = vrot.slane %v8068_v32, 4  ;;  %v5317_v50 = vmax.f32 %v5141_v27, 0.0 }
 0x553   : > { %v7472_v43 = vmax.f32 %v7248_v63, 0.0  ;;  %v9000_v38 = vrot.slane %v8923_v36, 7  ;;  %v8781_v52 = vmax.f32 %v8780_v56, %v8032_v47  ;;  %v6119_v6 = vrot.slane %v6118_v29, 1  ;;  %v9632_v47 = vpop.f32.mrf.mxu0 }
 0x554   : > { %v8778_v28 = vmax.f32 %v14002_v34, %v8025_v41  ;;  %v8064_v23 = vrot.slane %v8063_v53, 2  ;;  %v8070_v2 = vmax.f32 %v8068_v32, %v8069_v61  ;;  %v5461_v60 = vcombine.high %v5317_v50, %v5317_v50 }
 0x555   : > { %v6086_v4 = vsel %vm1138_vm3, %v5317_v50, -inf  ;;  %v7616_v40 = vcombine.high %v7472_v43, %v7472_v43  ;;  %v6126_v7 = vrot.slane %v6125_v21, 1  ;;  %v8033_v13 = vsel %vm1138_vm3, %v7472_v43, -inf }
 0x556   : > { %v8065_v19 = vmax.f32 %v8063_v53, %v8064_v23  ;;  %v6087_v26 = vrot.slane %v6086_v4, 4  ;;  %v8071_v37 = vrot.slane %v8070_v2, 2  ;;  %v6093_v17 = vsel %vm1138_vm3, %v5461_v60, -inf  ;;  %v9690_v60 = vpop.f32.mrf.mxu1 }
 0x557   : > { %v8034_v39 = vrot.slane %v8033_v13, 4  ;;  %v8040_v41 = vsel %vm1138_vm3, %v7616_v40, -inf  ;;  %v6094_v51 = vrot.slane %v6093_v17, 4  ;;  %v12555_v18 = vmax.f32 %v6118_v29, %v6119_v6 }
 0x558   : > { %v8066_v57 = vrot.slane %v8065_v19, 1  ;;  %v6088_v56 = vmax.f32 %v6086_v4, %v6087_v26  ;;  %v8041_v36 = vrot.slane %v8040_v41, 4  ;;  %v8072_v15 = vmax.f32 %v8070_v2, %v8071_v37 }
 0x559   : > { %v8035_v32 = vmax.f32 %v8033_v13, %v8034_v39  ;;  %v5162_v27 = vadd.f32 %v12425_v62, %v9632_v47  ;;  %v6095_v53 = vmax.f32 %v6093_v17, %v6094_v51  ;;  %v12558_v61 = vmax.f32 %v6125_v21, %v6126_v7 }
 0x55a   : > { %v8067_v63 = vmax.f32 %v8065_v19, %v8066_v57  ;;  %v6089_v3 = vrot.slane %v6088_v56, 2  ;;  %v8042_v34 = vmax.f32 %v8040_v41, %v8041_v36  ;;  %v8073_v50 = vrot.slane %v8072_v15, 1 }
 0x55b   : > { %v8036_v43 = vrot.slane %v8035_v32, 2  ;;  %v5322_v23 = vmax.f32 %v5162_v27, 0.0  ;;  %v6096_v26 = vrot.slane %v6095_v53, 2  ;;  %v9001_v19 = vsel %vm2308_vm4, %v9000_v38, %v8922_v9 }
 0x55c   : > { %v8779_v4 = vmax.f32 %v8778_v28, %v8067_v63  ;;  %v6090_v40 = vmax.f32 %v6088_v56, %v6089_v3  ;;  %v8043_v25 = vrot.slane %v8042_v34, 2  ;;  %v8074_v29 = vmax.f32 %v8072_v15, %v8073_v50 }
 0x55d   : > { %v8037_v6 = vmax.f32 %v8035_v32, %v8036_v43  ;;  %v5466_v2 = vcombine.high %v5322_v23, %v5322_v23  ;;  %v6156_v13 = vsel %vm1138_vm3, %v5322_v23, -inf  ;;  %v14003_v21 = vrot.slane %v12299_v31, 4 }
 0x55e   : > { %v8924_v37 = vmul.f32 %v8779_v4, %v13936_v33  ;;  %v7269_v17 = vadd.f32 %v12425_v62, %v9690_v60  ;;  %v8782_v28 = vmax.f32 %v8781_v52, %v8074_v29  ;;  %v8044_v41 = vmax.f32 %v8042_v34, %v8043_v25 }
 0x55f   : > { %v8993_v7 = vsel %vm2476_vm7, %v14003_v21, %v12367_v11  ;;  %v8038_v39 = vrot.slane %v8037_v6, 1  ;;  %v6157_v57 = vrot.slane %v6156_v13, 4  ;;  %v6630_v56 = vmax.f32 %v12537_v24, %v12555_v18  ;;  %v14028_v18 = vld [vmem:[#allocation46_spill] sm:$0xff] }
 0x560   : > { %v6091_v51 = vrot.slane %v6090_v40, 1  ;;  %v6097_v36 = vmax.f32 %v6095_v53, %v6096_v26  ;;  %v6163_v9 = vsel %vm1138_vm3, %v5466_v2, -inf  ;;  %v6633_v33 = vmax.f32 %v12546_v59, %v12558_v61  ;;  %v14006_v26 = vld [vmem:[#allocation18_spill] sm:$0xff] }
 0x561   : > { %v9002_v38 = vrot.slane %v8924_v37, 6  ;;  %v8039_v31 = vmax.f32 %v8037_v6, %v8038_v39  ;;  %v8045_v47 = vrot.slane %v8044_v41, 1  ;;  %v8861_v11 = vmax.f32 %v12530_v44, %v8779_v4  ;;  %v14005_v4 = vld [vmem:[#allocation32_spill] sm:$0xff] }
 0x562   : > { %v14004_v52 = vrot.slane %v12308_v55, 3  ;;  %v6158_v15 = vmax.f32 %v6156_v13, %v6157_v57  ;;  %v6164_v32 = vrot.slane %v6163_v9, 4  ;;  %v8925_v27 = vmul.f32 %v8782_v28, %v13939_v48  ;;  %v14007_v37 = vld [vmem:[#allocation48_spill] sm:$0xff] }
 0x563   : > { %v8046_v63 = vmax.f32 %v8044_v41, %v8045_v47  ;;  %v8767_v3 = vmax.f32 %v12440_v46, %v8039_v31  ;;  %v7477_v53 = vmax.f32 %v7269_v17, 0.0  ;;  %v12579_v34 = vmax.f32 %v6090_v40, %v6091_v51  ;;  %v14009_v17 = vld [vmem:[#allocation17_spill] sm:$0xff] }
 0x564   : > { %v8995_v25 = vsel %vm2479_vm8, %v14004_v52, %v8993_v7  ;;  %v6098_v50 = vrot.slane %v6097_v36, 1  ;;  %v6159_v43 = vrot.slane %v6158_v15, 2  ;;  %v6165_v23 = vmax.f32 %v6163_v9, %v6164_v32  ;;  %v14008_v7 = vld [vmem:[#allocation29_spill] sm:$0xff] }
 0x565   : > { %v9003_v60 = vsel %vm2311_vm5, %v9002_v38, %v9001_v19  ;;  %v8770_v44 = vmax.f32 %v12464_v16, %v8046_v63  ;;  %v7621_v55 = vcombine.high %v7477_v53, %v7477_v53  ;;  %v4537_v29 = vmax.f32 %v14006_v26, %v14005_v4  ;;  %v14011_v38 = vld [vmem:[#allocation47_spill] sm:$0xff]  ;;  %v14013_v32 = vld [vmem:[#allocation77_spill] sm:$0xff] }
 0x566   : > { %v8920_v6 = vmul.f32 %v8767_v3, %v13942_v35  ;;  %v6160_v48 = vmax.f32 %v6158_v15, %v6159_v43  ;;  %v6166_v2 = vrot.slane %v6165_v23, 2  ;;  %v8103_v46 = vsel %vm1138_vm3, %v7477_v53, -inf  ;;  %v14015_v43 = vld [vmem:[#allocation75_spill] sm:$0xff] }
 0x567   : > { %v9004_v13 = vrot.slane %v8925_v27, 5  ;;  %v8104_v40 = vrot.slane %v8103_v46, 4  ;;  %v4538_v21 = vmax.f32 %v4537_v29, %v14007_v37  ;;  %v4539_v39 = vmax.f32 %v14009_v17, %v14008_v7  ;;  %v14014_v27 = vld [vmem:[#allocation62_spill] sm:$0xff] }
 0x568   : > { %v8859_v19 = vmax.f32 %v8767_v3, %v8770_v44  ;;  %v6161_v41 = vrot.slane %v6160_v48, 1  ;;  %v6167_v16 = vmax.f32 %v6165_v23, %v6166_v2  ;;  %v8110_v57 = vsel %vm1138_vm3, %v7621_v55, -inf }
 0x569   : > { %v12591_v51 = vmax.f32 %v8861_v11, %v8782_v28  ;;  %v12593_v9 = vmax.f32 %v6097_v36, %v6098_v50  ;;  %v8105_v35 = vmax.f32 %v8103_v46, %v8104_v40  ;;  %v4540_v31 = vmax.f32 %v4539_v39, %v14011_v38  ;;  %v14016_v28 = vld [vmem:[#allocation61_spill] sm:$0xff]  ;;  %v14022_v39 = vld [vmem:[#allocation63_spill] sm:$0xff]  ;;  %v7260_v38 = vpop.f32.mrf.mxu1 }
 0x56a   : > { %v12597_v47 = vmul.f32 %v8770_v44, %v13944_v5  ;;  %v8996_v52 = vrot.slane %v8920_v6, 2  ;;  %v8111_v15 = vrot.slane %v8110_v57, 4  ;;  %v4541_v63 = vmax.f32 %v14014_v27, %v14013_v32  ;;  %v14020_v40 = vld [vmem:[#allocation45_spill] sm:$0xff]  ;;  %v14025_v32 = vld [vmem:[#allocation31_spill] sm:$0xff] }
 0x56b   : > { %14010 = vst [vmem:[#allocation42_spill] sm:$0xff] %v12591_v51  ;;  %v12602_v3 = vsel %vm2314_vm6, %v9004_v13, %v9003_v60  ;;  %v8106_v53 = vrot.slane %v8105_v35, 2  ;;  %v4543_v11 = vmax.f32 %v14016_v28, %v14015_v43  ;;  %v4545_v36 = vmax.f32 %v4538_v21, %v4540_v31  ;;  %v9778_v60 = vld [vmem:[%s13698_s4] sm:$0xf]  ;;  %v14019_v13 = vld [vmem:[#allocation49_spill] sm:$0xff] }
 0x56c   : > { %14012 = vst [vmem:[#allocation3_spill] sm:$0xff] %v12597_v47  ;;  %v12607_v50 = vmax.f32 %v8859_v19, %v12527_v10  ;;  %v6162_v23 = vmax.f32 %v6160_v48, %v6161_v41  ;;  %v6168_v55 = vrot.slane %v6167_v16, 1  ;;  %v4542_v5 = vmax.f32 %v4541_v63, %v11978_v49  ;;  %v14023_v19 = vld [vmem:[#allocation58_spill] sm:$0xff]  ;;  %v14030_v43 = vld [vmem:[#allocation59_spill] sm:$0xff] }
 0x56d   : > { %v8112_v44 = vmax.f32 %v8110_v57, %v8111_v15  ;;  %v4544_v4 = vmax.f32 %v4543_v11, %v11952_v54  ;;  %v4549_v26 = vmul.f32 %v9778_v60, %v4538_v21  ;;  %v4550_v29 = vmul.f32 %v4540_v31, %v12175_v45 }
 0x56e   : > { %14017 = vst [vmem:[#allocation4_spill] sm:$0xff] %v12607_v50  ;;  %v12616_v6 = vsel %vm2482_vm9, %v8996_v52, %v8995_v25  ;;  %v12619_v2 = vmax.f32 %v8105_v35, %v8106_v53  ;;  %v4551_v48 = vmul.f32 %v4542_v5, %v12181_v42  ;;  %v14021_v37 = vrot.slane %v14020_v40, 2  ;;  %v5153_v35 = vpop.f32.mrf.mxu0  ;;  %v14037_v40 = vld [vmem:[#allocation60_spill] sm:$0xff] }
 0x56f   : > { %14018 = vst [vmem:[#allocation15_spill] sm:$0xff] %v12616_v6  ;;  %v4546_v49 = vmax.f32 %v4542_v5, %v4544_v4  ;;  %v4552_v46 = vmul.f32 %v4544_v4, %v12183_v1  ;;  %v4557_v54 = vrot.slane %v4550_v29, 7  ;;  %v12627_v7 = vmax.f32 %v6167_v16, %v6168_v55  ;;  %v14026_v16 = vld [vmem:[#allocation30_spill] sm:$0xff] }
 0x570   : > { %v4669_v21 = vsel %vm2482_vm9, %v14021_v37, %v14019_v13  ;;  %v12632_v25 = vmax.f32 %v6630_v56, %v6162_v23  ;;  %v4559_v17 = vrot.slane %v4551_v48, 6  ;;  %v14024_v41 = vrot.slane %v14023_v19, 3  ;;  %v14032_v23 = vld [vmem:[#allocation78_spill] sm:$0xff]  ;;  %v14035_v48 = vld [vmem:[#allocation76_spill] sm:$0xff] }
 0x571   : > { %v8113_v31 = vrot.slane %v8112_v44, 2  ;;  %v4558_v52 = vsel %vm2308_vm4, %v4557_v54, %v4549_v26  ;;  %v4561_v15 = vrot.slane %v4552_v46, 5  ;;  %v14027_v27 = vrot.slane %v14026_v16, 1  ;;  %v14033_v55 = vld [vmem:[#allocation74_spill] sm:$0xff] }
 0x572   : > { %v4681_v57 = vsel %vm2479_vm8, %v14024_v41, %v14022_v39  ;;  %v4560_v24 = vsel %vm2311_vm5, %v4559_v17, %v4558_v52  ;;  %v14029_v56 = vrot.slane %v14028_v18, 1  ;;  %v14031_v28 = vrot.slane %v14030_v43, 2  ;;  %v14039_v17 = vld [vmem:[#allocation83_spill] sm:$0xff]  ;;  %v14041_v41 = vld [vmem:[#allocation80_spill] sm:$0xff] }
 0x573   : > { %v4657_v63 = vsel %vm2485_vm10, %v14027_v27, %v14025_v32  ;;  %v14034_v5 = vrot.slane %v14033_v55, 4  ;;  %v8108_v60 = vrot.slane %v12619_v2, 1  ;;  %v4547_v26 = vmax.f32 %v4545_v36, %v4546_v49  ;;  %v9633_v49 = vpop.f32.mrf.mxu0  ;;  %v14044_v27 = vld [vmem:[#allocation82_spill] sm:$0xff]  ;;  %v14046_v43 = vld [vmem:[#allocation84_spill] sm:$0xff] }
 0x574   : > { %v4671_v53 = vsel %vm2485_vm10, %v14029_v56, %v4669_v21  ;;  %v4683_v11 = vsel %vm2482_vm9, %v14031_v28, %v4681_v57  ;;  %v4562_v29 = vsel %vm2314_vm6, %v4561_v15, %v4560_v24  ;;  %v14036_v46 = vrot.slane %v14035_v48, 3  ;;  %v14042_v57 = vld [vmem:[#allocation81_spill] sm:$0xff]  ;;  %v9691_v15 = vpop.f32.mrf.mxu1 }
 0x575   : > { %v4693_v4 = vsel %vm2476_vm7, %v14034_v5, %v14032_v23  ;;  %v4564_v13 = vsel %vm1138_vm3, %v4562_v29, 0.0  ;;  %v14038_v37 = vrot.slane %v14037_v40, 1  ;;  %v14040_v39 = vrot.slane %v14039_v17, 2  ;;  %v5156_v40 = vpop.f32.mrf.mxu0 }
 0x576   : > { %v4695_v54 = vsel %vm2479_vm8, %v14036_v46, %v4693_v4  ;;  %v14043_v52 = vrot.slane %v14042_v57, 6  ;;  %v12670_v32 = vmax.f32 %v8112_v44, %v8113_v31  ;;  %v4565_v16 = vrot.slane %v4564_v13, 4  ;;  %v9779_v44 = vld [vmem:[%s13697_s3] sm:$0x1] }
 0x577   : > { %v4685_v21 = vsel %vm2485_vm10, %v14038_v37, %v4683_v11  ;;  %v4697_v19 = vsel %vm2482_vm9, %v14040_v39, %v4695_v54  ;;  %v14045_v24 = vrot.slane %v14044_v27, 5  ;;  %v4711_v56 = vadd.f32 %v4671_v53, %v4657_v63 }
 0x578   : > { %v4703_v36 = vsel %vm2311_vm5, %v14043_v52, %v14041_v41  ;;  %v14047_v28 = vrot.slane %v14046_v43, 1  ;;  %v5154_v23 = vadd.f32 %v12425_v62, %v5153_v35  ;;  %v7261_v55 = vadd.f32 %v12425_v62, %v7260_v38 }
 0x579   : > { %v4705_v18 = vsel %vm2314_vm6, %v14045_v24, %v4703_v36  ;;  %v5165_v5 = vadd.f32 %v12425_v62, %v9633_v49  ;;  %v4548_v31 = vmul.f32 %v9779_v44, %v4547_v26  ;;  %v4566_v4 = vadd.f32 %v4565_v16, %v4564_v13 }
 0x57a   : > { %v4699_v11 = vsel %vm2485_vm10, %v14047_v28, %v4697_v19  ;;  %v4712_v29 = vadd.f32 %v4711_v56, %v4685_v21  ;;  %v7272_v48 = vadd.f32 %v12425_v62, %v9691_v15  ;;  %v4714_v63 = vsel %vm1138_vm3, %v4705_v18, 0.0 }
 0x57b   : > { %v5320_v53 = vmax.f32 %v5154_v23, 0.0  ;;  %v7475_v46 = vmax.f32 %v7261_v55, 0.0  ;;  %v5323_v54 = vmax.f32 %v5165_v5, 0.0  ;;  %v4567_v35 = vrot.slane %v4566_v4, 2 }
 0x57c   : > { %v4713_v37 = vadd.f32 %v4712_v29, %v4699_v11  ;;  %v12686_v38 = vmax.f32 %v7272_v48, 0.0  ;;  %v5157_v17 = vadd.f32 %v12425_v62, %v5156_v40 }
 0x57d   : > { %v5464_v39 = vcombine.high %v5320_v53, %v5320_v53  ;;  %v6128_v19 = vsel %vm1138_vm3, %v5320_v53, -inf  ;;  %v7619_v26 = vcombine.high %v7475_v46, %v7475_v46  ;;  %v8075_v13 = vsel %vm1138_vm3, %v7475_v46, -inf }
 0x57e   : > { %v4568_v21 = vadd.f32 %v4567_v35, %v4566_v4  ;;  %v4715_v41 = vadd.f32 %v4714_v63, %v4713_v37  ;;  %v6129_v57 = vrot.slane %v6128_v19, 4  ;;  %v8076_v52 = vrot.slane %v8075_v13, 4 }
 0x57f   : > { %v6135_v36 = vsel %vm1138_vm3, %v5464_v39, -inf  ;;  %v8082_v49 = vsel %vm1138_vm3, %v7619_v26, -inf  ;;  %v5467_v15 = vcombine.high %v5323_v54, %v5323_v54  ;;  %v6170_v16 = vsel %vm1138_vm3, %v5323_v54, -inf }
 0x580   : > { %v4569_v27 = vrot.slane %v4568_v21, 1  ;;  %v4716_v24 = vrot.slane %v4715_v41, 4  ;;  %v6130_v18 = vmax.f32 %v6128_v19, %v6129_v57  ;;  %v6136_v56 = vrot.slane %v6135_v36, 4 }
 0x581   : > { %v8077_v43 = vmax.f32 %v8075_v13, %v8076_v52  ;;  %v8083_v28 = vrot.slane %v8082_v49, 4  ;;  %v6171_v11 = vrot.slane %v6170_v16, 4  ;;  %v6177_v23 = vsel %vm1138_vm3, %v5467_v15, -inf }
 0x582   : > { %v4570_v55 = vadd.f32 %v4569_v27, %v4568_v21  ;;  %v4717_v5 = vadd.f32 %v4716_v24, %v4715_v41  ;;  %v6131_v44 = vrot.slane %v6130_v18, 2  ;;  %v6137_v4 = vmax.f32 %v6135_v36, %v6136_v56 }
 0x583   : > { %v8078_v29 = vrot.slane %v8077_v43, 2  ;;  %v8084_v48 = vmax.f32 %v8082_v49, %v8083_v28  ;;  %v6172_v63 = vmax.f32 %v6170_v16, %v6171_v11  ;;  %v6178_v53 = vrot.slane %v6177_v23, 4 }
 0x584   : > { %v4571_v46 = vadd.f32 %v4570_v55, %v4548_v31  ;;  %v4718_v40 = vrot.slane %v4717_v5, 2  ;;  %v6132_v54 = vmax.f32 %v6130_v18, %v6131_v44  ;;  %v6138_v35 = vrot.slane %v6137_v4, 2  ;;  %v7263_v31 = vpop.f32.mrf.mxu1 }
 0x585   : > { %v8079_v37 = vmax.f32 %v8077_v43, %v8078_v29  ;;  %v8085_v39 = vrot.slane %v8084_v48, 2  ;;  %v6173_v19 = vrot.slane %v6172_v63, 2  ;;  %v6179_v26 = vmax.f32 %v6177_v23, %v6178_v53 }
 0x586   : > { %v8115_v13 = vrot.slane %v12670_v32, 1  ;;  %v4719_v57 = vadd.f32 %v4718_v40, %v4717_v5  ;;  %v6133_v52 = vrot.slane %v6132_v54, 1  ;;  %v6139_v21 = vmax.f32 %v6137_v4, %v6138_v35  ;;  %v9636_v35 = vpop.f32.mrf.mxu0 }
 0x587   : > { %v8080_v41 = vrot.slane %v8079_v37, 1  ;;  %v12696_v15 = vmax.f32 %v8084_v48, %v8085_v39  ;;  %v6174_v36 = vmax.f32 %v6172_v63, %v6173_v19  ;;  %v7622_v49 = vcombine.high %v12686_v38, %v12686_v38 }
 0x588   : > { %v12704_v16 = vmax.f32 %v6633_v33, %v12627_v7  ;;  %v4720_v27 = vrot.slane %v4719_v57, 1  ;;  %v6180_v24 = vrot.slane %v6179_v26, 2  ;;  %v8117_v18 = vsel %vm1138_vm3, %v12686_v38, -inf }
 0x589   : > { %v12711_v56 = vmax.f32 %v12619_v2, %v8108_v60  ;;  %v12713_v43 = vmax.f32 %v6132_v54, %v6133_v52  ;;  %v6140_v28 = vrot.slane %v6139_v21, 1  ;;  %v5321_v11 = vmax.f32 %v5157_v17, 0.0 }
 0x58a   : > { %v12716_v23 = vmax.f32 %v12670_v32, %v8115_v13  ;;  %v4721_v59 = vadd.f32 %v4720_v27, %v4719_v57  ;;  %v8118_v61 = vrot.slane %v8117_v18, 4  ;;  %v7264_v33 = vadd.f32 %v12425_v62, %v7263_v31  ;;  %v9694_v31 = vpop.f32.mrf.mxu1 }
 0x58b   : > { %v12719_v7 = vmax.f32 %v8079_v37, %v8080_v41  ;;  %v8087_v38 = vrot.slane %v12696_v15, 1  ;;  %v6175_v55 = vrot.slane %v6174_v36, 1  ;;  %v8124_v5 = vsel %vm1138_vm3, %v7622_v49, -inf }
 0x58c   : > { %v4722_v2 = vadd.f32 %v4721_v59, %v4571_v46  ;;  %v6181_v60 = vmax.f32 %v6179_v26, %v6180_v24  ;;  %v8119_v44 = vmax.f32 %v8117_v18, %v8118_v61  ;;  %v8125_v4 = vrot.slane %v8124_v5, 4 }
 0x58d   : > { %v6141_v29 = vmax.f32 %v6139_v21, %v6140_v28  ;;  %v6636_v32 = vmax.f32 %v12579_v34, %v12713_v43  ;;  %v5465_v17 = vcombine.high %v5321_v11, %v5321_v11  ;;  %v6142_v48 = vsel %vm1138_vm3, %v5321_v11, -inf }
 0x58e   : > { %v4723_v63 = vsel %vm522_vm0, %v4722_v2, 0.0  ;;  %v8120_v53 = vrot.slane %v8119_v44, 2  ;;  %v8126_v40 = vmax.f32 %v8124_v5, %v8125_v4  ;;  %v6143_v54 = vrot.slane %v6142_v48, 4 }
 0x58f   : > { %4724 = vadd.xlane.f32.xlu1 %v4723_v63  ;;  %v6176_v37 = vmax.f32 %v6174_v36, %v6175_v55  ;;  %v6149_v46 = vsel %vm1138_vm3, %v5465_v17, -inf  ;;  %v7476_v39 = vmax.f32 %v7264_v33, 0.0  ;;  %v5178_v19 = vadd.f32 %v12425_v62, %v9636_v35 }
 0x590   : > { %v8121_v26 = vmax.f32 %v8119_v44, %v8120_v53  ;;  %v8127_v13 = vrot.slane %v8126_v40, 2  ;;  %v6144_v57 = vmax.f32 %v6142_v48, %v6143_v54  ;;  %v6150_v34 = vrot.slane %v6149_v46, 4 }
 0x591   : > { %v6182_v52 = vrot.slane %v6181_v60, 1  ;;  %v7620_v21 = vcombine.high %v7476_v39, %v7476_v39  ;;  %v8089_v41 = vsel %vm1138_vm3, %v7476_v39, -inf  ;;  %v5326_v49 = vmax.f32 %v5178_v19, 0.0 }
 0x592   : > { %v8122_v27 = vrot.slane %v8121_v26, 1  ;;  %v8128_v24 = vmax.f32 %v8126_v40, %v8127_v13  ;;  %v6145_v18 = vrot.slane %v6144_v57, 2  ;;  %v6151_v43 = vmax.f32 %v6149_v46, %v6150_v34 }
 0x593   : > { %v8090_v36 = vrot.slane %v8089_v41, 4  ;;  %v8096_v28 = vsel %vm1138_vm3, %v7620_v21, -inf  ;;  %v5470_v11 = vcombine.high %v5326_v49, %v5326_v49  ;;  %v6212_v59 = vsel %vm1138_vm3, %v5326_v49, -inf }
 0x594   : > { %v8129_v61 = vrot.slane %v8128_v24, 1  ;;  %v6146_v33 = vmax.f32 %v6144_v57, %v6145_v18  ;;  %v6152_v55 = vrot.slane %v6151_v43, 2  ;;  %v7285_v5 = vadd.f32 %v12425_v62, %v9694_v31 }
 0x595   : > { %v8091_v2 = vmax.f32 %v8089_v41, %v8090_v36  ;;  %v8097_v44 = vrot.slane %v8096_v28, 4  ;;  %v6213_v4 = vrot.slane %v6212_v59, 4  ;;  %v6219_v17 = vsel %vm1138_vm3, %v5470_v11, -inf }
 0x596   : > { %v6639_v48 = vmax.f32 %v12593_v9, %v6141_v29  ;;  %v6183_v63 = vmax.f32 %v6181_v60, %v6182_v52  ;;  %v12735_v53 = vmax.f32 %v8121_v26, %v8122_v27  ;;  %v12737_v40 = vmax.f32 %v8128_v24, %v8129_v61  ;;  %v5169_v52 = vpop.f32.mrf.mxu0 }
 0x597   : > { %v6153_v54 = vmax.f32 %v6151_v43, %v6152_v55  ;;  %v8098_v35 = vmax.f32 %v8096_v28, %v8097_v44  ;;  %v6214_v46 = vmax.f32 %v6212_v59, %v6213_v4  ;;  %v6220_v39 = vrot.slane %v6219_v17, 4  ;;  %v12754_v4 = vld [vmem:[%s13696_s2] ss:$0 sm:$0xff] }
 0x598   : > { %v12740_v19 = vmax.f32 %v12696_v15, %v8087_v38  ;;  %v6637_v13 = vmax.f32 %v6636_v32, %v6176_v37  ;;  %v6147_v57 = vrot.slane %v6146_v33, 1  ;;  %v7481_v34 = vmax.f32 %v7285_v5, 0.0  ;;  %v7276_v37 = vpop.f32.mrf.mxu1 }
 0x599   : > { %v8092_v21 = vrot.slane %v8091_v2, 2  ;;  %v8099_v41 = vrot.slane %v8098_v35, 2  ;;  %v6215_v49 = vrot.slane %v6214_v46, 2  ;;  %v6221_v31 = vmax.f32 %v6219_v17, %v6220_v39  ;;  %v9637_v17 = vpop.f32.mrf.mxu0 }
 0x59a   : > { %v6640_v9 = vmax.f32 %v6639_v48, %v6183_v63  ;;  %v7625_v29 = vcombine.high %v7481_v34, %v7481_v34  ;;  %v8159_v26 = vsel %vm1138_vm3, %v7481_v34, -inf  ;;  %v6154_v15 = vrot.slane %v6153_v54, 1 }
 0x59b   : > { %v6216_v38 = vmax.f32 %v6214_v46, %v6215_v49  ;;  %v6222_v32 = vrot.slane %v6221_v31, 2  ;;  %v12747_v24 = vmax.f32 %v6146_v33, %v6147_v57  ;;  %v8160_v18 = vrot.slane %v8159_v26, 4 }
 0x59c   : > { %v8166_v43 = vsel %vm1138_vm3, %v7625_v29, -inf  ;;  %v5170_v36 = vadd.f32 %v12425_v62, %v5169_v52  ;;  %v8093_v28 = vmax.f32 %v8091_v2, %v8092_v21  ;;  %v8100_v11 = vmax.f32 %v8098_v35, %v8099_v41 }
 0x59d   : > { %v6217_v59 = vrot.slane %v6216_v38, 1  ;;  %v6223_v61 = vmax.f32 %v6221_v31, %v6222_v32  ;;  %v8161_v55 = vmax.f32 %v8159_v26, %v8160_v18  ;;  %v8167_v5 = vrot.slane %v8166_v43, 4 }
 0x59e   : > { %v5324_v44 = vmax.f32 %v5170_v36, 0.0  ;;  %v7277_v33 = vadd.f32 %v12754_v4, %v7276_v37  ;;  %v12757_v48 = vmax.f32 %v6153_v54, %v6154_v15  ;;  %v5181_v62 = vadd.f32 %v12754_v4, %v9637_v17 }
 0x59f   : > { %v6218_v63 = vmax.f32 %v6216_v38, %v6217_v59  ;;  %v6224_v46 = vrot.slane %v6223_v61, 1  ;;  %v8162_v2 = vrot.slane %v8161_v55, 2  ;;  %v8168_v35 = vmax.f32 %v8166_v43, %v8167_v5 }
 0x5a0   : > { %v5468_v39 = vcombine.high %v5324_v44, %v5324_v44  ;;  %v6184_v57 = vsel %vm1138_vm3, %v5324_v44, -inf  ;;  %v8094_v34 = vrot.slane %v8093_v28, 1  ;;  %v7479_v49 = vmax.f32 %v7277_v33, 0.0  ;;  %v14048_v33 = vld [vmem:[#allocation33_spill] sm:$0xff] }
 0x5a1   : > { %v6225_v21 = vmax.f32 %v6223_v61, %v6224_v46  ;;  %v6185_v41 = vrot.slane %v6184_v57, 4  ;;  %v6642_v31 = vmax.f32 %v12524_v14, %v12747_v24  ;;  %v8101_v29 = vrot.slane %v8100_v11, 1 }
 0x5a2   : > { %v8169_v26 = vrot.slane %v8168_v35, 2  ;;  %v6191_v54 = vsel %vm1138_vm3, %v5468_v39, -inf  ;;  %v12764_v52 = vmax.f32 %v6637_v13, %v6218_v63  ;;  %v8163_v15 = vmax.f32 %v8161_v55, %v8162_v2 }
 0x5a3   : > { %v6186_v38 = vmax.f32 %v6184_v57, %v6185_v41  ;;  %v6192_v32 = vrot.slane %v6191_v54, 4  ;;  %v12766_v37 = vmax.f32 %v6640_v9, %v6225_v21  ;;  %v7623_v18 = vcombine.high %v7479_v49, %v7479_v49  ;;  %v5172_v21 = vpop.f32.mrf.mxu0 }
 0x5a4   : > { %v8131_v43 = vsel %vm1138_vm3, %v7479_v49, -inf  ;;  %v5327_v36 = vmax.f32 %v5181_v62, 0.0  ;;  %v6645_v59 = vmax.f32 %v12532_v0, %v12757_v48  ;;  %v12771_v61 = vmax.f32 %v8093_v28, %v8094_v34  ;;  %v14049_v62 = vld [vmem:[#allocation34_spill] sm:$0xff]  ;;  %v9695_v34 = vpop.f32.mrf.mxu1 }
 0x5a5   : > { %v6187_v14 = vrot.slane %v6186_v38, 2  ;;  %v6193_v24 = vmax.f32 %v6191_v54, %v6192_v32  ;;  %v12773_v5 = vmax.f32 %v8100_v11, %v8101_v29  ;;  %v8170_v13 = vmax.f32 %v8168_v35, %v8169_v26 }
 0x5a6   : > { %v8132_v44 = vrot.slane %v8131_v43, 4  ;;  %v8138_v55 = vsel %vm1138_vm3, %v7623_v18, -inf  ;;  %v12778_v9 = vmul.f32 %v12764_v52, %v14048_v33  ;;  %v12782_v0 = vmul.f32 %v12766_v37, %v14049_v62  ;;  %v7279_v10 = vpop.f32.mrf.mxu1 }
 0x5a7   : > { %v6188_v17 = vmax.f32 %v6186_v38, %v6187_v14  ;;  %v6194_v63 = vrot.slane %v6193_v24, 2  ;;  %v8139_v46 = vrot.slane %v8138_v55, 4  ;;  %v8164_v28 = vrot.slane %v8163_v15, 1 }
 0x5a8   : > { %14050 = vst [vmem:[#allocation16_spill] sm:$0xff] %v12782_v0  ;;  %v8133_v48 = vmax.f32 %v8131_v43, %v8132_v44  ;;  %v5471_v2 = vcombine.high %v5327_v36, %v5327_v36  ;;  %v6226_v57 = vsel %vm1138_vm3, %v5327_v36, -inf  ;;  %v8171_v41 = vrot.slane %v8170_v13, 1 }
 0x5a9   : > { %v6189_v11 = vrot.slane %v6188_v17, 1  ;;  %v6195_v39 = vmax.f32 %v6193_v24, %v6194_v63  ;;  %v8140_v35 = vmax.f32 %v8138_v55, %v8139_v46  ;;  %v6227_v29 = vrot.slane %v6226_v57, 4 }
 0x5aa   : > { %v8134_v49 = vrot.slane %v8133_v48, 2  ;;  %v6233_v26 = vsel %vm1138_vm3, %v5471_v2, -inf  ;;  %v7288_v44 = vadd.f32 %v12754_v4, %v9695_v34  ;;  %v5173_v24 = vadd.f32 %v12754_v4, %v5172_v21 }
 0x5ab   : > { %v6190_v54 = vmax.f32 %v6188_v17, %v6189_v11  ;;  %v6196_v38 = vrot.slane %v6195_v39, 1  ;;  %v8141_v32 = vrot.slane %v8140_v35, 2  ;;  %v6234_v18 = vrot.slane %v6233_v26, 4 }
 0x5ac   : > { %v6228_v43 = vmax.f32 %v6226_v57, %v6227_v29  ;;  %v8165_v55 = vmax.f32 %v8163_v15, %v8164_v28  ;;  %v8135_v63 = vmax.f32 %v8133_v48, %v8134_v49  ;;  %v7482_v2 = vmax.f32 %v7288_v44, 0.0 }
 0x5ad   : > { %v6235_v46 = vmax.f32 %v6233_v26, %v6234_v18  ;;  %v8142_v27 = vmax.f32 %v8140_v35, %v8141_v32  ;;  %v5325_v17 = vmax.f32 %v5173_v24, 0.0  ;;  %v8172_v11 = vmax.f32 %v8170_v13, %v8171_v41 }
 0x5ae   : > { %v6229_v60 = vrot.slane %v6228_v43, 2  ;;  %v6197_v47 = vmax.f32 %v6195_v39, %v6196_v38  ;;  %v6643_v6 = vmax.f32 %v6642_v31, %v6190_v54  ;;  %v7626_v57 = vcombine.high %v7482_v2, %v7482_v2 }
 0x5af   : > { %v6236_v51 = vrot.slane %v6235_v46, 2  ;;  %v8173_v34 = vsel %vm1138_vm3, %v7482_v2, -inf  ;;  %v7280_v21 = vadd.f32 %v12754_v4, %v7279_v10  ;;  %v8136_v29 = vrot.slane %v8135_v63, 1 }
 0x5b0   : > { %v6230_v14 = vmax.f32 %v6228_v43, %v6229_v60  ;;  %v8174_v15 = vrot.slane %v8173_v34, 4  ;;  %v5469_v28 = vcombine.high %v5325_v17, %v5325_v17  ;;  %v8143_v48 = vrot.slane %v8142_v27, 1 }
 0x5b1   : > { %v6237_v36 = vmax.f32 %v6235_v46, %v6236_v51  ;;  %v8180_v35 = vsel %vm1138_vm3, %v7626_v57, -inf  ;;  %v6198_v26 = vsel %vm1138_vm3, %v5325_v17, -inf  ;;  %v6646_v13 = vmax.f32 %v6645_v59, %v6197_v47 }
 0x5b2   : > { %v6231_v49 = vrot.slane %v6230_v14, 1  ;;  %v8175_v31 = vmax.f32 %v8173_v34, %v8174_v15  ;;  %v8181_v41 = vrot.slane %v8180_v35, 4  ;;  %v6199_v54 = vrot.slane %v6198_v26, 4 }
 0x5b3   : > { %v6238_v39 = vrot.slane %v6237_v36, 1  ;;  %v6205_v38 = vsel %vm1138_vm3, %v5469_v28, -inf  ;;  %v7480_v32 = vmax.f32 %v7280_v21, 0.0  ;;  %v12795_v44 = vmax.f32 %v8135_v63, %v8136_v29 }
 0x5b4   : > { %v6232_v60 = vmax.f32 %v6230_v14, %v6231_v49  ;;  %v8176_v18 = vrot.slane %v8175_v31, 2  ;;  %v8182_v51 = vmax.f32 %v8180_v35, %v8181_v41  ;;  %v6206_v43 = vrot.slane %v6205_v38, 4 }
 0x5b5   : > { %v6239_v10 = vmax.f32 %v6237_v36, %v6238_v39  ;;  %v12797_v24 = vmax.f32 %v8142_v27, %v8143_v48  ;;  %v6200_v46 = vmax.f32 %v6198_v26, %v6199_v54  ;;  %v8145_v2 = vsel %vm1138_vm3, %v7480_v32, -inf  ;;  %v14053_v26 = vld [vmem:[#allocation36_spill] sm:$0xff] }
 0x5b6   : > { %v6644_v47 = vmax.f32 %v6643_v6, %v6232_v60  ;;  %v8177_v59 = vmax.f32 %v8175_v31, %v8176_v18  ;;  %v8183_v17 = vrot.slane %v8182_v51, 2  ;;  %v6207_v57 = vmax.f32 %v6205_v38, %v6206_v43  ;;  %v14055_v60 = vld [vmem:[#allocation37_spill] sm:$0xff] }
 0x5b7   : > { %v14051_v14 = vmax.f32 %v12719_v7, %v12735_v53  ;;  %v6201_v36 = vrot.slane %v6200_v46, 2  ;;  %v7624_v21 = vcombine.high %v7480_v32, %v7480_v32  ;;  %v8146_v15 = vrot.slane %v8145_v2, 4 }
 0x5b8   : > { %v14052_v63 = vmax.f32 %v12740_v19, %v12737_v40  ;;  %v6647_v29 = vmax.f32 %v6646_v13, %v6239_v10  ;;  %v8184_v28 = vmax.f32 %v8182_v51, %v8183_v17  ;;  %v6208_v48 = vrot.slane %v6207_v57, 2 }
 0x5b9   : > { %v12803_v34 = vmax.f32 %v14051_v14, %v8165_v55  ;;  %v8789_v6 = vmax.f32 %v12771_v61, %v12795_v44  ;;  %v8792_v49 = vmax.f32 %v12773_v5, %v12797_v24  ;;  %v6202_v7 = vmax.f32 %v6200_v46, %v6201_v36  ;;  %v9640_v55 = vpop.f32.mrf.mxu0 }
 0x5ba   : > { %v12808_v27 = vmax.f32 %v14052_v63, %v8172_v11  ;;  %v8147_v53 = vmax.f32 %v8145_v2, %v8146_v15  ;;  %v6698_v35 = vmax.f32 %v12766_v37, %v6644_v47  ;;  %v12816_v39 = vmul.f32 %v6644_v47, %v14053_v26  ;;  %v9698_v11 = vpop.f32.mrf.mxu1 }
 0x5bb   : > { %v8178_v40 = vrot.slane %v8177_v59, 1  ;;  %v6209_v19 = vmax.f32 %v6207_v57, %v6208_v48  ;;  %v6203_v13 = vrot.slane %v6202_v7, 1  ;;  %v8152_v41 = vsel %vm1138_vm3, %v7624_v21, -inf  ;;  %v5185_v43 = vpop.f32.mrf.mxu0 }
 0x5bc   : > { %14054 = vst [vmem:[#allocation28_spill] sm:$0xff] %v12816_v39  ;;  %v8148_v31 = vrot.slane %v8147_v53, 2  ;;  %v5194_v61 = vadd.f32 %v12754_v4, %v9640_v55  ;;  %v12821_v54 = vmul.f32 %v6647_v29, %v14055_v60  ;;  %v8185_v5 = vrot.slane %v8184_v28, 1 }
 0x5bd   : > { %v6210_v38 = vrot.slane %v6209_v19, 1  ;;  %v8153_v32 = vrot.slane %v8152_v41, 4  ;;  %v6204_v10 = vmax.f32 %v6202_v7, %v6203_v13  ;;  %v7301_v51 = vadd.f32 %v12754_v4, %v9698_v11 }
 0x5be   : > { %14056 = vst [vmem:[#allocation21_spill] sm:$0xff] %v12821_v54  ;;  %v8149_v37 = vmax.f32 %v8147_v53, %v8148_v31  ;;  %v5330_v18 = vmax.f32 %v5194_v61, 0.0  ;;  %v8179_v44 = vmax.f32 %v8177_v59, %v8178_v40  ;;  %v5186_v2 = vadd.f32 %v12754_v4, %v5185_v43  ;;  %v14058_v53 = vld [vmem:[#allocation38_spill] sm:$0xff]  ;;  %v14059_v40 = vld [vmem:[#allocation39_spill] sm:$0xff] }
 0x5bf   : > { %v6211_v24 = vmax.f32 %v6209_v19, %v6210_v38  ;;  %v8154_v46 = vmax.f32 %v8152_v41, %v8153_v32  ;;  %v6632_v47 = vmax.f32 %v12632_v25, %v6204_v10  ;;  %v7485_v63 = vmax.f32 %v7301_v51, 0.0 }
 0x5c0   : > { %v8150_v17 = vrot.slane %v8149_v37, 1  ;;  %v5474_v57 = vcombine.high %v5330_v18, %v5330_v18  ;;  %v6268_v14 = vsel %vm1138_vm3, %v5330_v18, -inf  ;;  %v12828_v48 = vmax.f32 %v6698_v35, %v6647_v29 }
 0x5c1   : > { %v6635_v36 = vmax.f32 %v12704_v16, %v6211_v24  ;;  %v8155_v21 = vrot.slane %v8154_v46, 2  ;;  %v6269_v15 = vrot.slane %v6268_v14, 4  ;;  %v8186_v7 = vmax.f32 %v8184_v28, %v8185_v5 }
 0x5c2   : > { %14057 = vst [vmem:[#allocation44_spill] sm:$0xff] %v12828_v48  ;;  %v6761_v59 = vmul.f32 %v6632_v47, %v14058_v53  ;;  %v6275_v55 = vsel %vm1138_vm3, %v5474_v57, -inf  ;;  %v12833_v11 = vmax.f32 %v8149_v37, %v8150_v17  ;;  %v5328_v13 = vmax.f32 %v5186_v2, 0.0 }
 0x5c3   : > { %v6762_v19 = vmul.f32 %v6635_v36, %v14059_v40  ;;  %v8156_v25 = vmax.f32 %v8154_v46, %v8155_v21  ;;  %v6270_v41 = vmax.f32 %v6268_v14, %v6269_v15  ;;  %v6276_v61 = vrot.slane %v6275_v55, 4 }
 0x5c4   : > { %v6845_v31 = vrot.slane %v6761_v59, 6  ;;  %v7629_v16 = vcombine.high %v7485_v63, %v7485_v63  ;;  %v12837_v35 = vmax.f32 %v8789_v6, %v8179_v44  ;;  %v6696_v28 = vmax.f32 %v6632_v47, %v6635_v36  ;;  %v7292_v47 = vpop.f32.mrf.mxu1 }
 0x5c5   : > { %v6847_v5 = vrot.slane %v6762_v19, 5  ;;  %v6277_v32 = vmax.f32 %v6275_v55, %v6276_v61  ;;  %v8215_v10 = vsel %vm1138_vm3, %v7485_v63, -inf  ;;  %v12841_v18 = vmax.f32 %v8792_v49, %v8186_v7  ;;  %v9641_v19 = vpop.f32.mrf.mxu0 }
 0x5c6   : > { %v8222_v37 = vsel %vm1138_vm3, %v7629_v16, -inf  ;;  %v6846_v51 = vsel %vm2311_vm5, %v6845_v31, %v12495_v12  ;;  %v8157_v43 = vrot.slane %v8156_v25, 1  ;;  %v8216_v24 = vrot.slane %v8215_v10, 4 }
 0x5c7   : > { %v6271_v2 = vrot.slane %v6270_v41, 2  ;;  %v8223_v6 = vrot.slane %v8222_v37, 4  ;;  %v5472_v44 = vcombine.high %v5328_v13, %v5328_v13  ;;  %v12848_v17 = vmax.f32 %v6696_v28, %v12764_v52 }
 0x5c8   : > { %v6278_v57 = vrot.slane %v6277_v32, 2  ;;  %v8217_v14 = vmax.f32 %v8215_v10, %v8216_v24  ;;  %v6240_v49 = vsel %vm1138_vm3, %v5328_v13, -inf  ;;  %v6848_v36 = vsel %vm2314_vm6, %v6847_v5, %v6846_v51 }
 0x5c9   : > { %v8224_v21 = vmax.f32 %v8222_v37, %v8223_v6  ;;  %v6241_v12 = vrot.slane %v6240_v49, 4  ;;  %v6247_v15 = vsel %vm1138_vm3, %v5472_v44, -inf  ;;  %v12853_v63 = vmax.f32 %v8156_v25, %v8157_v43 }
 0x5ca   : > { %v8218_v7 = vrot.slane %v8217_v14, 2  ;;  %v6248_v59 = vrot.slane %v6247_v15, 4  ;;  %v7293_v55 = vadd.f32 %v12754_v4, %v7292_v47  ;;  %v6272_v31 = vmax.f32 %v6270_v41, %v6271_v2  ;;  %v9699_v2 = vpop.f32.mrf.mxu1 }
 0x5cb   : > { %v8225_v52 = vrot.slane %v8224_v21, 2  ;;  %v6242_v61 = vmax.f32 %v6240_v49, %v6241_v12  ;;  %v5197_v16 = vadd.f32 %v12754_v4, %v9641_v19  ;;  %v6279_v28 = vmax.f32 %v6277_v32, %v6278_v57 }
 0x5cc   : > { %v8219_v13 = vmax.f32 %v8217_v14, %v8218_v7  ;;  %v6249_v10 = vmax.f32 %v6247_v15, %v6248_v59  ;;  %v7483_v5 = vmax.f32 %v7293_v55, 0.0  ;;  %v14060_v37 = vrot.slane %v12778_v9, 4 }
 0x5cd   : > { %v8226_v25 = vmax.f32 %v8224_v21, %v8225_v52  ;;  %v6243_v43 = vrot.slane %v6242_v61, 2  ;;  %v5331_v24 = vmax.f32 %v5197_v16, 0.0  ;;  %v6273_v49 = vrot.slane %v6272_v31, 1 }
 0x5ce   : > { %v12860_v51 = vsel %vm2476_vm7, %v14060_v37, %v6848_v36  ;;  %v8220_v6 = vrot.slane %v8219_v13, 1  ;;  %v6250_v44 = vrot.slane %v6249_v10, 2  ;;  %v7627_v47 = vcombine.high %v7483_v5, %v7483_v5 }
 0x5cf   : > { %14061 = vst [vmem:[#allocation35_spill] sm:$0xff] %v12860_v51  ;;  %v8187_v41 = vsel %vm1138_vm3, %v7483_v5, -inf  ;;  %v8227_v12 = vrot.slane %v8226_v25, 1  ;;  %v5475_v57 = vcombine.high %v5331_v24, %v5331_v24  ;;  %v6280_v14 = vrot.slane %v6279_v28, 1 }
 0x5d0   : > { %v8188_v32 = vrot.slane %v8187_v41, 4  ;;  %v6244_v15 = vmax.f32 %v6242_v61, %v6243_v43  ;;  %v8194_v9 = vsel %vm1138_vm3, %v7627_v47, -inf  ;;  %v6282_v36 = vsel %vm1138_vm3, %v5331_v24, -inf }
 0x5d1   : > { %v8221_v7 = vmax.f32 %v8219_v13, %v8220_v6  ;;  %v8195_v59 = vrot.slane %v8194_v9, 4  ;;  %v7304_v55 = vadd.f32 %v12754_v4, %v9699_v2  ;;  %v6251_v52 = vmax.f32 %v6249_v10, %v6250_v44  ;;  %v5188_v10 = vpop.f32.mrf.mxu0 }
 0x5d2   : > { %v8189_v21 = vmax.f32 %v8187_v41, %v8188_v32  ;;  %v6283_v16 = vrot.slane %v6282_v36, 4  ;;  %v6289_v5 = vsel %vm1138_vm3, %v5475_v57, -inf  ;;  %v12869_v37 = vmax.f32 %v6272_v31, %v6273_v49 }
 0x5d3   : > { %v8228_v29 = vmax.f32 %v8226_v25, %v8227_v12  ;;  %v8196_v43 = vmax.f32 %v8194_v9, %v8195_v59  ;;  %v12871_v47 = vmax.f32 %v6279_v28, %v6280_v14  ;;  %v6245_v24 = vrot.slane %v6244_v15, 1 }
 0x5d4   : > { %v8190_v61 = vrot.slane %v8189_v21, 2  ;;  %v6284_v13 = vmax.f32 %v6282_v36, %v6283_v16  ;;  %v6290_v6 = vrot.slane %v6289_v5, 4  ;;  %v12874_v41 = vmax.f32 %v12837_v35, %v8221_v7  ;;  %v14062_v7 = vld [vmem:[#allocation19_spill] sm:$0xff] }
 0x5d5   : > { %v8197_v32 = vrot.slane %v8196_v43, 2  ;;  %v7486_v38 = vmax.f32 %v7304_v55, 0.0  ;;  %v6252_v44 = vrot.slane %v6251_v52, 1  ;;  %v5189_v31 = vadd.f32 %v12754_v4, %v5188_v10 }
 0x5d6   : > { %v8191_v2 = vmax.f32 %v8189_v21, %v8190_v61  ;;  %v6285_v19 = vrot.slane %v6284_v13, 2  ;;  %v6291_v57 = vmax.f32 %v6289_v5, %v6290_v6  ;;  %v12878_v25 = vmax.f32 %v12841_v18, %v8228_v29  ;;  %v14064_v6 = vld [vmem:[#allocation20_spill] sm:$0xff] }
 0x5d7   : > { %v8198_v49 = vmax.f32 %v8196_v43, %v8197_v32  ;;  %v7630_v12 = vcombine.high %v7486_v38, %v7486_v38  ;;  %v8229_v35 = vsel %vm1138_vm3, %v7486_v38, -inf  ;;  %v5329_v36 = vmax.f32 %v5189_v31, 0.0  ;;  %v7295_v43 = vpop.f32.mrf.mxu1 }
 0x5d8   : > { %v8192_v28 = vrot.slane %v8191_v2, 1  ;;  %v6286_v14 = vmax.f32 %v6284_v13, %v6285_v19  ;;  %v6292_v9 = vrot.slane %v6291_v57, 2  ;;  %v12883_v21 = vmul.f32 %v12874_v41, %v14062_v7 }
 0x5d9   : > { %v12885_v59 = vmax.f32 %v6244_v15, %v6245_v24  ;;  %v8230_v55 = vrot.slane %v8229_v35, 4  ;;  %v8236_v16 = vsel %vm1138_vm3, %v7630_v12, -inf  ;;  %v8199_v5 = vrot.slane %v8198_v49, 1 }
 0x5da   : > { %14063 = vst [vmem:[#allocation22_spill] sm:$0xff] %v12883_v21  ;;  %v6293_v29 = vmax.f32 %v6291_v57, %v6292_v9  ;;  %v8237_v18 = vrot.slane %v8236_v16, 4  ;;  %v5473_v61 = vcombine.high %v5329_v36, %v5329_v36  ;;  %v12890_v19 = vmul.f32 %v12878_v25, %v14064_v6 }
 0x5db   : > { %v12892_v38 = vmax.f32 %v6251_v52, %v6252_v44  ;;  %v8231_v13 = vmax.f32 %v8229_v35, %v8230_v55  ;;  %v6254_v32 = vsel %vm1138_vm3, %v5329_v36, -inf  ;;  %v8193_v10 = vmax.f32 %v8191_v2, %v8192_v28  ;;  %v9644_v52 = vpop.f32.mrf.mxu0  ;;  %v9702_v28 = vpop.f32.mrf.mxu1 }
 0x5dc   : > { %14065 = vst [vmem:[#allocation40_spill] sm:$0xff] %v12890_v19  ;;  %v6287_v15 = vrot.slane %v6286_v14, 1  ;;  %v8238_v24 = vmax.f32 %v8236_v16, %v8237_v18  ;;  %v6255_v31 = vrot.slane %v6254_v32, 4  ;;  %v6261_v57 = vsel %vm1138_vm3, %v5473_v61, -inf }
 0x5dd   : > { %v8232_v7 = vrot.slane %v8231_v13, 2  ;;  %v7296_v9 = vadd.f32 %v12754_v4, %v7295_v43  ;;  %v8200_v46 = vmax.f32 %v8198_v49, %v8199_v5  ;;  %v6294_v50 = vrot.slane %v6293_v29, 1 }
 0x5de   : > { %v8239_v6 = vrot.slane %v8238_v24, 2  ;;  %v6256_v54 = vmax.f32 %v6254_v32, %v6255_v31  ;;  %v6262_v35 = vrot.slane %v6261_v57, 4  ;;  %v5210_v2 = vadd.f32 %v12754_v4, %v9644_v52 }
 0x5df   : > { %v8233_v44 = vmax.f32 %v8231_v13, %v8232_v7  ;;  %v7484_v55 = vmax.f32 %v7296_v9, 0.0  ;;  %v14066_v36 = vmax.f32 %v12711_v56, %v12833_v11  ;;  %v12902_v18 = vmax.f32 %v6286_v14, %v6287_v15 }
 0x5e0   : > { %v8240_v61 = vmax.f32 %v8238_v24, %v8239_v6  ;;  %v6257_v12 = vrot.slane %v6256_v54, 2  ;;  %v6263_v49 = vmax.f32 %v6261_v57, %v6262_v35  ;;  %v5334_v7 = vmax.f32 %v5210_v2, 0.0 }
 0x5e1   : > { %v8796_v16 = vmax.f32 %v14066_v36, %v8193_v10  ;;  %v8234_v43 = vrot.slane %v8233_v44, 1  ;;  %v7628_v5 = vcombine.high %v7484_v55, %v7484_v55  ;;  %v8201_v32 = vsel %vm1138_vm3, %v7484_v55, -inf }
 0x5e2   : > { %v8241_v31 = vrot.slane %v8240_v61, 1  ;;  %v8202_v13 = vrot.slane %v8201_v32, 4  ;;  %v7317_v9 = vadd.f32 %v12754_v4, %v9702_v28  ;;  %v12906_v52 = vmax.f32 %v6293_v29, %v6294_v50 }
 0x5e3   : > { %v8235_v21 = vmax.f32 %v8233_v44, %v8234_v43  ;;  %v6264_v39 = vrot.slane %v6263_v49, 2  ;;  %v8208_v56 = vsel %vm1138_vm3, %v7628_v5, -inf  ;;  %v14067_v11 = vmax.f32 %v12716_v23, %v12853_v63 }
 0x5e4   : > { %v8242_v10 = vmax.f32 %v8240_v61, %v8241_v31  ;;  %v8203_v15 = vmax.f32 %v8201_v32, %v8202_v13  ;;  %v8209_v24 = vrot.slane %v8208_v56, 4  ;;  %v6258_v6 = vmax.f32 %v6256_v54, %v6257_v12  ;;  %v5201_v13 = vpop.f32.mrf.mxu0 }
 0x5e5   : > { %v8799_v14 = vmax.f32 %v14067_v11, %v8200_v46  ;;  %v12912_v57 = vmax.f32 %v8796_v16, %v8235_v21  ;;  %v5478_v35 = vcombine.high %v5334_v7, %v5334_v7  ;;  %v6324_v55 = vsel %vm1138_vm3, %v5334_v7, -inf }
 0x5e6   : > { %v6265_v2 = vmax.f32 %v6263_v49, %v6264_v39  ;;  %v8204_v50 = vrot.slane %v8203_v15, 2  ;;  %v8210_v29 = vmax.f32 %v8208_v56, %v8209_v24  ;;  %v7489_v44 = vmax.f32 %v7317_v9, 0.0 }
 0x5e7   : > { %v6648_v36 = vmax.f32 %v12885_v59, %v12902_v18  ;;  %v6325_v46 = vrot.slane %v6324_v55, 4  ;;  %v8800_v63 = vmax.f32 %v8799_v14, %v8242_v10  ;;  %v6331_v54 = vsel %vm1138_vm3, %v5478_v35, -inf }
 0x5e8   : > { %v8205_v21 = vmax.f32 %v8203_v15, %v8204_v50  ;;  %v8211_v16 = vrot.slane %v8210_v29, 2  ;;  %v8865_v39 = vmax.f32 %v12878_v25, %v12912_v57  ;;  %v6259_v12 = vrot.slane %v6258_v6, 1 }
 0x5e9   : > { %v6326_v61 = vmax.f32 %v6324_v55, %v6325_v46  ;;  %v6332_v43 = vrot.slane %v6331_v54, 4  ;;  %v6266_v49 = vrot.slane %v6265_v2, 1  ;;  %v7633_v31 = vcombine.high %v7489_v44, %v7489_v44 }
 0x5ea   : > { %v8206_v5 = vrot.slane %v8205_v21, 1  ;;  %v8212_v32 = vmax.f32 %v8210_v29, %v8211_v16  ;;  %v8271_v56 = vsel %vm1138_vm3, %v7489_v44, -inf  ;;  %v5202_v11 = vadd.f32 %v12754_v4, %v5201_v13 }
 0x5eb   : > { %v6327_v7 = vrot.slane %v6326_v61, 2  ;;  %v6333_v9 = vmax.f32 %v6331_v54, %v6332_v43  ;;  %v8931_v14 = vmul.f32 %v8800_v63, %v13998_v8  ;;  %v8272_v24 = vrot.slane %v8271_v56, 4 }
 0x5ec   : > { %v8207_v10 = vmax.f32 %v8205_v21, %v8206_v5  ;;  %v8213_v15 = vrot.slane %v8212_v32, 1  ;;  %v8278_v55 = vsel %vm1138_vm3, %v7633_v31, -inf  ;;  %v5332_v50 = vmax.f32 %v5202_v11, 0.0 }
 0x5ed   : > { %v6328_v25 = vmax.f32 %v6326_v61, %v6327_v7  ;;  %v6334_v35 = vrot.slane %v6333_v9, 2  ;;  %v8273_v16 = vmax.f32 %v8271_v56, %v8272_v24  ;;  %v8279_v28 = vrot.slane %v8278_v55, 4  ;;  %v7308_v7 = vpop.f32.mrf.mxu1 }
 0x5ee   : > { %v8214_v46 = vmax.f32 %v8212_v32, %v8213_v15  ;;  %v8785_v29 = vmax.f32 %v12803_v34, %v8207_v10  ;;  %v5476_v44 = vcombine.high %v5332_v50, %v5332_v50  ;;  %v6296_v13 = vsel %vm1138_vm3, %v5332_v50, -inf  ;;  %v9781_v34 = vld [vmem:[%s13699_s5 + $0x10] sm:$0xff] }
 0x5ef   : > { %v6329_v54 = vrot.slane %v6328_v25, 1  ;;  %v6335_v43 = vmax.f32 %v6333_v9, %v6334_v35  ;;  %v8274_v5 = vrot.slane %v8273_v16, 2  ;;  %v8280_v61 = vmax.f32 %v8278_v55, %v8279_v28  ;;  %v9703_v55 = vpop.f32.mrf.mxu1 }
 0x5f0   : > { %v8788_v8 = vmax.f32 %v12808_v27, %v8214_v46  ;;  %v8926_v21 = vmul.f32 %v8785_v29, %v13999_v22  ;;  %v9014_v23 = vrot.slane %v8931_v14, 7  ;;  %v12931_v31 = vmax.f32 %v6258_v6, %v6259_v12 }
 0x5f1   : > { %v6336_v32 = vrot.slane %v6335_v43, 1  ;;  %v6297_v11 = vrot.slane %v6296_v13, 4  ;;  %v8930_v9 = vmul.f32 %v9781_v34, %v12912_v57  ;;  %v6330_v10 = vmax.f32 %v6328_v25, %v6329_v54 }
 0x5f2   : > { %v8863_v56 = vmax.f32 %v8785_v29, %v8788_v8  ;;  %v6303_v27 = vsel %vm1138_vm3, %v5476_v44, -inf  ;;  %v12939_v22 = vmul.f32 %v8788_v8, %v14000_v20  ;;  %v9006_v28 = vrot.slane %v8926_v21, 4  ;;  %v9645_v20 = vpop.f32.mrf.mxu0 }
 0x5f3   : > { %v8281_v15 = vrot.slane %v8280_v61, 2  ;;  %v6298_v14 = vmax.f32 %v6296_v13, %v6297_v11  ;;  %v12941_v6 = vmax.f32 %v8865_v39, %v8800_v63  ;;  %v12943_v12 = vmax.f32 %v6265_v2, %v6266_v49  ;;  %v7311_v11 = vpop.f32.mrf.mxu1 }
 0x5f4   : > { %v6337_v24 = vmax.f32 %v6335_v43, %v6336_v32  ;;  %v12945_v35 = vmax.f32 %v8273_v16, %v8274_v5  ;;  %v12948_v57 = vsel %vm2308_vm4, %v9014_v23, %v8930_v9  ;;  %v6304_v46 = vrot.slane %v6303_v27, 4  ;;  %v5204_v32 = vpop.f32.mrf.mxu0 }
 0x5f5   : > { %14068 = vst [vmem:[#allocation57_spill] sm:$0xff] %v12941_v6  ;;  %v12950_v25 = vmax.f32 %v8280_v61, %v8281_v15  ;;  %v6299_v50 = vrot.slane %v6298_v14, 2  ;;  %v12953_v29 = vmax.f32 %v8863_v56, %v12874_v41  ;;  %v12958_v2 = vmax.f32 %v6648_v36, %v6330_v10 }
 0x5f6   : > { %v7309_v63 = vadd.f32 %v12754_v4, %v7308_v7  ;;  %v5213_v39 = vadd.f32 %v12754_v4, %v9645_v20  ;;  %v9007_v23 = vsel %vm2476_vm7, %v9006_v28, %v12602_v3  ;;  %v9008_v49 = vrot.slane %v12939_v22, 3 }
 0x5f7   : > { %14069 = vst [vmem:[#allocation54_spill] sm:$0xff] %v12953_v29  ;;  %v6305_v16 = vmax.f32 %v6303_v27, %v6304_v46  ;;  %v7320_v54 = vadd.f32 %v12754_v4, %v9703_v55  ;;  %v14070_v41 = vmax.f32 %v12892_v38, %v12906_v52  ;;  %v8276_v59 = vrot.slane %v12945_v35, 1 }
 0x5f8   : > { %v7487_v18 = vmax.f32 %v7309_v63, 0.0  ;;  %v5335_v36 = vmax.f32 %v5213_v39, 0.0  ;;  %v8283_v44 = vrot.slane %v12950_v25, 1  ;;  %v6300_v13 = vmax.f32 %v6298_v14, %v6299_v50 }
 0x5f9   : > { %v12969_v43 = vmax.f32 %v14070_v41, %v6337_v24  ;;  %v6306_v8 = vrot.slane %v6305_v16, 2  ;;  %v7490_v21 = vmax.f32 %v7320_v54, 0.0  ;;  %v5205_v9 = vadd.f32 %v12754_v4, %v5204_v32 }
 0x5fa   : > { %v7631_v3 = vcombine.high %v7487_v18, %v7487_v18  ;;  %v8243_v5 = vsel %vm1138_vm3, %v7487_v18, -inf  ;;  %v5479_v61 = vcombine.high %v5335_v36, %v5335_v36  ;;  %v6338_v7 = vsel %vm1138_vm3, %v5335_v36, -inf }
 0x5fb   : > { %v6307_v38 = vmax.f32 %v6305_v16, %v6306_v8  ;;  %v8244_v52 = vrot.slane %v8243_v5, 4  ;;  %v6339_v34 = vrot.slane %v6338_v7, 4  ;;  %v7634_v27 = vcombine.high %v7490_v21, %v7490_v21 }
 0x5fc   : > { %v8250_v56 = vsel %vm1138_vm3, %v7631_v3, -inf  ;;  %v6345_v10 = vsel %vm1138_vm3, %v5479_v61, -inf  ;;  %v8285_v22 = vsel %vm1138_vm3, %v7490_v21, -inf  ;;  %v6301_v28 = vrot.slane %v6300_v13, 1 }
 0x5fd   : > { %v8245_v15 = vmax.f32 %v8243_v5, %v8244_v52  ;;  %v8251_v14 = vrot.slane %v8250_v56, 4  ;;  %v7312_v24 = vadd.f32 %v12754_v4, %v7311_v11  ;;  %v6340_v55 = vmax.f32 %v6338_v7, %v6339_v34 }
 0x5fe   : > { %v6346_v50 = vrot.slane %v6345_v10, 4  ;;  %v8286_v46 = vrot.slane %v8285_v22, 4  ;;  %v8292_v20 = vsel %vm1138_vm3, %v7634_v27, -inf  ;;  %v6308_v63 = vrot.slane %v6307_v38, 1 }
 0x5ff   : > { %v8246_v39 = vrot.slane %v8245_v15, 2  ;;  %v8252_v16 = vmax.f32 %v8250_v56, %v8251_v14  ;;  %v8293_v54 = vrot.slane %v8292_v20, 4  ;;  %v6341_v41 = vrot.slane %v6340_v55, 2 }
 0x600   : > { %v6347_v18 = vmax.f32 %v6345_v10, %v6346_v50  ;;  %v8287_v36 = vmax.f32 %v8285_v22, %v8286_v46  ;;  %v5333_v8 = vmax.f32 %v5205_v9, 0.0  ;;  %v6302_v3 = vmax.f32 %v6300_v13, %v6301_v28  ;;  %v9648_v50 = vpop.f32.mrf.mxu0 }
 0x601   : > { %v8247_v21 = vmax.f32 %v8245_v15, %v8246_v39  ;;  %v8253_v61 = vrot.slane %v8252_v16, 2  ;;  %v8294_v5 = vmax.f32 %v8292_v20, %v8293_v54  ;;  %v6342_v32 = vmax.f32 %v6340_v55, %v6341_v41 }
 0x602   : > { %v6348_v52 = vrot.slane %v6347_v18, 2  ;;  %v8288_v11 = vrot.slane %v8287_v36, 2  ;;  %v5477_v7 = vcombine.high %v5333_v8, %v5333_v8  ;;  %v6309_v34 = vmax.f32 %v6307_v38, %v6308_v63 }
 0x603   : > { %v8254_v19 = vmax.f32 %v8252_v16, %v8253_v61  ;;  %v8295_v6 = vrot.slane %v8294_v5, 2  ;;  %v6310_v27 = vsel %vm1138_vm3, %v5333_v8, -inf  ;;  %v8248_v29 = vrot.slane %v8247_v21, 1 }
 0x604   : > { %v6349_v56 = vmax.f32 %v6347_v18, %v6348_v52  ;;  %v8289_v14 = vmax.f32 %v8287_v36, %v8288_v11  ;;  %v6311_v1 = vrot.slane %v6310_v27, 4  ;;  %v12983_v10 = vsel %vm2479_vm8, %v9008_v49, %v9007_v23 }
 0x605   : > { %14071 = vst [vmem:[#allocation67_spill] sm:$0xff] %v12983_v10  ;;  %v12986_v13 = vmax.f32 %v12945_v35, %v8276_v59  ;;  %v8296_v9 = vmax.f32 %v8294_v5, %v8295_v6  ;;  %v6317_v22 = vsel %vm1138_vm3, %v5477_v7, -inf  ;;  %v8255_v28 = vrot.slane %v8254_v19, 1 }
 0x606   : > { %v6343_v15 = vrot.slane %v6342_v32, 1  ;;  %v6350_v38 = vrot.slane %v6349_v56, 1  ;;  %v6312_v55 = vmax.f32 %v6310_v27, %v6311_v1  ;;  %v12990_v46 = vmax.f32 %v12950_v25, %v8283_v44  ;;  %v9706_v1 = vpop.f32.mrf.mxu1 }
 0x607   : > { %v6654_v20 = vmax.f32 %v12931_v31, %v6302_v3  ;;  %v6318_v63 = vrot.slane %v6317_v22, 4  ;;  %v7488_v39 = vmax.f32 %v7312_v24, 0.0  ;;  %v6657_v23 = vmax.f32 %v12943_v12, %v6309_v34  ;;  %v5217_v31 = vpop.f32.mrf.mxu0 }
 0x608   : > { %v12994_v49 = vmax.f32 %v8247_v21, %v8248_v29  ;;  %v8290_v35 = vrot.slane %v8289_v14, 1  ;;  %v6313_v6 = vrot.slane %v6312_v55, 2  ;;  %v8297_v59 = vrot.slane %v8296_v9, 1 }
 0x609   : > { %v6319_v16 = vmax.f32 %v6317_v22, %v6318_v63  ;;  %v7632_v54 = vcombine.high %v7488_v39, %v7488_v39  ;;  %v8257_v41 = vsel %vm1138_vm3, %v7488_v39, -inf  ;;  %v12997_v18 = vmax.f32 %v8254_v19, %v8255_v28 }
 0x60a   : > { %v6344_v25 = vmax.f32 %v6342_v32, %v6343_v15  ;;  %v6351_v44 = vmax.f32 %v6349_v56, %v6350_v38  ;;  %v8258_v36 = vrot.slane %v8257_v41, 4  ;;  %v6314_v8 = vmax.f32 %v6312_v55, %v6313_v6  ;;  %v7324_v38 = vpop.f32.mrf.mxu1 }
 0x60b   : > { %v6320_v24 = vrot.slane %v6319_v16, 2  ;;  %v8264_v12 = vsel %vm1138_vm3, %v7632_v54, -inf  ;;  %v5226_v29 = vadd.f32 %v12754_v4, %v9648_v50  ;;  %v13001_v3 = vmax.f32 %v8289_v14, %v8290_v35 }
 0x60c   : > { %v8259_v21 = vmax.f32 %v8257_v41, %v8258_v36  ;;  %v8265_v61 = vrot.slane %v8264_v12, 4  ;;  %v7333_v5 = vadd.f32 %v12754_v4, %v9706_v1  ;;  %v13004_v52 = vmax.f32 %v8296_v9, %v8297_v59 }
 0x60d   : > { %v6321_v19 = vmax.f32 %v6319_v16, %v6320_v24  ;;  %v5338_v11 = vmax.f32 %v5226_v29, 0.0  ;;  %v5218_v32 = vadd.f32 %v12754_v4, %v5217_v31  ;;  %v6655_v7 = vmax.f32 %v6654_v20, %v6344_v25 }
 0x60e   : > { %v13007_v34 = vmax.f32 %v6657_v23, %v6351_v44  ;;  %v8260_v27 = vrot.slane %v8259_v21, 2  ;;  %v7493_v56 = vmax.f32 %v7333_v5, 0.0  ;;  %v6315_v22 = vrot.slane %v6314_v8, 1 }
 0x60f   : > { %v5482_v28 = vcombine.high %v5338_v11, %v5338_v11  ;;  %v6380_v14 = vsel %vm1138_vm3, %v5338_v11, -inf  ;;  %v5336_v15 = vmax.f32 %v5218_v32, 0.0  ;;  %v6322_v9 = vrot.slane %v6321_v19, 1 }
 0x610   : > { %v8266_v50 = vmax.f32 %v8264_v12, %v8265_v61  ;;  %v6381_v63 = vrot.slane %v6380_v14, 4  ;;  %v7637_v23 = vcombine.high %v7493_v56, %v7493_v56  ;;  %v8327_v35 = vsel %vm1138_vm3, %v7493_v56, -inf }
 0x611   : > { %v6387_v20 = vsel %vm1138_vm3, %v5482_v28, -inf  ;;  %v8261_v6 = vmax.f32 %v8259_v21, %v8260_v27  ;;  %v7325_v54 = vadd.f32 %v12754_v4, %v7324_v38  ;;  %v13017_v41 = vmax.f32 %v6314_v8, %v6315_v22 }
 0x612   : > { %v6382_v59 = vmax.f32 %v6380_v14, %v6381_v63  ;;  %v6388_v16 = vrot.slane %v6387_v20, 4  ;;  %v8328_v1 = vrot.slane %v8327_v35, 4  ;;  %v8334_v25 = vsel %vm1138_vm3, %v7637_v23, -inf }
 0x613   : > { %v5480_v44 = vcombine.high %v5336_v15, %v5336_v15  ;;  %v13020_v36 = vmax.f32 %v6321_v19, %v6322_v9  ;;  %v8267_v31 = vrot.slane %v8266_v50, 2  ;;  %v8335_v61 = vrot.slane %v8334_v25, 4 }
 0x614   : > { %v6383_v24 = vrot.slane %v6382_v59, 2  ;;  %v6389_v12 = vmax.f32 %v6387_v20, %v6388_v16  ;;  %v8329_v29 = vmax.f32 %v8327_v35, %v8328_v1  ;;  %v6352_v5 = vsel %vm1138_vm3, %v5336_v15, -inf }
 0x615   : > { %v6359_v21 = vsel %vm1138_vm3, %v5480_v44, -inf  ;;  %v8262_v11 = vrot.slane %v8261_v6, 1  ;;  %v6353_v8 = vrot.slane %v6352_v5, 4  ;;  %v8336_v56 = vmax.f32 %v8334_v25, %v8335_v61 }
 0x616   : > { %v6384_v32 = vmax.f32 %v6382_v59, %v6383_v24  ;;  %v6390_v4 = vrot.slane %v6389_v12, 2  ;;  %v8330_v27 = vrot.slane %v8329_v29, 2  ;;  %v6360_v22 = vrot.slane %v6359_v21, 4  ;;  %v9649_v59 = vpop.f32.mrf.mxu0 }
 0x617   : > { %v7491_v28 = vmax.f32 %v7325_v54, 0.0  ;;  %v8268_v14 = vmax.f32 %v8266_v50, %v8267_v31  ;;  %v6354_v9 = vmax.f32 %v6352_v5, %v6353_v8  ;;  %v8337_v20 = vrot.slane %v8336_v56, 2 }
 0x618   : > { %v6385_v19 = vrot.slane %v6384_v32, 1  ;;  %v6391_v38 = vmax.f32 %v6389_v12, %v6390_v4  ;;  %v8331_v63 = vmax.f32 %v8329_v29, %v8330_v27  ;;  %v6361_v23 = vmax.f32 %v6359_v21, %v6360_v22  ;;  %v13031_v21 = vld [vmem:[%s13696_s2] ss:$0 sm:$0xff]  ;;  %v9707_v22 = vpop.f32.mrf.mxu1 }
 0x619   : > { %v7635_v35 = vcombine.high %v7491_v28, %v7491_v28  ;;  %v6355_v1 = vrot.slane %v6354_v9, 2  ;;  %v8299_v44 = vsel %vm1138_vm3, %v7491_v28, -inf  ;;  %v8338_v39 = vmax.f32 %v8336_v56, %v8337_v20 }
 0x61a   : > { %v6386_v16 = vmax.f32 %v6384_v32, %v6385_v19  ;;  %v6392_v15 = vrot.slane %v6391_v38, 1  ;;  %v8332_v24 = vrot.slane %v8331_v63, 1  ;;  %v6362_v55 = vrot.slane %v6361_v23, 2 }
 0x61b   : > { %v8300_v25 = vrot.slane %v8299_v44, 4  ;;  %v8269_v61 = vrot.slane %v8268_v14, 1  ;;  %v6356_v50 = vmax.f32 %v6354_v9, %v6355_v1  ;;  %v8306_v31 = vsel %vm1138_vm3, %v7635_v35, -inf }
 0x61c   : > { %v6393_v54 = vmax.f32 %v6391_v38, %v6392_v15  ;;  %v13026_v12 = vmax.f32 %v6655_v7, %v6386_v16  ;;  %v6363_v29 = vmax.f32 %v6361_v23, %v6362_v55  ;;  %v5229_v32 = vadd.f32 %v13031_v21, %v9649_v59  ;;  %v14072_v23 = vld [vmem:[#allocation50_spill] sm:$0xff] }
 0x61d   : > { %v8301_v5 = vmax.f32 %v8299_v44, %v8300_v25  ;;  %v8333_v4 = vmax.f32 %v8331_v63, %v8332_v24  ;;  %v8339_v8 = vrot.slane %v8338_v39, 1  ;;  %v6357_v27 = vrot.slane %v6356_v50, 1 }
 0x61e   : > { %v8307_v56 = vrot.slane %v8306_v31, 4  ;;  %v6660_v28 = vmax.f32 %v12869_v37, %v13017_v41  ;;  %v6663_v7 = vmax.f32 %v12871_v47, %v13020_v36  ;;  %v6364_v55 = vrot.slane %v6363_v29, 1  ;;  %v5220_v41 = vpop.f32.mrf.mxu0 }
 0x61f   : > { %v8302_v19 = vrot.slane %v8301_v5, 2  ;;  %v13038_v38 = vmax.f32 %v8261_v6, %v8262_v11  ;;  %v13040_v9 = vmax.f32 %v8268_v14, %v8269_v61  ;;  %v13043_v20 = vmax.f32 %v13007_v34, %v6393_v54  ;;  %v7327_v11 = vpop.f32.mrf.mxu1  ;;  %v14074_v14 = vld [vmem:[#allocation51_spill] sm:$0xff] }
 0x620   : > { %v8308_v63 = vmax.f32 %v8306_v31, %v8307_v56  ;;  %v13047_v35 = vmul.f32 %v13026_v12, %v14072_v23  ;;  %v6358_v16 = vmax.f32 %v6356_v50, %v6357_v27  ;;  %v5339_v37 = vmax.f32 %v5229_v32, 0.0 }
 0x621   : > { %v8303_v15 = vmax.f32 %v8301_v5, %v8302_v19  ;;  %v13049_v1 = vmax.f32 %v8338_v39, %v8339_v8  ;;  %v14073_v47 = vmax.f32 %v12994_v49, %v13001_v3  ;;  %v7336_v34 = vadd.f32 %v13031_v21, %v9707_v22 }
 0x622   : > { %v8309_v36 = vrot.slane %v8308_v63, 2  ;;  %v13059_v44 = vmul.f32 %v13043_v20, %v14074_v14  ;;  %v6365_v59 = vmax.f32 %v6363_v29, %v6364_v55  ;;  %v5483_v24 = vcombine.high %v5339_v37, %v5339_v37 }
 0x623   : > { %v13054_v6 = vmax.f32 %v14073_v47, %v8333_v4  ;;  %v6394_v25 = vsel %vm1138_vm3, %v5339_v37, -inf  ;;  %v8304_v61 = vrot.slane %v8303_v15, 1  ;;  %v7494_v54 = vmax.f32 %v7336_v34, 0.0 }
 0x624   : > { %v6395_v39 = vrot.slane %v6394_v25, 4  ;;  %v5221_v50 = vadd.f32 %v13031_v21, %v5220_v41  ;;  %v6661_v3 = vmax.f32 %v6660_v28, %v6358_v16  ;;  %v6401_v31 = vsel %vm1138_vm3, %v5483_v24, -inf }
 0x625   : > { %v7328_v5 = vadd.f32 %v13031_v21, %v7327_v11  ;;  %v8310_v32 = vmax.f32 %v8308_v63, %v8309_v36  ;;  %v6402_v8 = vrot.slane %v6401_v31, 4  ;;  %v7638_v27 = vcombine.high %v7494_v54, %v7494_v54 }
 0x626   : > { %v6396_v4 = vmax.f32 %v6394_v25, %v6395_v39  ;;  %v6664_v29 = vmax.f32 %v6663_v7, %v6365_v59  ;;  %v8341_v56 = vsel %vm1138_vm3, %v7494_v54, -inf  ;;  %v5337_v22 = vmax.f32 %v5221_v50, 0.0 }
 0x627   : > { %v7492_v55 = vmax.f32 %v7328_v5, 0.0  ;;  %v13067_v19 = vmax.f32 %v8303_v15, %v8304_v61  ;;  %v6403_v41 = vmax.f32 %v6401_v31, %v6402_v8  ;;  %v8342_v47 = vrot.slane %v8341_v56, 4 }
 0x628   : > { %v6397_v37 = vrot.slane %v6396_v4, 2  ;;  %v8348_v28 = vsel %vm1138_vm3, %v7638_v27, -inf  ;;  %v5481_v16 = vcombine.high %v5337_v22, %v5337_v22  ;;  %v6366_v34 = vsel %vm1138_vm3, %v5337_v22, -inf }
 0x629   : > { %v7636_v11 = vcombine.high %v7492_v55, %v7492_v55  ;;  %v8311_v63 = vrot.slane %v8310_v32, 1  ;;  %v6404_v24 = vrot.slane %v6403_v41, 2  ;;  %v8343_v25 = vmax.f32 %v8341_v56, %v8342_v47 }
 0x62a   : > { %v6398_v36 = vmax.f32 %v6396_v4, %v6397_v37  ;;  %v8349_v7 = vrot.slane %v8348_v28, 4  ;;  %v6367_v59 = vrot.slane %v6366_v34, 4  ;;  %v6373_v39 = vsel %vm1138_vm3, %v5481_v16, -inf }
 0x62b   : > { %v8313_v15 = vsel %vm1138_vm3, %v7492_v55, -inf  ;;  %v6405_v54 = vmax.f32 %v6403_v41, %v6404_v24  ;;  %v8344_v50 = vrot.slane %v8343_v25, 2  ;;  %v6374_v31 = vrot.slane %v6373_v39, 4 }
 0x62c   : > { %v6399_v61 = vrot.slane %v6398_v36, 1  ;;  %v8350_v5 = vmax.f32 %v8348_v28, %v8349_v7  ;;  %v6368_v8 = vmax.f32 %v6366_v34, %v6367_v59  ;;  %v8314_v27 = vrot.slane %v8313_v15, 4  ;;  %v9652_v34 = vpop.f32.mrf.mxu0  ;;  %v14075_v59 = vld [vmem:[#allocation52_spill] sm:$0xff] }
 0x62d   : > { %v8320_v22 = vsel %vm1138_vm3, %v7636_v11, -inf  ;;  %v6406_v10 = vrot.slane %v6405_v54, 1  ;;  %v8345_v4 = vmax.f32 %v8343_v25, %v8344_v50  ;;  %v6375_v37 = vmax.f32 %v6373_v39, %v6374_v31 }
 0x62e   : > { %v6400_v49 = vmax.f32 %v6398_v36, %v6399_v61  ;;  %v8351_v56 = vrot.slane %v8350_v5, 2  ;;  %v6369_v47 = vrot.slane %v6368_v8, 2  ;;  %v8315_v0 = vmax.f32 %v8313_v15, %v8314_v27 }
 0x62f   : > { %v8321_v51 = vrot.slane %v8320_v22, 4  ;;  %v6407_v16 = vmax.f32 %v6405_v54, %v6406_v10  ;;  %v8346_v55 = vrot.slane %v8345_v4, 1  ;;  %v6376_v45 = vrot.slane %v6375_v37, 2 }
 0x630   : > { %v6662_v42 = vmax.f32 %v6661_v3, %v6400_v49  ;;  %v8312_v41 = vmax.f32 %v8310_v32, %v8311_v63  ;;  %v8352_v24 = vmax.f32 %v8350_v5, %v8351_v56  ;;  %v6370_v48 = vmax.f32 %v6368_v8, %v6369_v47  ;;  %v9710_v49 = vpop.f32.mrf.mxu1  ;;  %v14077_v8 = vld [vmem:[#allocation53_spill] sm:$0xff] }
 0x631   : > { %v8316_v28 = vrot.slane %v8315_v0, 2  ;;  %v6665_v7 = vmax.f32 %v6664_v29, %v6407_v16  ;;  %v8322_v36 = vmax.f32 %v8320_v22, %v8321_v51  ;;  %v5242_v25 = vadd.f32 %v13031_v21, %v9652_v34 }
 0x632   : > { %v6702_v11 = vmax.f32 %v13043_v20, %v6662_v42  ;;  %v13077_v39 = vmul.f32 %v6662_v42, %v14075_v59  ;;  %v6371_v15 = vrot.slane %v6370_v48, 1  ;;  %v6377_v61 = vmax.f32 %v6375_v37, %v6376_v45 }
 0x633   : > { %v8317_v10 = vmax.f32 %v8315_v0, %v8316_v28  ;;  %v6861_v3 = vrot.slane %v13059_v44, 5  ;;  %v14076_v32 = vmax.f32 %v12997_v18, %v13004_v52  ;;  %v8807_v51 = vmax.f32 %v13038_v38, %v13067_v19  ;;  %v14079_v28 = vld [vmem:[#allocation55_spill] sm:$0xff] }
 0x634   : > { %v8347_v20 = vmax.f32 %v8345_v4, %v8346_v55  ;;  %v8810_v29 = vmax.f32 %v13040_v9, %v8312_v41  ;;  %v8353_v42 = vrot.slane %v8352_v24, 1  ;;  %v6372_v54 = vmax.f32 %v6370_v48, %v6371_v15  ;;  %v5233_v15 = vpop.f32.mrf.mxu0 }
 0x635   : > { %v13084_v63 = vmax.f32 %v14076_v32, %v13049_v1  ;;  %v6378_v50 = vrot.slane %v6377_v61, 1  ;;  %v13089_v45 = vmax.f32 %v6702_v11, %v6665_v7  ;;  %v8323_v0 = vrot.slane %v8322_v36, 2 }
 0x636   : > { %v5342_v31 = vmax.f32 %v5242_v25, 0.0  ;;  %v7349_v5 = vadd.f32 %v13031_v21, %v9710_v49  ;;  %v13093_v27 = vmul.f32 %v6665_v7, %v14077_v8  ;;  %v8318_v1 = vrot.slane %v8317_v10, 1  ;;  %v7340_v49 = vpop.f32.mrf.mxu1 }
 0x637   : > { %v6379_v52 = vmax.f32 %v6377_v61, %v6378_v50  ;;  %v13096_v38 = vmax.f32 %v8807_v51, %v8347_v20  ;;  %v6650_v22 = vmax.f32 %v12958_v2, %v6372_v54  ;;  %v8324_v37 = vmax.f32 %v8322_v36, %v8323_v0  ;;  %v9783_v2 = vld [vmem:[%s13699_s5 + $0x18] sm:$0xff] }
 0x638   : > { %14078 = vst [vmem:[#allocation70_spill] sm:$0xff] %v13093_v27  ;;  %v5486_v19 = vcombine.high %v5342_v31, %v5342_v31  ;;  %v6436_v9 = vsel %vm1138_vm3, %v5342_v31, -inf  ;;  %v7497_v48 = vmax.f32 %v7349_v5, 0.0  ;;  %v8354_v47 = vmax.f32 %v8352_v24, %v8353_v42 }
 0x639   : > { %v6653_v4 = vmax.f32 %v12969_v43, %v6379_v52  ;;  %v6437_v56 = vrot.slane %v6436_v9, 4  ;;  %v13104_v7 = vmax.f32 %v8317_v10, %v8318_v1  ;;  %v6767_v43 = vmul.f32 %v9783_v2, %v6650_v22 }
 0x63a   : > { %v6443_v16 = vsel %vm1138_vm3, %v5486_v19, -inf  ;;  %v7641_v55 = vcombine.high %v7497_v48, %v7497_v48  ;;  %v8383_v41 = vsel %vm1138_vm3, %v7497_v48, -inf  ;;  %v5234_v61 = vadd.f32 %v13031_v21, %v5233_v15 }
 0x63b   : > { %v6768_v34 = vmul.f32 %v6653_v4, %v14079_v28  ;;  %v6438_v11 = vmax.f32 %v6436_v9, %v6437_v56  ;;  %v6444_v25 = vrot.slane %v6443_v16, 4  ;;  %v8384_v36 = vrot.slane %v8383_v41, 4 }
 0x63c   : > { %v8390_v24 = vsel %vm1138_vm3, %v7641_v55, -inf  ;;  %v6700_v32 = vmax.f32 %v6650_v22, %v6653_v4  ;;  %v8325_v20 = vrot.slane %v8324_v37, 1  ;;  %v5340_v0 = vmax.f32 %v5234_v61, 0.0 }
 0x63d   : > { %v6857_v51 = vrot.slane %v6768_v34, 7  ;;  %v6445_v42 = vmax.f32 %v6443_v16, %v6444_v25  ;;  %v8385_v54 = vmax.f32 %v8383_v41, %v8384_v36  ;;  %v8391_v50 = vrot.slane %v8390_v24, 4 }
 0x63e   : > { %v8811_v31 = vmax.f32 %v8810_v29, %v8354_v47  ;;  %v6439_v5 = vrot.slane %v6438_v11, 2  ;;  %v7341_v1 = vadd.f32 %v13031_v21, %v7340_v49  ;;  %v8813_v19 = vmax.f32 %v12986_v13, %v13104_v7 }
 0x63f   : > { %v6446_v52 = vrot.slane %v6445_v42, 2  ;;  %v8386_v9 = vrot.slane %v8385_v54, 2  ;;  %v8392_v48 = vmax.f32 %v8390_v24, %v8391_v50  ;;  %v5484_v56 = vcombine.high %v5340_v0, %v5340_v0  ;;  %v9653_v24 = vpop.f32.mrf.mxu0 }
 0x640   : > { %v13116_v22 = vmax.f32 %v6700_v32, %v13026_v12  ;;  %v6858_v4 = vsel %vm2308_vm4, %v6857_v51, %v6767_v43  ;;  %v13119_v16 = vmax.f32 %v8324_v37, %v8325_v20  ;;  %v6408_v55 = vsel %vm1138_vm3, %v5340_v0, -inf }
 0x641   : > { %v8387_v29 = vmax.f32 %v8385_v54, %v8386_v9  ;;  %v8393_v47 = vrot.slane %v8392_v48, 2  ;;  %v6409_v41 = vrot.slane %v6408_v55, 4  ;;  %v6415_v34 = vsel %vm1138_vm3, %v5484_v56, -inf }
 0x642   : > { %v6440_v25 = vmax.f32 %v6438_v11, %v6439_v5  ;;  %v6447_v15 = vmax.f32 %v6445_v42, %v6446_v52  ;;  %v6416_v2 = vrot.slane %v6415_v34, 4  ;;  %v7495_v36 = vmax.f32 %v7341_v1, 0.0 }
 0x643   : > { %v8388_v61 = vrot.slane %v8387_v29, 1  ;;  %v8394_v49 = vmax.f32 %v8392_v48, %v8393_v47  ;;  %v6410_v12 = vmax.f32 %v6408_v55, %v6409_v41  ;;  %v5245_v32 = vadd.f32 %v13031_v21, %v9653_v24  ;;  %v9711_v48 = vpop.f32.mrf.mxu1 }
 0x644   : > { %v6417_v43 = vmax.f32 %v6415_v34, %v6416_v2  ;;  %v7639_v51 = vcombine.high %v7495_v36, %v7495_v36  ;;  %v8355_v20 = vsel %vm1138_vm3, %v7495_v36, -inf  ;;  %v14080_v42 = vrot.slane %v13047_v35, 6 }
 0x645   : > { %v8389_v54 = vmax.f32 %v8387_v29, %v8388_v61  ;;  %v8395_v50 = vrot.slane %v8394_v49, 1  ;;  %v6411_v0 = vrot.slane %v6410_v12, 2  ;;  %v8356_v11 = vrot.slane %v8355_v20, 4 }
 0x646   : > { %v6860_v5 = vsel %vm2311_vm5, %v14080_v42, %v6858_v4  ;;  %v6418_v52 = vrot.slane %v6417_v43, 2  ;;  %v8362_v1 = vsel %vm1138_vm3, %v7639_v51, -inf  ;;  %v5343_v9 = vmax.f32 %v5245_v32, 0.0 }
 0x647   : > { %v6441_v56 = vrot.slane %v6440_v25, 1  ;;  %v6448_v55 = vrot.slane %v6447_v15, 1  ;;  %v8396_v47 = vmax.f32 %v8394_v49, %v8395_v50  ;;  %v8357_v41 = vmax.f32 %v8355_v20, %v8356_v11  ;;  %v7343_v11 = vpop.f32.mrf.mxu1 }
 0x648   : > { %v13132_v34 = vmax.f32 %v13096_v38, %v8389_v54  ;;  %v8363_v29 = vrot.slane %v8362_v1, 4  ;;  %v5487_v2 = vcombine.high %v5343_v9, %v5343_v9  ;;  %v6450_v36 = vsel %vm1138_vm3, %v5343_v9, -inf }
 0x649   : > { %v6412_v24 = vmax.f32 %v6410_v12, %v6411_v0  ;;  %v6419_v35 = vmax.f32 %v6417_v43, %v6418_v52  ;;  %v8358_v61 = vrot.slane %v8357_v41, 2  ;;  %v7352_v4 = vadd.f32 %v13031_v21, %v9711_v48  ;;  %v5236_v0 = vpop.f32.mrf.mxu0 }
 0x64a   : > { %v13136_v42 = vmax.f32 %v8811_v31, %v8396_v47  ;;  %v8364_v32 = vmax.f32 %v8362_v1, %v8363_v29  ;;  %v6451_v51 = vrot.slane %v6450_v36, 4  ;;  %v6457_v10 = vsel %vm1138_vm3, %v5487_v2, -inf }
 0x64b   : > { %v13142_v38 = vsel %vm2314_vm6, %v6861_v3, %v6860_v5  ;;  %v13144_v49 = vmax.f32 %v6440_v25, %v6441_v56  ;;  %v13146_v20 = vmax.f32 %v6447_v15, %v6448_v55  ;;  %v8359_v12 = vmax.f32 %v8357_v41, %v8358_v61 }
 0x64c   : > { %v13150_v43 = vmul.f32 %v13132_v34, %v14048_v33  ;;  %v8365_v31 = vrot.slane %v8364_v32, 2  ;;  %v6452_v54 = vmax.f32 %v6450_v36, %v6451_v51  ;;  %v6458_v50 = vrot.slane %v6457_v10, 4 }
 0x64d   : > { %v6413_v52 = vrot.slane %v6412_v24, 1  ;;  %v8360_v1 = vrot.slane %v8359_v12, 1  ;;  %v7498_v44 = vmax.f32 %v7352_v4, 0.0  ;;  %v5237_v3 = vadd.f32 %v13031_v21, %v5236_v0 }
 0x64e   : > { %v13155_v25 = vmul.f32 %v13136_v42, %v14049_v62  ;;  %v6420_v15 = vrot.slane %v6419_v35, 1  ;;  %v6453_v5 = vrot.slane %v6452_v54, 2  ;;  %v6459_v9 = vmax.f32 %v6457_v10, %v6458_v50 }
 0x64f   : > { %v7642_v48 = vcombine.high %v7498_v44, %v7498_v44  ;;  %v8397_v33 = vsel %vm1138_vm3, %v7498_v44, -inf  ;;  %v5341_v56 = vmax.f32 %v5237_v3, 0.0  ;;  %v7344_v55 = vadd.f32 %v13031_v21, %v7343_v11 }
 0x650   : > { %14081 = vst [vmem:[#allocation41_spill] sm:$0xff] %v13155_v25  ;;  %v8361_v47 = vmax.f32 %v8359_v12, %v8360_v1  ;;  %v8366_v41 = vmax.f32 %v8364_v32, %v8365_v31  ;;  %v6460_v29 = vrot.slane %v6459_v9, 2  ;;  %v8398_v2 = vrot.slane %v8397_v33, 4 }
 0x651   : > { %v8404_v61 = vsel %vm1138_vm3, %v7642_v48, -inf  ;;  %v5485_v4 = vcombine.high %v5341_v56, %v5341_v56  ;;  %v6422_v62 = vsel %vm1138_vm3, %v5341_v56, -inf  ;;  %v13162_v51 = vmax.f32 %v6412_v24, %v6413_v52 }
 0x652   : > { %v6454_v10 = vmax.f32 %v6452_v54, %v6453_v5  ;;  %v6461_v50 = vmax.f32 %v6459_v9, %v6460_v29  ;;  %v8399_v0 = vmax.f32 %v8397_v33, %v8398_v2  ;;  %v8405_v44 = vrot.slane %v8404_v61, 4 }
 0x653   : > { %v6423_v3 = vrot.slane %v6422_v62, 4  ;;  %v6429_v11 = vsel %vm1138_vm3, %v5485_v4, -inf  ;;  %v7496_v12 = vmax.f32 %v7344_v55, 0.0  ;;  %v13165_v32 = vmax.f32 %v6419_v35, %v6420_v15  ;;  %v9656_v15 = vpop.f32.mrf.mxu0 }
 0x654   : > { %v8367_v31 = vrot.slane %v8366_v41, 1  ;;  %v8814_v1 = vmax.f32 %v8813_v19, %v8361_v47  ;;  %v8400_v48 = vrot.slane %v8399_v0, 2  ;;  %v8406_v18 = vmax.f32 %v8404_v61, %v8405_v44 }
 0x655   : > { %v6424_v56 = vmax.f32 %v6422_v62, %v6423_v3  ;;  %v6430_v24 = vrot.slane %v6429_v11, 4  ;;  %v7640_v52 = vcombine.high %v7496_v12, %v7496_v12  ;;  %v6455_v54 = vrot.slane %v6454_v10, 1 }
 0x656   : > { %v6462_v5 = vrot.slane %v6461_v50, 1  ;;  %v8401_v9 = vmax.f32 %v8399_v0, %v8400_v48  ;;  %v8369_v33 = vsel %vm1138_vm3, %v7496_v12, -inf  ;;  %v8407_v29 = vrot.slane %v8406_v18, 2  ;;  %v9714_v48 = vpop.f32.mrf.mxu1 }
 0x657   : > { %v6425_v2 = vrot.slane %v6424_v56, 2  ;;  %v6431_v55 = vmax.f32 %v6429_v11, %v6430_v24  ;;  %v8370_v35 = vrot.slane %v8369_v33, 4  ;;  %v8368_v4 = vmax.f32 %v8366_v41, %v8367_v31 }
 0x658   : > { %v8402_v36 = vrot.slane %v8401_v9, 1  ;;  %v8376_v13 = vsel %vm1138_vm3, %v7640_v52, -inf  ;;  %v5258_v7 = vadd.f32 %v13031_v21, %v9656_v15  ;;  %v8408_v19 = vmax.f32 %v8406_v18, %v8407_v29 }
 0x659   : > { %v6426_v47 = vmax.f32 %v6424_v56, %v6425_v2  ;;  %v6432_v61 = vrot.slane %v6431_v55, 2  ;;  %v8371_v62 = vmax.f32 %v8369_v33, %v8370_v35  ;;  %v13173_v44 = vmax.f32 %v6454_v10, %v6455_v54 }
 0x65a   : > { %v8403_v0 = vmax.f32 %v8401_v9, %v8402_v36  ;;  %v8377_v3 = vrot.slane %v8376_v13, 4  ;;  %v5346_v12 = vmax.f32 %v5258_v7, 0.0  ;;  %v13176_v24 = vmax.f32 %v6461_v50, %v6462_v5 }
 0x65b   : > { %v8409_v41 = vrot.slane %v8408_v19, 1  ;;  %v8372_v31 = vrot.slane %v8371_v62, 2  ;;  %v6427_v37 = vrot.slane %v6426_v47, 1  ;;  %v6433_v29 = vmax.f32 %v6431_v55, %v6432_v61 }
 0x65c   : > { %v8378_v52 = vmax.f32 %v8376_v13, %v8377_v3  ;;  %v5490_v27 = vcombine.high %v5346_v12, %v5346_v12  ;;  %v6492_v18 = vsel %vm1138_vm3, %v5346_v12, -inf  ;;  %v8815_v56 = vmax.f32 %v8814_v1, %v8403_v0  ;;  %v5249_v0 = vpop.f32.mrf.mxu0 }
 0x65d   : > { %v8373_v33 = vmax.f32 %v8371_v62, %v8372_v31  ;;  %v7365_v10 = vadd.f32 %v13031_v21, %v9714_v48  ;;  %v14082_v36 = vmax.f32 %v12990_v46, %v13119_v16  ;;  %v6666_v50 = vmax.f32 %v13162_v51, %v13173_v44 }
 0x65e   : > { %v8379_v5 = vrot.slane %v8378_v52, 2  ;;  %v6493_v9 = vrot.slane %v6492_v18, 4  ;;  %v6669_v2 = vmax.f32 %v13165_v32, %v13176_v24  ;;  %v8410_v35 = vmax.f32 %v8408_v19, %v8409_v41 }
 0x65f   : > { %v8817_v54 = vmax.f32 %v14082_v36, %v8368_v4  ;;  %v8374_v15 = vrot.slane %v8373_v33, 1  ;;  %v6499_v1 = vsel %vm1138_vm3, %v5490_v27, -inf  ;;  %v13188_v55 = vmax.f32 %v6426_v47, %v6427_v37 }
 0x660   : > { %v8380_v13 = vmax.f32 %v8378_v52, %v8379_v5  ;;  %v6494_v7 = vmax.f32 %v6492_v18, %v6493_v9  ;;  %v6500_v61 = vrot.slane %v6499_v1, 4  ;;  %v8869_v46 = vmax.f32 %v13136_v42, %v8815_v56  ;;  %v7356_v9 = vpop.f32.mrf.mxu1 }
 0x661   : > { %v6434_v16 = vrot.slane %v6433_v29, 1  ;;  %v8375_v4 = vmax.f32 %v8373_v33, %v8374_v15  ;;  %v7501_v62 = vmax.f32 %v7365_v10, 0.0  ;;  %v5250_v31 = vadd.f32 %v13031_v21, %v5249_v0 }
 0x662   : > { %v8381_v3 = vrot.slane %v8380_v13, 1  ;;  %v6495_v12 = vrot.slane %v6494_v7, 2  ;;  %v6501_v48 = vmax.f32 %v6499_v1, %v6500_v61  ;;  %v8818_v19 = vmax.f32 %v8817_v54, %v8410_v35 }
 0x663   : > { %v8803_v41 = vmax.f32 %v13054_v6, %v8375_v4  ;;  %v7645_v27 = vcombine.high %v7501_v62, %v7501_v62  ;;  %v8439_v37 = vsel %vm1138_vm3, %v7501_v62, -inf  ;;  %v13195_v42 = vmul.f32 %v8815_v56, %v14053_v26 }
 0x664   : > { %v8382_v47 = vmax.f32 %v8380_v13, %v8381_v3  ;;  %v6496_v52 = vmax.f32 %v6494_v7, %v6495_v12  ;;  %v6502_v18 = vrot.slane %v6501_v48, 2  ;;  %v8440_v36 = vrot.slane %v8439_v37, 4 }
 0x665   : > { %14083 = vst [vmem:[#allocation56_spill] sm:$0xff] %v13195_v42  ;;  %v8932_v33 = vmul.f32 %v8803_v41, %v14058_v53  ;;  %v8446_v10 = vsel %vm1138_vm3, %v7645_v27, -inf  ;;  %v5344_v5 = vmax.f32 %v5250_v31, 0.0  ;;  %v13201_v1 = vmul.f32 %v8818_v19, %v14055_v60 }
 0x666   : > { %v8806_v54 = vmax.f32 %v13084_v63, %v8382_v47  ;;  %v6497_v35 = vrot.slane %v6496_v52, 1  ;;  %v6503_v6 = vmax.f32 %v6501_v48, %v6502_v18  ;;  %v8441_v15 = vmax.f32 %v8439_v37, %v8440_v36 }
 0x667   : > { %14084 = vst [vmem:[#allocation72_spill] sm:$0xff] %v13201_v1  ;;  %v8447_v13 = vrot.slane %v8446_v10, 4  ;;  %v5488_v7 = vcombine.high %v5344_v5, %v5344_v5  ;;  %v6464_v61 = vsel %vm1138_vm3, %v5344_v5, -inf  ;;  %v9016_v56 = vrot.slane %v8932_v33, 6 }
 0x668   : > { %v8933_v26 = vmul.f32 %v8806_v54, %v14059_v40  ;;  %v6504_v53 = vrot.slane %v6503_v6, 1  ;;  %v7357_v4 = vadd.f32 %v13031_v21, %v7356_v9  ;;  %v8867_v62 = vmax.f32 %v8803_v41, %v8806_v54 }
 0x669   : > { %v8442_v0 = vrot.slane %v8441_v15, 2  ;;  %v8448_v3 = vmax.f32 %v8446_v10, %v8447_v13  ;;  %v6465_v63 = vrot.slane %v6464_v61, 4  ;;  %v13206_v12 = vmax.f32 %v8869_v46, %v8818_v19 }
 0x66a   : > { %v13209_v60 = vmax.f32 %v6433_v29, %v6434_v16  ;;  %v6498_v31 = vmax.f32 %v6496_v52, %v6497_v35  ;;  %v9018_v27 = vrot.slane %v8933_v26, 5  ;;  %v6505_v37 = vmax.f32 %v6503_v6, %v6504_v53  ;;  %v9657_v16 = vpop.f32.mrf.mxu0  ;;  %v9715_v52 = vpop.f32.mrf.mxu1 }
 0x66b   : > { %14085 = vst [vmem:[#allocation71_spill] sm:$0xff] %v13206_v12  ;;  %v6466_v47 = vmax.f32 %v6464_v61, %v6465_v63  ;;  %v6471_v40 = vsel %vm1138_vm3, %v5488_v7, -inf  ;;  %v9017_v41 = vsel %vm2311_vm5, %v9016_v56, %v12948_v57  ;;  %v7499_v33 = vmax.f32 %v7357_v4, 0.0 }
 0x66c   : > { %v6472_v36 = vrot.slane %v6471_v40, 4  ;;  %v13216_v46 = vmax.f32 %v8867_v62, %v13132_v34  ;;  %v8443_v19 = vmax.f32 %v8441_v15, %v8442_v0  ;;  %v8449_v10 = vrot.slane %v8448_v3, 2 }
 0x66d   : > { %v6467_v29 = vrot.slane %v6466_v47, 2  ;;  %v7643_v9 = vcombine.high %v7499_v33, %v7499_v33  ;;  %v8411_v54 = vsel %vm1138_vm3, %v7499_v33, -inf  ;;  %v5261_v35 = vadd.f32 %v13031_v21, %v9657_v16 }
 0x66e   : > { %14086 = vst [vmem:[#allocation73_spill] sm:$0xff] %v13216_v46  ;;  %v6473_v5 = vmax.f32 %v6471_v40, %v6472_v36  ;;  %v9019_v6 = vsel %vm2314_vm6, %v9018_v27, %v9017_v41  ;;  %v13224_v57 = vmax.f32 %v6666_v50, %v6498_v31  ;;  %v13229_v34 = vmax.f32 %v6669_v2, %v6505_v37 }
 0x66f   : > { %v8412_v15 = vrot.slane %v8411_v54, 4  ;;  %v8418_v7 = vsel %vm1138_vm3, %v7643_v9, -inf  ;;  %v5347_v61 = vmax.f32 %v5261_v35, 0.0  ;;  %v7368_v26 = vadd.f32 %v13031_v21, %v9715_v52 }
 0x670   : > { %v6474_v13 = vrot.slane %v6473_v5, 2  ;;  %v8450_v56 = vmax.f32 %v8448_v3, %v8449_v10  ;;  %v6468_v53 = vmax.f32 %v6466_v47, %v6467_v29  ;;  %v8419_v62 = vrot.slane %v8418_v7, 4 }
 0x671   : > { %v8413_v4 = vmax.f32 %v8411_v54, %v8412_v15  ;;  %v8444_v0 = vrot.slane %v8443_v19, 1  ;;  %v5491_v51 = vcombine.high %v5347_v61, %v5347_v61  ;;  %v6506_v44 = vsel %vm1138_vm3, %v5347_v61, -inf }
 0x672   : > { %v7502_v50 = vmax.f32 %v7368_v26, 0.0  ;;  %v6475_v63 = vmax.f32 %v6473_v5, %v6474_v13  ;;  %v8420_v24 = vmax.f32 %v8418_v7, %v8419_v62  ;;  %v6507_v2 = vrot.slane %v6506_v44, 4  ;;  %v5252_v5 = vpop.f32.mrf.mxu0 }
 0x673   : > { %v8414_v32 = vrot.slane %v8413_v4, 2  ;;  %v14087_v31 = vrot.slane %v13150_v43, 4  ;;  %v6513_v37 = vsel %vm1138_vm3, %v5491_v51, -inf  ;;  %v8451_v40 = vrot.slane %v8450_v56, 1 }
 0x674   : > { %v7646_v3 = vcombine.high %v7502_v50, %v7502_v50  ;;  %v8453_v47 = vsel %vm1138_vm3, %v7502_v50, -inf  ;;  %v6469_v41 = vrot.slane %v6468_v53, 1  ;;  %v8421_v36 = vrot.slane %v8420_v24, 2 }
 0x675   : > { %v13237_v27 = vsel %vm2476_vm7, %v14087_v31, %v9019_v6  ;;  %v6508_v33 = vmax.f32 %v6506_v44, %v6507_v2  ;;  %v13241_v10 = vmax.f32 %v8443_v19, %v8444_v0  ;;  %v6514_v29 = vrot.slane %v6513_v37, 4  ;;  %v7359_v6 = vpop.f32.mrf.mxu1  ;;  %v9660_v31 = vpop.f32.mrf.mxu0 }
 0x676   : > { %14088 = vst [vmem:[#allocation23_spill] sm:$0xff] %v13237_v27  ;;  %v8454_v16 = vrot.slane %v8453_v47, 4  ;;  %v8460_v52 = vsel %vm1138_vm3, %v7646_v3, -inf  ;;  %v6476_v43 = vrot.slane %v6475_v63, 1  ;;  %v8415_v9 = vmax.f32 %v8413_v4, %v8414_v32 }
 0x677   : > { %v6509_v54 = vrot.slane %v6508_v33, 2  ;;  %v8461_v35 = vrot.slane %v8460_v52, 4  ;;  %v8422_v15 = vmax.f32 %v8420_v24, %v8421_v36  ;;  %v6515_v13 = vmax.f32 %v6513_v37, %v6514_v29 }
 0x678   : > { %v8455_v7 = vmax.f32 %v8453_v47, %v8454_v16  ;;  %v5253_v61 = vadd.f32 %v13031_v21, %v5252_v5  ;;  %v13245_v26 = vmax.f32 %v8450_v56, %v8451_v40  ;;  %v6470_v62 = vmax.f32 %v6468_v53, %v6469_v41 }
 0x679   : > { %v6510_v19 = vmax.f32 %v6508_v33, %v6509_v54  ;;  %v8462_v0 = vmax.f32 %v8460_v52, %v8461_v35  ;;  %v6516_v51 = vrot.slane %v6515_v13, 2  ;;  %v7360_v2 = vadd.f32 %v13031_v21, %v7359_v6 }
 0x67a   : > { %v8456_v44 = vrot.slane %v8455_v7, 2  ;;  %v5345_v50 = vmax.f32 %v5253_v61, 0.0  ;;  %v6477_v4 = vmax.f32 %v6475_v63, %v6476_v43  ;;  %v5274_v24 = vadd.f32 %v13031_v21, %v9660_v31 }
 0x67b   : > { %v6511_v32 = vrot.slane %v6510_v19, 1  ;;  %v8463_v3 = vrot.slane %v8462_v0, 2  ;;  %v8416_v37 = vrot.slane %v8415_v9, 1  ;;  %v8423_v47 = vrot.slane %v8422_v15, 1 }
 0x67c   : > { %v5489_v36 = vcombine.high %v5345_v50, %v5345_v50  ;;  %v6478_v56 = vsel %vm1138_vm3, %v5345_v50, -inf  ;;  %v6672_v53 = vmax.f32 %v13188_v55, %v6470_v62  ;;  %v6517_v40 = vmax.f32 %v6515_v13, %v6516_v51 }
 0x67d   : > { %v6479_v41 = vrot.slane %v6478_v56, 4  ;;  %v7500_v33 = vmax.f32 %v7360_v2, 0.0  ;;  %v6512_v29 = vmax.f32 %v6510_v19, %v6511_v32  ;;  %v8457_v16 = vmax.f32 %v8455_v7, %v8456_v44  ;;  %v9718_v7 = vpop.f32.mrf.mxu1 }
 0x67e   : > { %v6485_v52 = vsel %vm1138_vm3, %v5489_v36, -inf  ;;  %v5350_v5 = vmax.f32 %v5274_v24, 0.0  ;;  %v6675_v63 = vmax.f32 %v13209_v60, %v6477_v4  ;;  %v8464_v43 = vmax.f32 %v8462_v0, %v8463_v3 }
 0x67f   : > { %v6480_v54 = vmax.f32 %v6478_v56, %v6479_v41  ;;  %v6486_v35 = vrot.slane %v6485_v52, 4  ;;  %v13253_v6 = vmax.f32 %v8415_v9, %v8416_v37  ;;  %v13255_v61 = vmax.f32 %v8422_v15, %v8423_v47  ;;  %v5265_v47 = vpop.f32.mrf.mxu0 }
 0x680   : > { %v7644_v50 = vcombine.high %v7500_v33, %v7500_v33  ;;  %v8425_v55 = vsel %vm1138_vm3, %v7500_v33, -inf  ;;  %v6518_v13 = vrot.slane %v6517_v40, 1  ;;  %v13258_v44 = vmax.f32 %v6672_v53, %v6512_v29 }
 0x681   : > { %v6481_v62 = vrot.slane %v6480_v54, 2  ;;  %v6487_v51 = vmax.f32 %v6485_v52, %v6486_v35  ;;  %v8426_v19 = vrot.slane %v8425_v55, 4  ;;  %v8458_v2 = vrot.slane %v8457_v16, 1 }
 0x682   : > { %v8432_v60 = vsel %vm1138_vm3, %v7644_v50, -inf  ;;  %v5494_v0 = vcombine.high %v5350_v5, %v5350_v5  ;;  %v8465_v31 = vrot.slane %v8464_v43, 1  ;;  %v6548_v3 = vsel %vm1138_vm3, %v5350_v5, -inf }
 0x683   : > { %v6482_v4 = vmax.f32 %v6480_v54, %v6481_v62  ;;  %v6488_v9 = vrot.slane %v6487_v51, 2  ;;  %v8427_v32 = vmax.f32 %v8425_v55, %v8426_v19  ;;  %v8433_v15 = vrot.slane %v8432_v60, 4 }
 0x684   : > { %v6555_v24 = vsel %vm1138_vm3, %v5494_v0, -inf  ;;  %v7381_v37 = vadd.f32 %v13031_v21, %v9718_v7  ;;  %v6519_v36 = vmax.f32 %v6517_v40, %v6518_v13  ;;  %v6549_v41 = vrot.slane %v6548_v3, 4 }
 0x685   : > { %v6483_v56 = vrot.slane %v6482_v4, 1  ;;  %v6489_v53 = vmax.f32 %v6487_v51, %v6488_v9  ;;  %v13264_v33 = vmax.f32 %v8457_v16, %v8458_v2  ;;  %v8434_v29 = vmax.f32 %v8432_v60, %v8433_v15  ;;  %v7372_v9 = vpop.f32.mrf.mxu1 }
 0x686   : > { %v6556_v52 = vrot.slane %v6555_v24, 4  ;;  %v7505_v35 = vmax.f32 %v7381_v37, 0.0  ;;  %v13266_v54 = vmax.f32 %v8464_v43, %v8465_v31  ;;  %v8428_v50 = vrot.slane %v8427_v32, 2 }
 0x687   : > { %v6550_v55 = vmax.f32 %v6548_v3, %v6549_v41  ;;  %v5266_v5 = vadd.f32 %v13031_v21, %v5265_v47  ;;  %v6490_v62 = vrot.slane %v6489_v53, 1  ;;  %v6676_v40 = vmax.f32 %v6675_v63, %v6519_v36 }
 0x688   : > { %v6557_v19 = vmax.f32 %v6555_v24, %v6556_v52  ;;  %v7649_v0 = vcombine.high %v7505_v35, %v7505_v35  ;;  %v8495_v7 = vsel %vm1138_vm3, %v7505_v35, -inf  ;;  %v13270_v13 = vmax.f32 %v6482_v4, %v6483_v56 }
 0x689   : > { %v8435_v51 = vrot.slane %v8434_v29, 2  ;;  %v6551_v16 = vrot.slane %v6550_v55, 2  ;;  %v8819_v2 = vmax.f32 %v13253_v6, %v13264_v33  ;;  %v8496_v43 = vrot.slane %v8495_v7, 4 }
 0x68a   : > { %v6558_v60 = vrot.slane %v6557_v19, 2  ;;  %v8502_v31 = vsel %vm1138_vm3, %v7649_v0, -inf  ;;  %v8429_v3 = vmax.f32 %v8427_v32, %v8428_v50  ;;  %v13277_v47 = vmax.f32 %v6489_v53, %v6490_v62 }
 0x68b   : > { %v6552_v24 = vmax.f32 %v6550_v55, %v6551_v16  ;;  %v8503_v37 = vrot.slane %v8502_v31, 4  ;;  %v8497_v4 = vmax.f32 %v8495_v7, %v8496_v43  ;;  %v5348_v36 = vmax.f32 %v5266_v5, 0.0  ;;  %v9661_v55 = vpop.f32.mrf.mxu0 }
 0x68c   : > { %v6559_v63 = vmax.f32 %v6557_v19, %v6558_v60  ;;  %v8436_v41 = vmax.f32 %v8434_v29, %v8435_v51  ;;  %v7373_v35 = vadd.f32 %v13031_v21, %v7372_v9  ;;  %v8430_v15 = vrot.slane %v8429_v3, 1 }
 0x68d   : > { %v8504_v52 = vmax.f32 %v8502_v31, %v8503_v37  ;;  %v6553_v0 = vrot.slane %v6552_v24, 1  ;;  %v8498_v48 = vrot.slane %v8497_v4, 2  ;;  %v5492_v11 = vcombine.high %v5348_v36, %v5348_v36 }
 0x68e   : > { %v6560_v18 = vrot.slane %v6559_v63, 1  ;;  %v6520_v50 = vsel %vm1138_vm3, %v5348_v36, -inf  ;;  %v7503_v53 = vmax.f32 %v7373_v35, 0.0  ;;  %v8437_v16 = vrot.slane %v8436_v41, 1 }
 0x68f   : > { %v8505_v32 = vrot.slane %v8504_v52, 2  ;;  %v8499_v19 = vmax.f32 %v8497_v4, %v8498_v48  ;;  %v6521_v5 = vrot.slane %v6520_v50, 4  ;;  %v6527_v7 = vsel %vm1138_vm3, %v5492_v11, -inf }
 0x690   : > { %v6561_v62 = vmax.f32 %v6559_v63, %v6560_v18  ;;  %v6528_v51 = vrot.slane %v6527_v7, 4  ;;  %v7647_v60 = vcombine.high %v7503_v53, %v7503_v53  ;;  %v6554_v43 = vmax.f32 %v6552_v24, %v6553_v0 }
 0x691   : > { %v8506_v29 = vmax.f32 %v8504_v52, %v8505_v32  ;;  %v6522_v31 = vmax.f32 %v6520_v50, %v6521_v5  ;;  %v8467_v9 = vsel %vm1138_vm3, %v7503_v53, -inf  ;;  %v5277_v37 = vadd.f32 %v13031_v21, %v9661_v55 }
 0x692   : > { %v13288_v35 = vmax.f32 %v8429_v3, %v8430_v15  ;;  %v6529_v18 = vmax.f32 %v6527_v7, %v6528_v51  ;;  %v8468_v48 = vrot.slane %v8467_v9, 4  ;;  %v13290_v63 = vmax.f32 %v6676_v40, %v6561_v62  ;;  %v14089_v3 = vld [vmem:[#allocation64_spill] sm:$0xff]  ;;  %v9719_v51 = vpop.f32.mrf.mxu1 }
 0x693   : > { %v8500_v11 = vrot.slane %v8499_v19, 1  ;;  %v6523_v4 = vrot.slane %v6522_v31, 2  ;;  %v8474_v52 = vsel %vm1138_vm3, %v7647_v60, -inf  ;;  %v8507_v32 = vrot.slane %v8506_v29, 1  ;;  %v5268_v60 = vpop.f32.mrf.mxu0 }
 0x694   : > { %v6530_v24 = vrot.slane %v6529_v18, 2  ;;  %v8469_v0 = vmax.f32 %v8467_v9, %v8468_v48  ;;  %v8475_v50 = vrot.slane %v8474_v52, 4  ;;  %v13293_v53 = vmax.f32 %v8436_v41, %v8437_v16 }
 0x695   : > { %v13296_v21 = vmax.f32 %v13258_v44, %v6554_v43  ;;  %v6524_v55 = vmax.f32 %v6522_v31, %v6523_v4  ;;  %v5351_v15 = vmax.f32 %v5277_v37, 0.0  ;;  %v13300_v5 = vmul.f32 %v13290_v63, %v14089_v3  ;;  %v13306_v31 = vld [vmem:[%s13699_s5 + $0x20] sm:$0xf] }
 0x696   : > { %v6531_v40 = vmax.f32 %v6529_v18, %v6530_v24  ;;  %v8470_v62 = vrot.slane %v8469_v0, 2  ;;  %v8476_v7 = vmax.f32 %v8474_v52, %v8475_v50  ;;  %v8501_v36 = vmax.f32 %v8499_v19, %v8500_v11  ;;  %v13314_v19 = vld [vmem:[%s13696_s2] ss:$0 sm:$0xff] }
 0x697   : > { %v6525_v56 = vrot.slane %v6524_v55, 1  ;;  %v5495_v9 = vcombine.high %v5351_v15, %v5351_v15  ;;  %v6562_v41 = vsel %vm1138_vm3, %v5351_v15, -inf  ;;  %v8508_v16 = vmax.f32 %v8506_v29, %v8507_v32 }
 0x698   : > { %v6532_v48 = vrot.slane %v6531_v40, 1  ;;  %v8477_v44 = vrot.slane %v8476_v7, 2  ;;  %v6563_v43 = vrot.slane %v6562_v41, 4  ;;  %v6775_v37 = vmul.f32 %v13306_v31, %v13296_v21 }
 0x699   : > { %v6569_v18 = vsel %vm1138_vm3, %v5495_v9, -inf  ;;  %v7384_v29 = vadd.f32 %v13314_v19, %v9719_v51  ;;  %v5269_v11 = vadd.f32 %v13314_v19, %v5268_v60  ;;  %v6871_v4 = vrot.slane %v13300_v5, 7 }
 0x69a   : > { %v6526_v52 = vmax.f32 %v6524_v55, %v6525_v56  ;;  %v8471_v32 = vmax.f32 %v8469_v0, %v8470_v62  ;;  %v6564_v24 = vmax.f32 %v6562_v41, %v6563_v43  ;;  %v13322_v50 = vmax.f32 %v8819_v2, %v8501_v36  ;;  %v7375_v62 = vpop.f32.mrf.mxu1 }
 0x69b   : > { %v6570_v15 = vrot.slane %v6569_v18, 4  ;;  %v7506_v9 = vmax.f32 %v7384_v29, 0.0  ;;  %v5349_v1 = vmax.f32 %v5269_v11, 0.0  ;;  %v14090_v42 = vmax.f32 %v13255_v61, %v13266_v54 }
 0x69c   : > { %v6533_v51 = vmax.f32 %v6531_v40, %v6532_v48  ;;  %v8478_v60 = vmax.f32 %v8476_v7, %v8477_v44  ;;  %v6565_v27 = vrot.slane %v6564_v24, 2  ;;  %v14091_v6 = vmax.f32 %v13144_v49, %v13270_v13  ;;  %v9722_v13 = vpop.f32.mrf.mxu1 }
 0x69d   : > { %v13327_v25 = vmax.f32 %v14090_v42, %v8508_v16  ;;  %v6571_v5 = vmax.f32 %v6569_v18, %v6570_v15  ;;  %v7650_v56 = vcombine.high %v7506_v9, %v7506_v9  ;;  %v8509_v0 = vsel %vm1138_vm3, %v7506_v9, -inf }
 0x69e   : > { %v5493_v55 = vcombine.high %v5349_v1, %v5349_v1  ;;  %v6679_v33 = vmax.f32 %v14091_v6, %v6526_v52  ;;  %v8472_v2 = vrot.slane %v8471_v32, 1  ;;  %v6566_v36 = vmax.f32 %v6564_v24, %v6565_v27 }
 0x69f   : > { %v8510_v41 = vrot.slane %v8509_v0, 4  ;;  %v6572_v43 = vrot.slane %v6571_v5, 2  ;;  %v8516_v42 = vsel %vm1138_vm3, %v7650_v56, -inf  ;;  %v6534_v61 = vsel %vm1138_vm3, %v5349_v1, -inf }
 0x6a0   : > { %v6541_v54 = vsel %vm1138_vm3, %v5493_v55, -inf  ;;  %v8479_v40 = vrot.slane %v8478_v60, 1  ;;  %v6567_v7 = vrot.slane %v6566_v36, 1  ;;  %v8517_v48 = vrot.slane %v8516_v42, 4 }
 0x6a1   : > { %v8511_v16 = vmax.f32 %v8509_v0, %v8510_v41  ;;  %v6573_v44 = vmax.f32 %v6571_v5, %v6572_v43  ;;  %v6535_v18 = vrot.slane %v6534_v61, 4  ;;  %v6542_v29 = vrot.slane %v6541_v54, 4 }
 0x6a2   : > { %v7376_v49 = vadd.f32 %v13314_v19, %v7375_v62  ;;  %v8473_v11 = vmax.f32 %v8471_v32, %v8472_v2  ;;  %v6568_v27 = vmax.f32 %v6566_v36, %v6567_v7  ;;  %v8518_v24 = vmax.f32 %v8516_v42, %v8517_v48  ;;  %v7388_v48 = vpop.f32.mrf.mxu1 }
 0x6a3   : > { %v8512_v52 = vrot.slane %v8511_v16, 2  ;;  %v6574_v15 = vrot.slane %v6573_v44, 1  ;;  %v6536_v9 = vmax.f32 %v6534_v61, %v6535_v18  ;;  %v6543_v56 = vmax.f32 %v6541_v54, %v6542_v29 }
 0x6a4   : > { %v7504_v1 = vmax.f32 %v7376_v49, 0.0  ;;  %v8480_v6 = vmax.f32 %v8478_v60, %v8479_v40  ;;  %v8519_v12 = vrot.slane %v8518_v24, 2  ;;  %v7397_v0 = vadd.f32 %v13314_v19, %v9722_v13 }
 0x6a5   : > { %v8513_v55 = vmax.f32 %v8511_v16, %v8512_v52  ;;  %v13339_v5 = vsel %vm2308_vm4, %v6871_v4, %v6775_v37  ;;  %v6680_v41 = vmax.f32 %v6679_v33, %v6568_v27  ;;  %v6537_v43 = vrot.slane %v6536_v9, 2 }
 0x6a6   : > { %v6544_v62 = vrot.slane %v6543_v56, 2  ;;  %v14092_v32 = vmax.f32 %v13146_v20, %v13277_v47  ;;  %v6575_v36 = vmax.f32 %v6573_v44, %v6574_v15  ;;  %v8520_v42 = vmax.f32 %v8518_v24, %v8519_v12  ;;  %v14093_v12 = vld [vmem:[#allocation65_spill] sm:$0xff] }
 0x6a7   : > { %v7648_v61 = vcombine.high %v7504_v1, %v7504_v1  ;;  %v8514_v54 = vrot.slane %v8513_v55, 1  ;;  %v6538_v7 = vmax.f32 %v6536_v9, %v6537_v43  ;;  %v8481_v40 = vsel %vm1138_vm3, %v7504_v1, -inf }
 0x6a8   : > { %v6682_v2 = vmax.f32 %v14092_v32, %v6533_v51  ;;  %v6545_v60 = vmax.f32 %v6543_v56, %v6544_v62  ;;  %v8825_v16 = vmax.f32 %v13288_v35, %v8473_v11  ;;  %v8828_v37 = vmax.f32 %v13293_v53, %v8480_v6  ;;  %v14095_v53 = vld [vmem:[#allocation66_spill] sm:$0xff]  ;;  %v9723_v56 = vpop.f32.mrf.mxu1 }
 0x6a9   : > { %v8482_v4 = vrot.slane %v8481_v40, 4  ;;  %v7509_v33 = vmax.f32 %v7397_v0, 0.0  ;;  %v6706_v18 = vmax.f32 %v13290_v63, %v6680_v41  ;;  %v8521_v29 = vrot.slane %v8520_v42, 1 }
 0x6aa   : > { %v6539_v20 = vrot.slane %v6538_v7, 1  ;;  %v6546_v47 = vrot.slane %v6545_v60, 1  ;;  %v6683_v51 = vmax.f32 %v6682_v2, %v6575_v36  ;;  %v13349_v44 = vmul.f32 %v6680_v41, %v14093_v12 }
 0x6ab   : > { %v8483_v49 = vmax.f32 %v8481_v40, %v8482_v4  ;;  %v8488_v13 = vsel %vm1138_vm3, %v7648_v61, -inf  ;;  %v8515_v27 = vmax.f32 %v8513_v55, %v8514_v54  ;;  %v7653_v9 = vcombine.high %v7509_v33, %v7509_v33  ;;  %v7391_v40 = vpop.f32.mrf.mxu1 }
 0x6ac   : > { %14094 = vst [vmem:[#allocation24_spill] sm:$0xff] %v13349_v44  ;;  %v6540_v52 = vmax.f32 %v6538_v7, %v6539_v20  ;;  %v6547_v35 = vmax.f32 %v6545_v60, %v6546_v47  ;;  %v8489_v11 = vrot.slane %v8488_v13, 4  ;;  %v13353_v24 = vmul.f32 %v6683_v51, %v14095_v53  ;;  %v14097_v20 = vld [vmem:[#allocation68_spill] sm:$0xff] }
 0x6ad   : > { %v8484_v15 = vrot.slane %v8483_v49, 2  ;;  %v8551_v63 = vsel %vm1138_vm3, %v7509_v33, -inf  ;;  %v8522_v1 = vmax.f32 %v8520_v42, %v8521_v29  ;;  %v8558_v62 = vsel %vm1138_vm3, %v7653_v9, -inf }
 0x6ae   : > { %14096 = vst [vmem:[#allocation25_spill] sm:$0xff] %v13353_v24  ;;  %v13357_v6 = vmax.f32 %v13229_v34, %v6547_v35  ;;  %v8490_v0 = vmax.f32 %v8488_v13, %v8489_v11  ;;  %v8552_v41 = vrot.slane %v8551_v63, 4  ;;  %v13361_v55 = vmax.f32 %v13224_v57, %v6540_v52  ;;  %v14098_v52 = vld [vmem:[#allocation69_spill] sm:$0xff] }
 0x6af   : > { %v7389_v32 = vadd.f32 %v13314_v19, %v7388_v48  ;;  %v13365_v2 = vmax.f32 %v6706_v18, %v6683_v51  ;;  %v8485_v36 = vmax.f32 %v8483_v49, %v8484_v15  ;;  %v7400_v42 = vadd.f32 %v13314_v19, %v9723_v56 }
 0x6b0   : > { %v8491_v61 = vrot.slane %v8490_v0, 2  ;;  %v8826_v54 = vmax.f32 %v8825_v16, %v8515_v27  ;;  %v8553_v34 = vmax.f32 %v8551_v63, %v8552_v41  ;;  %v8559_v7 = vrot.slane %v8558_v62, 4 }
 0x6b1   : > { %v7507_v60 = vmax.f32 %v7389_v32, 0.0  ;;  %v8829_v33 = vmax.f32 %v8828_v37, %v8522_v1  ;;  %v13373_v48 = vmul.f32 %v13361_v55, %v14097_v20  ;;  %v8486_v49 = vrot.slane %v8485_v36, 1 }
 0x6b2   : > { %v8492_v29 = vmax.f32 %v8490_v0, %v8491_v61  ;;  %v8554_v18 = vrot.slane %v8553_v34, 2  ;;  %v8560_v47 = vmax.f32 %v8558_v62, %v8559_v7  ;;  %v7510_v13 = vmax.f32 %v7400_v42, 0.0 }
 0x6b3   : > { %v7651_v51 = vcombine.high %v7507_v60, %v7507_v60  ;;  %v8523_v16 = vsel %vm1138_vm3, %v7507_v60, -inf  ;;  %v7392_v27 = vadd.f32 %v13314_v19, %v7391_v40  ;;  %v13379_v37 = vmul.f32 %v13357_v6, %v14098_v52  ;;  %v9726_v40 = vpop.f32.mrf.mxu1 }
 0x6b4   : > { %v8555_v35 = vmax.f32 %v8553_v34, %v8554_v18  ;;  %v8561_v11 = vrot.slane %v8560_v47, 2  ;;  %v8524_v15 = vrot.slane %v8523_v16, 4  ;;  %v8493_v9 = vrot.slane %v8492_v29, 1 }
 0x6b5   : > { %14099 = vst [vmem:[#allocation32_spill] sm:$0xff] %v13379_v37  ;;  %v8530_v63 = vsel %vm1138_vm3, %v7651_v51, -inf  ;;  %v7654_v56 = vcombine.high %v7510_v13, %v7510_v13  ;;  %v8565_v1 = vsel %vm1138_vm3, %v7510_v13, -inf  ;;  %v8487_v61 = vmax.f32 %v8485_v36, %v8486_v49 }
 0x6b6   : > { %v8556_v0 = vrot.slane %v8555_v35, 1  ;;  %v8562_v41 = vmax.f32 %v8560_v47, %v8561_v11  ;;  %v8525_v62 = vmax.f32 %v8523_v16, %v8524_v15  ;;  %v8531_v32 = vrot.slane %v8530_v63, 4 }
 0x6b7   : > { %v8566_v42 = vrot.slane %v8565_v1, 4  ;;  %v8572_v7 = vsel %vm1138_vm3, %v7654_v56, -inf  ;;  %v7508_v60 = vmax.f32 %v7392_v27, 0.0  ;;  %v8494_v13 = vmax.f32 %v8492_v29, %v8493_v9  ;;  %v7404_v27 = vpop.f32.mrf.mxu1 }
 0x6b8   : > { %v8557_v4 = vmax.f32 %v8555_v35, %v8556_v0  ;;  %v8563_v34 = vrot.slane %v8562_v41, 1  ;;  %v8526_v18 = vrot.slane %v8525_v62, 2  ;;  %v8532_v43 = vmax.f32 %v8530_v63, %v8531_v32 }
 0x6b9   : > { %v8567_v57 = vmax.f32 %v8565_v1, %v8566_v42  ;;  %v8573_v46 = vrot.slane %v8572_v7, 4  ;;  %v7652_v51 = vcombine.high %v7508_v60, %v7508_v60  ;;  %v8537_v24 = vsel %vm1138_vm3, %v7508_v60, -inf }
 0x6ba   : > { %v8564_v44 = vmax.f32 %v8562_v41, %v8563_v34  ;;  %v8527_v47 = vmax.f32 %v8525_v62, %v8526_v18  ;;  %v8533_v16 = vrot.slane %v8532_v43, 2  ;;  %v8538_v49 = vrot.slane %v8537_v24, 4 }
 0x6bb   : > { %v8568_v11 = vrot.slane %v8567_v57, 2  ;;  %v8574_v36 = vmax.f32 %v8572_v7, %v8573_v46  ;;  %v8544_v15 = vsel %vm1138_vm3, %v7652_v51, -inf  ;;  %v8831_v35 = vmax.f32 %v13241_v10, %v8487_v61  ;;  %v9727_v51 = vpop.f32.mrf.mxu1 }
 0x6bc   : > { %v13387_v56 = vmax.f32 %v8826_v54, %v8557_v4  ;;  %v8528_v63 = vrot.slane %v8527_v47, 1  ;;  %v8534_v1 = vmax.f32 %v8532_v43, %v8533_v16  ;;  %v8539_v42 = vmax.f32 %v8537_v24, %v8538_v49 }
 0x6bd   : > { %v8569_v0 = vmax.f32 %v8567_v57, %v8568_v11  ;;  %v8575_v32 = vrot.slane %v8574_v36, 2  ;;  %v8545_v60 = vrot.slane %v8544_v15, 4  ;;  %v8834_v29 = vmax.f32 %v13245_v26, %v8494_v13 }
 0x6be   : > { %v13390_v9 = vmax.f32 %v8829_v33, %v8564_v44  ;;  %v8529_v41 = vmax.f32 %v8527_v47, %v8528_v63  ;;  %v8535_v46 = vrot.slane %v8534_v1, 1  ;;  %v8540_v34 = vrot.slane %v8539_v42, 2 }
 0x6bf   : > { %v8570_v62 = vrot.slane %v8569_v0, 1  ;;  %v8576_v7 = vmax.f32 %v8574_v36, %v8575_v32  ;;  %v8546_v18 = vmax.f32 %v8544_v15, %v8545_v60  ;;  %v13394_v10 = vmul.f32 %v13387_v56, %v14072_v23 }
 0x6c0   : > { %v8536_v43 = vmax.f32 %v8534_v1, %v8535_v46  ;;  %v8832_v54 = vmax.f32 %v8831_v35, %v8529_v41  ;;  %v7413_v24 = vadd.f32 %v13314_v19, %v9726_v40  ;;  %v8541_v26 = vmax.f32 %v8539_v42, %v8540_v34 }
 0x6c1   : > { %v8571_v4 = vmax.f32 %v8569_v0, %v8570_v62  ;;  %v8577_v57 = vrot.slane %v8576_v7, 1  ;;  %v8547_v44 = vrot.slane %v8546_v18, 2  ;;  %v7405_v13 = vadd.f32 %v13314_v19, %v7404_v27 }
 0x6c2   : > { %v8835_v33 = vmax.f32 %v8834_v29, %v8536_v43  ;;  %v7513_v61 = vmax.f32 %v7413_v24, 0.0  ;;  %v7416_v47 = vadd.f32 %v13314_v19, %v9727_v51  ;;  %v8542_v36 = vrot.slane %v8541_v26, 1  ;;  %v7407_v51 = vpop.f32.mrf.mxu1 }
 0x6c3   : > { %v8578_v16 = vmax.f32 %v8576_v7, %v8577_v57  ;;  %v8833_v11 = vmax.f32 %v8832_v54, %v8571_v4  ;;  %v8548_v49 = vmax.f32 %v8546_v18, %v8547_v44  ;;  %v14100_v23 = vmax.f32 %v13361_v55, %v13357_v6 }
 0x6c4   : > { %v7657_v40 = vcombine.high %v7513_v61, %v7513_v61  ;;  %v8607_v35 = vsel %vm1138_vm3, %v7513_v61, -inf  ;;  %v7511_v63 = vmax.f32 %v7405_v13, 0.0  ;;  %v13410_v0 = vmul.f32 %v13390_v9, %v14074_v14 }
 0x6c5   : > { %v13403_v15 = vmax.f32 %v14100_v23, %v13296_v21  ;;  %v8543_v32 = vmax.f32 %v8541_v26, %v8542_v36  ;;  %v8549_v42 = vrot.slane %v8548_v49, 1  ;;  %v8608_v60 = vrot.slane %v8607_v35, 4  ;;  %v9786_v23 = vld [vmem:[%s13699_s5 + $0x18] sm:$0xff] }
 0x6c6   : > { %v8614_v29 = vsel %vm1138_vm3, %v7657_v40, -inf  ;;  %v7655_v6 = vcombine.high %v7511_v63, %v7511_v63  ;;  %v9030_v21 = vrot.slane %v13394_v10, 6  ;;  %v8836_v55 = vmax.f32 %v8835_v33, %v8578_v16  ;;  %v9730_v16 = vpop.f32.mrf.mxu1 }
 0x6c7   : > { %v8873_v41 = vmax.f32 %v13390_v9, %v8833_v11  ;;  %v7514_v46 = vmax.f32 %v7416_v47, 0.0  ;;  %v8550_v62 = vmax.f32 %v8548_v49, %v8549_v42  ;;  %v8609_v7 = vmax.f32 %v8607_v35, %v8608_v60 }
 0x6c8   : > { %v8615_v34 = vrot.slane %v8614_v29, 4  ;;  %v8579_v18 = vsel %vm1138_vm3, %v7511_v63, -inf  ;;  %v13417_v14 = vmul.f32 %v8833_v11, %v14075_v59  ;;  %v13420_v43 = vmax.f32 %v13322_v50, %v8543_v32 }
 0x6c9   : > { %v8580_v54 = vrot.slane %v8579_v18, 4  ;;  %v8586_v24 = vsel %vm1138_vm3, %v7655_v6, -inf  ;;  %v13424_v10 = vmax.f32 %v13327_v25, %v8550_v62  ;;  %v8610_v9 = vrot.slane %v8609_v7, 2 }
 0x6ca   : > { %14101 = vst [vmem:[#allocation18_spill] sm:$0xff] %v13417_v14  ;;  %v8616_v4 = vmax.f32 %v8614_v29, %v8615_v34  ;;  %v8587_v57 = vrot.slane %v8586_v24, 4  ;;  %v13427_v26 = vmul.f32 %v8836_v55, %v14077_v8  ;;  %v7658_v33 = vcombine.high %v7514_v46, %v7514_v46 }
 0x6cb   : > { %v8581_v44 = vmax.f32 %v8579_v18, %v8580_v54  ;;  %v8621_v59 = vsel %vm1138_vm3, %v7514_v46, -inf  ;;  %v8939_v50 = vmul.f32 %v13424_v10, %v14079_v28  ;;  %v8611_v61 = vmax.f32 %v8609_v7, %v8610_v9  ;;  %v7420_v7 = vpop.f32.mrf.mxu1 }
 0x6cc   : > { %14102 = vst [vmem:[#allocation48_spill] sm:$0xff] %v13427_v26  ;;  %v8617_v13 = vrot.slane %v8616_v4, 2  ;;  %v7408_v47 = vadd.f32 %v13314_v19, %v7407_v51  ;;  %v8588_v11 = vmax.f32 %v8586_v24, %v8587_v57  ;;  %v8622_v36 = vrot.slane %v8621_v59, 4 }
 0x6cd   : > { %v8582_v25 = vrot.slane %v8581_v44, 2  ;;  %v8628_v49 = vsel %vm1138_vm3, %v7658_v33, -inf  ;;  %v8938_v40 = vmul.f32 %v9786_v23, %v13420_v43  ;;  %v9028_v35 = vrot.slane %v8939_v50, 7 }
 0x6ce   : > { %v8612_v28 = vrot.slane %v8611_v61, 1  ;;  %v8618_v63 = vmax.f32 %v8616_v4, %v8617_v13  ;;  %v8589_v32 = vrot.slane %v8588_v11, 2  ;;  %v8623_v42 = vmax.f32 %v8621_v59, %v8622_v36 }
 0x6cf   : > { %v8629_v60 = vrot.slane %v8628_v49, 4  ;;  %v13439_v29 = vmax.f32 %v8873_v41, %v8836_v55  ;;  %v9029_v46 = vsel %vm2308_vm4, %v9028_v35, %v8938_v40  ;;  %v7512_v62 = vmax.f32 %v7408_v47, 0.0 }
 0x6d0   : > { %v8583_v18 = vmax.f32 %v8581_v44, %v8582_v25  ;;  %v8590_v51 = vmax.f32 %v8588_v11, %v8589_v32  ;;  %v8624_v54 = vrot.slane %v8623_v42, 2  ;;  %v13446_v9 = vmax.f32 %v8611_v61, %v8612_v28  ;;  %v9731_v25 = vpop.f32.mrf.mxu1 }
 0x6d1   : > { %14103 = vst [vmem:[#allocation29_spill] sm:$0xff] %v13439_v29  ;;  %v8630_v4 = vmax.f32 %v8628_v49, %v8629_v60  ;;  %v7656_v57 = vcombine.high %v7512_v62, %v7512_v62  ;;  %v13449_v55 = vsel %vm2311_vm5, %v9030_v21, %v9029_v46  ;;  %v8619_v41 = vrot.slane %v8618_v63, 1 }
 0x6d2   : > { %v8625_v33 = vmax.f32 %v8623_v42, %v8624_v54  ;;  %v8593_v59 = vsel %vm1138_vm3, %v7512_v62, -inf  ;;  %v7429_v47 = vadd.f32 %v13314_v19, %v9730_v16  ;;  %v8584_v11 = vrot.slane %v8583_v18, 1  ;;  %v7423_v27 = vpop.f32.mrf.mxu1 }
 0x6d3   : > { %v8631_v50 = vrot.slane %v8630_v4, 2  ;;  %v8594_v13 = vrot.slane %v8593_v59, 4  ;;  %v8600_v44 = vsel %vm1138_vm3, %v7656_v57, -inf  ;;  %v8591_v36 = vrot.slane %v8590_v51, 1 }
 0x6d4   : > { %v8601_v61 = vrot.slane %v8600_v44, 4  ;;  %v7421_v49 = vadd.f32 %v13314_v19, %v7420_v7  ;;  %v8626_v23 = vrot.slane %v8625_v33, 1  ;;  %v7517_v35 = vmax.f32 %v7429_v47, 0.0 }
 0x6d5   : > { %v8632_v40 = vmax.f32 %v8630_v4, %v8631_v50  ;;  %v8595_v21 = vmax.f32 %v8593_v59, %v8594_v13  ;;  %v13455_v28 = vmax.f32 %v8618_v63, %v8619_v41  ;;  %v7432_v60 = vadd.f32 %v13314_v19, %v9731_v25 }
 0x6d6   : > { %v8602_v32 = vmax.f32 %v8600_v44, %v8601_v61  ;;  %v7515_v42 = vmax.f32 %v7421_v49, 0.0  ;;  %v7661_v54 = vcombine.high %v7517_v35, %v7517_v35  ;;  %v8663_v16 = vsel %vm1138_vm3, %v7517_v35, -inf }
 0x6d7   : > { %v8633_v46 = vrot.slane %v8632_v40, 1  ;;  %v8596_v62 = vrot.slane %v8595_v21, 2  ;;  %v13459_v57 = vmax.f32 %v8583_v18, %v8584_v11  ;;  %v8664_v6 = vrot.slane %v8663_v16, 4 }
 0x6d8   : > { %v8603_v34 = vrot.slane %v8602_v32, 2  ;;  %v7659_v7 = vcombine.high %v7515_v42, %v7515_v42  ;;  %v13461_v4 = vmax.f32 %v8590_v51, %v8591_v36  ;;  %v13463_v59 = vmax.f32 %v8625_v33, %v8626_v23 }
 0x6d9   : > { %v8670_v63 = vsel %vm1138_vm3, %v7661_v54, -inf  ;;  %v8635_v41 = vsel %vm1138_vm3, %v7515_v42, -inf  ;;  %v13467_v50 = vmax.f32 %v8632_v40, %v8633_v46  ;;  %v8665_v13 = vmax.f32 %v8663_v16, %v8664_v6 }
 0x6da   : > { %v8671_v44 = vrot.slane %v8670_v63, 4  ;;  %v8636_v47 = vrot.slane %v8635_v41, 4  ;;  %v8597_v25 = vmax.f32 %v8595_v21, %v8596_v62  ;;  %v8642_v18 = vsel %vm1138_vm3, %v7659_v7, -inf }
 0x6db   : > { %v7518_v11 = vmax.f32 %v7432_v60, 0.0  ;;  %v7424_v61 = vadd.f32 %v13314_v19, %v7423_v27  ;;  %v8604_v49 = vmax.f32 %v8602_v32, %v8603_v34  ;;  %v8666_v51 = vrot.slane %v8665_v13, 2  ;;  %v9734_v60 = vpop.f32.mrf.mxu1 }
 0x6dc   : > { %v8672_v36 = vmax.f32 %v8670_v63, %v8671_v44  ;;  %v8637_v33 = vmax.f32 %v8635_v41, %v8636_v47  ;;  %v8643_v35 = vrot.slane %v8642_v18, 4  ;;  %v8598_v16 = vrot.slane %v8597_v25, 1 }
 0x6dd   : > { %v7662_v42 = vcombine.high %v7518_v11, %v7518_v11  ;;  %v8677_v40 = vsel %vm1138_vm3, %v7518_v11, -inf  ;;  %v8667_v21 = vmax.f32 %v8665_v13, %v8666_v51  ;;  %v7516_v32 = vmax.f32 %v7424_v61, 0.0  ;;  %v7436_v24 = vpop.f32.mrf.mxu1 }
 0x6de   : > { %v8673_v46 = vrot.slane %v8672_v36, 2  ;;  %v8638_v62 = vrot.slane %v8637_v33, 2  ;;  %v8644_v54 = vmax.f32 %v8642_v18, %v8643_v35  ;;  %v8678_v27 = vrot.slane %v8677_v40, 4 }
 0x6df   : > { %v8684_v34 = vsel %vm1138_vm3, %v7662_v42, -inf  ;;  %v8605_v7 = vrot.slane %v8604_v49, 1  ;;  %v7660_v1 = vcombine.high %v7516_v32, %v7516_v32  ;;  %v8649_v11 = vsel %vm1138_vm3, %v7516_v32, -inf }
 0x6e0   : > { %v8639_v63 = vmax.f32 %v8637_v33, %v8638_v62  ;;  %v8685_v41 = vrot.slane %v8684_v34, 4  ;;  %v8645_v44 = vrot.slane %v8644_v54, 2  ;;  %v8679_v47 = vmax.f32 %v8677_v40, %v8678_v27 }
 0x6e1   : > { %v8668_v8 = vrot.slane %v8667_v21, 1  ;;  %v13478_v6 = vmax.f32 %v8672_v36, %v8673_v46  ;;  %v8650_v23 = vrot.slane %v8649_v11, 4  ;;  %v8656_v61 = vsel %vm1138_vm3, %v7660_v1, -inf }
 0x6e2   : > { %v8640_v13 = vrot.slane %v8639_v63, 1  ;;  %v8686_v51 = vmax.f32 %v8684_v34, %v8685_v41  ;;  %v8646_v18 = vmax.f32 %v8644_v54, %v8645_v44  ;;  %v8680_v35 = vrot.slane %v8679_v47, 2  ;;  %v9735_v54 = vpop.f32.mrf.mxu1 }
 0x6e3   : > { %v8599_v42 = vmax.f32 %v8597_v25, %v8598_v16  ;;  %v8606_v26 = vmax.f32 %v8604_v49, %v8605_v7  ;;  %v8651_v27 = vmax.f32 %v8649_v11, %v8650_v23  ;;  %v8657_v29 = vrot.slane %v8656_v61, 4 }
 0x6e4   : > { %v8641_v33 = vmax.f32 %v8639_v63, %v8640_v13  ;;  %v8687_v62 = vrot.slane %v8686_v51, 2  ;;  %v8647_v14 = vrot.slane %v8646_v18, 1  ;;  %v8681_v40 = vmax.f32 %v8679_v47, %v8680_v35 }
 0x6e5   : > { %v13481_v32 = vmax.f32 %v8667_v21, %v8668_v8  ;;  %v8675_v36 = vrot.slane %v13478_v6, 1  ;;  %v7445_v34 = vadd.f32 %v13314_v19, %v9734_v60  ;;  %v8652_v37 = vrot.slane %v8651_v27, 2 }
 0x6e6   : > { %v8688_v46 = vmax.f32 %v8686_v51, %v8687_v62  ;;  %v8648_v41 = vmax.f32 %v8646_v18, %v8647_v14  ;;  %v8682_v44 = vrot.slane %v8681_v40, 1  ;;  %v8658_v1 = vmax.f32 %v8656_v61, %v8657_v29  ;;  %v7439_v29 = vpop.f32.mrf.mxu1 }
 0x6e7   : > { %v8843_v25 = vmax.f32 %v8599_v42, %v8641_v33  ;;  %v7521_v16 = vmax.f32 %v7445_v34, 0.0  ;;  %v7437_v7 = vadd.f32 %v13314_v19, %v7436_v24  ;;  %v8653_v23 = vmax.f32 %v8651_v27, %v8652_v37 }
 0x6e8   : > { %v8689_v49 = vrot.slane %v8688_v46, 1  ;;  %v8683_v63 = vmax.f32 %v8681_v40, %v8682_v44  ;;  %v8659_v47 = vrot.slane %v8658_v1, 2  ;;  %v7448_v8 = vadd.f32 %v13314_v19, %v9735_v54 }
 0x6e9   : > { %v8846_v21 = vmax.f32 %v8606_v26, %v8648_v41  ;;  %v7665_v11 = vcombine.high %v7521_v16, %v7521_v16  ;;  %v8719_v13 = vsel %vm1138_vm3, %v7521_v16, -inf  ;;  %v7519_v60 = vmax.f32 %v7437_v7, 0.0 }
 0x6ea   : > { %v8690_v51 = vmax.f32 %v8688_v46, %v8689_v49  ;;  %v8654_v14 = vrot.slane %v8653_v23, 1  ;;  %v8660_v18 = vmax.f32 %v8658_v1, %v8659_v47  ;;  %v8720_v35 = vrot.slane %v8719_v13, 4 }
 0x6eb   : > { %v8844_v61 = vmax.f32 %v8843_v25, %v8683_v63  ;;  %v8726_v42 = vsel %vm1138_vm3, %v7665_v11, -inf  ;;  %v7663_v33 = vcombine.high %v7519_v60, %v7519_v60  ;;  %v8691_v24 = vsel %vm1138_vm3, %v7519_v60, -inf }
 0x6ec   : > { %v8655_v37 = vmax.f32 %v8653_v23, %v8654_v14  ;;  %v8661_v62 = vrot.slane %v8660_v18, 1  ;;  %v8721_v40 = vmax.f32 %v8719_v13, %v8720_v35  ;;  %v8727_v27 = vrot.slane %v8726_v42, 4 }
 0x6ed   : > { %v8692_v26 = vrot.slane %v8691_v24, 4  ;;  %v8698_v34 = vsel %vm1138_vm3, %v7663_v33, -inf  ;;  %v7522_v54 = vmax.f32 %v7448_v8, 0.0  ;;  %v7440_v46 = vadd.f32 %v13314_v19, %v7439_v29 }
 0x6ee   : > { %v8847_v41 = vmax.f32 %v8846_v21, %v8690_v51  ;;  %v8662_v44 = vmax.f32 %v8660_v18, %v8661_v62  ;;  %v8722_v1 = vrot.slane %v8721_v40, 2  ;;  %v8728_v49 = vmax.f32 %v8726_v42, %v8727_v27 }
 0x6ef   : > { %v8693_v25 = vmax.f32 %v8691_v24, %v8692_v26  ;;  %v8699_v16 = vrot.slane %v8698_v34, 4  ;;  %v7666_v7 = vcombine.high %v7522_v54, %v7522_v54  ;;  %v8733_v63 = vsel %vm1138_vm3, %v7522_v54, -inf }
 0x6f0   : > { %v8849_v23 = vmax.f32 %v13446_v9, %v8655_v37  ;;  %v8723_v47 = vmax.f32 %v8721_v40, %v8722_v1  ;;  %v8729_v11 = vrot.slane %v8728_v49, 2  ;;  %v8734_v13 = vrot.slane %v8733_v63, 4 }
 0x6f1   : > { %v8694_v60 = vrot.slane %v8693_v25, 2  ;;  %v8700_v14 = vmax.f32 %v8698_v34, %v8699_v16  ;;  %v8740_v8 = vsel %vm1138_vm3, %v7666_v7, -inf  ;;  %v7520_v35 = vmax.f32 %v7440_v46, 0.0 }
 0x6f2   : > { %v8724_v19 = vrot.slane %v8723_v47, 1  ;;  %v8730_v21 = vmax.f32 %v8728_v49, %v8729_v11  ;;  %v8735_v51 = vmax.f32 %v8733_v63, %v8734_v13  ;;  %v8741_v18 = vrot.slane %v8740_v8, 4  ;;  %v2554_v13 = vpop.xlane.xlu0 %2553 }
 0x6f3   : > { %v8695_v29 = vmax.f32 %v8693_v25, %v8694_v60  ;;  %v8701_v42 = vrot.slane %v8700_v14, 2  ;;  %v7664_v33 = vcombine.high %v7520_v35, %v7520_v35  ;;  %v8705_v24 = vsel %vm1138_vm3, %v7520_v35, -inf }
 0x6f4   : > { %v8725_v62 = vmax.f32 %v8723_v47, %v8724_v19  ;;  %v8731_v27 = vrot.slane %v8730_v21, 1  ;;  %v8736_v9 = vrot.slane %v8735_v51, 2  ;;  %v8742_v37 = vmax.f32 %v8740_v8, %v8741_v18 }
 0x6f5   : > { %v8696_v40 = vrot.slane %v8695_v29, 1  ;;  %v8702_v26 = vmax.f32 %v8700_v14, %v8701_v42  ;;  %v8706_v54 = vrot.slane %v8705_v24, 4  ;;  %v8712_v34 = vsel %vm1138_vm3, %v7664_v33, -inf }
 0x6f6   : > { %v8852_v46 = vmax.f32 %v13455_v28, %v8662_v44  ;;  %v8732_v1 = vmax.f32 %v8730_v21, %v8731_v27  ;;  %v8737_v49 = vmax.f32 %v8735_v51, %v8736_v9  ;;  %v8743_v16 = vrot.slane %v8742_v37, 2  ;;  %v14105_v9 = vld [vmem:[#allocation10_spill] sm:$0xff] }
 0x6f7   : > { %v8697_v7 = vmax.f32 %v8695_v29, %v8696_v40  ;;  %v8703_v25 = vrot.slane %v8702_v26, 1  ;;  %v8707_v63 = vmax.f32 %v8705_v24, %v8706_v54  ;;  %v8713_v11 = vrot.slane %v8712_v34, 4 }
 0x6f8   : > { %v13498_v60 = vmax.f32 %v8844_v61, %v8725_v62  ;;  %v8848_v47 = vmax.f32 %v8847_v41, %v8732_v1  ;;  %v8738_v35 = vrot.slane %v8737_v49, 1  ;;  %v8744_v8 = vmax.f32 %v8742_v37, %v8743_v16  ;;  %v14106_v37 = vld [vmem:[#allocation5_spill] sm:$0xff]  ;;  %v14108_v1 = vld [vmem:[#allocation79_spill] sm:$0xff] }
 0x6f9   : > { %v8704_v19 = vmax.f32 %v8702_v26, %v8703_v25  ;;  %v8850_v14 = vmax.f32 %v8849_v23, %v8697_v7  ;;  %v8708_v18 = vrot.slane %v8707_v63, 2  ;;  %v8714_v42 = vmax.f32 %v8712_v34, %v8713_v11  ;;  %v14107_v34 = vld [vmem:[#allocation7_spill] sm:$0xff] }
 0x6fa   : > { %v8947_v33 = vmul.f32 %v8848_v47, %v14089_v3  ;;  %v8739_v28 = vmax.f32 %v8737_v49, %v8738_v35  ;;  %v8745_v44 = vrot.slane %v8744_v8, 1  ;;  %v2555_v21 = vrot.slane %v2554_v13, 4 }
 0x6fb   : > { %v8676_v51 = vmax.f32 %v13478_v6, %v8675_v36  ;;  %v8853_v29 = vmax.f32 %v8852_v46, %v8704_v19  ;;  %v8709_v24 = vmax.f32 %v8707_v63, %v8708_v18  ;;  %v8715_v61 = vrot.slane %v8714_v42, 2  ;;  %v14113_v19 = vld [vmem:[#allocation8_spill] sm:$0xff] }
 0x6fc   : > { %v14104_v41 = vmax.f32 %v13459_v57, %v13463_v59  ;;  %v8746_v23 = vmax.f32 %v8744_v8, %v8745_v44  ;;  %v8851_v27 = vmax.f32 %v8850_v14, %v8739_v28  ;;  %v6708_v3 = vmax.f32 %v14106_v37, %v14105_v9  ;;  %v14116_v28 = vld [vmem:[#allocation27_spill] sm:$0xff]  ;;  %v14122_v9 = vld [vmem:[#allocation14_spill] sm:$0xff]  ;;  %v14123_v37 = vld [vmem:[#allocation9_spill] sm:$0xff] }
 0x6fd   : > { %v9042_v40 = vrot.slane %v8947_v33, 7  ;;  %v8710_v26 = vrot.slane %v8709_v24, 1  ;;  %v8716_v54 = vmax.f32 %v8714_v42, %v8715_v61  ;;  %v6710_v49 = vmax.f32 %v14108_v1, %v14107_v34  ;;  %v14115_v33 = vld [vmem:[#allocation26_spill] sm:$0xff] }
 0x6fe   : > { %v8838_v62 = vmax.f32 %v14104_v41, %v13481_v32  ;;  %v8946_v6 = vmul.f32 %v13306_v31, %v13498_v60  ;;  %v8854_v36 = vmax.f32 %v8853_v29, %v8746_v23  ;;  %v2556_v46 = vadd.f32 %v2555_v21, %v2554_v13  ;;  %v14118_v21 = vld [vmem:[#allocation35_spill] sm:$0xff] }
 0x6ff   : > { %v13515_v16 = vmax.f32 %v6708_v3, %v12498_v30  ;;  %v8877_v57 = vmax.f32 %v8848_v47, %v8851_v27  ;;  %v8711_v59 = vmax.f32 %v8709_v24, %v8710_v26  ;;  %v8717_v32 = vrot.slane %v8716_v54, 1  ;;  %v14125_v26 = vld [vmem:[#allocation43_spill] sm:$0xff] }
 0x700   : > { %v6711_v7 = vmax.f32 %v6710_v49, %v12489_v58  ;;  %v14109_v25 = vmax.f32 %v13420_v43, %v13424_v10  ;;  %v14110_v11 = vrot.slane %v13410_v0, 5  ;;  %v14111_v30 = vmax.f32 %v13461_v4, %v13467_v50 }
 0x701   : > { %v6712_v47 = vmax.f32 %v12848_v17, %v13116_v22  ;;  %v13536_v58 = vsel %vm2308_vm4, %v9042_v40, %v8946_v6  ;;  %v8718_v35 = vmax.f32 %v8716_v54, %v8717_v32  ;;  %v8839_v43 = vmax.f32 %v8838_v62, %v8711_v59  ;;  %v9787_v22 = vld [vmem:[%s13698_s4] sm:$0xf]  ;;  %v14121_v62 = vld [vmem:[#allocation13_spill] sm:$0xff]  ;;  %v14127_v6 = vld [vmem:[#allocation28_spill] sm:$0xff] }
 0x702   : > { %v13522_v63 = vmax.f32 %v14109_v25, %v13387_v56  ;;  %v13528_v31 = vsel %vm2314_vm6, %v14110_v11, %v13449_v55  ;;  %v8841_v13 = vmax.f32 %v14111_v30, %v8676_v51  ;;  %v14112_v56 = vld [vmem:[#allocation44_spill] sm:$0xff]  ;;  %v13541_v0 = vmul.f32 %v8851_v27, %v14093_v12  ;;  %v14114_v12 = vld [vmem:[#allocation11_spill] sm:$0xff]  ;;  %v14129_v32 = vld [vmem:[#allocation21_spill] sm:$0xff] }
 0x703   : > { %v6714_v10 = vmax.f32 %v14112_v56, %v13089_v45  ;;  %v2557_v55 = vrot.slane %v2556_v46, 2  ;;  %v6713_v8 = vmax.f32 %v6712_v47, %v13403_v15  ;;  %v6721_v4 = vmul.f32 %v6711_v7, %v14113_v19  ;;  %v14119_v51 = vld [vmem:[#allocation16_spill] sm:$0xff] }
 0x704   : > { %v8878_v50 = vmax.f32 %v8877_v57, %v8854_v36  ;;  %v8842_v14 = vmax.f32 %v8841_v13, %v8718_v35  ;;  %v6720_v18 = vmul.f32 %v9787_v22, %v13515_v16  ;;  %v13551_v45 = vmul.f32 %v8854_v36, %v14095_v53  ;;  %v14132_v13 = vld [vmem:[#allocation70_spill] sm:$0xff] }
 0x705   : > { %v6715_v17 = vmax.f32 %v6714_v10, %v13365_v2  ;;  %v6722_v42 = vmul.f32 %v6713_v8, %v14114_v12  ;;  %v14117_v15 = vrot.slane %v14116_v28, 2  ;;  %v14120_v29 = vrot.slane %v14119_v51, 3  ;;  %v14139_v28 = vld [vmem:[#allocation32_spill] sm:$0xff] }
 0x706   : > { %v8875_v24 = vmax.f32 %v8839_v43, %v8842_v14  ;;  %v13563_v61 = vmul.f32 %v8839_v43, %v14097_v20  ;;  %v6716_v41 = vmax.f32 %v13515_v16, %v6711_v7  ;;  %v6728_v53 = vrot.slane %v6721_v4, 7  ;;  %v14134_v43 = vld [vmem:[#allocation24_spill] sm:$0xff]  ;;  %v4725_v4 = vpop.xlane.xlu1 %4724 }
 0x707   : > { %v6840_v44 = vsel %vm2482_vm9, %v14117_v15, %v14115_v33  ;;  %v6852_v2 = vsel %vm2479_vm8, %v14120_v29, %v14118_v21  ;;  %v6723_v23 = vmul.f32 %v6715_v17, %v14121_v62  ;;  %v6730_v27 = vrot.slane %v6722_v42, 6 }
 0x708   : > { %v14124_v3 = vrot.slane %v14123_v37, 1  ;;  %v14126_v54 = vrot.slane %v14125_v26, 1  ;;  %v13575_v1 = vmul.f32 %v8842_v14, %v14098_v52  ;;  %v6717_v20 = vmax.f32 %v6713_v8, %v6715_v17 }
 0x709   : > { %v6729_v49 = vsel %vm2308_vm4, %v6728_v53, %v6720_v18  ;;  %v14128_v36 = vrot.slane %v14127_v6, 2  ;;  %v6732_v59 = vrot.slane %v6723_v23, 5  ;;  %v14130_v7 = vrot.slane %v14129_v32, 1  ;;  %v14148_v6 = vld [vmem:[#allocation54_spill] sm:$0xff] }
 0x70a   : > { %v6828_v40 = vsel %vm2485_vm10, %v14124_v3, %v14122_v9  ;;  %v6842_v34 = vsel %vm2485_vm10, %v14126_v54, %v6840_v44  ;;  %v6731_v57 = vsel %vm2311_vm5, %v6730_v27, %v6729_v49  ;;  %v14131_v11 = vrot.slane %v13077_v39, 4  ;;  %v14143_v27 = vld [vmem:[#allocation42_spill] sm:$0xff]  ;;  %v14144_v9 = vld [vmem:[#allocation12_spill] sm:$0xff]  ;;  %v14146_v3 = vld [vmem:[#allocation29_spill] sm:$0xff] }
 0x70b   : > { %v6854_v16 = vsel %vm2482_vm9, %v14128_v36, %v6852_v2  ;;  %v8876_v30 = vmax.f32 %v8875_v24, %v13498_v60  ;;  %v14133_v47 = vrot.slane %v14132_v13, 3  ;;  %v14135_v56 = vrot.slane %v14134_v43, 6  ;;  %v14142_v24 = vld [vmem:[#allocation6_spill] sm:$0xff] }
 0x70c   : > { %v6856_v25 = vsel %vm2485_vm10, %v14130_v7, %v6854_v16  ;;  %v6864_v52 = vsel %vm2476_vm7, %v14131_v11, %v13142_v38  ;;  %v6882_v8 = vadd.f32 %v6842_v34, %v6828_v40  ;;  %v6733_v14 = vsel %vm2314_vm6, %v6732_v59, %v6731_v57  ;;  %v14137_v38 = vld [vmem:[#allocation25_spill] sm:$0xff]  ;;  %v14147_v40 = vld [vmem:[#allocation71_spill] sm:$0xff] }
 0x70d   : > { %v6866_v35 = vsel %vm2479_vm8, %v14133_v47, %v6864_v52  ;;  %v6874_v10 = vsel %vm2311_vm5, %v14135_v56, %v13339_v5  ;;  %v14136_v17 = vrot.slane %v13373_v48, 2  ;;  %v14138_v18 = vrot.slane %v14137_v38, 5  ;;  %v14141_v48 = vld [vmem:[#allocation4_spill] sm:$0xff]  ;;  %v14149_v57 = vld [vmem:[#allocation57_spill] sm:$0xff] }
 0x70e   : > { %v2558_v42 = vadd.f32 %v2557_v55, %v2556_v46  ;;  %v6735_v33 = vsel %vm1138_vm3, %v6733_v14, 0.0  ;;  %v14140_v15 = vrot.slane %v14139_v28, 1  ;;  %v6883_v5 = vadd.f32 %v6882_v8, %v6856_v25  ;;  %v14145_v46 = vld [vmem:[#allocation73_spill] sm:$0xff] }
 0x70f   : > { %v6868_v39 = vsel %vm2482_vm9, %v14136_v17, %v6866_v35  ;;  %v6876_v60 = vsel %vm2314_vm6, %v14138_v18, %v6874_v10  ;;  %v6736_v51 = vrot.slane %v6735_v33, 4  ;;  %v4726_v2 = vrot.slane %v4725_v4, 4  ;;  %v14151_v10 = vld [vmem:[#allocation22_spill] sm:$0xff]  ;;  %v14153_v17 = vld [vmem:[#allocation23_spill] sm:$0xff] }
 0x710   : > { %v6870_v44 = vsel %vm2485_vm10, %v14140_v15, %v6868_v39  ;;  %v6885_v21 = vsel %vm1138_vm3, %v6876_v60, 0.0  ;;  %v2559_v29 = vrot.slane %v2558_v42, 1  ;;  %v8879_v53 = vmax.f32 %v14142_v24, %v14141_v48 }
 0x711   : > { %v6884_v23 = vadd.f32 %v6883_v5, %v6870_v44  ;;  %v8881_v37 = vmax.f32 %v14144_v9, %v14143_v27  ;;  %v8883_v55 = vmax.f32 %v14145_v46, %v13522_v63  ;;  %v8885_v26 = vmax.f32 %v14147_v40, %v14146_v3  ;;  %v14158_v5 = vld [vmem:[#allocation40_spill] sm:$0xff]  ;;  %v14163_v27 = vld [vmem:[#allocation3_spill] sm:$0xff] }
 0x712   : > { %v6718_v54 = vmax.f32 %v6716_v41, %v6717_v20  ;;  %v6737_v34 = vadd.f32 %v6736_v51, %v6735_v33  ;;  %v2560_v49 = vadd.f32 %v2559_v29, %v2558_v42  ;;  %v13618_v36 = vmax.f32 %v8879_v53, %v14148_v6  ;;  %v14156_v42 = vld [vmem:[#allocation56_spill] sm:$0xff]  ;;  %v14160_v29 = vld [vmem:[#allocation18_spill] sm:$0xff] }
 0x713   : > { %v6886_v16 = vadd.f32 %v6885_v21, %v6884_v23  ;;  %v13621_v59 = vmax.f32 %v8881_v37, %v14149_v57  ;;  %v13623_v32 = vmax.f32 %v8883_v55, %v8876_v30  ;;  %v13625_v7 = vmax.f32 %v8885_v26, %v8878_v50  ;;  %v14162_v23 = vld [vmem:[#allocation15_spill] sm:$0xff]  ;;  %v14165_v46 = vld [vmem:[#allocation48_spill] sm:$0xff] }
 0x714   : > { %v9044_v25 = vrot.slane %v13541_v0, 6  ;;  %v9046_v63 = vrot.slane %v13551_v45, 5  ;;  %v6738_v11 = vrot.slane %v6737_v34, 2  ;;  %9737 = vpush %v2560_v49  ;;  %v4727_v41 = vadd.f32 %v4726_v2, %v4725_v4  ;;  %v9788_v45 = vld [vmem:[%s13697_s3] sm:$0x1]  ;;  %v14167_v26 = vld [vmem:[#allocation72_spill] sm:$0xff] }
 0x715   : > { %v9038_v20 = vrot.slane %v13563_v61, 2  ;;  %v6887_v52 = vrot.slane %v6886_v16, 4  ;;  %v8891_v13 = vmul.f32 %v9787_v22, %v13618_v36  ;;  %v8892_v47 = vmul.f32 %v13621_v59, %v14113_v19  ;;  %v14150_v22 = vld [vmem:[#allocation67_spill] sm:$0xff] }
 0x716   : > { %v9040_v30 = vrot.slane %v13575_v1, 1  ;;  %v6739_v35 = vadd.f32 %v6738_v11, %v6737_v34  ;;  %v8893_v50 = vmul.f32 %v13623_v32, %v14114_v12  ;;  %v8894_v0 = vmul.f32 %v13625_v7, %v14121_v62  ;;  %v14154_v12 = vld [vmem:[#allocation41_spill] sm:$0xff] }
 0x717   : > { %v6719_v61 = vmul.f32 %v9788_v45, %v6718_v54  ;;  %v6888_v43 = vadd.f32 %v6887_v52, %v6886_v16  ;;  %v8899_v56 = vrot.slane %v8892_v47, 7  ;;  %v14152_v8 = vrot.slane %v14151_v10, 2 }
 0x718   : > { %v6740_v1 = vrot.slane %v6739_v35, 1  ;;  %v4728_v4 = vrot.slane %v4727_v41, 2  ;;  %v8901_v14 = vrot.slane %v8893_v50, 6  ;;  %v14155_v39 = vrot.slane %v14154_v12, 3 }
 0x719   : > { %v9011_v19 = vsel %vm2482_vm9, %v14152_v8, %v14150_v22  ;;  %v6889_v38 = vrot.slane %v6888_v43, 2  ;;  %v8900_v18 = vsel %vm2308_vm4, %v8899_v56, %v8891_v13  ;;  %v8903_v60 = vrot.slane %v8894_v0, 5 }
 0x71a   : > { %v9023_v62 = vsel %vm2479_vm8, %v14155_v39, %v14153_v17  ;;  %v14157_v33 = vrot.slane %v14156_v42, 2  ;;  %v6741_v15 = vadd.f32 %v6740_v1, %v6739_v35  ;;  %v8902_v44 = vsel %vm2311_vm5, %v8901_v14, %v8900_v18 }
 0x71b   : > { %v14159_v21 = vrot.slane %v14158_v5, 1  ;;  %v14161_v2 = vrot.slane %v14160_v29, 4  ;;  %v6890_v24 = vadd.f32 %v6889_v38, %v6888_v43  ;;  %v8904_v53 = vsel %vm2314_vm6, %v8903_v60, %v8902_v44 }
 0x71c   : > { %v9025_v28 = vsel %vm2482_vm9, %v14157_v33, %v9023_v62  ;;  %v14164_v9 = vrot.slane %v14163_v27, 1  ;;  %v14166_v55 = vrot.slane %v14165_v46, 3  ;;  %v8906_v40 = vsel %vm1138_vm3, %v8904_v53, 0.0 }
 0x71d   : > { %v9013_v51 = vsel %vm2485_vm10, %v14159_v21, %v9011_v19  ;;  %v9035_v48 = vsel %vm2476_vm7, %v14161_v2, %v13528_v31  ;;  %v14168_v54 = vrot.slane %v14167_v26, 1  ;;  %v9045_v49 = vsel %vm2311_vm5, %v9044_v25, %v13536_v58 }
 0x71e   : > { %v8999_v37 = vsel %vm2485_vm10, %v14164_v9, %v14162_v23  ;;  %v9037_v3 = vsel %vm2479_vm8, %v14166_v55, %v9035_v48  ;;  %v6742_v6 = vadd.f32 %v6741_v15, %v6719_v61  ;;  %v6891_v16 = vrot.slane %v6890_v24, 1 }
 0x71f   : > { %v9027_v34 = vsel %vm2485_vm10, %v14168_v54, %v9025_v28  ;;  %v9039_v31 = vsel %vm2482_vm9, %v9038_v20, %v9037_v3  ;;  %v8907_v57 = vrot.slane %v8906_v40, 4  ;;  %v9053_v11 = vadd.f32 %v9013_v51, %v8999_v37 }
 0x720   : > { %v9041_v52 = vsel %vm2485_vm10, %v9040_v30, %v9039_v31  ;;  %v4729_v13 = vadd.f32 %v4728_v4, %v4727_v41  ;;  %v6892_v47 = vadd.f32 %v6891_v16, %v6890_v24  ;;  %v9047_v50 = vsel %vm2314_vm6, %v9046_v63, %v9045_v49 }
 0x721   : > { %v8908_v35 = vadd.f32 %v8907_v57, %v8906_v40  ;;  %v9054_v0 = vadd.f32 %v9053_v11, %v9027_v34  ;;  %v9056_v20 = vsel %vm1138_vm3, %v9047_v50, 0.0  ;;  %v8888_v25 = vmax.f32 %v13623_v32, %v13625_v7 }
 0x722   : > { %v4730_v43 = vrot.slane %v4729_v13, 1  ;;  %v6893_v56 = vadd.f32 %v6892_v47, %v6742_v6  ;;  %v8887_v63 = vmax.f32 %v13618_v36, %v13621_v59  ;;  %v14169_v48 = vlaneseq }
 0x723   : > { %v8909_v22 = vrot.slane %v8908_v35, 2  ;;  %v9055_v10 = vadd.f32 %v9054_v0, %v9041_v52 }
 0x724   : > { %v4731_v8 = vadd.f32 %v4730_v43, %v4729_v13  ;;  %v6894_v58 = vsel %vm522_vm0, %v6893_v56, 0.0  ;;  %v8889_v1 = vmax.f32 %v8887_v63, %v8888_v25  ;;  %v293_v24 = vand.u32 127, %v14169_v48 }
 0x725   : > { %v8910_v61 = vadd.f32 %v8909_v22, %v8908_v35  ;;  %v9057_v30 = vadd.f32 %v9056_v20, %v9055_v10  ;;  %6895 = vadd.xlane.f32.xlu0 %v6894_v58 }
 0x726   : > { %9739 = vpush %v4731_v8  ;;  %v8890_v12 = vmul.f32 %v9788_v45, %v8889_v1  ;;  %vm2563_vm11 = vcmp.eq.s32.totalorder %v293_v24, 0  ;;  %vm4734_vm12 = vcmp.eq.s32.totalorder %v293_v24, 1  ;;  %vm6905_vm13 = vcmp.eq.s32.totalorder %v293_v24, 2 }
 0x727   : > { %v8911_v41 = vrot.slane %v8910_v61, 1  ;;  %v9058_v19 = vrot.slane %v9057_v30, 4  ;;  %vm9076_vm14 = vcmp.eq.s32.totalorder %v293_v24, 3 }
 0x729   : > { %v9059_v4 = vadd.f32 %v9058_v19, %v9057_v30  ;;  %v8912_v14 = vadd.f32 %v8911_v41, %v8910_v61 }
 0x72b   : > { %v9060_v17 = vrot.slane %v9059_v4, 2  ;;  %v8913_v62 = vadd.f32 %v8912_v14, %v8890_v12 }
 0x72d   : > { %v9061_v39 = vadd.f32 %v9060_v17, %v9059_v4 }
 0x72f   : > { %v9062_v38 = vrot.slane %v9061_v39, 1 }
 0x731   : > { %v9063_v18 = vadd.f32 %v9062_v38, %v9061_v39 }
 0x733   : > { %v9064_v60 = vadd.f32 %v9063_v18, %v8913_v62 }
 0x735   : > { %v9065_v32 = vsel %vm522_vm0, %v9064_v60, 0.0 }
 0x736   : > { %9066 = vadd.xlane.f32.xlu1 %v9065_v32 }
 0x745   : > { %s9738_s20 = spop %9737 }
 0x746   : > { %s2562_s23 = sadd.f32 %s9738_s20, %s291_s19 }
 0x748   : > { %v2564_v53 = vstv %s2562_s23 }
 0x749   : > { %v2565_v9 = vsel %vm2563_vm11, %v2564_v53, 0.0 }
 0x757   : > { %s9740_s21 = spop %9739 }
 0x758   : > { %s4733_s24 = sadd.f32 %s9740_s21, %s291_s19 }
 0x75a   : > { %v4735_v23 = vstv %s4733_s24 }
 0x75b   : > { %v4736_v37 = vsel %vm4734_vm12, %v4735_v23, %v2565_v9 }
 0x7ae   : > { %v6896_v7 = vpop.xlane.xlu0 %6895 }
 0x7af   : > { %v6897_v42 = vrot.slane %v6896_v7, 4 }
 0x7b1   : > { %v6898_v33 = vadd.f32 %v6897_v42, %v6896_v7 }
 0x7b3   : > { %v6899_v28 = vrot.slane %v6898_v33, 2 }
 0x7b5   : > { %v6900_v36 = vadd.f32 %v6899_v28, %v6898_v33 }
 0x7b7   : > { %v6901_v59 = vrot.slane %v6900_v36, 1 }
 0x7b9   : > { %v6902_v15 = vadd.f32 %v6901_v59, %v6900_v36 }
 0x7bb   : > { %9741 = vpush %v6902_v15 }
 0x7bf   : > { %v9067_v44 = vpop.xlane.xlu1 %9066 }
 0x7c0   : > { %v9068_v5 = vrot.slane %v9067_v44, 4 }
 0x7c2   : > { %v9069_v45 = vadd.f32 %v9068_v5, %v9067_v44 }
 0x7c4   : > { %v9070_v21 = vrot.slane %v9069_v45, 2 }
 0x7c6   : > { %v9071_v51 = vadd.f32 %v9070_v21, %v9069_v45 }
 0x7c8   : > { %v9072_v29 = vrot.slane %v9071_v51, 1 }
 0x7ca   : > { %v9073_v2 = vadd.f32 %v9072_v29, %v9071_v51 }
 0x7cc   : > { %9743 = vpush %v9073_v2 }
 0x7ec   : > { %s9742_s22 = spop %9741 }
 0x7ed   : > { %s6904_s25 = sadd.f32 %s9742_s22, %s291_s19 }
 0x7ef   : > { %v6906_v27 = vstv %s6904_s25 }
 0x7f0   : > { %v6907_v46 = vsel %vm6905_vm13, %v6906_v27, %v4736_v37 }
 0x7fd   : > { %s9744_s28 = spop %9743 }
 0x7fe   : > { %s9075_s6 = sadd.f32 %s9744_s28, %s291_s19 }
 0x800   : > { %v9077_v55 = vstv %s9075_s6 }
 0x801   : > { %v9078_v3 = vsel %vm9076_vm14, %v9077_v55, %v6907_v46 }
 0x802   : > { %9080 = vst.msk [vmem:[%s280_s8] sm:$0x1] %vm9079_vm15, %v9078_v3 }
 0x803 PF: > { %s18_s26 = sadd.s32 1, %s9795_s26  }
 0x804   : > { %p15_p5 = scmp.ge.s32.totalorder %s18_s26, 4  }
 0x806   :  { %17 = sbr.rel (!%p15_p5) target bundleno = 2 (0x2), region = 81 }

</bundles_post_ra>
